<compile_context>
chip_gen: v6e
topology: v6e:2x2x1
jax: 0.10.0
libtpu: 0.0.40
codegen_flags: <defaults>
</compile_context>

<pallas_src>
import functools
import math

import jax
import jax.numpy as jnp
from jax import lax
from jax.experimental import pallas as pl
from jax.experimental.pallas import tpu as pltpu


# DeepSpeech2-style extractor wrapped by MaskCNN: each Conv2d fused with the Hardtanh
# that follows it (the re-mask after Hardtanh is redundant because clip(0, 0, 20)==0).
LAYER1 = dict(in_ch=1, out_ch=4, kh=3, kw=3, sh=2, sw=2, ph=1, pw=1, act=(0.0, 20.0))
LAYER2 = dict(in_ch=4, out_ch=8, kh=3, kw=3, sh=1, sw=1, ph=1, pw=1, act=(0.0, 20.0))
FUSED_LAYERS = (LAYER1, LAYER2)


# ----------------------------- Pallas kernel ------------------------------ #

def _fused_extractor_kernel(sl1_ref, sl2_ref, x_ref, w1_ref, b1_ref, w2_ref, b2_ref,
                            o_ref, *,
                            c1_in, c1_out, kh1, kw1, sh1, sw1,
                            c2_out, kh2, kw2,
                            h1, h2, w_tile, eh, ew, act1, act2):
    """One (batch, time-tile) step: conv1+ht+mask -> conv2+ht+mask, all in VMEM/vregs."""
    b = pl.program_id(0)
    j = pl.program_id(1)
    col0 = j * w_tile                   # first real output column of this tile
    sl1 = sl1_ref[b]                    # masked length after layer 1
    sl2 = sl2_ref[b]                    # masked length after layer 2

    h1e = h1 + 2 * eh                   # layer-1 rows computed: [-eh, h1 + eh)
    w1e = w_tile + 2 * ew               # layer-1 cols computed: [col0 - ew, col0 + w_tile + ew)

    # Validity of the expanded layer-1 tile.  Zeroing rows/cols outside [0, h1) x
    # [0, sl1) reproduces, in one select, (a) layer-2's zero padding and (b) the
    # seq-len mask the reference applies between the two convs (sl1 <= w1 always).
    row1 = lax.broadcasted_iota(jnp.int32, (h1e, w1e), 0) - eh
    colg1 = col0 - ew + lax.broadcasted_iota(jnp.int32, (h1e, w1e), 1)
    keep1 = (row1 >= 0) & (row1 < h1) & (colg1 >= 0) & (colg1 < sl1)

    # ---- Layer 1: conv (stride sh1 x sw1) + bias + Hardtanh + mask on the halo tile.
    # Taps are static stride-1 slices of the phase-split (space-to-depth) input; bias
    # is folded into the accumulator init.
    acc1 = [jnp.full((h1e, w1e), b1_ref[co], jnp.float32) for co in range(c1_out)]
    for ci in range(c1_in):
        for ki in range(kh1):
            for kj in range(kw1):
                phase = ((ki % sh1) * sw1 + (kj % sw1)) * c1_in + ci
                tap = x_ref[0, phase,
                            pl.ds(ki // sh1, h1e),
                            pl.ds(kj // sw1, w1e)]
                for co in range(c1_out):
                    wv = w1_ref[((co * c1_in + ci) * kh1 + ki) * kw1 + kj]
                    acc1[co] = acc1[co] + wv * tap
    inter = []
    for co in range(c1_out):
        y = acc1[co]
        if act1 is not None:
            y = jnp.clip(y, act1[0], act1[1])       # fused Hardtanh
        inter.append(jnp.where(keep1, y, 0.0))      # mask (also realises conv2 zero pad)

    # ---- Layer 2 (stride 1, "same"): consumes the vreg/VMEM-resident intermediate.
    keep2 = (col0 + lax.broadcasted_iota(jnp.int32, (h2, w_tile), 1)) < sl2
    acc2 = [jnp.full((h2, w_tile), b2_ref[co], jnp.float32) for co in range(c2_out)]
    for ci in range(c1_out):
        for ki in range(kh2):
            for kj in range(kw2):
                tap = inter[ci][ki:ki + h2, kj:kj + w_tile]     # static slice
                for co in range(c2_out):
                    wv = w2_ref[((co * c1_out + ci) * kh2 + ki) * kw2 + kj]
                    acc2[co] = acc2[co] + wv * tap
    for co in range(c2_out):
        y = acc2[co]
        if act2 is not None:
            y = jnp.clip(y, act2[0], act2[1])
        # Lane-dense (w_tile % 128 == 0) unmasked store.
        o_ref[0, co] = jnp.where(keep2, y, 0.0).astype(o_ref.dtype)


# ------------------------------- JAX glue --------------------------------- #

def _conv_out_len(n, k, s, p):
    return (n + 2 * p - k) // s + 1


def mask_cnn_forward(x_nchw, seq_lengths, params, *, w_tile=128):
    """Equivalent of MaskCNN.forward(inputs, seq_lengths) -> (output NCHW, seq_lengths)."""
    (w1, b1), (w2, b2) = params
    L1, L2 = FUSED_LAYERS
    B, c_in, H, W = x_nchw.shape
    kh1, kw1, sh1, sw1, ph1, pw1 = (L1[k] for k in ("kh", "kw", "sh", "sw", "ph", "pw"))
    kh2, kw2, ph2, pw2 = (L2[k] for k in ("kh", "kw", "ph", "pw"))
    c1_out, c2_out = L1["out_ch"], L2["out_ch"]

    assert c_in == L1["in_ch"] and L2["in_ch"] == c1_out
    assert w1.shape == (c1_out, c_in, kh1, kw1) and w2.shape == (c2_out, c1_out, kh2, kw2)
    # The fusion assumes a stride-1 "same" second conv (true for this extractor).
    assert L2["sh"] == 1 and L2["sw"] == 1 and kh2 == 2 * ph2 + 1 and kw2 == 2 * pw2 + 1
    assert w_tile % 128 == 0, "output time tile must be lane-dense (multiple of 128)"

    h1 = _conv_out_len(H, kh1, sh1, ph1)
    w1_out = _conv_out_len(W, kw1, sw1, pw1)
    h2 = _conv_out_len(h1, kh2, 1, ph2)
    w2_out = _conv_out_len(w1_out, kw2, 1, pw2)
    assert h2 == h1 and w2_out == w1_out

    # MaskCNN.get_seq_lengths after each Conv2d (dilation = 1).
    sl = seq_lengths.astype(jnp.int32)
    sl1 = (sl + 2 * pw1 - (kw1 - 1) - 1) // sw1 + 1
    sl2 = (sl1 + 2 * pw2 - (kw2 - 1) - 1) // 1 + 1

    # Time tiling of the FINAL output, padded to a multiple of w_tile (lane-dense
    # stores); padded columns are zeroed by the seq-len mask (sl2 <= w2_out).
    eh, ew = ph2, pw2                       # layer-2 halo on the intermediate
    n_w = -(-w2_out // w_tile)
    w2_pad = n_w * w_tile

    # Single merged pad of the raw input covering conv-1 padding, the layer-2 halo,
    # the lane padding of the time axis and the space-to-depth rounding.
    top = ph1 + sh1 * eh
    left = pw1 + sw1 * ew
    hq = max(h1 + 2 * eh + (kh1 - 1) // sh1, -(-(H + top) // sh1))
    wq = max(w2_pad + 2 * ew + (kw1 - 1) // sw1, -(-(W + left) // sw1))
    bottom = sh1 * hq - (H + top)
    right = sw1 * wq - (W + left)
    assert bottom >= 0 and right >= 0

    x_ext = jnp.pad(x_nchw.astype(jnp.float32),
                    ((0, 0), (0, 0), (top, bottom), (left, right)))
    # Space-to-depth by the conv-1 stride so every kernel tap is a stride-1 slice.
    x_ph = x_ext.reshape(B, c_in, hq, sh1, wq, sw1)
    x_ph = jnp.transpose(x_ph, (0, 3, 5, 1, 2, 4)).reshape(B, sh1 * sw1 * c_in, hq, wq)
    n_phase_ch = sh1 * sw1 * c_in

    # Per-tile overlapping windows (conv halo, ~2% duplication at w_tile=128) carved
    # out of the SMALL phase-split raw input, so all in-kernel tap slices are static
    # and every grid step DMAs exactly its window.
    # TODO(synk): a manual-DMA (pl.ANY + make_async_copy) variant could avoid even
    # this duplicated copy for very long utterances.
    wq_tile = w_tile + 2 * ew + (kw1 - 1) // sw1
    # Static OOB guards: pl.ds tap slices in the kernel have no runtime bounds check.
    assert hq >= (h1 + 2 * eh) + (kh1 - 1) // sh1
    assert wq >= (n_w - 1) * w_tile + wq_tile
    col_idx = jnp.arange(n_w)[:, None] * w_tile + jnp.arange(wq_tile)[None, :]
    x_tiles = jnp.take(x_ph, col_idx, axis=3)           # (B, P, hq, n_w, wq_tile)
    x_tiles = jnp.transpose(x_tiles, (0, 3, 1, 2, 4))   # (B, n_w, P, hq, wq_tile)
    x_tiles = x_tiles.reshape(B * n_w, n_phase_ch, hq, wq_tile)

    w1_flat = w1.astype(jnp.float32).reshape(-1)        # -> SMEM scalars
    b1_flat = b1.astype(jnp.float32).reshape(-1)
    w2_flat = w2.astype(jnp.float32).reshape(-1)
    b2_flat = b2.astype(jnp.float32).reshape(-1)

    kernel = functools.partial(
        _fused_extractor_kernel,
        c1_in=c_in, c1_out=c1_out, kh1=kh1, kw1=kw1, sh1=sh1, sw1=sw1,
        c2_out=c2_out, kh2=kh2, kw2=kw2,
        h1=h1, h2=h2, w_tile=w_tile, eh=eh, ew=ew,
        act1=L1["act"], act2=L2["act"])

    # VMEM budget derived from the (double-buffered) block sizes, capped so it is
    # safe on every generation (v7x has only 64 MiB physical VMEM).
    in_block = n_phase_ch * hq * wq_tile * 4
    out_block = c2_out * h2 * w_tile * 4
    vmem_limit = int(min(32 * 1024 * 1024,
                         max(4 * 1024 * 1024, 8 * (in_block + out_block))))

    out_padded = pl.pallas_call(
        kernel,
        out_shape=jax.ShapeDtypeStruct((B, c2_out, h2, w2_pad), jnp.float32),
        grid_spec=pltpu.PrefetchScalarGridSpec(
            num_scalar_prefetch=2,                      # sl1, sl2 -> SMEM
            grid=(B, n_w),
            in_specs=[
                pl.BlockSpec((1, n_phase_ch, hq, wq_tile),
                             lambda b, j, s1, s2: (b * n_w + j, 0, 0, 0)),
                pl.BlockSpec(memory_space=pltpu.MemorySpace.SMEM),   # w1 scalars
                pl.BlockSpec(memory_space=pltpu.MemorySpace.SMEM),   # b1 scalars
                pl.BlockSpec(memory_space=pltpu.MemorySpace.SMEM),   # w2 scalars
                pl.BlockSpec(memory_space=pltpu.MemorySpace.SMEM),   # b2 scalars
            ],
            out_specs=pl.BlockSpec((1, c2_out, h2, w_tile),
                                   lambda b, j, s1, s2: (b, 0, 0, j)),
        ),
        compiler_params=pltpu.CompilerParams(
            dimension_semantics=("parallel", "parallel"),   # keep both v7x TCs busy
            vmem_limit_bytes=vmem_limit),
    )(sl1, sl2, x_tiles, w1_flat, b1_flat, w2_flat, b2_flat)

    # Match the module's exact output shape; callers that track the true lengths can
    # keep the lane-padded tensor directly (columns >= sl2 are already zero).
    return out_padded[..., :w2_out], sl2


def init_params(key):
    params = []
    for layer in FUSED_LAYERS:
        key, kw_, kb_ = jax.random.split(key, 3)
        fan_in = layer["in_ch"] * layer["kh"] * layer["kw"]
        bound = 1.0 / math.sqrt(fan_in)
        w = jax.random.uniform(kw_, (layer["out_ch"], layer["in_ch"],
                                     layer["kh"], layer["kw"]),
                               jnp.float32, -bound, bound)
        b = jax.random.uniform(kb_, (layer["out_ch"],), jnp.float32, -bound, bound)
        params.append((w, b))
    return params


def reference_forward(x_nchw, seq_lengths, params):
    """Pure-JAX reference replicating the UNFUSED MaskCNN module-by-module semantics."""
    out = x_nchw.astype(jnp.float32)
    sl = seq_lengths.astype(jnp.int32)

    def mask(t, s):
        S = t.shape[3]
        keep = jnp.arange(S, dtype=jnp.int32)[None, None, None, :] < s[:, None, None, None]
        return jnp.where(keep, t, 0.0)

    for layer, (w, b) in zip(FUSED_LAYERS, params):
        out = lax.conv_general_dilated(
            out, w, (layer["sh"], layer["sw"]),
            ((layer["ph"], layer["ph"]), (layer["pw"], layer["pw"])),
            dimension_numbers=("NCHW", "OIHW", "NCHW"),
            precision=lax.Precision.HIGHEST)
        out = out + b[None, :, None, None]
        sl = (sl + 2 * layer["pw"] - (layer["kw"] - 1) - 1) // layer["sw"] + 1
        out = mask(out, sl)                       # mask after the Conv2d module
        if layer["act"] is not None:
            out = jnp.clip(out, *layer["act"])
            out = mask(out, sl)                   # mask after the Hardtanh module
    return out, sl


if __name__ == "__main__":
    B, C, H, S = 2, 1, 16, 16
    key = jax.random.PRNGKey(0)
    key, kx = jax.random.split(key)
    x = jax.random.normal(kx, (B, C, H, S), jnp.float32)      # NCHW like PyTorch
    seq_lengths = jnp.array([16, 11], dtype=jnp.int32)
    params = init_params(key)

    out, out_sl = mask_cnn_forward(x, seq_lengths, params)
    out = jax.block_until_ready(out)
    out_sl = jax.block_until_ready(out_sl)

    ref_out, ref_sl = reference_forward(x, seq_lengths, params)
    assert out.shape == ref_out.shape, (out.shape, ref_out.shape)
    assert jnp.array_equal(out_sl, ref_sl), (out_sl, ref_sl)
    max_err = float(jnp.abs(out - ref_out).max())
    assert max_err < 1e-3, max_err

    print("KERNEL_OK")
</pallas_src>

<mosaic_0001>
module attributes {stable_mosaic.version = 11 : i64} {
  func.func @_fused_extractor_kernel(%arg0: i32, %arg1: i32, %arg2: memref<2xi32, #tpu.memory_space<smem>>, %arg3: memref<2xi32, #tpu.memory_space<smem>>, %arg4: memref<1x4x11x131xf32, #tpu.memory_space<vmem>>, %arg5: memref<36xf32, #tpu.memory_space<smem>>, %arg6: memref<4xf32, #tpu.memory_space<smem>>, %arg7: memref<288xf32, #tpu.memory_space<smem>>, %arg8: memref<8xf32, #tpu.memory_space<smem>>, %arg9: memref<1x8x8x128xf32, #tpu.memory_space<vmem>>) attributes {dimension_semantics = [#tpu.dimension_semantics<parallel>, #tpu.dimension_semantics<parallel>], iteration_bounds = array<i64: 2, 1>, scalar_prefetch = 2 : i64, scratch_operands = 0 : i64, tpu.core_type = #tpu.core_type<tc>, window_params = [{transform_indices = @transform_0, window_bounds = array<i64: 1, 4, 11, 131>}, {transform_indices = @transform_1, window_bounds = array<i64: 36>}, {transform_indices = @transform_2, window_bounds = array<i64: 4>}, {transform_indices = @transform_3, window_bounds = array<i64: 288>}, {transform_indices = @transform_4, window_bounds = array<i64: 8>}, {transform_indices = @transform_5, window_bounds = array<i64: 1, 8, 8, 128>}]} {
    %c128_i32 = arith.constant 128 : i32
    %0 = arith.muli %arg1, %c128_i32 : i32
    %1 = arith.index_cast %arg0 : i32 to index
    %2 = memref.load %arg2[%1] : memref<2xi32, #tpu.memory_space<smem>>
    %3 = arith.index_cast %arg0 : i32 to index
    %4 = memref.load %arg3[%3] : memref<2xi32, #tpu.memory_space<smem>>
    %5 = tpu.iota {dimensions = array<i32: 0>} : vector<10x130xi32>
    %c1_i32 = arith.constant 1 : i32
    %6 = vector.broadcast %c1_i32 : i32 to vector<10x130xi32>
    %7 = arith.subi %5, %6 : vector<10x130xi32>
    %c1_i32_0 = arith.constant 1 : i32
    %8 = arith.subi %0, %c1_i32_0 : i32
    %9 = tpu.iota {dimensions = array<i32: 1>} : vector<10x130xi32>
    %10 = vector.broadcast %8 : i32 to vector<10x130xi32>
    %11 = arith.addi %10, %9 : vector<10x130xi32>
    %c0_i32 = arith.constant 0 : i32
    %12 = vector.broadcast %c0_i32 : i32 to vector<10x130xi32>
    %13 = arith.cmpi sge, %7, %12 : vector<10x130xi32>
    %c8_i32 = arith.constant 8 : i32
    %14 = vector.broadcast %c8_i32 : i32 to vector<10x130xi32>
    %15 = arith.cmpi slt, %7, %14 : vector<10x130xi32>
    %16 = arith.andi %13, %15 : vector<10x130xi1>
    %c0_i32_1 = arith.constant 0 : i32
    %17 = vector.broadcast %c0_i32_1 : i32 to vector<10x130xi32>
    %18 = arith.cmpi sge, %11, %17 : vector<10x130xi32>
    %19 = arith.andi %16, %18 : vector<10x130xi1>
    %20 = vector.broadcast %2 : i32 to vector<10x130xi32>
    %21 = arith.cmpi slt, %11, %20 : vector<10x130xi32>
    %22 = arith.andi %19, %21 : vector<10x130xi1>
    %c0 = arith.constant 0 : index
    %23 = memref.load %arg6[%c0] : memref<4xf32, #tpu.memory_space<smem>>
    %24 = vector.broadcast %23 : f32 to vector<10x130xf32>
    %c1 = arith.constant 1 : index
    %25 = memref.load %arg6[%c1] : memref<4xf32, #tpu.memory_space<smem>>
    %26 = vector.broadcast %25 : f32 to vector<10x130xf32>
    %c2 = arith.constant 2 : index
    %27 = memref.load %arg6[%c2] : memref<4xf32, #tpu.memory_space<smem>>
    %28 = vector.broadcast %27 : f32 to vector<10x130xf32>
    %c3 = arith.constant 3 : index
    %29 = memref.load %arg6[%c3] : memref<4xf32, #tpu.memory_space<smem>>
    %30 = vector.broadcast %29 : f32 to vector<10x130xf32>
    %c0_2 = arith.constant 0 : index
    %c0_3 = arith.constant 0 : index
    %c0_4 = arith.constant 0 : index
    %c0_5 = arith.constant 0 : index
    %31 = vector.load %arg4[%c0_2, %c0_3, %c0_4, %c0_5] : memref<1x4x11x131xf32, #tpu.memory_space<vmem>>, vector<1x1x10x130xf32>
    %32 = vector.shape_cast %31 : vector<1x1x10x130xf32> to vector<10x130xf32>
    %c0_6 = arith.constant 0 : index
    %33 = memref.load %arg5[%c0_6] : memref<36xf32, #tpu.memory_space<smem>>
    %34 = vector.broadcast %33 : f32 to vector<10x130xf32>
    %35 = arith.mulf %34, %32 : vector<10x130xf32>
    %36 = arith.addf %24, %35 : vector<10x130xf32>
    %c9 = arith.constant 9 : index
    %37 = memref.load %arg5[%c9] : memref<36xf32, #tpu.memory_space<smem>>
    %38 = vector.broadcast %37 : f32 to vector<10x130xf32>
    %39 = arith.mulf %38, %32 : vector<10x130xf32>
    %40 = arith.addf %26, %39 : vector<10x130xf32>
    %c18 = arith.constant 18 : index
    %41 = memref.load %arg5[%c18] : memref<36xf32, #tpu.memory_space<smem>>
    %42 = vector.broadcast %41 : f32 to vector<10x130xf32>
    %43 = arith.mulf %42, %32 : vector<10x130xf32>
    %44 = arith.addf %28, %43 : vector<10x130xf32>
    %c27 = arith.constant 27 : index
    %45 = memref.load %arg5[%c27] : memref<36xf32, #tpu.memory_space<smem>>
    %46 = vector.broadcast %45 : f32 to vector<10x130xf32>
    %47 = arith.mulf %46, %32 : vector<10x130xf32>
    %48 = arith.addf %30, %47 : vector<10x130xf32>
    %c0_7 = arith.constant 0 : index
    %c1_8 = arith.constant 1 : index
    %c0_9 = arith.constant 0 : index
    %c0_10 = arith.constant 0 : index
    %49 = vector.load %arg4[%c0_7, %c1_8, %c0_9, %c0_10] : memref<1x4x11x131xf32, #tpu.memory_space<vmem>>, vector<1x1x10x130xf32>
    %50 = vector.shape_cast %49 : vector<1x1x10x130xf32> to vector<10x130xf32>
    %c1_11 = arith.constant 1 : index
    %51 = memref.load %arg5[%c1_11] : memref<36xf32, #tpu.memory_space<smem>>
    %52 = vector.broadcast %51 : f32 to vector<10x130xf32>
    %53 = arith.mulf %52, %50 : vector<10x130xf32>
    %54 = arith.addf %36, %53 : vector<10x130xf32>
    %c10 = arith.constant 10 : index
    %55 = memref.load %arg5[%c10] : memref<36xf32, #tpu.memory_space<smem>>
    %56 = vector.broadcast %55 : f32 to vector<10x130xf32>
    %57 = arith.mulf %56, %50 : vector<10x130xf32>
    %58 = arith.addf %40, %57 : vector<10x130xf32>
    %c19 = arith.constant 19 : index
    %59 = memref.load %arg5[%c19] : memref<36xf32, #tpu.memory_space<smem>>
    %60 = vector.broadcast %59 : f32 to vector<10x130xf32>
    %61 = arith.mulf %60, %50 : vector<10x130xf32>
    %62 = arith.addf %44, %61 : vector<10x130xf32>
    %c28 = arith.constant 28 : index
    %63 = memref.load %arg5[%c28] : memref<36xf32, #tpu.memory_space<smem>>
    %64 = vector.broadcast %63 : f32 to vector<10x130xf32>
    %65 = arith.mulf %64, %50 : vector<10x130xf32>
    %66 = arith.addf %48, %65 : vector<10x130xf32>
    %c0_12 = arith.constant 0 : index
    %c0_13 = arith.constant 0 : index
    %c0_14 = arith.constant 0 : index
    %c1_15 = arith.constant 1 : index
    %67 = vector.load %arg4[%c0_12, %c0_13, %c0_14, %c1_15] : memref<1x4x11x131xf32, #tpu.memory_space<vmem>>, vector<1x1x10x130xf32>
    %68 = vector.shape_cast %67 : vector<1x1x10x130xf32> to vector<10x130xf32>
    %c2_16 = arith.constant 2 : index
    %69 = memref.load %arg5[%c2_16] : memref<36xf32, #tpu.memory_space<smem>>
    %70 = vector.broadcast %69 : f32 to vector<10x130xf32>
    %71 = arith.mulf %70, %68 : vector<10x130xf32>
    %72 = arith.addf %54, %71 : vector<10x130xf32>
    %c11 = arith.constant 11 : index
    %73 = memref.load %arg5[%c11] : memref<36xf32, #tpu.memory_space<smem>>
    %74 = vector.broadcast %73 : f32 to vector<10x130xf32>
    %75 = arith.mulf %74, %68 : vector<10x130xf32>
    %76 = arith.addf %58, %75 : vector<10x130xf32>
    %c20 = arith.constant 20 : index
    %77 = memref.load %arg5[%c20] : memref<36xf32, #tpu.memory_space<smem>>
    %78 = vector.broadcast %77 : f32 to vector<10x130xf32>
    %79 = arith.mulf %78, %68 : vector<10x130xf32>
    %80 = arith.addf %62, %79 : vector<10x130xf32>
    %c29 = arith.constant 29 : index
    %81 = memref.load %arg5[%c29] : memref<36xf32, #tpu.memory_space<smem>>
    %82 = vector.broadcast %81 : f32 to vector<10x130xf32>
    %83 = arith.mulf %82, %68 : vector<10x130xf32>
    %84 = arith.addf %66, %83 : vector<10x130xf32>
    %c0_17 = arith.constant 0 : index
    %c2_18 = arith.constant 2 : index
    %c0_19 = arith.constant 0 : index
    %c0_20 = arith.constant 0 : index
    %85 = vector.load %arg4[%c0_17, %c2_18, %c0_19, %c0_20] : memref<1x4x11x131xf32, #tpu.memory_space<vmem>>, vector<1x1x10x130xf32>
    %86 = vector.shape_cast %85 : vector<1x1x10x130xf32> to vector<10x130xf32>
    %c3_21 = arith.constant 3 : index
    %87 = memref.load %arg5[%c3_21] : memref<36xf32, #tpu.memory_space<smem>>
    %88 = vector.broadcast %87 : f32 to vector<10x130xf32>
    %89 = arith.mulf %88, %86 : vector<10x130xf32>
    %90 = arith.addf %72, %89 : vector<10x130xf32>
    %c12 = arith.constant 12 : index
    %91 = memref.load %arg5[%c12] : memref<36xf32, #tpu.memory_space<smem>>
    %92 = vector.broadcast %91 : f32 to vector<10x130xf32>
    %93 = arith.mulf %92, %86 : vector<10x130xf32>
    %94 = arith.addf %76, %93 : vector<10x130xf32>
    %c21 = arith.constant 21 : index
    %95 = memref.load %arg5[%c21] : memref<36xf32, #tpu.memory_space<smem>>
    %96 = vector.broadcast %95 : f32 to vector<10x130xf32>
    %97 = arith.mulf %96, %86 : vector<10x130xf32>
    %98 = arith.addf %80, %97 : vector<10x130xf32>
    %c30 = arith.constant 30 : index
    %99 = memref.load %arg5[%c30] : memref<36xf32, #tpu.memory_space<smem>>
    %100 = vector.broadcast %99 : f32 to vector<10x130xf32>
    %101 = arith.mulf %100, %86 : vector<10x130xf32>
    %102 = arith.addf %84, %101 : vector<10x130xf32>
    %c0_22 = arith.constant 0 : index
    %c3_23 = arith.constant 3 : index
    %c0_24 = arith.constant 0 : index
    %c0_25 = arith.constant 0 : index
    %103 = vector.load %arg4[%c0_22, %c3_23, %c0_24, %c0_25] : memref<1x4x11x131xf32, #tpu.memory_space<vmem>>, vector<1x1x10x130xf32>
    %104 = vector.shape_cast %103 : vector<1x1x10x130xf32> to vector<10x130xf32>
    %c4 = arith.constant 4 : index
    %105 = memref.load %arg5[%c4] : memref<36xf32, #tpu.memory_space<smem>>
    %106 = vector.broadcast %105 : f32 to vector<10x130xf32>
    %107 = arith.mulf %106, %104 : vector<10x130xf32>
    %108 = arith.addf %90, %107 : vector<10x130xf32>
    %c13 = arith.constant 13 : index
    %109 = memref.load %arg5[%c13] : memref<36xf32, #tpu.memory_space<smem>>
    %110 = vector.broadcast %109 : f32 to vector<10x130xf32>
    %111 = arith.mulf %110, %104 : vector<10x130xf32>
    %112 = arith.addf %94, %111 : vector<10x130xf32>
    %c22 = arith.constant 22 : index
    %113 = memref.load %arg5[%c22] : memref<36xf32, #tpu.memory_space<smem>>
    %114 = vector.broadcast %113 : f32 to vector<10x130xf32>
    %115 = arith.mulf %114, %104 : vector<10x130xf32>
    %116 = arith.addf %98, %115 : vector<10x130xf32>
    %c31 = arith.constant 31 : index
    %117 = memref.load %arg5[%c31] : memref<36xf32, #tpu.memory_space<smem>>
    %118 = vector.broadcast %117 : f32 to vector<10x130xf32>
    %119 = arith.mulf %118, %104 : vector<10x130xf32>
    %120 = arith.addf %102, %119 : vector<10x130xf32>
    %c0_26 = arith.constant 0 : index
    %c2_27 = arith.constant 2 : index
    %c0_28 = arith.constant 0 : index
    %c1_29 = arith.constant 1 : index
    %121 = vector.load %arg4[%c0_26, %c2_27, %c0_28, %c1_29] : memref<1x4x11x131xf32, #tpu.memory_space<vmem>>, vector<1x1x10x130xf32>
    %122 = vector.shape_cast %121 : vector<1x1x10x130xf32> to vector<10x130xf32>
    %c5 = arith.constant 5 : index
    %123 = memref.load %arg5[%c5] : memref<36xf32, #tpu.memory_space<smem>>
    %124 = vector.broadcast %123 : f32 to vector<10x130xf32>
    %125 = arith.mulf %124, %122 : vector<10x130xf32>
    %126 = arith.addf %108, %125 : vector<10x130xf32>
    %c14 = arith.constant 14 : index
    %127 = memref.load %arg5[%c14] : memref<36xf32, #tpu.memory_space<smem>>
    %128 = vector.broadcast %127 : f32 to vector<10x130xf32>
    %129 = arith.mulf %128, %122 : vector<10x130xf32>
    %130 = arith.addf %112, %129 : vector<10x130xf32>
    %c23 = arith.constant 23 : index
    %131 = memref.load %arg5[%c23] : memref<36xf32, #tpu.memory_space<smem>>
    %132 = vector.broadcast %131 : f32 to vector<10x130xf32>
    %133 = arith.mulf %132, %122 : vector<10x130xf32>
    %134 = arith.addf %116, %133 : vector<10x130xf32>
    %c32 = arith.constant 32 : index
    %135 = memref.load %arg5[%c32] : memref<36xf32, #tpu.memory_space<smem>>
    %136 = vector.broadcast %135 : f32 to vector<10x130xf32>
    %137 = arith.mulf %136, %122 : vector<10x130xf32>
    %138 = arith.addf %120, %137 : vector<10x130xf32>
    %c0_30 = arith.constant 0 : index
    %c0_31 = arith.constant 0 : index
    %c1_32 = arith.constant 1 : index
    %c0_33 = arith.constant 0 : index
    %139 = vector.load %arg4[%c0_30, %c0_31, %c1_32, %c0_33] : memref<1x4x11x131xf32, #tpu.memory_space<vmem>>, vector<1x1x10x130xf32>
    %140 = vector.shape_cast %139 : vector<1x1x10x130xf32> to vector<10x130xf32>
    %c6 = arith.constant 6 : index
    %141 = memref.load %arg5[%c6] : memref<36xf32, #tpu.memory_space<smem>>
    %142 = vector.broadcast %141 : f32 to vector<10x130xf32>
    %143 = arith.mulf %142, %140 : vector<10x130xf32>
    %144 = arith.addf %126, %143 : vector<10x130xf32>
    %c15 = arith.constant 15 : index
    %145 = memref.load %arg5[%c15] : memref<36xf32, #tpu.memory_space<smem>>
    %146 = vector.broadcast %145 : f32 to vector<10x130xf32>
    %147 = arith.mulf %146, %140 : vector<10x130xf32>
    %148 = arith.addf %130, %147 : vector<10x130xf32>
    %c24 = arith.constant 24 : index
    %149 = memref.load %arg5[%c24] : memref<36xf32, #tpu.memory_space<smem>>
    %150 = vector.broadcast %149 : f32 to vector<10x130xf32>
    %151 = arith.mulf %150, %140 : vector<10x130xf32>
    %152 = arith.addf %134, %151 : vector<10x130xf32>
    %c33 = arith.constant 33 : index
    %153 = memref.load %arg5[%c33] : memref<36xf32, #tpu.memory_space<smem>>
    %154 = vector.broadcast %153 : f32 to vector<10x130xf32>
    %155 = arith.mulf %154, %140 : vector<10x130xf32>
    %156 = arith.addf %138, %155 : vector<10x130xf32>
    %c0_34 = arith.constant 0 : index
    %c1_35 = arith.constant 1 : index
    %c1_36 = arith.constant 1 : index
    %c0_37 = arith.constant 0 : index
    %157 = vector.load %arg4[%c0_34, %c1_35, %c1_36, %c0_37] : memref<1x4x11x131xf32, #tpu.memory_space<vmem>>, vector<1x1x10x130xf32>
    %158 = vector.shape_cast %157 : vector<1x1x10x130xf32> to vector<10x130xf32>
    %c7 = arith.constant 7 : index
    %159 = memref.load %arg5[%c7] : memref<36xf32, #tpu.memory_space<smem>>
    %160 = vector.broadcast %159 : f32 to vector<10x130xf32>
    %161 = arith.mulf %160, %158 : vector<10x130xf32>
    %162 = arith.addf %144, %161 : vector<10x130xf32>
    %c16 = arith.constant 16 : index
    %163 = memref.load %arg5[%c16] : memref<36xf32, #tpu.memory_space<smem>>
    %164 = vector.broadcast %163 : f32 to vector<10x130xf32>
    %165 = arith.mulf %164, %158 : vector<10x130xf32>
    %166 = arith.addf %148, %165 : vector<10x130xf32>
    %c25 = arith.constant 25 : index
    %167 = memref.load %arg5[%c25] : memref<36xf32, #tpu.memory_space<smem>>
    %168 = vector.broadcast %167 : f32 to vector<10x130xf32>
    %169 = arith.mulf %168, %158 : vector<10x130xf32>
    %170 = arith.addf %152, %169 : vector<10x130xf32>
    %c34 = arith.constant 34 : index
    %171 = memref.load %arg5[%c34] : memref<36xf32, #tpu.memory_space<smem>>
    %172 = vector.broadcast %171 : f32 to vector<10x130xf32>
    %173 = arith.mulf %172, %158 : vector<10x130xf32>
    %174 = arith.addf %156, %173 : vector<10x130xf32>
    %c0_38 = arith.constant 0 : index
    %c0_39 = arith.constant 0 : index
    %c1_40 = arith.constant 1 : index
    %c1_41 = arith.constant 1 : index
    %175 = vector.load %arg4[%c0_38, %c0_39, %c1_40, %c1_41] : memref<1x4x11x131xf32, #tpu.memory_space<vmem>>, vector<1x1x10x130xf32>
    %176 = vector.shape_cast %175 : vector<1x1x10x130xf32> to vector<10x130xf32>
    %c8 = arith.constant 8 : index
    %177 = memref.load %arg5[%c8] : memref<36xf32, #tpu.memory_space<smem>>
    %178 = vector.broadcast %177 : f32 to vector<10x130xf32>
    %179 = arith.mulf %178, %176 : vector<10x130xf32>
    %180 = arith.addf %162, %179 : vector<10x130xf32>
    %c17 = arith.constant 17 : index
    %181 = memref.load %arg5[%c17] : memref<36xf32, #tpu.memory_space<smem>>
    %182 = vector.broadcast %181 : f32 to vector<10x130xf32>
    %183 = arith.mulf %182, %176 : vector<10x130xf32>
    %184 = arith.addf %166, %183 : vector<10x130xf32>
    %c26 = arith.constant 26 : index
    %185 = memref.load %arg5[%c26] : memref<36xf32, #tpu.memory_space<smem>>
    %186 = vector.broadcast %185 : f32 to vector<10x130xf32>
    %187 = arith.mulf %186, %176 : vector<10x130xf32>
    %188 = arith.addf %170, %187 : vector<10x130xf32>
    %c35 = arith.constant 35 : index
    %189 = memref.load %arg5[%c35] : memref<36xf32, #tpu.memory_space<smem>>
    %190 = vector.broadcast %189 : f32 to vector<10x130xf32>
    %191 = arith.mulf %190, %176 : vector<10x130xf32>
    %192 = arith.addf %174, %191 : vector<10x130xf32>
    %cst = arith.constant 0.000000e+00 : f32
    %cst_42 = arith.constant 2.000000e+01 : f32
    %193 = vector.broadcast %cst : f32 to vector<10x130xf32>
    %194 = arith.maximumf %193, %180 : vector<10x130xf32>
    %195 = vector.broadcast %cst_42 : f32 to vector<10x130xf32>
    %196 = arith.minimumf %195, %194 : vector<10x130xf32>
    %cst_43 = arith.constant 0.000000e+00 : f32
    %197 = vector.broadcast %cst_43 : f32 to vector<10x130xf32>
    %198 = arith.select %22, %196, %197 : vector<10x130xi1>, vector<10x130xf32>
    %cst_44 = arith.constant 0.000000e+00 : f32
    %cst_45 = arith.constant 2.000000e+01 : f32
    %199 = vector.broadcast %cst_44 : f32 to vector<10x130xf32>
    %200 = arith.maximumf %199, %184 : vector<10x130xf32>
    %201 = vector.broadcast %cst_45 : f32 to vector<10x130xf32>
    %202 = arith.minimumf %201, %200 : vector<10x130xf32>
    %cst_46 = arith.constant 0.000000e+00 : f32
    %203 = vector.broadcast %cst_46 : f32 to vector<10x130xf32>
    %204 = arith.select %22, %202, %203 : vector<10x130xi1>, vector<10x130xf32>
    %cst_47 = arith.constant 0.000000e+00 : f32
    %cst_48 = arith.constant 2.000000e+01 : f32
    %205 = vector.broadcast %cst_47 : f32 to vector<10x130xf32>
    %206 = arith.maximumf %205, %188 : vector<10x130xf32>
    %207 = vector.broadcast %cst_48 : f32 to vector<10x130xf32>
    %208 = arith.minimumf %207, %206 : vector<10x130xf32>
    %cst_49 = arith.constant 0.000000e+00 : f32
    %209 = vector.broadcast %cst_49 : f32 to vector<10x130xf32>
    %210 = arith.select %22, %208, %209 : vector<10x130xi1>, vector<10x130xf32>
    %cst_50 = arith.constant 0.000000e+00 : f32
    %cst_51 = arith.constant 2.000000e+01 : f32
    %211 = vector.broadcast %cst_50 : f32 to vector<10x130xf32>
    %212 = arith.maximumf %211, %192 : vector<10x130xf32>
    %213 = vector.broadcast %cst_51 : f32 to vector<10x130xf32>
    %214 = arith.minimumf %213, %212 : vector<10x130xf32>
    %cst_52 = arith.constant 0.000000e+00 : f32
    %215 = vector.broadcast %cst_52 : f32 to vector<10x130xf32>
    %216 = arith.select %22, %214, %215 : vector<10x130xi1>, vector<10x130xf32>
    %217 = tpu.iota {dimensions = array<i32: 1>} : vector<8x128xi32>
    %218 = vector.broadcast %0 : i32 to vector<8x128xi32>
    %219 = arith.addi %218, %217 : vector<8x128xi32>
    %220 = vector.broadcast %4 : i32 to vector<8x128xi32>
    %221 = arith.cmpi slt, %219, %220 : vector<8x128xi32>
    %c0_53 = arith.constant 0 : index
    %222 = memref.load %arg8[%c0_53] : memref<8xf32, #tpu.memory_space<smem>>
    %223 = vector.broadcast %222 : f32 to vector<8x128xf32>
    %c1_54 = arith.constant 1 : index
    %224 = memref.load %arg8[%c1_54] : memref<8xf32, #tpu.memory_space<smem>>
    %225 = vector.broadcast %224 : f32 to vector<8x128xf32>
    %c2_55 = arith.constant 2 : index
    %226 = memref.load %arg8[%c2_55] : memref<8xf32, #tpu.memory_space<smem>>
    %227 = vector.broadcast %226 : f32 to vector<8x128xf32>
    %c3_56 = arith.constant 3 : index
    %228 = memref.load %arg8[%c3_56] : memref<8xf32, #tpu.memory_space<smem>>
    %229 = vector.broadcast %228 : f32 to vector<8x128xf32>
    %c4_57 = arith.constant 4 : index
    %230 = memref.load %arg8[%c4_57] : memref<8xf32, #tpu.memory_space<smem>>
    %231 = vector.broadcast %230 : f32 to vector<8x128xf32>
    %c5_58 = arith.constant 5 : index
    %232 = memref.load %arg8[%c5_58] : memref<8xf32, #tpu.memory_space<smem>>
    %233 = vector.broadcast %232 : f32 to vector<8x128xf32>
    %c6_59 = arith.constant 6 : index
    %234 = memref.load %arg8[%c6_59] : memref<8xf32, #tpu.memory_space<smem>>
    %235 = vector.broadcast %234 : f32 to vector<8x128xf32>
    %c7_60 = arith.constant 7 : index
    %236 = memref.load %arg8[%c7_60] : memref<8xf32, #tpu.memory_space<smem>>
    %237 = vector.broadcast %236 : f32 to vector<8x128xf32>
    %238 = vector.extract_strided_slice %198 {offsets = [0, 0], sizes = [8, 128], strides = [1, 1]} : vector<10x130xf32> to vector<8x128xf32>
    %c0_61 = arith.constant 0 : index
    %239 = memref.load %arg7[%c0_61] : memref<288xf32, #tpu.memory_space<smem>>
    %240 = vector.broadcast %239 : f32 to vector<8x128xf32>
    %241 = arith.mulf %240, %238 : vector<8x128xf32>
    %242 = arith.addf %223, %241 : vector<8x128xf32>
    %c36 = arith.constant 36 : index
    %243 = memref.load %arg7[%c36] : memref<288xf32, #tpu.memory_space<smem>>
    %244 = vector.broadcast %243 : f32 to vector<8x128xf32>
    %245 = arith.mulf %244, %238 : vector<8x128xf32>
    %246 = arith.addf %225, %245 : vector<8x128xf32>
    %c72 = arith.constant 72 : index
    %247 = memref.load %arg7[%c72] : memref<288xf32, #tpu.memory_space<smem>>
    %248 = vector.broadcast %247 : f32 to vector<8x128xf32>
    %249 = arith.mulf %248, %238 : vector<8x128xf32>
    %250 = arith.addf %227, %249 : vector<8x128xf32>
    %c108 = arith.constant 108 : index
    %251 = memref.load %arg7[%c108] : memref<288xf32, #tpu.memory_space<smem>>
    %252 = vector.broadcast %251 : f32 to vector<8x128xf32>
    %253 = arith.mulf %252, %238 : vector<8x128xf32>
    %254 = arith.addf %229, %253 : vector<8x128xf32>
    %c144 = arith.constant 144 : index
    %255 = memref.load %arg7[%c144] : memref<288xf32, #tpu.memory_space<smem>>
    %256 = vector.broadcast %255 : f32 to vector<8x128xf32>
    %257 = arith.mulf %256, %238 : vector<8x128xf32>
    %258 = arith.addf %231, %257 : vector<8x128xf32>
    %c180 = arith.constant 180 : index
    %259 = memref.load %arg7[%c180] : memref<288xf32, #tpu.memory_space<smem>>
    %260 = vector.broadcast %259 : f32 to vector<8x128xf32>
    %261 = arith.mulf %260, %238 : vector<8x128xf32>
    %262 = arith.addf %233, %261 : vector<8x128xf32>
    %c216 = arith.constant 216 : index
    %263 = memref.load %arg7[%c216] : memref<288xf32, #tpu.memory_space<smem>>
    %264 = vector.broadcast %263 : f32 to vector<8x128xf32>
    %265 = arith.mulf %264, %238 : vector<8x128xf32>
    %266 = arith.addf %235, %265 : vector<8x128xf32>
    %c252 = arith.constant 252 : index
    %267 = memref.load %arg7[%c252] : memref<288xf32, #tpu.memory_space<smem>>
    %268 = vector.broadcast %267 : f32 to vector<8x128xf32>
    %269 = arith.mulf %268, %238 : vector<8x128xf32>
    %270 = arith.addf %237, %269 : vector<8x128xf32>
    %271 = vector.extract_strided_slice %198 {offsets = [0, 1], sizes = [8, 128], strides = [1, 1]} : vector<10x130xf32> to vector<8x128xf32>
    %c1_62 = arith.constant 1 : index
    %272 = memref.load %arg7[%c1_62] : memref<288xf32, #tpu.memory_space<smem>>
    %273 = vector.broadcast %272 : f32 to vector<8x128xf32>
    %274 = arith.mulf %273, %271 : vector<8x128xf32>
    %275 = arith.addf %242, %274 : vector<8x128xf32>
    %c37 = arith.constant 37 : index
    %276 = memref.load %arg7[%c37] : memref<288xf32, #tpu.memory_space<smem>>
    %277 = vector.broadcast %276 : f32 to vector<8x128xf32>
    %278 = arith.mulf %277, %271 : vector<8x128xf32>
    %279 = arith.addf %246, %278 : vector<8x128xf32>
    %c73 = arith.constant 73 : index
    %280 = memref.load %arg7[%c73] : memref<288xf32, #tpu.memory_space<smem>>
    %281 = vector.broadcast %280 : f32 to vector<8x128xf32>
    %282 = arith.mulf %281, %271 : vector<8x128xf32>
    %283 = arith.addf %250, %282 : vector<8x128xf32>
    %c109 = arith.constant 109 : index
    %284 = memref.load %arg7[%c109] : memref<288xf32, #tpu.memory_space<smem>>
    %285 = vector.broadcast %284 : f32 to vector<8x128xf32>
    %286 = arith.mulf %285, %271 : vector<8x128xf32>
    %287 = arith.addf %254, %286 : vector<8x128xf32>
    %c145 = arith.constant 145 : index
    %288 = memref.load %arg7[%c145] : memref<288xf32, #tpu.memory_space<smem>>
    %289 = vector.broadcast %288 : f32 to vector<8x128xf32>
    %290 = arith.mulf %289, %271 : vector<8x128xf32>
    %291 = arith.addf %258, %290 : vector<8x128xf32>
    %c181 = arith.constant 181 : index
    %292 = memref.load %arg7[%c181] : memref<288xf32, #tpu.memory_space<smem>>
    %293 = vector.broadcast %292 : f32 to vector<8x128xf32>
    %294 = arith.mulf %293, %271 : vector<8x128xf32>
    %295 = arith.addf %262, %294 : vector<8x128xf32>
    %c217 = arith.constant 217 : index
    %296 = memref.load %arg7[%c217] : memref<288xf32, #tpu.memory_space<smem>>
    %297 = vector.broadcast %296 : f32 to vector<8x128xf32>
    %298 = arith.mulf %297, %271 : vector<8x128xf32>
    %299 = arith.addf %266, %298 : vector<8x128xf32>
    %c253 = arith.constant 253 : index
    %300 = memref.load %arg7[%c253] : memref<288xf32, #tpu.memory_space<smem>>
    %301 = vector.broadcast %300 : f32 to vector<8x128xf32>
    %302 = arith.mulf %301, %271 : vector<8x128xf32>
    %303 = arith.addf %270, %302 : vector<8x128xf32>
    %304 = vector.extract_strided_slice %198 {offsets = [0, 2], sizes = [8, 128], strides = [1, 1]} : vector<10x130xf32> to vector<8x128xf32>
    %c2_63 = arith.constant 2 : index
    %305 = memref.load %arg7[%c2_63] : memref<288xf32, #tpu.memory_space<smem>>
    %306 = vector.broadcast %305 : f32 to vector<8x128xf32>
    %307 = arith.mulf %306, %304 : vector<8x128xf32>
    %308 = arith.addf %275, %307 : vector<8x128xf32>
    %c38 = arith.constant 38 : index
    %309 = memref.load %arg7[%c38] : memref<288xf32, #tpu.memory_space<smem>>
    %310 = vector.broadcast %309 : f32 to vector<8x128xf32>
    %311 = arith.mulf %310, %304 : vector<8x128xf32>
    %312 = arith.addf %279, %311 : vector<8x128xf32>
    %c74 = arith.constant 74 : index
    %313 = memref.load %arg7[%c74] : memref<288xf32, #tpu.memory_space<smem>>
    %314 = vector.broadcast %313 : f32 to vector<8x128xf32>
    %315 = arith.mulf %314, %304 : vector<8x128xf32>
    %316 = arith.addf %283, %315 : vector<8x128xf32>
    %c110 = arith.constant 110 : index
    %317 = memref.load %arg7[%c110] : memref<288xf32, #tpu.memory_space<smem>>
    %318 = vector.broadcast %317 : f32 to vector<8x128xf32>
    %319 = arith.mulf %318, %304 : vector<8x128xf32>
    %320 = arith.addf %287, %319 : vector<8x128xf32>
    %c146 = arith.constant 146 : index
    %321 = memref.load %arg7[%c146] : memref<288xf32, #tpu.memory_space<smem>>
    %322 = vector.broadcast %321 : f32 to vector<8x128xf32>
    %323 = arith.mulf %322, %304 : vector<8x128xf32>
    %324 = arith.addf %291, %323 : vector<8x128xf32>
    %c182 = arith.constant 182 : index
    %325 = memref.load %arg7[%c182] : memref<288xf32, #tpu.memory_space<smem>>
    %326 = vector.broadcast %325 : f32 to vector<8x128xf32>
    %327 = arith.mulf %326, %304 : vector<8x128xf32>
    %328 = arith.addf %295, %327 : vector<8x128xf32>
    %c218 = arith.constant 218 : index
    %329 = memref.load %arg7[%c218] : memref<288xf32, #tpu.memory_space<smem>>
    %330 = vector.broadcast %329 : f32 to vector<8x128xf32>
    %331 = arith.mulf %330, %304 : vector<8x128xf32>
    %332 = arith.addf %299, %331 : vector<8x128xf32>
    %c254 = arith.constant 254 : index
    %333 = memref.load %arg7[%c254] : memref<288xf32, #tpu.memory_space<smem>>
    %334 = vector.broadcast %333 : f32 to vector<8x128xf32>
    %335 = arith.mulf %334, %304 : vector<8x128xf32>
    %336 = arith.addf %303, %335 : vector<8x128xf32>
    %337 = vector.extract_strided_slice %198 {offsets = [1, 0], sizes = [8, 128], strides = [1, 1]} : vector<10x130xf32> to vector<8x128xf32>
    %c3_64 = arith.constant 3 : index
    %338 = memref.load %arg7[%c3_64] : memref<288xf32, #tpu.memory_space<smem>>
    %339 = vector.broadcast %338 : f32 to vector<8x128xf32>
    %340 = arith.mulf %339, %337 : vector<8x128xf32>
    %341 = arith.addf %308, %340 : vector<8x128xf32>
    %c39 = arith.constant 39 : index
    %342 = memref.load %arg7[%c39] : memref<288xf32, #tpu.memory_space<smem>>
    %343 = vector.broadcast %342 : f32 to vector<8x128xf32>
    %344 = arith.mulf %343, %337 : vector<8x128xf32>
    %345 = arith.addf %312, %344 : vector<8x128xf32>
    %c75 = arith.constant 75 : index
    %346 = memref.load %arg7[%c75] : memref<288xf32, #tpu.memory_space<smem>>
    %347 = vector.broadcast %346 : f32 to vector<8x128xf32>
    %348 = arith.mulf %347, %337 : vector<8x128xf32>
    %349 = arith.addf %316, %348 : vector<8x128xf32>
    %c111 = arith.constant 111 : index
    %350 = memref.load %arg7[%c111] : memref<288xf32, #tpu.memory_space<smem>>
    %351 = vector.broadcast %350 : f32 to vector<8x128xf32>
    %352 = arith.mulf %351, %337 : vector<8x128xf32>
    %353 = arith.addf %320, %352 : vector<8x128xf32>
    %c147 = arith.constant 147 : index
    %354 = memref.load %arg7[%c147] : memref<288xf32, #tpu.memory_space<smem>>
    %355 = vector.broadcast %354 : f32 to vector<8x128xf32>
    %356 = arith.mulf %355, %337 : vector<8x128xf32>
    %357 = arith.addf %324, %356 : vector<8x128xf32>
    %c183 = arith.constant 183 : index
    %358 = memref.load %arg7[%c183] : memref<288xf32, #tpu.memory_space<smem>>
    %359 = vector.broadcast %358 : f32 to vector<8x128xf32>
    %360 = arith.mulf %359, %337 : vector<8x128xf32>
    %361 = arith.addf %328, %360 : vector<8x128xf32>
    %c219 = arith.constant 219 : index
    %362 = memref.load %arg7[%c219] : memref<288xf32, #tpu.memory_space<smem>>
    %363 = vector.broadcast %362 : f32 to vector<8x128xf32>
    %364 = arith.mulf %363, %337 : vector<8x128xf32>
    %365 = arith.addf %332, %364 : vector<8x128xf32>
    %c255 = arith.constant 255 : index
    %366 = memref.load %arg7[%c255] : memref<288xf32, #tpu.memory_space<smem>>
    %367 = vector.broadcast %366 : f32 to vector<8x128xf32>
    %368 = arith.mulf %367, %337 : vector<8x128xf32>
    %369 = arith.addf %336, %368 : vector<8x128xf32>
    %370 = vector.extract_strided_slice %198 {offsets = [1, 1], sizes = [8, 128], strides = [1, 1]} : vector<10x130xf32> to vector<8x128xf32>
    %c4_65 = arith.constant 4 : index
    %371 = memref.load %arg7[%c4_65] : memref<288xf32, #tpu.memory_space<smem>>
    %372 = vector.broadcast %371 : f32 to vector<8x128xf32>
    %373 = arith.mulf %372, %370 : vector<8x128xf32>
    %374 = arith.addf %341, %373 : vector<8x128xf32>
    %c40 = arith.constant 40 : index
    %375 = memref.load %arg7[%c40] : memref<288xf32, #tpu.memory_space<smem>>
    %376 = vector.broadcast %375 : f32 to vector<8x128xf32>
    %377 = arith.mulf %376, %370 : vector<8x128xf32>
    %378 = arith.addf %345, %377 : vector<8x128xf32>
    %c76 = arith.constant 76 : index
    %379 = memref.load %arg7[%c76] : memref<288xf32, #tpu.memory_space<smem>>
    %380 = vector.broadcast %379 : f32 to vector<8x128xf32>
    %381 = arith.mulf %380, %370 : vector<8x128xf32>
    %382 = arith.addf %349, %381 : vector<8x128xf32>
    %c112 = arith.constant 112 : index
    %383 = memref.load %arg7[%c112] : memref<288xf32, #tpu.memory_space<smem>>
    %384 = vector.broadcast %383 : f32 to vector<8x128xf32>
    %385 = arith.mulf %384, %370 : vector<8x128xf32>
    %386 = arith.addf %353, %385 : vector<8x128xf32>
    %c148 = arith.constant 148 : index
    %387 = memref.load %arg7[%c148] : memref<288xf32, #tpu.memory_space<smem>>
    %388 = vector.broadcast %387 : f32 to vector<8x128xf32>
    %389 = arith.mulf %388, %370 : vector<8x128xf32>
    %390 = arith.addf %357, %389 : vector<8x128xf32>
    %c184 = arith.constant 184 : index
    %391 = memref.load %arg7[%c184] : memref<288xf32, #tpu.memory_space<smem>>
    %392 = vector.broadcast %391 : f32 to vector<8x128xf32>
    %393 = arith.mulf %392, %370 : vector<8x128xf32>
    %394 = arith.addf %361, %393 : vector<8x128xf32>
    %c220 = arith.constant 220 : index
    %395 = memref.load %arg7[%c220] : memref<288xf32, #tpu.memory_space<smem>>
    %396 = vector.broadcast %395 : f32 to vector<8x128xf32>
    %397 = arith.mulf %396, %370 : vector<8x128xf32>
    %398 = arith.addf %365, %397 : vector<8x128xf32>
    %c256 = arith.constant 256 : index
    %399 = memref.load %arg7[%c256] : memref<288xf32, #tpu.memory_space<smem>>
    %400 = vector.broadcast %399 : f32 to vector<8x128xf32>
    %401 = arith.mulf %400, %370 : vector<8x128xf32>
    %402 = arith.addf %369, %401 : vector<8x128xf32>
    %403 = vector.extract_strided_slice %198 {offsets = [1, 2], sizes = [8, 128], strides = [1, 1]} : vector<10x130xf32> to vector<8x128xf32>
    %c5_66 = arith.constant 5 : index
    %404 = memref.load %arg7[%c5_66] : memref<288xf32, #tpu.memory_space<smem>>
    %405 = vector.broadcast %404 : f32 to vector<8x128xf32>
    %406 = arith.mulf %405, %403 : vector<8x128xf32>
    %407 = arith.addf %374, %406 : vector<8x128xf32>
    %c41 = arith.constant 41 : index
    %408 = memref.load %arg7[%c41] : memref<288xf32, #tpu.memory_space<smem>>
    %409 = vector.broadcast %408 : f32 to vector<8x128xf32>
    %410 = arith.mulf %409, %403 : vector<8x128xf32>
    %411 = arith.addf %378, %410 : vector<8x128xf32>
    %c77 = arith.constant 77 : index
    %412 = memref.load %arg7[%c77] : memref<288xf32, #tpu.memory_space<smem>>
    %413 = vector.broadcast %412 : f32 to vector<8x128xf32>
    %414 = arith.mulf %413, %403 : vector<8x128xf32>
    %415 = arith.addf %382, %414 : vector<8x128xf32>
    %c113 = arith.constant 113 : index
    %416 = memref.load %arg7[%c113] : memref<288xf32, #tpu.memory_space<smem>>
    %417 = vector.broadcast %416 : f32 to vector<8x128xf32>
    %418 = arith.mulf %417, %403 : vector<8x128xf32>
    %419 = arith.addf %386, %418 : vector<8x128xf32>
    %c149 = arith.constant 149 : index
    %420 = memref.load %arg7[%c149] : memref<288xf32, #tpu.memory_space<smem>>
    %421 = vector.broadcast %420 : f32 to vector<8x128xf32>
    %422 = arith.mulf %421, %403 : vector<8x128xf32>
    %423 = arith.addf %390, %422 : vector<8x128xf32>
    %c185 = arith.constant 185 : index
    %424 = memref.load %arg7[%c185] : memref<288xf32, #tpu.memory_space<smem>>
    %425 = vector.broadcast %424 : f32 to vector<8x128xf32>
    %426 = arith.mulf %425, %403 : vector<8x128xf32>
    %427 = arith.addf %394, %426 : vector<8x128xf32>
    %c221 = arith.constant 221 : index
    %428 = memref.load %arg7[%c221] : memref<288xf32, #tpu.memory_space<smem>>
    %429 = vector.broadcast %428 : f32 to vector<8x128xf32>
    %430 = arith.mulf %429, %403 : vector<8x128xf32>
    %431 = arith.addf %398, %430 : vector<8x128xf32>
    %c257 = arith.constant 257 : index
    %432 = memref.load %arg7[%c257] : memref<288xf32, #tpu.memory_space<smem>>
    %433 = vector.broadcast %432 : f32 to vector<8x128xf32>
    %434 = arith.mulf %433, %403 : vector<8x128xf32>
    %435 = arith.addf %402, %434 : vector<8x128xf32>
    %436 = vector.extract_strided_slice %198 {offsets = [2, 0], sizes = [8, 128], strides = [1, 1]} : vector<10x130xf32> to vector<8x128xf32>
    %c6_67 = arith.constant 6 : index
    %437 = memref.load %arg7[%c6_67] : memref<288xf32, #tpu.memory_space<smem>>
    %438 = vector.broadcast %437 : f32 to vector<8x128xf32>
    %439 = arith.mulf %438, %436 : vector<8x128xf32>
    %440 = arith.addf %407, %439 : vector<8x128xf32>
    %c42 = arith.constant 42 : index
    %441 = memref.load %arg7[%c42] : memref<288xf32, #tpu.memory_space<smem>>
    %442 = vector.broadcast %441 : f32 to vector<8x128xf32>
    %443 = arith.mulf %442, %436 : vector<8x128xf32>
    %444 = arith.addf %411, %443 : vector<8x128xf32>
    %c78 = arith.constant 78 : index
    %445 = memref.load %arg7[%c78] : memref<288xf32, #tpu.memory_space<smem>>
    %446 = vector.broadcast %445 : f32 to vector<8x128xf32>
    %447 = arith.mulf %446, %436 : vector<8x128xf32>
    %448 = arith.addf %415, %447 : vector<8x128xf32>
    %c114 = arith.constant 114 : index
    %449 = memref.load %arg7[%c114] : memref<288xf32, #tpu.memory_space<smem>>
    %450 = vector.broadcast %449 : f32 to vector<8x128xf32>
    %451 = arith.mulf %450, %436 : vector<8x128xf32>
    %452 = arith.addf %419, %451 : vector<8x128xf32>
    %c150 = arith.constant 150 : index
    %453 = memref.load %arg7[%c150] : memref<288xf32, #tpu.memory_space<smem>>
    %454 = vector.broadcast %453 : f32 to vector<8x128xf32>
    %455 = arith.mulf %454, %436 : vector<8x128xf32>
    %456 = arith.addf %423, %455 : vector<8x128xf32>
    %c186 = arith.constant 186 : index
    %457 = memref.load %arg7[%c186] : memref<288xf32, #tpu.memory_space<smem>>
    %458 = vector.broadcast %457 : f32 to vector<8x128xf32>
    %459 = arith.mulf %458, %436 : vector<8x128xf32>
    %460 = arith.addf %427, %459 : vector<8x128xf32>
    %c222 = arith.constant 222 : index
    %461 = memref.load %arg7[%c222] : memref<288xf32, #tpu.memory_space<smem>>
    %462 = vector.broadcast %461 : f32 to vector<8x128xf32>
    %463 = arith.mulf %462, %436 : vector<8x128xf32>
    %464 = arith.addf %431, %463 : vector<8x128xf32>
    %c258 = arith.constant 258 : index
    %465 = memref.load %arg7[%c258] : memref<288xf32, #tpu.memory_space<smem>>
    %466 = vector.broadcast %465 : f32 to vector<8x128xf32>
    %467 = arith.mulf %466, %436 : vector<8x128xf32>
    %468 = arith.addf %435, %467 : vector<8x128xf32>
    %469 = vector.extract_strided_slice %198 {offsets = [2, 1], sizes = [8, 128], strides = [1, 1]} : vector<10x130xf32> to vector<8x128xf32>
    %c7_68 = arith.constant 7 : index
    %470 = memref.load %arg7[%c7_68] : memref<288xf32, #tpu.memory_space<smem>>
    %471 = vector.broadcast %470 : f32 to vector<8x128xf32>
    %472 = arith.mulf %471, %469 : vector<8x128xf32>
    %473 = arith.addf %440, %472 : vector<8x128xf32>
    %c43 = arith.constant 43 : index
    %474 = memref.load %arg7[%c43] : memref<288xf32, #tpu.memory_space<smem>>
    %475 = vector.broadcast %474 : f32 to vector<8x128xf32>
    %476 = arith.mulf %475, %469 : vector<8x128xf32>
    %477 = arith.addf %444, %476 : vector<8x128xf32>
    %c79 = arith.constant 79 : index
    %478 = memref.load %arg7[%c79] : memref<288xf32, #tpu.memory_space<smem>>
    %479 = vector.broadcast %478 : f32 to vector<8x128xf32>
    %480 = arith.mulf %479, %469 : vector<8x128xf32>
    %481 = arith.addf %448, %480 : vector<8x128xf32>
    %c115 = arith.constant 115 : index
    %482 = memref.load %arg7[%c115] : memref<288xf32, #tpu.memory_space<smem>>
    %483 = vector.broadcast %482 : f32 to vector<8x128xf32>
    %484 = arith.mulf %483, %469 : vector<8x128xf32>
    %485 = arith.addf %452, %484 : vector<8x128xf32>
    %c151 = arith.constant 151 : index
    %486 = memref.load %arg7[%c151] : memref<288xf32, #tpu.memory_space<smem>>
    %487 = vector.broadcast %486 : f32 to vector<8x128xf32>
    %488 = arith.mulf %487, %469 : vector<8x128xf32>
    %489 = arith.addf %456, %488 : vector<8x128xf32>
    %c187 = arith.constant 187 : index
    %490 = memref.load %arg7[%c187] : memref<288xf32, #tpu.memory_space<smem>>
    %491 = vector.broadcast %490 : f32 to vector<8x128xf32>
    %492 = arith.mulf %491, %469 : vector<8x128xf32>
    %493 = arith.addf %460, %492 : vector<8x128xf32>
    %c223 = arith.constant 223 : index
    %494 = memref.load %arg7[%c223] : memref<288xf32, #tpu.memory_space<smem>>
    %495 = vector.broadcast %494 : f32 to vector<8x128xf32>
    %496 = arith.mulf %495, %469 : vector<8x128xf32>
    %497 = arith.addf %464, %496 : vector<8x128xf32>
    %c259 = arith.constant 259 : index
    %498 = memref.load %arg7[%c259] : memref<288xf32, #tpu.memory_space<smem>>
    %499 = vector.broadcast %498 : f32 to vector<8x128xf32>
    %500 = arith.mulf %499, %469 : vector<8x128xf32>
    %501 = arith.addf %468, %500 : vector<8x128xf32>
    %502 = vector.extract_strided_slice %198 {offsets = [2, 2], sizes = [8, 128], strides = [1, 1]} : vector<10x130xf32> to vector<8x128xf32>
    %c8_69 = arith.constant 8 : index
    %503 = memref.load %arg7[%c8_69] : memref<288xf32, #tpu.memory_space<smem>>
    %504 = vector.broadcast %503 : f32 to vector<8x128xf32>
    %505 = arith.mulf %504, %502 : vector<8x128xf32>
    %506 = arith.addf %473, %505 : vector<8x128xf32>
    %c44 = arith.constant 44 : index
    %507 = memref.load %arg7[%c44] : memref<288xf32, #tpu.memory_space<smem>>
    %508 = vector.broadcast %507 : f32 to vector<8x128xf32>
    %509 = arith.mulf %508, %502 : vector<8x128xf32>
    %510 = arith.addf %477, %509 : vector<8x128xf32>
    %c80 = arith.constant 80 : index
    %511 = memref.load %arg7[%c80] : memref<288xf32, #tpu.memory_space<smem>>
    %512 = vector.broadcast %511 : f32 to vector<8x128xf32>
    %513 = arith.mulf %512, %502 : vector<8x128xf32>
    %514 = arith.addf %481, %513 : vector<8x128xf32>
    %c116 = arith.constant 116 : index
    %515 = memref.load %arg7[%c116] : memref<288xf32, #tpu.memory_space<smem>>
    %516 = vector.broadcast %515 : f32 to vector<8x128xf32>
    %517 = arith.mulf %516, %502 : vector<8x128xf32>
    %518 = arith.addf %485, %517 : vector<8x128xf32>
    %c152 = arith.constant 152 : index
    %519 = memref.load %arg7[%c152] : memref<288xf32, #tpu.memory_space<smem>>
    %520 = vector.broadcast %519 : f32 to vector<8x128xf32>
    %521 = arith.mulf %520, %502 : vector<8x128xf32>
    %522 = arith.addf %489, %521 : vector<8x128xf32>
    %c188 = arith.constant 188 : index
    %523 = memref.load %arg7[%c188] : memref<288xf32, #tpu.memory_space<smem>>
    %524 = vector.broadcast %523 : f32 to vector<8x128xf32>
    %525 = arith.mulf %524, %502 : vector<8x128xf32>
    %526 = arith.addf %493, %525 : vector<8x128xf32>
    %c224 = arith.constant 224 : index
    %527 = memref.load %arg7[%c224] : memref<288xf32, #tpu.memory_space<smem>>
    %528 = vector.broadcast %527 : f32 to vector<8x128xf32>
    %529 = arith.mulf %528, %502 : vector<8x128xf32>
    %530 = arith.addf %497, %529 : vector<8x128xf32>
    %c260 = arith.constant 260 : index
    %531 = memref.load %arg7[%c260] : memref<288xf32, #tpu.memory_space<smem>>
    %532 = vector.broadcast %531 : f32 to vector<8x128xf32>
    %533 = arith.mulf %532, %502 : vector<8x128xf32>
    %534 = arith.addf %501, %533 : vector<8x128xf32>
    %535 = vector.extract_strided_slice %204 {offsets = [0, 0], sizes = [8, 128], strides = [1, 1]} : vector<10x130xf32> to vector<8x128xf32>
    %c9_70 = arith.constant 9 : index
    %536 = memref.load %arg7[%c9_70] : memref<288xf32, #tpu.memory_space<smem>>
    %537 = vector.broadcast %536 : f32 to vector<8x128xf32>
    %538 = arith.mulf %537, %535 : vector<8x128xf32>
    %539 = arith.addf %506, %538 : vector<8x128xf32>
    %c45 = arith.constant 45 : index
    %540 = memref.load %arg7[%c45] : memref<288xf32, #tpu.memory_space<smem>>
    %541 = vector.broadcast %540 : f32 to vector<8x128xf32>
    %542 = arith.mulf %541, %535 : vector<8x128xf32>
    %543 = arith.addf %510, %542 : vector<8x128xf32>
    %c81 = arith.constant 81 : index
    %544 = memref.load %arg7[%c81] : memref<288xf32, #tpu.memory_space<smem>>
    %545 = vector.broadcast %544 : f32 to vector<8x128xf32>
    %546 = arith.mulf %545, %535 : vector<8x128xf32>
    %547 = arith.addf %514, %546 : vector<8x128xf32>
    %c117 = arith.constant 117 : index
    %548 = memref.load %arg7[%c117] : memref<288xf32, #tpu.memory_space<smem>>
    %549 = vector.broadcast %548 : f32 to vector<8x128xf32>
    %550 = arith.mulf %549, %535 : vector<8x128xf32>
    %551 = arith.addf %518, %550 : vector<8x128xf32>
    %c153 = arith.constant 153 : index
    %552 = memref.load %arg7[%c153] : memref<288xf32, #tpu.memory_space<smem>>
    %553 = vector.broadcast %552 : f32 to vector<8x128xf32>
    %554 = arith.mulf %553, %535 : vector<8x128xf32>
    %555 = arith.addf %522, %554 : vector<8x128xf32>
    %c189 = arith.constant 189 : index
    %556 = memref.load %arg7[%c189] : memref<288xf32, #tpu.memory_space<smem>>
    %557 = vector.broadcast %556 : f32 to vector<8x128xf32>
    %558 = arith.mulf %557, %535 : vector<8x128xf32>
    %559 = arith.addf %526, %558 : vector<8x128xf32>
    %c225 = arith.constant 225 : index
    %560 = memref.load %arg7[%c225] : memref<288xf32, #tpu.memory_space<smem>>
    %561 = vector.broadcast %560 : f32 to vector<8x128xf32>
    %562 = arith.mulf %561, %535 : vector<8x128xf32>
    %563 = arith.addf %530, %562 : vector<8x128xf32>
    %c261 = arith.constant 261 : index
    %564 = memref.load %arg7[%c261] : memref<288xf32, #tpu.memory_space<smem>>
    %565 = vector.broadcast %564 : f32 to vector<8x128xf32>
    %566 = arith.mulf %565, %535 : vector<8x128xf32>
    %567 = arith.addf %534, %566 : vector<8x128xf32>
    %568 = vector.extract_strided_slice %204 {offsets = [0, 1], sizes = [8, 128], strides = [1, 1]} : vector<10x130xf32> to vector<8x128xf32>
    %c10_71 = arith.constant 10 : index
    %569 = memref.load %arg7[%c10_71] : memref<288xf32, #tpu.memory_space<smem>>
    %570 = vector.broadcast %569 : f32 to vector<8x128xf32>
    %571 = arith.mulf %570, %568 : vector<8x128xf32>
    %572 = arith.addf %539, %571 : vector<8x128xf32>
    %c46 = arith.constant 46 : index
    %573 = memref.load %arg7[%c46] : memref<288xf32, #tpu.memory_space<smem>>
    %574 = vector.broadcast %573 : f32 to vector<8x128xf32>
    %575 = arith.mulf %574, %568 : vector<8x128xf32>
    %576 = arith.addf %543, %575 : vector<8x128xf32>
    %c82 = arith.constant 82 : index
    %577 = memref.load %arg7[%c82] : memref<288xf32, #tpu.memory_space<smem>>
    %578 = vector.broadcast %577 : f32 to vector<8x128xf32>
    %579 = arith.mulf %578, %568 : vector<8x128xf32>
    %580 = arith.addf %547, %579 : vector<8x128xf32>
    %c118 = arith.constant 118 : index
    %581 = memref.load %arg7[%c118] : memref<288xf32, #tpu.memory_space<smem>>
    %582 = vector.broadcast %581 : f32 to vector<8x128xf32>
    %583 = arith.mulf %582, %568 : vector<8x128xf32>
    %584 = arith.addf %551, %583 : vector<8x128xf32>
    %c154 = arith.constant 154 : index
    %585 = memref.load %arg7[%c154] : memref<288xf32, #tpu.memory_space<smem>>
    %586 = vector.broadcast %585 : f32 to vector<8x128xf32>
    %587 = arith.mulf %586, %568 : vector<8x128xf32>
    %588 = arith.addf %555, %587 : vector<8x128xf32>
    %c190 = arith.constant 190 : index
    %589 = memref.load %arg7[%c190] : memref<288xf32, #tpu.memory_space<smem>>
    %590 = vector.broadcast %589 : f32 to vector<8x128xf32>
    %591 = arith.mulf %590, %568 : vector<8x128xf32>
    %592 = arith.addf %559, %591 : vector<8x128xf32>
    %c226 = arith.constant 226 : index
    %593 = memref.load %arg7[%c226] : memref<288xf32, #tpu.memory_space<smem>>
    %594 = vector.broadcast %593 : f32 to vector<8x128xf32>
    %595 = arith.mulf %594, %568 : vector<8x128xf32>
    %596 = arith.addf %563, %595 : vector<8x128xf32>
    %c262 = arith.constant 262 : index
    %597 = memref.load %arg7[%c262] : memref<288xf32, #tpu.memory_space<smem>>
    %598 = vector.broadcast %597 : f32 to vector<8x128xf32>
    %599 = arith.mulf %598, %568 : vector<8x128xf32>
    %600 = arith.addf %567, %599 : vector<8x128xf32>
    %601 = vector.extract_strided_slice %204 {offsets = [0, 2], sizes = [8, 128], strides = [1, 1]} : vector<10x130xf32> to vector<8x128xf32>
    %c11_72 = arith.constant 11 : index
    %602 = memref.load %arg7[%c11_72] : memref<288xf32, #tpu.memory_space<smem>>
    %603 = vector.broadcast %602 : f32 to vector<8x128xf32>
    %604 = arith.mulf %603, %601 : vector<8x128xf32>
    %605 = arith.addf %572, %604 : vector<8x128xf32>
    %c47 = arith.constant 47 : index
    %606 = memref.load %arg7[%c47] : memref<288xf32, #tpu.memory_space<smem>>
    %607 = vector.broadcast %606 : f32 to vector<8x128xf32>
    %608 = arith.mulf %607, %601 : vector<8x128xf32>
    %609 = arith.addf %576, %608 : vector<8x128xf32>
    %c83 = arith.constant 83 : index
    %610 = memref.load %arg7[%c83] : memref<288xf32, #tpu.memory_space<smem>>
    %611 = vector.broadcast %610 : f32 to vector<8x128xf32>
    %612 = arith.mulf %611, %601 : vector<8x128xf32>
    %613 = arith.addf %580, %612 : vector<8x128xf32>
    %c119 = arith.constant 119 : index
    %614 = memref.load %arg7[%c119] : memref<288xf32, #tpu.memory_space<smem>>
    %615 = vector.broadcast %614 : f32 to vector<8x128xf32>
    %616 = arith.mulf %615, %601 : vector<8x128xf32>
    %617 = arith.addf %584, %616 : vector<8x128xf32>
    %c155 = arith.constant 155 : index
    %618 = memref.load %arg7[%c155] : memref<288xf32, #tpu.memory_space<smem>>
    %619 = vector.broadcast %618 : f32 to vector<8x128xf32>
    %620 = arith.mulf %619, %601 : vector<8x128xf32>
    %621 = arith.addf %588, %620 : vector<8x128xf32>
    %c191 = arith.constant 191 : index
    %622 = memref.load %arg7[%c191] : memref<288xf32, #tpu.memory_space<smem>>
    %623 = vector.broadcast %622 : f32 to vector<8x128xf32>
    %624 = arith.mulf %623, %601 : vector<8x128xf32>
    %625 = arith.addf %592, %624 : vector<8x128xf32>
    %c227 = arith.constant 227 : index
    %626 = memref.load %arg7[%c227] : memref<288xf32, #tpu.memory_space<smem>>
    %627 = vector.broadcast %626 : f32 to vector<8x128xf32>
    %628 = arith.mulf %627, %601 : vector<8x128xf32>
    %629 = arith.addf %596, %628 : vector<8x128xf32>
    %c263 = arith.constant 263 : index
    %630 = memref.load %arg7[%c263] : memref<288xf32, #tpu.memory_space<smem>>
    %631 = vector.broadcast %630 : f32 to vector<8x128xf32>
    %632 = arith.mulf %631, %601 : vector<8x128xf32>
    %633 = arith.addf %600, %632 : vector<8x128xf32>
    %634 = vector.extract_strided_slice %204 {offsets = [1, 0], sizes = [8, 128], strides = [1, 1]} : vector<10x130xf32> to vector<8x128xf32>
    %c12_73 = arith.constant 12 : index
    %635 = memref.load %arg7[%c12_73] : memref<288xf32, #tpu.memory_space<smem>>
    %636 = vector.broadcast %635 : f32 to vector<8x128xf32>
    %637 = arith.mulf %636, %634 : vector<8x128xf32>
    %638 = arith.addf %605, %637 : vector<8x128xf32>
    %c48 = arith.constant 48 : index
    %639 = memref.load %arg7[%c48] : memref<288xf32, #tpu.memory_space<smem>>
    %640 = vector.broadcast %639 : f32 to vector<8x128xf32>
    %641 = arith.mulf %640, %634 : vector<8x128xf32>
    %642 = arith.addf %609, %641 : vector<8x128xf32>
    %c84 = arith.constant 84 : index
    %643 = memref.load %arg7[%c84] : memref<288xf32, #tpu.memory_space<smem>>
    %644 = vector.broadcast %643 : f32 to vector<8x128xf32>
    %645 = arith.mulf %644, %634 : vector<8x128xf32>
    %646 = arith.addf %613, %645 : vector<8x128xf32>
    %c120 = arith.constant 120 : index
    %647 = memref.load %arg7[%c120] : memref<288xf32, #tpu.memory_space<smem>>
    %648 = vector.broadcast %647 : f32 to vector<8x128xf32>
    %649 = arith.mulf %648, %634 : vector<8x128xf32>
    %650 = arith.addf %617, %649 : vector<8x128xf32>
    %c156 = arith.constant 156 : index
    %651 = memref.load %arg7[%c156] : memref<288xf32, #tpu.memory_space<smem>>
    %652 = vector.broadcast %651 : f32 to vector<8x128xf32>
    %653 = arith.mulf %652, %634 : vector<8x128xf32>
    %654 = arith.addf %621, %653 : vector<8x128xf32>
    %c192 = arith.constant 192 : index
    %655 = memref.load %arg7[%c192] : memref<288xf32, #tpu.memory_space<smem>>
    %656 = vector.broadcast %655 : f32 to vector<8x128xf32>
    %657 = arith.mulf %656, %634 : vector<8x128xf32>
    %658 = arith.addf %625, %657 : vector<8x128xf32>
    %c228 = arith.constant 228 : index
    %659 = memref.load %arg7[%c228] : memref<288xf32, #tpu.memory_space<smem>>
    %660 = vector.broadcast %659 : f32 to vector<8x128xf32>
    %661 = arith.mulf %660, %634 : vector<8x128xf32>
    %662 = arith.addf %629, %661 : vector<8x128xf32>
    %c264 = arith.constant 264 : index
    %663 = memref.load %arg7[%c264] : memref<288xf32, #tpu.memory_space<smem>>
    %664 = vector.broadcast %663 : f32 to vector<8x128xf32>
    %665 = arith.mulf %664, %634 : vector<8x128xf32>
    %666 = arith.addf %633, %665 : vector<8x128xf32>
    %667 = vector.extract_strided_slice %204 {offsets = [1, 1], sizes = [8, 128], strides = [1, 1]} : vector<10x130xf32> to vector<8x128xf32>
    %c13_74 = arith.constant 13 : index
    %668 = memref.load %arg7[%c13_74] : memref<288xf32, #tpu.memory_space<smem>>
    %669 = vector.broadcast %668 : f32 to vector<8x128xf32>
    %670 = arith.mulf %669, %667 : vector<8x128xf32>
    %671 = arith.addf %638, %670 : vector<8x128xf32>
    %c49 = arith.constant 49 : index
    %672 = memref.load %arg7[%c49] : memref<288xf32, #tpu.memory_space<smem>>
    %673 = vector.broadcast %672 : f32 to vector<8x128xf32>
    %674 = arith.mulf %673, %667 : vector<8x128xf32>
    %675 = arith.addf %642, %674 : vector<8x128xf32>
    %c85 = arith.constant 85 : index
    %676 = memref.load %arg7[%c85] : memref<288xf32, #tpu.memory_space<smem>>
    %677 = vector.broadcast %676 : f32 to vector<8x128xf32>
    %678 = arith.mulf %677, %667 : vector<8x128xf32>
    %679 = arith.addf %646, %678 : vector<8x128xf32>
    %c121 = arith.constant 121 : index
    %680 = memref.load %arg7[%c121] : memref<288xf32, #tpu.memory_space<smem>>
    %681 = vector.broadcast %680 : f32 to vector<8x128xf32>
    %682 = arith.mulf %681, %667 : vector<8x128xf32>
    %683 = arith.addf %650, %682 : vector<8x128xf32>
    %c157 = arith.constant 157 : index
    %684 = memref.load %arg7[%c157] : memref<288xf32, #tpu.memory_space<smem>>
    %685 = vector.broadcast %684 : f32 to vector<8x128xf32>
    %686 = arith.mulf %685, %667 : vector<8x128xf32>
    %687 = arith.addf %654, %686 : vector<8x128xf32>
    %c193 = arith.constant 193 : index
    %688 = memref.load %arg7[%c193] : memref<288xf32, #tpu.memory_space<smem>>
    %689 = vector.broadcast %688 : f32 to vector<8x128xf32>
    %690 = arith.mulf %689, %667 : vector<8x128xf32>
    %691 = arith.addf %658, %690 : vector<8x128xf32>
    %c229 = arith.constant 229 : index
    %692 = memref.load %arg7[%c229] : memref<288xf32, #tpu.memory_space<smem>>
    %693 = vector.broadcast %692 : f32 to vector<8x128xf32>
    %694 = arith.mulf %693, %667 : vector<8x128xf32>
    %695 = arith.addf %662, %694 : vector<8x128xf32>
    %c265 = arith.constant 265 : index
    %696 = memref.load %arg7[%c265] : memref<288xf32, #tpu.memory_space<smem>>
    %697 = vector.broadcast %696 : f32 to vector<8x128xf32>
    %698 = arith.mulf %697, %667 : vector<8x128xf32>
    %699 = arith.addf %666, %698 : vector<8x128xf32>
    %700 = vector.extract_strided_slice %204 {offsets = [1, 2], sizes = [8, 128], strides = [1, 1]} : vector<10x130xf32> to vector<8x128xf32>
    %c14_75 = arith.constant 14 : index
    %701 = memref.load %arg7[%c14_75] : memref<288xf32, #tpu.memory_space<smem>>
    %702 = vector.broadcast %701 : f32 to vector<8x128xf32>
    %703 = arith.mulf %702, %700 : vector<8x128xf32>
    %704 = arith.addf %671, %703 : vector<8x128xf32>
    %c50 = arith.constant 50 : index
    %705 = memref.load %arg7[%c50] : memref<288xf32, #tpu.memory_space<smem>>
    %706 = vector.broadcast %705 : f32 to vector<8x128xf32>
    %707 = arith.mulf %706, %700 : vector<8x128xf32>
    %708 = arith.addf %675, %707 : vector<8x128xf32>
    %c86 = arith.constant 86 : index
    %709 = memref.load %arg7[%c86] : memref<288xf32, #tpu.memory_space<smem>>
    %710 = vector.broadcast %709 : f32 to vector<8x128xf32>
    %711 = arith.mulf %710, %700 : vector<8x128xf32>
    %712 = arith.addf %679, %711 : vector<8x128xf32>
    %c122 = arith.constant 122 : index
    %713 = memref.load %arg7[%c122] : memref<288xf32, #tpu.memory_space<smem>>
    %714 = vector.broadcast %713 : f32 to vector<8x128xf32>
    %715 = arith.mulf %714, %700 : vector<8x128xf32>
    %716 = arith.addf %683, %715 : vector<8x128xf32>
    %c158 = arith.constant 158 : index
    %717 = memref.load %arg7[%c158] : memref<288xf32, #tpu.memory_space<smem>>
    %718 = vector.broadcast %717 : f32 to vector<8x128xf32>
    %719 = arith.mulf %718, %700 : vector<8x128xf32>
    %720 = arith.addf %687, %719 : vector<8x128xf32>
    %c194 = arith.constant 194 : index
    %721 = memref.load %arg7[%c194] : memref<288xf32, #tpu.memory_space<smem>>
    %722 = vector.broadcast %721 : f32 to vector<8x128xf32>
    %723 = arith.mulf %722, %700 : vector<8x128xf32>
    %724 = arith.addf %691, %723 : vector<8x128xf32>
    %c230 = arith.constant 230 : index
    %725 = memref.load %arg7[%c230] : memref<288xf32, #tpu.memory_space<smem>>
    %726 = vector.broadcast %725 : f32 to vector<8x128xf32>
    %727 = arith.mulf %726, %700 : vector<8x128xf32>
    %728 = arith.addf %695, %727 : vector<8x128xf32>
    %c266 = arith.constant 266 : index
    %729 = memref.load %arg7[%c266] : memref<288xf32, #tpu.memory_space<smem>>
    %730 = vector.broadcast %729 : f32 to vector<8x128xf32>
    %731 = arith.mulf %730, %700 : vector<8x128xf32>
    %732 = arith.addf %699, %731 : vector<8x128xf32>
    %733 = vector.extract_strided_slice %204 {offsets = [2, 0], sizes = [8, 128], strides = [1, 1]} : vector<10x130xf32> to vector<8x128xf32>
    %c15_76 = arith.constant 15 : index
    %734 = memref.load %arg7[%c15_76] : memref<288xf32, #tpu.memory_space<smem>>
    %735 = vector.broadcast %734 : f32 to vector<8x128xf32>
    %736 = arith.mulf %735, %733 : vector<8x128xf32>
    %737 = arith.addf %704, %736 : vector<8x128xf32>
    %c51 = arith.constant 51 : index
    %738 = memref.load %arg7[%c51] : memref<288xf32, #tpu.memory_space<smem>>
    %739 = vector.broadcast %738 : f32 to vector<8x128xf32>
    %740 = arith.mulf %739, %733 : vector<8x128xf32>
    %741 = arith.addf %708, %740 : vector<8x128xf32>
    %c87 = arith.constant 87 : index
    %742 = memref.load %arg7[%c87] : memref<288xf32, #tpu.memory_space<smem>>
    %743 = vector.broadcast %742 : f32 to vector<8x128xf32>
    %744 = arith.mulf %743, %733 : vector<8x128xf32>
    %745 = arith.addf %712, %744 : vector<8x128xf32>
    %c123 = arith.constant 123 : index
    %746 = memref.load %arg7[%c123] : memref<288xf32, #tpu.memory_space<smem>>
    %747 = vector.broadcast %746 : f32 to vector<8x128xf32>
    %748 = arith.mulf %747, %733 : vector<8x128xf32>
    %749 = arith.addf %716, %748 : vector<8x128xf32>
    %c159 = arith.constant 159 : index
    %750 = memref.load %arg7[%c159] : memref<288xf32, #tpu.memory_space<smem>>
    %751 = vector.broadcast %750 : f32 to vector<8x128xf32>
    %752 = arith.mulf %751, %733 : vector<8x128xf32>
    %753 = arith.addf %720, %752 : vector<8x128xf32>
    %c195 = arith.constant 195 : index
    %754 = memref.load %arg7[%c195] : memref<288xf32, #tpu.memory_space<smem>>
    %755 = vector.broadcast %754 : f32 to vector<8x128xf32>
    %756 = arith.mulf %755, %733 : vector<8x128xf32>
    %757 = arith.addf %724, %756 : vector<8x128xf32>
    %c231 = arith.constant 231 : index
    %758 = memref.load %arg7[%c231] : memref<288xf32, #tpu.memory_space<smem>>
    %759 = vector.broadcast %758 : f32 to vector<8x128xf32>
    %760 = arith.mulf %759, %733 : vector<8x128xf32>
    %761 = arith.addf %728, %760 : vector<8x128xf32>
    %c267 = arith.constant 267 : index
    %762 = memref.load %arg7[%c267] : memref<288xf32, #tpu.memory_space<smem>>
    %763 = vector.broadcast %762 : f32 to vector<8x128xf32>
    %764 = arith.mulf %763, %733 : vector<8x128xf32>
    %765 = arith.addf %732, %764 : vector<8x128xf32>
    %766 = vector.extract_strided_slice %204 {offsets = [2, 1], sizes = [8, 128], strides = [1, 1]} : vector<10x130xf32> to vector<8x128xf32>
    %c16_77 = arith.constant 16 : index
    %767 = memref.load %arg7[%c16_77] : memref<288xf32, #tpu.memory_space<smem>>
    %768 = vector.broadcast %767 : f32 to vector<8x128xf32>
    %769 = arith.mulf %768, %766 : vector<8x128xf32>
    %770 = arith.addf %737, %769 : vector<8x128xf32>
    %c52 = arith.constant 52 : index
    %771 = memref.load %arg7[%c52] : memref<288xf32, #tpu.memory_space<smem>>
    %772 = vector.broadcast %771 : f32 to vector<8x128xf32>
    %773 = arith.mulf %772, %766 : vector<8x128xf32>
    %774 = arith.addf %741, %773 : vector<8x128xf32>
    %c88 = arith.constant 88 : index
    %775 = memref.load %arg7[%c88] : memref<288xf32, #tpu.memory_space<smem>>
    %776 = vector.broadcast %775 : f32 to vector<8x128xf32>
    %777 = arith.mulf %776, %766 : vector<8x128xf32>
    %778 = arith.addf %745, %777 : vector<8x128xf32>
    %c124 = arith.constant 124 : index
    %779 = memref.load %arg7[%c124] : memref<288xf32, #tpu.memory_space<smem>>
    %780 = vector.broadcast %779 : f32 to vector<8x128xf32>
    %781 = arith.mulf %780, %766 : vector<8x128xf32>
    %782 = arith.addf %749, %781 : vector<8x128xf32>
    %c160 = arith.constant 160 : index
    %783 = memref.load %arg7[%c160] : memref<288xf32, #tpu.memory_space<smem>>
    %784 = vector.broadcast %783 : f32 to vector<8x128xf32>
    %785 = arith.mulf %784, %766 : vector<8x128xf32>
    %786 = arith.addf %753, %785 : vector<8x128xf32>
    %c196 = arith.constant 196 : index
    %787 = memref.load %arg7[%c196] : memref<288xf32, #tpu.memory_space<smem>>
    %788 = vector.broadcast %787 : f32 to vector<8x128xf32>
    %789 = arith.mulf %788, %766 : vector<8x128xf32>
    %790 = arith.addf %757, %789 : vector<8x128xf32>
    %c232 = arith.constant 232 : index
    %791 = memref.load %arg7[%c232] : memref<288xf32, #tpu.memory_space<smem>>
    %792 = vector.broadcast %791 : f32 to vector<8x128xf32>
    %793 = arith.mulf %792, %766 : vector<8x128xf32>
    %794 = arith.addf %761, %793 : vector<8x128xf32>
    %c268 = arith.constant 268 : index
    %795 = memref.load %arg7[%c268] : memref<288xf32, #tpu.memory_space<smem>>
    %796 = vector.broadcast %795 : f32 to vector<8x128xf32>
    %797 = arith.mulf %796, %766 : vector<8x128xf32>
    %798 = arith.addf %765, %797 : vector<8x128xf32>
    %799 = vector.extract_strided_slice %204 {offsets = [2, 2], sizes = [8, 128], strides = [1, 1]} : vector<10x130xf32> to vector<8x128xf32>
    %c17_78 = arith.constant 17 : index
    %800 = memref.load %arg7[%c17_78] : memref<288xf32, #tpu.memory_space<smem>>
    %801 = vector.broadcast %800 : f32 to vector<8x128xf32>
    %802 = arith.mulf %801, %799 : vector<8x128xf32>
    %803 = arith.addf %770, %802 : vector<8x128xf32>
    %c53 = arith.constant 53 : index
    %804 = memref.load %arg7[%c53] : memref<288xf32, #tpu.memory_space<smem>>
    %805 = vector.broadcast %804 : f32 to vector<8x128xf32>
    %806 = arith.mulf %805, %799 : vector<8x128xf32>
    %807 = arith.addf %774, %806 : vector<8x128xf32>
    %c89 = arith.constant 89 : index
    %808 = memref.load %arg7[%c89] : memref<288xf32, #tpu.memory_space<smem>>
    %809 = vector.broadcast %808 : f32 to vector<8x128xf32>
    %810 = arith.mulf %809, %799 : vector<8x128xf32>
    %811 = arith.addf %778, %810 : vector<8x128xf32>
    %c125 = arith.constant 125 : index
    %812 = memref.load %arg7[%c125] : memref<288xf32, #tpu.memory_space<smem>>
    %813 = vector.broadcast %812 : f32 to vector<8x128xf32>
    %814 = arith.mulf %813, %799 : vector<8x128xf32>
    %815 = arith.addf %782, %814 : vector<8x128xf32>
    %c161 = arith.constant 161 : index
    %816 = memref.load %arg7[%c161] : memref<288xf32, #tpu.memory_space<smem>>
    %817 = vector.broadcast %816 : f32 to vector<8x128xf32>
    %818 = arith.mulf %817, %799 : vector<8x128xf32>
    %819 = arith.addf %786, %818 : vector<8x128xf32>
    %c197 = arith.constant 197 : index
    %820 = memref.load %arg7[%c197] : memref<288xf32, #tpu.memory_space<smem>>
    %821 = vector.broadcast %820 : f32 to vector<8x128xf32>
    %822 = arith.mulf %821, %799 : vector<8x128xf32>
    %823 = arith.addf %790, %822 : vector<8x128xf32>
    %c233 = arith.constant 233 : index
    %824 = memref.load %arg7[%c233] : memref<288xf32, #tpu.memory_space<smem>>
    %825 = vector.broadcast %824 : f32 to vector<8x128xf32>
    %826 = arith.mulf %825, %799 : vector<8x128xf32>
    %827 = arith.addf %794, %826 : vector<8x128xf32>
    %c269 = arith.constant 269 : index
    %828 = memref.load %arg7[%c269] : memref<288xf32, #tpu.memory_space<smem>>
    %829 = vector.broadcast %828 : f32 to vector<8x128xf32>
    %830 = arith.mulf %829, %799 : vector<8x128xf32>
    %831 = arith.addf %798, %830 : vector<8x128xf32>
    %832 = vector.extract_strided_slice %210 {offsets = [0, 0], sizes = [8, 128], strides = [1, 1]} : vector<10x130xf32> to vector<8x128xf32>
    %c18_79 = arith.constant 18 : index
    %833 = memref.load %arg7[%c18_79] : memref<288xf32, #tpu.memory_space<smem>>
    %834 = vector.broadcast %833 : f32 to vector<8x128xf32>
    %835 = arith.mulf %834, %832 : vector<8x128xf32>
    %836 = arith.addf %803, %835 : vector<8x128xf32>
    %c54 = arith.constant 54 : index
    %837 = memref.load %arg7[%c54] : memref<288xf32, #tpu.memory_space<smem>>
    %838 = vector.broadcast %837 : f32 to vector<8x128xf32>
    %839 = arith.mulf %838, %832 : vector<8x128xf32>
    %840 = arith.addf %807, %839 : vector<8x128xf32>
    %c90 = arith.constant 90 : index
    %841 = memref.load %arg7[%c90] : memref<288xf32, #tpu.memory_space<smem>>
    %842 = vector.broadcast %841 : f32 to vector<8x128xf32>
    %843 = arith.mulf %842, %832 : vector<8x128xf32>
    %844 = arith.addf %811, %843 : vector<8x128xf32>
    %c126 = arith.constant 126 : index
    %845 = memref.load %arg7[%c126] : memref<288xf32, #tpu.memory_space<smem>>
    %846 = vector.broadcast %845 : f32 to vector<8x128xf32>
    %847 = arith.mulf %846, %832 : vector<8x128xf32>
    %848 = arith.addf %815, %847 : vector<8x128xf32>
    %c162 = arith.constant 162 : index
    %849 = memref.load %arg7[%c162] : memref<288xf32, #tpu.memory_space<smem>>
    %850 = vector.broadcast %849 : f32 to vector<8x128xf32>
    %851 = arith.mulf %850, %832 : vector<8x128xf32>
    %852 = arith.addf %819, %851 : vector<8x128xf32>
    %c198 = arith.constant 198 : index
    %853 = memref.load %arg7[%c198] : memref<288xf32, #tpu.memory_space<smem>>
    %854 = vector.broadcast %853 : f32 to vector<8x128xf32>
    %855 = arith.mulf %854, %832 : vector<8x128xf32>
    %856 = arith.addf %823, %855 : vector<8x128xf32>
    %c234 = arith.constant 234 : index
    %857 = memref.load %arg7[%c234] : memref<288xf32, #tpu.memory_space<smem>>
    %858 = vector.broadcast %857 : f32 to vector<8x128xf32>
    %859 = arith.mulf %858, %832 : vector<8x128xf32>
    %860 = arith.addf %827, %859 : vector<8x128xf32>
    %c270 = arith.constant 270 : index
    %861 = memref.load %arg7[%c270] : memref<288xf32, #tpu.memory_space<smem>>
    %862 = vector.broadcast %861 : f32 to vector<8x128xf32>
    %863 = arith.mulf %862, %832 : vector<8x128xf32>
    %864 = arith.addf %831, %863 : vector<8x128xf32>
    %865 = vector.extract_strided_slice %210 {offsets = [0, 1], sizes = [8, 128], strides = [1, 1]} : vector<10x130xf32> to vector<8x128xf32>
    %c19_80 = arith.constant 19 : index
    %866 = memref.load %arg7[%c19_80] : memref<288xf32, #tpu.memory_space<smem>>
    %867 = vector.broadcast %866 : f32 to vector<8x128xf32>
    %868 = arith.mulf %867, %865 : vector<8x128xf32>
    %869 = arith.addf %836, %868 : vector<8x128xf32>
    %c55 = arith.constant 55 : index
    %870 = memref.load %arg7[%c55] : memref<288xf32, #tpu.memory_space<smem>>
    %871 = vector.broadcast %870 : f32 to vector<8x128xf32>
    %872 = arith.mulf %871, %865 : vector<8x128xf32>
    %873 = arith.addf %840, %872 : vector<8x128xf32>
    %c91 = arith.constant 91 : index
    %874 = memref.load %arg7[%c91] : memref<288xf32, #tpu.memory_space<smem>>
    %875 = vector.broadcast %874 : f32 to vector<8x128xf32>
    %876 = arith.mulf %875, %865 : vector<8x128xf32>
    %877 = arith.addf %844, %876 : vector<8x128xf32>
    %c127 = arith.constant 127 : index
    %878 = memref.load %arg7[%c127] : memref<288xf32, #tpu.memory_space<smem>>
    %879 = vector.broadcast %878 : f32 to vector<8x128xf32>
    %880 = arith.mulf %879, %865 : vector<8x128xf32>
    %881 = arith.addf %848, %880 : vector<8x128xf32>
    %c163 = arith.constant 163 : index
    %882 = memref.load %arg7[%c163] : memref<288xf32, #tpu.memory_space<smem>>
    %883 = vector.broadcast %882 : f32 to vector<8x128xf32>
    %884 = arith.mulf %883, %865 : vector<8x128xf32>
    %885 = arith.addf %852, %884 : vector<8x128xf32>
    %c199 = arith.constant 199 : index
    %886 = memref.load %arg7[%c199] : memref<288xf32, #tpu.memory_space<smem>>
    %887 = vector.broadcast %886 : f32 to vector<8x128xf32>
    %888 = arith.mulf %887, %865 : vector<8x128xf32>
    %889 = arith.addf %856, %888 : vector<8x128xf32>
    %c235 = arith.constant 235 : index
    %890 = memref.load %arg7[%c235] : memref<288xf32, #tpu.memory_space<smem>>
    %891 = vector.broadcast %890 : f32 to vector<8x128xf32>
    %892 = arith.mulf %891, %865 : vector<8x128xf32>
    %893 = arith.addf %860, %892 : vector<8x128xf32>
    %c271 = arith.constant 271 : index
    %894 = memref.load %arg7[%c271] : memref<288xf32, #tpu.memory_space<smem>>
    %895 = vector.broadcast %894 : f32 to vector<8x128xf32>
    %896 = arith.mulf %895, %865 : vector<8x128xf32>
    %897 = arith.addf %864, %896 : vector<8x128xf32>
    %898 = vector.extract_strided_slice %210 {offsets = [0, 2], sizes = [8, 128], strides = [1, 1]} : vector<10x130xf32> to vector<8x128xf32>
    %c20_81 = arith.constant 20 : index
    %899 = memref.load %arg7[%c20_81] : memref<288xf32, #tpu.memory_space<smem>>
    %900 = vector.broadcast %899 : f32 to vector<8x128xf32>
    %901 = arith.mulf %900, %898 : vector<8x128xf32>
    %902 = arith.addf %869, %901 : vector<8x128xf32>
    %c56 = arith.constant 56 : index
    %903 = memref.load %arg7[%c56] : memref<288xf32, #tpu.memory_space<smem>>
    %904 = vector.broadcast %903 : f32 to vector<8x128xf32>
    %905 = arith.mulf %904, %898 : vector<8x128xf32>
    %906 = arith.addf %873, %905 : vector<8x128xf32>
    %c92 = arith.constant 92 : index
    %907 = memref.load %arg7[%c92] : memref<288xf32, #tpu.memory_space<smem>>
    %908 = vector.broadcast %907 : f32 to vector<8x128xf32>
    %909 = arith.mulf %908, %898 : vector<8x128xf32>
    %910 = arith.addf %877, %909 : vector<8x128xf32>
    %c128 = arith.constant 128 : index
    %911 = memref.load %arg7[%c128] : memref<288xf32, #tpu.memory_space<smem>>
    %912 = vector.broadcast %911 : f32 to vector<8x128xf32>
    %913 = arith.mulf %912, %898 : vector<8x128xf32>
    %914 = arith.addf %881, %913 : vector<8x128xf32>
    %c164 = arith.constant 164 : index
    %915 = memref.load %arg7[%c164] : memref<288xf32, #tpu.memory_space<smem>>
    %916 = vector.broadcast %915 : f32 to vector<8x128xf32>
    %917 = arith.mulf %916, %898 : vector<8x128xf32>
    %918 = arith.addf %885, %917 : vector<8x128xf32>
    %c200 = arith.constant 200 : index
    %919 = memref.load %arg7[%c200] : memref<288xf32, #tpu.memory_space<smem>>
    %920 = vector.broadcast %919 : f32 to vector<8x128xf32>
    %921 = arith.mulf %920, %898 : vector<8x128xf32>
    %922 = arith.addf %889, %921 : vector<8x128xf32>
    %c236 = arith.constant 236 : index
    %923 = memref.load %arg7[%c236] : memref<288xf32, #tpu.memory_space<smem>>
    %924 = vector.broadcast %923 : f32 to vector<8x128xf32>
    %925 = arith.mulf %924, %898 : vector<8x128xf32>
    %926 = arith.addf %893, %925 : vector<8x128xf32>
    %c272 = arith.constant 272 : index
    %927 = memref.load %arg7[%c272] : memref<288xf32, #tpu.memory_space<smem>>
    %928 = vector.broadcast %927 : f32 to vector<8x128xf32>
    %929 = arith.mulf %928, %898 : vector<8x128xf32>
    %930 = arith.addf %897, %929 : vector<8x128xf32>
    %931 = vector.extract_strided_slice %210 {offsets = [1, 0], sizes = [8, 128], strides = [1, 1]} : vector<10x130xf32> to vector<8x128xf32>
    %c21_82 = arith.constant 21 : index
    %932 = memref.load %arg7[%c21_82] : memref<288xf32, #tpu.memory_space<smem>>
    %933 = vector.broadcast %932 : f32 to vector<8x128xf32>
    %934 = arith.mulf %933, %931 : vector<8x128xf32>
    %935 = arith.addf %902, %934 : vector<8x128xf32>
    %c57 = arith.constant 57 : index
    %936 = memref.load %arg7[%c57] : memref<288xf32, #tpu.memory_space<smem>>
    %937 = vector.broadcast %936 : f32 to vector<8x128xf32>
    %938 = arith.mulf %937, %931 : vector<8x128xf32>
    %939 = arith.addf %906, %938 : vector<8x128xf32>
    %c93 = arith.constant 93 : index
    %940 = memref.load %arg7[%c93] : memref<288xf32, #tpu.memory_space<smem>>
    %941 = vector.broadcast %940 : f32 to vector<8x128xf32>
    %942 = arith.mulf %941, %931 : vector<8x128xf32>
    %943 = arith.addf %910, %942 : vector<8x128xf32>
    %c129 = arith.constant 129 : index
    %944 = memref.load %arg7[%c129] : memref<288xf32, #tpu.memory_space<smem>>
    %945 = vector.broadcast %944 : f32 to vector<8x128xf32>
    %946 = arith.mulf %945, %931 : vector<8x128xf32>
    %947 = arith.addf %914, %946 : vector<8x128xf32>
    %c165 = arith.constant 165 : index
    %948 = memref.load %arg7[%c165] : memref<288xf32, #tpu.memory_space<smem>>
    %949 = vector.broadcast %948 : f32 to vector<8x128xf32>
    %950 = arith.mulf %949, %931 : vector<8x128xf32>
    %951 = arith.addf %918, %950 : vector<8x128xf32>
    %c201 = arith.constant 201 : index
    %952 = memref.load %arg7[%c201] : memref<288xf32, #tpu.memory_space<smem>>
    %953 = vector.broadcast %952 : f32 to vector<8x128xf32>
    %954 = arith.mulf %953, %931 : vector<8x128xf32>
    %955 = arith.addf %922, %954 : vector<8x128xf32>
    %c237 = arith.constant 237 : index
    %956 = memref.load %arg7[%c237] : memref<288xf32, #tpu.memory_space<smem>>
    %957 = vector.broadcast %956 : f32 to vector<8x128xf32>
    %958 = arith.mulf %957, %931 : vector<8x128xf32>
    %959 = arith.addf %926, %958 : vector<8x128xf32>
    %c273 = arith.constant 273 : index
    %960 = memref.load %arg7[%c273] : memref<288xf32, #tpu.memory_space<smem>>
    %961 = vector.broadcast %960 : f32 to vector<8x128xf32>
    %962 = arith.mulf %961, %931 : vector<8x128xf32>
    %963 = arith.addf %930, %962 : vector<8x128xf32>
    %964 = vector.extract_strided_slice %210 {offsets = [1, 1], sizes = [8, 128], strides = [1, 1]} : vector<10x130xf32> to vector<8x128xf32>
    %c22_83 = arith.constant 22 : index
    %965 = memref.load %arg7[%c22_83] : memref<288xf32, #tpu.memory_space<smem>>
    %966 = vector.broadcast %965 : f32 to vector<8x128xf32>
    %967 = arith.mulf %966, %964 : vector<8x128xf32>
    %968 = arith.addf %935, %967 : vector<8x128xf32>
    %c58 = arith.constant 58 : index
    %969 = memref.load %arg7[%c58] : memref<288xf32, #tpu.memory_space<smem>>
    %970 = vector.broadcast %969 : f32 to vector<8x128xf32>
    %971 = arith.mulf %970, %964 : vector<8x128xf32>
    %972 = arith.addf %939, %971 : vector<8x128xf32>
    %c94 = arith.constant 94 : index
    %973 = memref.load %arg7[%c94] : memref<288xf32, #tpu.memory_space<smem>>
    %974 = vector.broadcast %973 : f32 to vector<8x128xf32>
    %975 = arith.mulf %974, %964 : vector<8x128xf32>
    %976 = arith.addf %943, %975 : vector<8x128xf32>
    %c130 = arith.constant 130 : index
    %977 = memref.load %arg7[%c130] : memref<288xf32, #tpu.memory_space<smem>>
    %978 = vector.broadcast %977 : f32 to vector<8x128xf32>
    %979 = arith.mulf %978, %964 : vector<8x128xf32>
    %980 = arith.addf %947, %979 : vector<8x128xf32>
    %c166 = arith.constant 166 : index
    %981 = memref.load %arg7[%c166] : memref<288xf32, #tpu.memory_space<smem>>
    %982 = vector.broadcast %981 : f32 to vector<8x128xf32>
    %983 = arith.mulf %982, %964 : vector<8x128xf32>
    %984 = arith.addf %951, %983 : vector<8x128xf32>
    %c202 = arith.constant 202 : index
    %985 = memref.load %arg7[%c202] : memref<288xf32, #tpu.memory_space<smem>>
    %986 = vector.broadcast %985 : f32 to vector<8x128xf32>
    %987 = arith.mulf %986, %964 : vector<8x128xf32>
    %988 = arith.addf %955, %987 : vector<8x128xf32>
    %c238 = arith.constant 238 : index
    %989 = memref.load %arg7[%c238] : memref<288xf32, #tpu.memory_space<smem>>
    %990 = vector.broadcast %989 : f32 to vector<8x128xf32>
    %991 = arith.mulf %990, %964 : vector<8x128xf32>
    %992 = arith.addf %959, %991 : vector<8x128xf32>
    %c274 = arith.constant 274 : index
    %993 = memref.load %arg7[%c274] : memref<288xf32, #tpu.memory_space<smem>>
    %994 = vector.broadcast %993 : f32 to vector<8x128xf32>
    %995 = arith.mulf %994, %964 : vector<8x128xf32>
    %996 = arith.addf %963, %995 : vector<8x128xf32>
    %997 = vector.extract_strided_slice %210 {offsets = [1, 2], sizes = [8, 128], strides = [1, 1]} : vector<10x130xf32> to vector<8x128xf32>
    %c23_84 = arith.constant 23 : index
    %998 = memref.load %arg7[%c23_84] : memref<288xf32, #tpu.memory_space<smem>>
    %999 = vector.broadcast %998 : f32 to vector<8x128xf32>
    %1000 = arith.mulf %999, %997 : vector<8x128xf32>
    %1001 = arith.addf %968, %1000 : vector<8x128xf32>
    %c59 = arith.constant 59 : index
    %1002 = memref.load %arg7[%c59] : memref<288xf32, #tpu.memory_space<smem>>
    %1003 = vector.broadcast %1002 : f32 to vector<8x128xf32>
    %1004 = arith.mulf %1003, %997 : vector<8x128xf32>
    %1005 = arith.addf %972, %1004 : vector<8x128xf32>
    %c95 = arith.constant 95 : index
    %1006 = memref.load %arg7[%c95] : memref<288xf32, #tpu.memory_space<smem>>
    %1007 = vector.broadcast %1006 : f32 to vector<8x128xf32>
    %1008 = arith.mulf %1007, %997 : vector<8x128xf32>
    %1009 = arith.addf %976, %1008 : vector<8x128xf32>
    %c131 = arith.constant 131 : index
    %1010 = memref.load %arg7[%c131] : memref<288xf32, #tpu.memory_space<smem>>
    %1011 = vector.broadcast %1010 : f32 to vector<8x128xf32>
    %1012 = arith.mulf %1011, %997 : vector<8x128xf32>
    %1013 = arith.addf %980, %1012 : vector<8x128xf32>
    %c167 = arith.constant 167 : index
    %1014 = memref.load %arg7[%c167] : memref<288xf32, #tpu.memory_space<smem>>
    %1015 = vector.broadcast %1014 : f32 to vector<8x128xf32>
    %1016 = arith.mulf %1015, %997 : vector<8x128xf32>
    %1017 = arith.addf %984, %1016 : vector<8x128xf32>
    %c203 = arith.constant 203 : index
    %1018 = memref.load %arg7[%c203] : memref<288xf32, #tpu.memory_space<smem>>
    %1019 = vector.broadcast %1018 : f32 to vector<8x128xf32>
    %1020 = arith.mulf %1019, %997 : vector<8x128xf32>
    %1021 = arith.addf %988, %1020 : vector<8x128xf32>
    %c239 = arith.constant 239 : index
    %1022 = memref.load %arg7[%c239] : memref<288xf32, #tpu.memory_space<smem>>
    %1023 = vector.broadcast %1022 : f32 to vector<8x128xf32>
    %1024 = arith.mulf %1023, %997 : vector<8x128xf32>
    %1025 = arith.addf %992, %1024 : vector<8x128xf32>
    %c275 = arith.constant 275 : index
    %1026 = memref.load %arg7[%c275] : memref<288xf32, #tpu.memory_space<smem>>
    %1027 = vector.broadcast %1026 : f32 to vector<8x128xf32>
    %1028 = arith.mulf %1027, %997 : vector<8x128xf32>
    %1029 = arith.addf %996, %1028 : vector<8x128xf32>
    %1030 = vector.extract_strided_slice %210 {offsets = [2, 0], sizes = [8, 128], strides = [1, 1]} : vector<10x130xf32> to vector<8x128xf32>
    %c24_85 = arith.constant 24 : index
    %1031 = memref.load %arg7[%c24_85] : memref<288xf32, #tpu.memory_space<smem>>
    %1032 = vector.broadcast %1031 : f32 to vector<8x128xf32>
    %1033 = arith.mulf %1032, %1030 : vector<8x128xf32>
    %1034 = arith.addf %1001, %1033 : vector<8x128xf32>
    %c60 = arith.constant 60 : index
    %1035 = memref.load %arg7[%c60] : memref<288xf32, #tpu.memory_space<smem>>
    %1036 = vector.broadcast %1035 : f32 to vector<8x128xf32>
    %1037 = arith.mulf %1036, %1030 : vector<8x128xf32>
    %1038 = arith.addf %1005, %1037 : vector<8x128xf32>
    %c96 = arith.constant 96 : index
    %1039 = memref.load %arg7[%c96] : memref<288xf32, #tpu.memory_space<smem>>
    %1040 = vector.broadcast %1039 : f32 to vector<8x128xf32>
    %1041 = arith.mulf %1040, %1030 : vector<8x128xf32>
    %1042 = arith.addf %1009, %1041 : vector<8x128xf32>
    %c132 = arith.constant 132 : index
    %1043 = memref.load %arg7[%c132] : memref<288xf32, #tpu.memory_space<smem>>
    %1044 = vector.broadcast %1043 : f32 to vector<8x128xf32>
    %1045 = arith.mulf %1044, %1030 : vector<8x128xf32>
    %1046 = arith.addf %1013, %1045 : vector<8x128xf32>
    %c168 = arith.constant 168 : index
    %1047 = memref.load %arg7[%c168] : memref<288xf32, #tpu.memory_space<smem>>
    %1048 = vector.broadcast %1047 : f32 to vector<8x128xf32>
    %1049 = arith.mulf %1048, %1030 : vector<8x128xf32>
    %1050 = arith.addf %1017, %1049 : vector<8x128xf32>
    %c204 = arith.constant 204 : index
    %1051 = memref.load %arg7[%c204] : memref<288xf32, #tpu.memory_space<smem>>
    %1052 = vector.broadcast %1051 : f32 to vector<8x128xf32>
    %1053 = arith.mulf %1052, %1030 : vector<8x128xf32>
    %1054 = arith.addf %1021, %1053 : vector<8x128xf32>
    %c240 = arith.constant 240 : index
    %1055 = memref.load %arg7[%c240] : memref<288xf32, #tpu.memory_space<smem>>
    %1056 = vector.broadcast %1055 : f32 to vector<8x128xf32>
    %1057 = arith.mulf %1056, %1030 : vector<8x128xf32>
    %1058 = arith.addf %1025, %1057 : vector<8x128xf32>
    %c276 = arith.constant 276 : index
    %1059 = memref.load %arg7[%c276] : memref<288xf32, #tpu.memory_space<smem>>
    %1060 = vector.broadcast %1059 : f32 to vector<8x128xf32>
    %1061 = arith.mulf %1060, %1030 : vector<8x128xf32>
    %1062 = arith.addf %1029, %1061 : vector<8x128xf32>
    %1063 = vector.extract_strided_slice %210 {offsets = [2, 1], sizes = [8, 128], strides = [1, 1]} : vector<10x130xf32> to vector<8x128xf32>
    %c25_86 = arith.constant 25 : index
    %1064 = memref.load %arg7[%c25_86] : memref<288xf32, #tpu.memory_space<smem>>
    %1065 = vector.broadcast %1064 : f32 to vector<8x128xf32>
    %1066 = arith.mulf %1065, %1063 : vector<8x128xf32>
    %1067 = arith.addf %1034, %1066 : vector<8x128xf32>
    %c61 = arith.constant 61 : index
    %1068 = memref.load %arg7[%c61] : memref<288xf32, #tpu.memory_space<smem>>
    %1069 = vector.broadcast %1068 : f32 to vector<8x128xf32>
    %1070 = arith.mulf %1069, %1063 : vector<8x128xf32>
    %1071 = arith.addf %1038, %1070 : vector<8x128xf32>
    %c97 = arith.constant 97 : index
    %1072 = memref.load %arg7[%c97] : memref<288xf32, #tpu.memory_space<smem>>
    %1073 = vector.broadcast %1072 : f32 to vector<8x128xf32>
    %1074 = arith.mulf %1073, %1063 : vector<8x128xf32>
    %1075 = arith.addf %1042, %1074 : vector<8x128xf32>
    %c133 = arith.constant 133 : index
    %1076 = memref.load %arg7[%c133] : memref<288xf32, #tpu.memory_space<smem>>
    %1077 = vector.broadcast %1076 : f32 to vector<8x128xf32>
    %1078 = arith.mulf %1077, %1063 : vector<8x128xf32>
    %1079 = arith.addf %1046, %1078 : vector<8x128xf32>
    %c169 = arith.constant 169 : index
    %1080 = memref.load %arg7[%c169] : memref<288xf32, #tpu.memory_space<smem>>
    %1081 = vector.broadcast %1080 : f32 to vector<8x128xf32>
    %1082 = arith.mulf %1081, %1063 : vector<8x128xf32>
    %1083 = arith.addf %1050, %1082 : vector<8x128xf32>
    %c205 = arith.constant 205 : index
    %1084 = memref.load %arg7[%c205] : memref<288xf32, #tpu.memory_space<smem>>
    %1085 = vector.broadcast %1084 : f32 to vector<8x128xf32>
    %1086 = arith.mulf %1085, %1063 : vector<8x128xf32>
    %1087 = arith.addf %1054, %1086 : vector<8x128xf32>
    %c241 = arith.constant 241 : index
    %1088 = memref.load %arg7[%c241] : memref<288xf32, #tpu.memory_space<smem>>
    %1089 = vector.broadcast %1088 : f32 to vector<8x128xf32>
    %1090 = arith.mulf %1089, %1063 : vector<8x128xf32>
    %1091 = arith.addf %1058, %1090 : vector<8x128xf32>
    %c277 = arith.constant 277 : index
    %1092 = memref.load %arg7[%c277] : memref<288xf32, #tpu.memory_space<smem>>
    %1093 = vector.broadcast %1092 : f32 to vector<8x128xf32>
    %1094 = arith.mulf %1093, %1063 : vector<8x128xf32>
    %1095 = arith.addf %1062, %1094 : vector<8x128xf32>
    %1096 = vector.extract_strided_slice %210 {offsets = [2, 2], sizes = [8, 128], strides = [1, 1]} : vector<10x130xf32> to vector<8x128xf32>
    %c26_87 = arith.constant 26 : index
    %1097 = memref.load %arg7[%c26_87] : memref<288xf32, #tpu.memory_space<smem>>
    %1098 = vector.broadcast %1097 : f32 to vector<8x128xf32>
    %1099 = arith.mulf %1098, %1096 : vector<8x128xf32>
    %1100 = arith.addf %1067, %1099 : vector<8x128xf32>
    %c62 = arith.constant 62 : index
    %1101 = memref.load %arg7[%c62] : memref<288xf32, #tpu.memory_space<smem>>
    %1102 = vector.broadcast %1101 : f32 to vector<8x128xf32>
    %1103 = arith.mulf %1102, %1096 : vector<8x128xf32>
    %1104 = arith.addf %1071, %1103 : vector<8x128xf32>
    %c98 = arith.constant 98 : index
    %1105 = memref.load %arg7[%c98] : memref<288xf32, #tpu.memory_space<smem>>
    %1106 = vector.broadcast %1105 : f32 to vector<8x128xf32>
    %1107 = arith.mulf %1106, %1096 : vector<8x128xf32>
    %1108 = arith.addf %1075, %1107 : vector<8x128xf32>
    %c134 = arith.constant 134 : index
    %1109 = memref.load %arg7[%c134] : memref<288xf32, #tpu.memory_space<smem>>
    %1110 = vector.broadcast %1109 : f32 to vector<8x128xf32>
    %1111 = arith.mulf %1110, %1096 : vector<8x128xf32>
    %1112 = arith.addf %1079, %1111 : vector<8x128xf32>
    %c170 = arith.constant 170 : index
    %1113 = memref.load %arg7[%c170] : memref<288xf32, #tpu.memory_space<smem>>
    %1114 = vector.broadcast %1113 : f32 to vector<8x128xf32>
    %1115 = arith.mulf %1114, %1096 : vector<8x128xf32>
    %1116 = arith.addf %1083, %1115 : vector<8x128xf32>
    %c206 = arith.constant 206 : index
    %1117 = memref.load %arg7[%c206] : memref<288xf32, #tpu.memory_space<smem>>
    %1118 = vector.broadcast %1117 : f32 to vector<8x128xf32>
    %1119 = arith.mulf %1118, %1096 : vector<8x128xf32>
    %1120 = arith.addf %1087, %1119 : vector<8x128xf32>
    %c242 = arith.constant 242 : index
    %1121 = memref.load %arg7[%c242] : memref<288xf32, #tpu.memory_space<smem>>
    %1122 = vector.broadcast %1121 : f32 to vector<8x128xf32>
    %1123 = arith.mulf %1122, %1096 : vector<8x128xf32>
    %1124 = arith.addf %1091, %1123 : vector<8x128xf32>
    %c278 = arith.constant 278 : index
    %1125 = memref.load %arg7[%c278] : memref<288xf32, #tpu.memory_space<smem>>
    %1126 = vector.broadcast %1125 : f32 to vector<8x128xf32>
    %1127 = arith.mulf %1126, %1096 : vector<8x128xf32>
    %1128 = arith.addf %1095, %1127 : vector<8x128xf32>
    %1129 = vector.extract_strided_slice %216 {offsets = [0, 0], sizes = [8, 128], strides = [1, 1]} : vector<10x130xf32> to vector<8x128xf32>
    %c27_88 = arith.constant 27 : index
    %1130 = memref.load %arg7[%c27_88] : memref<288xf32, #tpu.memory_space<smem>>
    %1131 = vector.broadcast %1130 : f32 to vector<8x128xf32>
    %1132 = arith.mulf %1131, %1129 : vector<8x128xf32>
    %1133 = arith.addf %1100, %1132 : vector<8x128xf32>
    %c63 = arith.constant 63 : index
    %1134 = memref.load %arg7[%c63] : memref<288xf32, #tpu.memory_space<smem>>
    %1135 = vector.broadcast %1134 : f32 to vector<8x128xf32>
    %1136 = arith.mulf %1135, %1129 : vector<8x128xf32>
    %1137 = arith.addf %1104, %1136 : vector<8x128xf32>
    %c99 = arith.constant 99 : index
    %1138 = memref.load %arg7[%c99] : memref<288xf32, #tpu.memory_space<smem>>
    %1139 = vector.broadcast %1138 : f32 to vector<8x128xf32>
    %1140 = arith.mulf %1139, %1129 : vector<8x128xf32>
    %1141 = arith.addf %1108, %1140 : vector<8x128xf32>
    %c135 = arith.constant 135 : index
    %1142 = memref.load %arg7[%c135] : memref<288xf32, #tpu.memory_space<smem>>
    %1143 = vector.broadcast %1142 : f32 to vector<8x128xf32>
    %1144 = arith.mulf %1143, %1129 : vector<8x128xf32>
    %1145 = arith.addf %1112, %1144 : vector<8x128xf32>
    %c171 = arith.constant 171 : index
    %1146 = memref.load %arg7[%c171] : memref<288xf32, #tpu.memory_space<smem>>
    %1147 = vector.broadcast %1146 : f32 to vector<8x128xf32>
    %1148 = arith.mulf %1147, %1129 : vector<8x128xf32>
    %1149 = arith.addf %1116, %1148 : vector<8x128xf32>
    %c207 = arith.constant 207 : index
    %1150 = memref.load %arg7[%c207] : memref<288xf32, #tpu.memory_space<smem>>
    %1151 = vector.broadcast %1150 : f32 to vector<8x128xf32>
    %1152 = arith.mulf %1151, %1129 : vector<8x128xf32>
    %1153 = arith.addf %1120, %1152 : vector<8x128xf32>
    %c243 = arith.constant 243 : index
    %1154 = memref.load %arg7[%c243] : memref<288xf32, #tpu.memory_space<smem>>
    %1155 = vector.broadcast %1154 : f32 to vector<8x128xf32>
    %1156 = arith.mulf %1155, %1129 : vector<8x128xf32>
    %1157 = arith.addf %1124, %1156 : vector<8x128xf32>
    %c279 = arith.constant 279 : index
    %1158 = memref.load %arg7[%c279] : memref<288xf32, #tpu.memory_space<smem>>
    %1159 = vector.broadcast %1158 : f32 to vector<8x128xf32>
    %1160 = arith.mulf %1159, %1129 : vector<8x128xf32>
    %1161 = arith.addf %1128, %1160 : vector<8x128xf32>
    %1162 = vector.extract_strided_slice %216 {offsets = [0, 1], sizes = [8, 128], strides = [1, 1]} : vector<10x130xf32> to vector<8x128xf32>
    %c28_89 = arith.constant 28 : index
    %1163 = memref.load %arg7[%c28_89] : memref<288xf32, #tpu.memory_space<smem>>
    %1164 = vector.broadcast %1163 : f32 to vector<8x128xf32>
    %1165 = arith.mulf %1164, %1162 : vector<8x128xf32>
    %1166 = arith.addf %1133, %1165 : vector<8x128xf32>
    %c64 = arith.constant 64 : index
    %1167 = memref.load %arg7[%c64] : memref<288xf32, #tpu.memory_space<smem>>
    %1168 = vector.broadcast %1167 : f32 to vector<8x128xf32>
    %1169 = arith.mulf %1168, %1162 : vector<8x128xf32>
    %1170 = arith.addf %1137, %1169 : vector<8x128xf32>
    %c100 = arith.constant 100 : index
    %1171 = memref.load %arg7[%c100] : memref<288xf32, #tpu.memory_space<smem>>
    %1172 = vector.broadcast %1171 : f32 to vector<8x128xf32>
    %1173 = arith.mulf %1172, %1162 : vector<8x128xf32>
    %1174 = arith.addf %1141, %1173 : vector<8x128xf32>
    %c136 = arith.constant 136 : index
    %1175 = memref.load %arg7[%c136] : memref<288xf32, #tpu.memory_space<smem>>
    %1176 = vector.broadcast %1175 : f32 to vector<8x128xf32>
    %1177 = arith.mulf %1176, %1162 : vector<8x128xf32>
    %1178 = arith.addf %1145, %1177 : vector<8x128xf32>
    %c172 = arith.constant 172 : index
    %1179 = memref.load %arg7[%c172] : memref<288xf32, #tpu.memory_space<smem>>
    %1180 = vector.broadcast %1179 : f32 to vector<8x128xf32>
    %1181 = arith.mulf %1180, %1162 : vector<8x128xf32>
    %1182 = arith.addf %1149, %1181 : vector<8x128xf32>
    %c208 = arith.constant 208 : index
    %1183 = memref.load %arg7[%c208] : memref<288xf32, #tpu.memory_space<smem>>
    %1184 = vector.broadcast %1183 : f32 to vector<8x128xf32>
    %1185 = arith.mulf %1184, %1162 : vector<8x128xf32>
    %1186 = arith.addf %1153, %1185 : vector<8x128xf32>
    %c244 = arith.constant 244 : index
    %1187 = memref.load %arg7[%c244] : memref<288xf32, #tpu.memory_space<smem>>
    %1188 = vector.broadcast %1187 : f32 to vector<8x128xf32>
    %1189 = arith.mulf %1188, %1162 : vector<8x128xf32>
    %1190 = arith.addf %1157, %1189 : vector<8x128xf32>
    %c280 = arith.constant 280 : index
    %1191 = memref.load %arg7[%c280] : memref<288xf32, #tpu.memory_space<smem>>
    %1192 = vector.broadcast %1191 : f32 to vector<8x128xf32>
    %1193 = arith.mulf %1192, %1162 : vector<8x128xf32>
    %1194 = arith.addf %1161, %1193 : vector<8x128xf32>
    %1195 = vector.extract_strided_slice %216 {offsets = [0, 2], sizes = [8, 128], strides = [1, 1]} : vector<10x130xf32> to vector<8x128xf32>
    %c29_90 = arith.constant 29 : index
    %1196 = memref.load %arg7[%c29_90] : memref<288xf32, #tpu.memory_space<smem>>
    %1197 = vector.broadcast %1196 : f32 to vector<8x128xf32>
    %1198 = arith.mulf %1197, %1195 : vector<8x128xf32>
    %1199 = arith.addf %1166, %1198 : vector<8x128xf32>
    %c65 = arith.constant 65 : index
    %1200 = memref.load %arg7[%c65] : memref<288xf32, #tpu.memory_space<smem>>
    %1201 = vector.broadcast %1200 : f32 to vector<8x128xf32>
    %1202 = arith.mulf %1201, %1195 : vector<8x128xf32>
    %1203 = arith.addf %1170, %1202 : vector<8x128xf32>
    %c101 = arith.constant 101 : index
    %1204 = memref.load %arg7[%c101] : memref<288xf32, #tpu.memory_space<smem>>
    %1205 = vector.broadcast %1204 : f32 to vector<8x128xf32>
    %1206 = arith.mulf %1205, %1195 : vector<8x128xf32>
    %1207 = arith.addf %1174, %1206 : vector<8x128xf32>
    %c137 = arith.constant 137 : index
    %1208 = memref.load %arg7[%c137] : memref<288xf32, #tpu.memory_space<smem>>
    %1209 = vector.broadcast %1208 : f32 to vector<8x128xf32>
    %1210 = arith.mulf %1209, %1195 : vector<8x128xf32>
    %1211 = arith.addf %1178, %1210 : vector<8x128xf32>
    %c173 = arith.constant 173 : index
    %1212 = memref.load %arg7[%c173] : memref<288xf32, #tpu.memory_space<smem>>
    %1213 = vector.broadcast %1212 : f32 to vector<8x128xf32>
    %1214 = arith.mulf %1213, %1195 : vector<8x128xf32>
    %1215 = arith.addf %1182, %1214 : vector<8x128xf32>
    %c209 = arith.constant 209 : index
    %1216 = memref.load %arg7[%c209] : memref<288xf32, #tpu.memory_space<smem>>
    %1217 = vector.broadcast %1216 : f32 to vector<8x128xf32>
    %1218 = arith.mulf %1217, %1195 : vector<8x128xf32>
    %1219 = arith.addf %1186, %1218 : vector<8x128xf32>
    %c245 = arith.constant 245 : index
    %1220 = memref.load %arg7[%c245] : memref<288xf32, #tpu.memory_space<smem>>
    %1221 = vector.broadcast %1220 : f32 to vector<8x128xf32>
    %1222 = arith.mulf %1221, %1195 : vector<8x128xf32>
    %1223 = arith.addf %1190, %1222 : vector<8x128xf32>
    %c281 = arith.constant 281 : index
    %1224 = memref.load %arg7[%c281] : memref<288xf32, #tpu.memory_space<smem>>
    %1225 = vector.broadcast %1224 : f32 to vector<8x128xf32>
    %1226 = arith.mulf %1225, %1195 : vector<8x128xf32>
    %1227 = arith.addf %1194, %1226 : vector<8x128xf32>
    %1228 = vector.extract_strided_slice %216 {offsets = [1, 0], sizes = [8, 128], strides = [1, 1]} : vector<10x130xf32> to vector<8x128xf32>
    %c30_91 = arith.constant 30 : index
    %1229 = memref.load %arg7[%c30_91] : memref<288xf32, #tpu.memory_space<smem>>
    %1230 = vector.broadcast %1229 : f32 to vector<8x128xf32>
    %1231 = arith.mulf %1230, %1228 : vector<8x128xf32>
    %1232 = arith.addf %1199, %1231 : vector<8x128xf32>
    %c66 = arith.constant 66 : index
    %1233 = memref.load %arg7[%c66] : memref<288xf32, #tpu.memory_space<smem>>
    %1234 = vector.broadcast %1233 : f32 to vector<8x128xf32>
    %1235 = arith.mulf %1234, %1228 : vector<8x128xf32>
    %1236 = arith.addf %1203, %1235 : vector<8x128xf32>
    %c102 = arith.constant 102 : index
    %1237 = memref.load %arg7[%c102] : memref<288xf32, #tpu.memory_space<smem>>
    %1238 = vector.broadcast %1237 : f32 to vector<8x128xf32>
    %1239 = arith.mulf %1238, %1228 : vector<8x128xf32>
    %1240 = arith.addf %1207, %1239 : vector<8x128xf32>
    %c138 = arith.constant 138 : index
    %1241 = memref.load %arg7[%c138] : memref<288xf32, #tpu.memory_space<smem>>
    %1242 = vector.broadcast %1241 : f32 to vector<8x128xf32>
    %1243 = arith.mulf %1242, %1228 : vector<8x128xf32>
    %1244 = arith.addf %1211, %1243 : vector<8x128xf32>
    %c174 = arith.constant 174 : index
    %1245 = memref.load %arg7[%c174] : memref<288xf32, #tpu.memory_space<smem>>
    %1246 = vector.broadcast %1245 : f32 to vector<8x128xf32>
    %1247 = arith.mulf %1246, %1228 : vector<8x128xf32>
    %1248 = arith.addf %1215, %1247 : vector<8x128xf32>
    %c210 = arith.constant 210 : index
    %1249 = memref.load %arg7[%c210] : memref<288xf32, #tpu.memory_space<smem>>
    %1250 = vector.broadcast %1249 : f32 to vector<8x128xf32>
    %1251 = arith.mulf %1250, %1228 : vector<8x128xf32>
    %1252 = arith.addf %1219, %1251 : vector<8x128xf32>
    %c246 = arith.constant 246 : index
    %1253 = memref.load %arg7[%c246] : memref<288xf32, #tpu.memory_space<smem>>
    %1254 = vector.broadcast %1253 : f32 to vector<8x128xf32>
    %1255 = arith.mulf %1254, %1228 : vector<8x128xf32>
    %1256 = arith.addf %1223, %1255 : vector<8x128xf32>
    %c282 = arith.constant 282 : index
    %1257 = memref.load %arg7[%c282] : memref<288xf32, #tpu.memory_space<smem>>
    %1258 = vector.broadcast %1257 : f32 to vector<8x128xf32>
    %1259 = arith.mulf %1258, %1228 : vector<8x128xf32>
    %1260 = arith.addf %1227, %1259 : vector<8x128xf32>
    %1261 = vector.extract_strided_slice %216 {offsets = [1, 1], sizes = [8, 128], strides = [1, 1]} : vector<10x130xf32> to vector<8x128xf32>
    %c31_92 = arith.constant 31 : index
    %1262 = memref.load %arg7[%c31_92] : memref<288xf32, #tpu.memory_space<smem>>
    %1263 = vector.broadcast %1262 : f32 to vector<8x128xf32>
    %1264 = arith.mulf %1263, %1261 : vector<8x128xf32>
    %1265 = arith.addf %1232, %1264 : vector<8x128xf32>
    %c67 = arith.constant 67 : index
    %1266 = memref.load %arg7[%c67] : memref<288xf32, #tpu.memory_space<smem>>
    %1267 = vector.broadcast %1266 : f32 to vector<8x128xf32>
    %1268 = arith.mulf %1267, %1261 : vector<8x128xf32>
    %1269 = arith.addf %1236, %1268 : vector<8x128xf32>
    %c103 = arith.constant 103 : index
    %1270 = memref.load %arg7[%c103] : memref<288xf32, #tpu.memory_space<smem>>
    %1271 = vector.broadcast %1270 : f32 to vector<8x128xf32>
    %1272 = arith.mulf %1271, %1261 : vector<8x128xf32>
    %1273 = arith.addf %1240, %1272 : vector<8x128xf32>
    %c139 = arith.constant 139 : index
    %1274 = memref.load %arg7[%c139] : memref<288xf32, #tpu.memory_space<smem>>
    %1275 = vector.broadcast %1274 : f32 to vector<8x128xf32>
    %1276 = arith.mulf %1275, %1261 : vector<8x128xf32>
    %1277 = arith.addf %1244, %1276 : vector<8x128xf32>
    %c175 = arith.constant 175 : index
    %1278 = memref.load %arg7[%c175] : memref<288xf32, #tpu.memory_space<smem>>
    %1279 = vector.broadcast %1278 : f32 to vector<8x128xf32>
    %1280 = arith.mulf %1279, %1261 : vector<8x128xf32>
    %1281 = arith.addf %1248, %1280 : vector<8x128xf32>
    %c211 = arith.constant 211 : index
    %1282 = memref.load %arg7[%c211] : memref<288xf32, #tpu.memory_space<smem>>
    %1283 = vector.broadcast %1282 : f32 to vector<8x128xf32>
    %1284 = arith.mulf %1283, %1261 : vector<8x128xf32>
    %1285 = arith.addf %1252, %1284 : vector<8x128xf32>
    %c247 = arith.constant 247 : index
    %1286 = memref.load %arg7[%c247] : memref<288xf32, #tpu.memory_space<smem>>
    %1287 = vector.broadcast %1286 : f32 to vector<8x128xf32>
    %1288 = arith.mulf %1287, %1261 : vector<8x128xf32>
    %1289 = arith.addf %1256, %1288 : vector<8x128xf32>
    %c283 = arith.constant 283 : index
    %1290 = memref.load %arg7[%c283] : memref<288xf32, #tpu.memory_space<smem>>
    %1291 = vector.broadcast %1290 : f32 to vector<8x128xf32>
    %1292 = arith.mulf %1291, %1261 : vector<8x128xf32>
    %1293 = arith.addf %1260, %1292 : vector<8x128xf32>
    %1294 = vector.extract_strided_slice %216 {offsets = [1, 2], sizes = [8, 128], strides = [1, 1]} : vector<10x130xf32> to vector<8x128xf32>
    %c32_93 = arith.constant 32 : index
    %1295 = memref.load %arg7[%c32_93] : memref<288xf32, #tpu.memory_space<smem>>
    %1296 = vector.broadcast %1295 : f32 to vector<8x128xf32>
    %1297 = arith.mulf %1296, %1294 : vector<8x128xf32>
    %1298 = arith.addf %1265, %1297 : vector<8x128xf32>
    %c68 = arith.constant 68 : index
    %1299 = memref.load %arg7[%c68] : memref<288xf32, #tpu.memory_space<smem>>
    %1300 = vector.broadcast %1299 : f32 to vector<8x128xf32>
    %1301 = arith.mulf %1300, %1294 : vector<8x128xf32>
    %1302 = arith.addf %1269, %1301 : vector<8x128xf32>
    %c104 = arith.constant 104 : index
    %1303 = memref.load %arg7[%c104] : memref<288xf32, #tpu.memory_space<smem>>
    %1304 = vector.broadcast %1303 : f32 to vector<8x128xf32>
    %1305 = arith.mulf %1304, %1294 : vector<8x128xf32>
    %1306 = arith.addf %1273, %1305 : vector<8x128xf32>
    %c140 = arith.constant 140 : index
    %1307 = memref.load %arg7[%c140] : memref<288xf32, #tpu.memory_space<smem>>
    %1308 = vector.broadcast %1307 : f32 to vector<8x128xf32>
    %1309 = arith.mulf %1308, %1294 : vector<8x128xf32>
    %1310 = arith.addf %1277, %1309 : vector<8x128xf32>
    %c176 = arith.constant 176 : index
    %1311 = memref.load %arg7[%c176] : memref<288xf32, #tpu.memory_space<smem>>
    %1312 = vector.broadcast %1311 : f32 to vector<8x128xf32>
    %1313 = arith.mulf %1312, %1294 : vector<8x128xf32>
    %1314 = arith.addf %1281, %1313 : vector<8x128xf32>
    %c212 = arith.constant 212 : index
    %1315 = memref.load %arg7[%c212] : memref<288xf32, #tpu.memory_space<smem>>
    %1316 = vector.broadcast %1315 : f32 to vector<8x128xf32>
    %1317 = arith.mulf %1316, %1294 : vector<8x128xf32>
    %1318 = arith.addf %1285, %1317 : vector<8x128xf32>
    %c248 = arith.constant 248 : index
    %1319 = memref.load %arg7[%c248] : memref<288xf32, #tpu.memory_space<smem>>
    %1320 = vector.broadcast %1319 : f32 to vector<8x128xf32>
    %1321 = arith.mulf %1320, %1294 : vector<8x128xf32>
    %1322 = arith.addf %1289, %1321 : vector<8x128xf32>
    %c284 = arith.constant 284 : index
    %1323 = memref.load %arg7[%c284] : memref<288xf32, #tpu.memory_space<smem>>
    %1324 = vector.broadcast %1323 : f32 to vector<8x128xf32>
    %1325 = arith.mulf %1324, %1294 : vector<8x128xf32>
    %1326 = arith.addf %1293, %1325 : vector<8x128xf32>
    %1327 = vector.extract_strided_slice %216 {offsets = [2, 0], sizes = [8, 128], strides = [1, 1]} : vector<10x130xf32> to vector<8x128xf32>
    %c33_94 = arith.constant 33 : index
    %1328 = memref.load %arg7[%c33_94] : memref<288xf32, #tpu.memory_space<smem>>
    %1329 = vector.broadcast %1328 : f32 to vector<8x128xf32>
    %1330 = arith.mulf %1329, %1327 : vector<8x128xf32>
    %1331 = arith.addf %1298, %1330 : vector<8x128xf32>
    %c69 = arith.constant 69 : index
    %1332 = memref.load %arg7[%c69] : memref<288xf32, #tpu.memory_space<smem>>
    %1333 = vector.broadcast %1332 : f32 to vector<8x128xf32>
    %1334 = arith.mulf %1333, %1327 : vector<8x128xf32>
    %1335 = arith.addf %1302, %1334 : vector<8x128xf32>
    %c105 = arith.constant 105 : index
    %1336 = memref.load %arg7[%c105] : memref<288xf32, #tpu.memory_space<smem>>
    %1337 = vector.broadcast %1336 : f32 to vector<8x128xf32>
    %1338 = arith.mulf %1337, %1327 : vector<8x128xf32>
    %1339 = arith.addf %1306, %1338 : vector<8x128xf32>
    %c141 = arith.constant 141 : index
    %1340 = memref.load %arg7[%c141] : memref<288xf32, #tpu.memory_space<smem>>
    %1341 = vector.broadcast %1340 : f32 to vector<8x128xf32>
    %1342 = arith.mulf %1341, %1327 : vector<8x128xf32>
    %1343 = arith.addf %1310, %1342 : vector<8x128xf32>
    %c177 = arith.constant 177 : index
    %1344 = memref.load %arg7[%c177] : memref<288xf32, #tpu.memory_space<smem>>
    %1345 = vector.broadcast %1344 : f32 to vector<8x128xf32>
    %1346 = arith.mulf %1345, %1327 : vector<8x128xf32>
    %1347 = arith.addf %1314, %1346 : vector<8x128xf32>
    %c213 = arith.constant 213 : index
    %1348 = memref.load %arg7[%c213] : memref<288xf32, #tpu.memory_space<smem>>
    %1349 = vector.broadcast %1348 : f32 to vector<8x128xf32>
    %1350 = arith.mulf %1349, %1327 : vector<8x128xf32>
    %1351 = arith.addf %1318, %1350 : vector<8x128xf32>
    %c249 = arith.constant 249 : index
    %1352 = memref.load %arg7[%c249] : memref<288xf32, #tpu.memory_space<smem>>
    %1353 = vector.broadcast %1352 : f32 to vector<8x128xf32>
    %1354 = arith.mulf %1353, %1327 : vector<8x128xf32>
    %1355 = arith.addf %1322, %1354 : vector<8x128xf32>
    %c285 = arith.constant 285 : index
    %1356 = memref.load %arg7[%c285] : memref<288xf32, #tpu.memory_space<smem>>
    %1357 = vector.broadcast %1356 : f32 to vector<8x128xf32>
    %1358 = arith.mulf %1357, %1327 : vector<8x128xf32>
    %1359 = arith.addf %1326, %1358 : vector<8x128xf32>
    %1360 = vector.extract_strided_slice %216 {offsets = [2, 1], sizes = [8, 128], strides = [1, 1]} : vector<10x130xf32> to vector<8x128xf32>
    %c34_95 = arith.constant 34 : index
    %1361 = memref.load %arg7[%c34_95] : memref<288xf32, #tpu.memory_space<smem>>
    %1362 = vector.broadcast %1361 : f32 to vector<8x128xf32>
    %1363 = arith.mulf %1362, %1360 : vector<8x128xf32>
    %1364 = arith.addf %1331, %1363 : vector<8x128xf32>
    %c70 = arith.constant 70 : index
    %1365 = memref.load %arg7[%c70] : memref<288xf32, #tpu.memory_space<smem>>
    %1366 = vector.broadcast %1365 : f32 to vector<8x128xf32>
    %1367 = arith.mulf %1366, %1360 : vector<8x128xf32>
    %1368 = arith.addf %1335, %1367 : vector<8x128xf32>
    %c106 = arith.constant 106 : index
    %1369 = memref.load %arg7[%c106] : memref<288xf32, #tpu.memory_space<smem>>
    %1370 = vector.broadcast %1369 : f32 to vector<8x128xf32>
    %1371 = arith.mulf %1370, %1360 : vector<8x128xf32>
    %1372 = arith.addf %1339, %1371 : vector<8x128xf32>
    %c142 = arith.constant 142 : index
    %1373 = memref.load %arg7[%c142] : memref<288xf32, #tpu.memory_space<smem>>
    %1374 = vector.broadcast %1373 : f32 to vector<8x128xf32>
    %1375 = arith.mulf %1374, %1360 : vector<8x128xf32>
    %1376 = arith.addf %1343, %1375 : vector<8x128xf32>
    %c178 = arith.constant 178 : index
    %1377 = memref.load %arg7[%c178] : memref<288xf32, #tpu.memory_space<smem>>
    %1378 = vector.broadcast %1377 : f32 to vector<8x128xf32>
    %1379 = arith.mulf %1378, %1360 : vector<8x128xf32>
    %1380 = arith.addf %1347, %1379 : vector<8x128xf32>
    %c214 = arith.constant 214 : index
    %1381 = memref.load %arg7[%c214] : memref<288xf32, #tpu.memory_space<smem>>
    %1382 = vector.broadcast %1381 : f32 to vector<8x128xf32>
    %1383 = arith.mulf %1382, %1360 : vector<8x128xf32>
    %1384 = arith.addf %1351, %1383 : vector<8x128xf32>
    %c250 = arith.constant 250 : index
    %1385 = memref.load %arg7[%c250] : memref<288xf32, #tpu.memory_space<smem>>
    %1386 = vector.broadcast %1385 : f32 to vector<8x128xf32>
    %1387 = arith.mulf %1386, %1360 : vector<8x128xf32>
    %1388 = arith.addf %1355, %1387 : vector<8x128xf32>
    %c286 = arith.constant 286 : index
    %1389 = memref.load %arg7[%c286] : memref<288xf32, #tpu.memory_space<smem>>
    %1390 = vector.broadcast %1389 : f32 to vector<8x128xf32>
    %1391 = arith.mulf %1390, %1360 : vector<8x128xf32>
    %1392 = arith.addf %1359, %1391 : vector<8x128xf32>
    %1393 = vector.extract_strided_slice %216 {offsets = [2, 2], sizes = [8, 128], strides = [1, 1]} : vector<10x130xf32> to vector<8x128xf32>
    %c35_96 = arith.constant 35 : index
    %1394 = memref.load %arg7[%c35_96] : memref<288xf32, #tpu.memory_space<smem>>
    %1395 = vector.broadcast %1394 : f32 to vector<8x128xf32>
    %1396 = arith.mulf %1395, %1393 : vector<8x128xf32>
    %1397 = arith.addf %1364, %1396 : vector<8x128xf32>
    %c71 = arith.constant 71 : index
    %1398 = memref.load %arg7[%c71] : memref<288xf32, #tpu.memory_space<smem>>
    %1399 = vector.broadcast %1398 : f32 to vector<8x128xf32>
    %1400 = arith.mulf %1399, %1393 : vector<8x128xf32>
    %1401 = arith.addf %1368, %1400 : vector<8x128xf32>
    %c107 = arith.constant 107 : index
    %1402 = memref.load %arg7[%c107] : memref<288xf32, #tpu.memory_space<smem>>
    %1403 = vector.broadcast %1402 : f32 to vector<8x128xf32>
    %1404 = arith.mulf %1403, %1393 : vector<8x128xf32>
    %1405 = arith.addf %1372, %1404 : vector<8x128xf32>
    %c143 = arith.constant 143 : index
    %1406 = memref.load %arg7[%c143] : memref<288xf32, #tpu.memory_space<smem>>
    %1407 = vector.broadcast %1406 : f32 to vector<8x128xf32>
    %1408 = arith.mulf %1407, %1393 : vector<8x128xf32>
    %1409 = arith.addf %1376, %1408 : vector<8x128xf32>
    %c179 = arith.constant 179 : index
    %1410 = memref.load %arg7[%c179] : memref<288xf32, #tpu.memory_space<smem>>
    %1411 = vector.broadcast %1410 : f32 to vector<8x128xf32>
    %1412 = arith.mulf %1411, %1393 : vector<8x128xf32>
    %1413 = arith.addf %1380, %1412 : vector<8x128xf32>
    %c215 = arith.constant 215 : index
    %1414 = memref.load %arg7[%c215] : memref<288xf32, #tpu.memory_space<smem>>
    %1415 = vector.broadcast %1414 : f32 to vector<8x128xf32>
    %1416 = arith.mulf %1415, %1393 : vector<8x128xf32>
    %1417 = arith.addf %1384, %1416 : vector<8x128xf32>
    %c251 = arith.constant 251 : index
    %1418 = memref.load %arg7[%c251] : memref<288xf32, #tpu.memory_space<smem>>
    %1419 = vector.broadcast %1418 : f32 to vector<8x128xf32>
    %1420 = arith.mulf %1419, %1393 : vector<8x128xf32>
    %1421 = arith.addf %1388, %1420 : vector<8x128xf32>
    %c287 = arith.constant 287 : index
    %1422 = memref.load %arg7[%c287] : memref<288xf32, #tpu.memory_space<smem>>
    %1423 = vector.broadcast %1422 : f32 to vector<8x128xf32>
    %1424 = arith.mulf %1423, %1393 : vector<8x128xf32>
    %1425 = arith.addf %1392, %1424 : vector<8x128xf32>
    %cst_97 = arith.constant 0.000000e+00 : f32
    %cst_98 = arith.constant 2.000000e+01 : f32
    %1426 = vector.broadcast %cst_97 : f32 to vector<8x128xf32>
    %1427 = arith.maximumf %1426, %1397 : vector<8x128xf32>
    %1428 = vector.broadcast %cst_98 : f32 to vector<8x128xf32>
    %1429 = arith.minimumf %1428, %1427 : vector<8x128xf32>
    %cst_99 = arith.constant 0.000000e+00 : f32
    %1430 = vector.broadcast %cst_99 : f32 to vector<8x128xf32>
    %1431 = arith.select %221, %1429, %1430 : vector<8x128xi1>, vector<8x128xf32>
    %c0_100 = arith.constant 0 : index
    %c0_101 = arith.constant 0 : index
    %c0_102 = arith.constant 0 : index
    %c0_103 = arith.constant 0 : index
    %1432 = vector.load %arg9[%c0_100, %c0_101, %c0_102, %c0_103] : memref<1x8x8x128xf32, #tpu.memory_space<vmem>>, vector<1x1x8x128xf32>
    %1433 = vector.shape_cast %1432 : vector<1x1x8x128xf32> to vector<8x128xf32>
    %1434 = vector.shape_cast %1431 : vector<8x128xf32> to vector<1x1x8x128xf32>
    tpu.vector_store %arg9[%c0_100, %c0_101, %c0_102, %c0_103], %1434 {strides = array<i32>} : memref<1x8x8x128xf32, #tpu.memory_space<vmem>>, vector<1x1x8x128xf32>,
    %cst_104 = arith.constant 0.000000e+00 : f32
    %cst_105 = arith.constant 2.000000e+01 : f32
    %1435 = vector.broadcast %cst_104 : f32 to vector<8x128xf32>
    %1436 = arith.maximumf %1435, %1401 : vector<8x128xf32>
    %1437 = vector.broadcast %cst_105 : f32 to vector<8x128xf32>
    %1438 = arith.minimumf %1437, %1436 : vector<8x128xf32>
    %cst_106 = arith.constant 0.000000e+00 : f32
    %1439 = vector.broadcast %cst_106 : f32 to vector<8x128xf32>
    %1440 = arith.select %221, %1438, %1439 : vector<8x128xi1>, vector<8x128xf32>
    %c0_107 = arith.constant 0 : index
    %c1_108 = arith.constant 1 : index
    %c0_109 = arith.constant 0 : index
    %c0_110 = arith.constant 0 : index
    %1441 = vector.load %arg9[%c0_107, %c1_108, %c0_109, %c0_110] : memref<1x8x8x128xf32, #tpu.memory_space<vmem>>, vector<1x1x8x128xf32>
    %1442 = vector.shape_cast %1441 : vector<1x1x8x128xf32> to vector<8x128xf32>
    %1443 = vector.shape_cast %1440 : vector<8x128xf32> to vector<1x1x8x128xf32>
    tpu.vector_store %arg9[%c0_107, %c1_108, %c0_109, %c0_110], %1443 {strides = array<i32>} : memref<1x8x8x128xf32, #tpu.memory_space<vmem>>, vector<1x1x8x128xf32>,
    %cst_111 = arith.constant 0.000000e+00 : f32
    %cst_112 = arith.constant 2.000000e+01 : f32
    %1444 = vector.broadcast %cst_111 : f32 to vector<8x128xf32>
    %1445 = arith.maximumf %1444, %1405 : vector<8x128xf32>
    %1446 = vector.broadcast %cst_112 : f32 to vector<8x128xf32>
    %1447 = arith.minimumf %1446, %1445 : vector<8x128xf32>
    %cst_113 = arith.constant 0.000000e+00 : f32
    %1448 = vector.broadcast %cst_113 : f32 to vector<8x128xf32>
    %1449 = arith.select %221, %1447, %1448 : vector<8x128xi1>, vector<8x128xf32>
    %c0_114 = arith.constant 0 : index
    %c2_115 = arith.constant 2 : index
    %c0_116 = arith.constant 0 : index
    %c0_117 = arith.constant 0 : index
    %1450 = vector.load %arg9[%c0_114, %c2_115, %c0_116, %c0_117] : memref<1x8x8x128xf32, #tpu.memory_space<vmem>>, vector<1x1x8x128xf32>
    %1451 = vector.shape_cast %1450 : vector<1x1x8x128xf32> to vector<8x128xf32>
    %1452 = vector.shape_cast %1449 : vector<8x128xf32> to vector<1x1x8x128xf32>
    tpu.vector_store %arg9[%c0_114, %c2_115, %c0_116, %c0_117], %1452 {strides = array<i32>} : memref<1x8x8x128xf32, #tpu.memory_space<vmem>>, vector<1x1x8x128xf32>,
    %cst_118 = arith.constant 0.000000e+00 : f32
    %cst_119 = arith.constant 2.000000e+01 : f32
    %1453 = vector.broadcast %cst_118 : f32 to vector<8x128xf32>
    %1454 = arith.maximumf %1453, %1409 : vector<8x128xf32>
    %1455 = vector.broadcast %cst_119 : f32 to vector<8x128xf32>
    %1456 = arith.minimumf %1455, %1454 : vector<8x128xf32>
    %cst_120 = arith.constant 0.000000e+00 : f32
    %1457 = vector.broadcast %cst_120 : f32 to vector<8x128xf32>
    %1458 = arith.select %221, %1456, %1457 : vector<8x128xi1>, vector<8x128xf32>
    %c0_121 = arith.constant 0 : index
    %c3_122 = arith.constant 3 : index
    %c0_123 = arith.constant 0 : index
    %c0_124 = arith.constant 0 : index
    %1459 = vector.load %arg9[%c0_121, %c3_122, %c0_123, %c0_124] : memref<1x8x8x128xf32, #tpu.memory_space<vmem>>, vector<1x1x8x128xf32>
    %1460 = vector.shape_cast %1459 : vector<1x1x8x128xf32> to vector<8x128xf32>
    %1461 = vector.shape_cast %1458 : vector<8x128xf32> to vector<1x1x8x128xf32>
    tpu.vector_store %arg9[%c0_121, %c3_122, %c0_123, %c0_124], %1461 {strides = array<i32>} : memref<1x8x8x128xf32, #tpu.memory_space<vmem>>, vector<1x1x8x128xf32>,
    %cst_125 = arith.constant 0.000000e+00 : f32
    %cst_126 = arith.constant 2.000000e+01 : f32
    %1462 = vector.broadcast %cst_125 : f32 to vector<8x128xf32>
    %1463 = arith.maximumf %1462, %1413 : vector<8x128xf32>
    %1464 = vector.broadcast %cst_126 : f32 to vector<8x128xf32>
    %1465 = arith.minimumf %1464, %1463 : vector<8x128xf32>
    %cst_127 = arith.constant 0.000000e+00 : f32
    %1466 = vector.broadcast %cst_127 : f32 to vector<8x128xf32>
    %1467 = arith.select %221, %1465, %1466 : vector<8x128xi1>, vector<8x128xf32>
    %c0_128 = arith.constant 0 : index
    %c4_129 = arith.constant 4 : index
    %c0_130 = arith.constant 0 : index
    %c0_131 = arith.constant 0 : index
    %1468 = vector.load %arg9[%c0_128, %c4_129, %c0_130, %c0_131] : memref<1x8x8x128xf32, #tpu.memory_space<vmem>>, vector<1x1x8x128xf32>
    %1469 = vector.shape_cast %1468 : vector<1x1x8x128xf32> to vector<8x128xf32>
    %1470 = vector.shape_cast %1467 : vector<8x128xf32> to vector<1x1x8x128xf32>
    tpu.vector_store %arg9[%c0_128, %c4_129, %c0_130, %c0_131], %1470 {strides = array<i32>} : memref<1x8x8x128xf32, #tpu.memory_space<vmem>>, vector<1x1x8x128xf32>,
    %cst_132 = arith.constant 0.000000e+00 : f32
    %cst_133 = arith.constant 2.000000e+01 : f32
    %1471 = vector.broadcast %cst_132 : f32 to vector<8x128xf32>
    %1472 = arith.maximumf %1471, %1417 : vector<8x128xf32>
    %1473 = vector.broadcast %cst_133 : f32 to vector<8x128xf32>
    %1474 = arith.minimumf %1473, %1472 : vector<8x128xf32>
    %cst_134 = arith.constant 0.000000e+00 : f32
    %1475 = vector.broadcast %cst_134 : f32 to vector<8x128xf32>
    %1476 = arith.select %221, %1474, %1475 : vector<8x128xi1>, vector<8x128xf32>
    %c0_135 = arith.constant 0 : index
    %c5_136 = arith.constant 5 : index
    %c0_137 = arith.constant 0 : index
    %c0_138 = arith.constant 0 : index
    %1477 = vector.load %arg9[%c0_135, %c5_136, %c0_137, %c0_138] : memref<1x8x8x128xf32, #tpu.memory_space<vmem>>, vector<1x1x8x128xf32>
    %1478 = vector.shape_cast %1477 : vector<1x1x8x128xf32> to vector<8x128xf32>
    %1479 = vector.shape_cast %1476 : vector<8x128xf32> to vector<1x1x8x128xf32>
    tpu.vector_store %arg9[%c0_135, %c5_136, %c0_137, %c0_138], %1479 {strides = array<i32>} : memref<1x8x8x128xf32, #tpu.memory_space<vmem>>, vector<1x1x8x128xf32>,
    %cst_139 = arith.constant 0.000000e+00 : f32
    %cst_140 = arith.constant 2.000000e+01 : f32
    %1480 = vector.broadcast %cst_139 : f32 to vector<8x128xf32>
    %1481 = arith.maximumf %1480, %1421 : vector<8x128xf32>
    %1482 = vector.broadcast %cst_140 : f32 to vector<8x128xf32>
    %1483 = arith.minimumf %1482, %1481 : vector<8x128xf32>
    %cst_141 = arith.constant 0.000000e+00 : f32
    %1484 = vector.broadcast %cst_141 : f32 to vector<8x128xf32>
    %1485 = arith.select %221, %1483, %1484 : vector<8x128xi1>, vector<8x128xf32>
    %c0_142 = arith.constant 0 : index
    %c6_143 = arith.constant 6 : index
    %c0_144 = arith.constant 0 : index
    %c0_145 = arith.constant 0 : index
    %1486 = vector.load %arg9[%c0_142, %c6_143, %c0_144, %c0_145] : memref<1x8x8x128xf32, #tpu.memory_space<vmem>>, vector<1x1x8x128xf32>
    %1487 = vector.shape_cast %1486 : vector<1x1x8x128xf32> to vector<8x128xf32>
    %1488 = vector.shape_cast %1485 : vector<8x128xf32> to vector<1x1x8x128xf32>
    tpu.vector_store %arg9[%c0_142, %c6_143, %c0_144, %c0_145], %1488 {strides = array<i32>} : memref<1x8x8x128xf32, #tpu.memory_space<vmem>>, vector<1x1x8x128xf32>,
    %cst_146 = arith.constant 0.000000e+00 : f32
    %cst_147 = arith.constant 2.000000e+01 : f32
    %1489 = vector.broadcast %cst_146 : f32 to vector<8x128xf32>
    %1490 = arith.maximumf %1489, %1425 : vector<8x128xf32>
    %1491 = vector.broadcast %cst_147 : f32 to vector<8x128xf32>
    %1492 = arith.minimumf %1491, %1490 : vector<8x128xf32>
    %cst_148 = arith.constant 0.000000e+00 : f32
    %1493 = vector.broadcast %cst_148 : f32 to vector<8x128xf32>
    %1494 = arith.select %221, %1492, %1493 : vector<8x128xi1>, vector<8x128xf32>
    %c0_149 = arith.constant 0 : index
    %c7_150 = arith.constant 7 : index
    %c0_151 = arith.constant 0 : index
    %c0_152 = arith.constant 0 : index
    %1495 = vector.load %arg9[%c0_149, %c7_150, %c0_151, %c0_152] : memref<1x8x8x128xf32, #tpu.memory_space<vmem>>, vector<1x1x8x128xf32>
    %1496 = vector.shape_cast %1495 : vector<1x1x8x128xf32> to vector<8x128xf32>
    %1497 = vector.shape_cast %1494 : vector<8x128xf32> to vector<1x1x8x128xf32>
    tpu.vector_store %arg9[%c0_149, %c7_150, %c0_151, %c0_152], %1497 {strides = array<i32>} : memref<1x8x8x128xf32, #tpu.memory_space<vmem>>, vector<1x1x8x128xf32>,
    return
  }
  func.func @transform_0(%arg0: i32, %arg1: i32, %arg2: memref<2xi32, #tpu.memory_space<smem>>, %arg3: memref<2xi32, #tpu.memory_space<smem>>) -> (i32, i32, i32, i32) {
    %c1_i32 = arith.constant 1 : i32
    %0 = arith.muli %arg0, %c1_i32 : i32
    %1 = arith.addi %0, %arg1 : i32
    %c0_i32 = arith.constant 0 : i32
    %c0_i32_0 = arith.constant 0 : i32
    %c0_i32_1 = arith.constant 0 : i32
    %c0_i32_2 = arith.constant 0 : i32
    return %1, %c0_i32, %c0_i32_0, %c0_i32_1 : i32, i32, i32, i32
  }
  func.func @transform_1(%arg0: i32, %arg1: i32, %arg2: memref<2xi32, #tpu.memory_space<smem>>, %arg3: memref<2xi32, #tpu.memory_space<smem>>) -> i32 {
    %c0_i32 = arith.constant 0 : i32
    %c0_i32_0 = arith.constant 0 : i32
    return %c0_i32 : i32
  }
  func.func @transform_2(%arg0: i32, %arg1: i32, %arg2: memref<2xi32, #tpu.memory_space<smem>>, %arg3: memref<2xi32, #tpu.memory_space<smem>>) -> i32 {
    %c0_i32 = arith.constant 0 : i32
    %c0_i32_0 = arith.constant 0 : i32
    return %c0_i32 : i32
  }
  func.func @transform_3(%arg0: i32, %arg1: i32, %arg2: memref<2xi32, #tpu.memory_space<smem>>, %arg3: memref<2xi32, #tpu.memory_space<smem>>) -> i32 {
    %c0_i32 = arith.constant 0 : i32
    %c0_i32_0 = arith.constant 0 : i32
    return %c0_i32 : i32
  }
  func.func @transform_4(%arg0: i32, %arg1: i32, %arg2: memref<2xi32, #tpu.memory_space<smem>>, %arg3: memref<2xi32, #tpu.memory_space<smem>>) -> i32 {
    %c0_i32 = arith.constant 0 : i32
    %c0_i32_0 = arith.constant 0 : i32
    return %c0_i32 : i32
  }
  func.func @transform_5(%arg0: i32, %arg1: i32, %arg2: memref<2xi32, #tpu.memory_space<smem>>, %arg3: memref<2xi32, #tpu.memory_space<smem>>) -> (i32, i32, i32, i32) {
    %c0_i32 = arith.constant 0 : i32
    %c0_i32_0 = arith.constant 0 : i32
    %c0_i32_1 = arith.constant 0 : i32
    return %arg0, %c0_i32, %c0_i32_0, %arg1 : i32, i32, i32, i32
  }
}

</mosaic_0001>

<bundles_post_ra>
// kernel: tpu_custom_call.1
= control target key start
LH: loop header
LB: loop body
LE: loop exit
PB: predicated region body
PF: predicated region fallthrough
CT: control target
= control target key end

     0   :  { %s11898_s0 = inlined_call_operand.vmem [shape: s32[2], index: 0, kind: input, shape index: {}]   ;;  %s11899_s2 = inlined_call_operand.vmem [shape: f32[2,4,11,131], index: 2, kind: input, shape index: {}]   ;;  %s11900_s3 = inlined_call_operand.vmem [shape: f32[36], index: 3, kind: input, shape index: {}]   ;;  %s11901_s4 = inlined_call_operand.vmem [shape: f32[4], index: 4, kind: input, shape index: {}]   ;;  %s11902_s5 = inlined_call_operand.vmem [shape: f32[288], index: 5, kind: input, shape index: {}]   ;;  %s11903_s6 = inlined_call_operand.vmem [shape: f32[8], index: 6, kind: input, shape index: {}]   ;;  %s11904_s7 = inlined_call_operand.hbm [shape: f32[2,8,8,128], index: 7, kind: output, shape index: {}]   ;;  %s11905_s1 = inlined_call_operand.vmem [shape: s32[2], index: 1, kind: input, shape index: {}]  }
   0x1   :  { %11958 = sst [smem:[#allocation150_spill]] %s11899_s2  ;;  %s12_s26 = sshll.u32 %s11898_s0, 4  ;;  %s13_s26 = int_to_ptr.vmem [resolvable:$true] %s12_s26 }
   0x2   :  { %11959 = sst [smem:[#allocation151_spill]] %s11900_s3  ;;  %s16_s29 = sshll.u32 %s11905_s1, 4  ;;  %s17_s29 = int_to_ptr.vmem [resolvable:$true] %s16_s29 }
   0x3   :  { %11960 = sst [smem:[#allocation152_spill]] %s11901_s4  ;;  %s6418_s30 = scalar_lea.vmem %s13_s26, 16 }
   0x4   :  { %11961 = sst [smem:[#allocation153_spill]] %s11902_s5  ;;  %p6419_p0 = scmp.ne.s32.totalorder %s13_s26, %s6418_s30 }
   0x5   :  { %11962 = sst [smem:[#allocation154_spill]] %s11903_s6  ;;  %p6423_p1 = scmp.lt.s32.totalorder %s13_s26, %s13_s26 }
   0x6   :  { %11963 = sst [smem:[#allocation155_spill]] %s11904_s7  ;;  %p6424_p2 = scmp.lt.s32.totalorder %s6418_s30, %s6418_s30 }
   0x8   :  { %p6425_p3 = por %p6424_p2, %p6423_p1 }
   0xa   :  { %p6426_p4 = pnand %p6425_p3, %p6419_p0 }
   0xc   :  { %6429 = shalt.err (!%p6426_p4)  }
   0xd   :  { %s6594_s8 = smov [#allocation3]   ;;  %s6430_s9 = scalar_lea.vmem %s17_s29, 16 }
   0xe   :  { %15 = dma.vmem_to_smem %s13_s26, 16, %s6594_s8, [#allocation2] }
   0xf   :  { %p6431_p5 = scmp.ne.s32.totalorder %s17_s29, %s6430_s9  ;;  %p6435_p6 = scmp.lt.s32.totalorder %s17_s29, %s17_s29 }
  0x10   :  { %p6436_p7 = scmp.lt.s32.totalorder %s6430_s9, %s6430_s9 }
  0x12   :  { %p6437_p8 = por %p6436_p7, %p6435_p6 }
  0x14   :  { %p6438_p9 = pnand %p6437_p8, %p6431_p5 }
  0x16   :  { %6441 = shalt.err (!%p6438_p9)  }
  0x17   :  { %s6595_s0 = smov [#allocation4]  }
  0x18   :  { %19 = dma.vmem_to_smem %s17_s29, 16, %s6595_s0, [#allocation2] }
  0x19   :  { %6552 = dma.done.wait [#allocation2], 32 }
  0x1a   :  { %6553 = vsyncadd [#allocation2], 4294967264 }
  0x1b   :  { %21 = sfence }
  0x1c   :  { %22 = vsyncpa [#allocation7], 0 }
  0x1d   :  { %23 = vsyncpa [#allocation9], 0 }
  0x1e   :  { %24 = vsyncpa [#allocation12], 0 }
  0x1f   :  { %25 = vsyncpa [#allocation6], 0 }
  0x20   :  { %27 = vsyncpa [#allocation6 + $0x1], 0  ;;  %s6651_s1 = smov 0   ;;  %s6653_s10 = smov 0  }
  0x21   :  { %s6655_s11 = smov 0   ;;  %s6657_s12 = smov 0  }
  0x22   :  { %s6659_s13 = smov 0   ;;  %s6661_s14 = smov 0  }
  0x23 LB: > { %11964 = sst [smem:[#allocation19_spill]] %s6572_s1  ;;  %s5936_s15 = sadd.s32 4294967295, %s6592_s14   ;;  %s6592_s14 = sphi %s6661_s14, %s33_s14   ;;  %s6588_s13 = sphi %s6659_s13, %s12640_s13   ;;  %s6584_s12 = sphi %s6657_s12, %s12639_s12   ;;  %s6580_s11 = sphi %s6655_s11, %s12638_s11   ;;  %s6576_s10 = sphi %s6653_s10, %s12637_s10   ;;  %s6572_s1 = sphi %s6651_s1, %s12636_s1  }
  0x24   : > { %11965 = sst [smem:[#allocation20_spill]] %s6576_s10  ;;  %s5937_s16 = sadd.s32 4294967294, %s6592_s14  }
  0x25   : > { %11966 = sst [smem:[#allocation21_spill]] %s6580_s11  ;;  %s45_s17 = sadd.s32 1, %s6588_s13 }
  0x26   : > { %11967 = sst [smem:[#allocation22_spill]] %s6588_s13  ;;  %s166_s18 = sadd.s32 1, %s6580_s11 }
  0x27   : > { %11968 = sst [smem:[#allocation23_spill]] %s6592_s14  ;;  %p47_p10 = scmp.ge.s32.totalorder %s45_s17, 2 }
  0x28   : > { %p176_p11 = scmp.ne.s32.totalorder %s6580_s11, %s6576_s10  ;;  %p177_p12 = scmp.eq.s32.totalorder %s5936_s15, 1 }
  0x29   : > { %p182_p13 = scmp.ne.s32.totalorder %s6576_s10, %s6572_s1  ;;  %s12642_s17 = smov (%p47_p10, %s45_s17), 0 }
  0x2a   : > { %11969 = sst [smem:[#allocation24_spill]] %s12642_s17  ;;  %p6691_p0 = por %p177_p12, %p176_p11 }
  0x2b   : > { %p183_p1 = scmp.eq.s32.totalorder %s5937_s16, 1  ;;  %s161_s20 = ssub.s32 %s6588_s13, %s12642_s17 }
  0x2c   : > { %s11970_s19 = scalar_select %p6691_p0, 1, 0 }
  0x2d   : > { %p5938_p2 = scmp.ge.s32.totalorder %s6592_s14, 1  ;;  %p164_p3 = scmp.eq.s32.totalorder %s161_s20, 0 }
  0x2e   : > { %11971 = sst [smem:[#allocation25_spill]] %s11970_s19  ;;  %p6698_p4 = por %p183_p1, %p182_p13 }
  0x2f   : > { %p190_p5 = scmp.lt.s32.totalorder %s6592_s14, 3  ;;  %p6710_p7 = scmp.eq.s32.totalorder %s5936_s15, 0 }
  0x30   : > { %s11972_s21 = scalar_select %p6698_p4, 1, 0 }
  0x31   : > { %s6704_s22 = scalar_select %p164_p3, %s6580_s11, %s166_s18  }
  0x32   : > { %11973 = sst [smem:[#allocation26_spill]] %s11972_s21  ;;  %p6706_p6 = pnand %p5938_p2, %p190_p5 }
  0x33   : > { %11974 = sst [smem:[#allocation27_spill]] %s6704_s22 }
  0x34   : > { %s11975_s23 = scalar_select %p6706_p6, 1, 0 }
  0x35   : > { %s11976_s24 = scalar_select %p6710_p7, 1, 0 }
  0x36   : > { %s11977_s4 = sld [smem:[#allocation152_spill]]  ;;  %p6334_p8 = pneg %p6706_p6 }
  0x37   : > { %s11978_s3 = sld [smem:[#allocation151_spill]] }
  0x38   : > { %p6724_p9 = pnand %p6710_p7, %p6334_p8  ;;  %s11980_s5 = sld [smem:[#allocation153_spill]] }
  0x3a   : > { %p6444_p11 = pneg %p6724_p9 }
  0x3c   : > { %s214_s27 = sshll.u32 %s11977_s4, 4  ;;  %s215_s27 = int_to_ptr.vmem [resolvable:$true] %s214_s27 }
  0x3d   : > { %s203_s30 = sshll.u32 %s11978_s3, 4  ;;  %s6442_s16 = scalar_lea.vmem %s215_s27, 16  ;;  %s204_s30 = int_to_ptr.vmem [resolvable:$true] %s203_s30 }
  0x3e   : > { %s225_s15 = sshll.u32 %s11980_s5, 4  ;;  %p6443_p10 = scmp.ne.s32.totalorder %s215_s27, %s6442_s16  ;;  %s226_s15 = int_to_ptr.vmem [resolvable:$true] %s225_s15 }
  0x3f   : > { %p6450_p1 = scmp.lt.s32.totalorder %s215_s27, %s215_s27  ;;  %p6451_p2 = scmp.lt.s32.totalorder %s6442_s16, %s6442_s16 }
  0x40   : > { %p6445_p12 = pnand %p6444_p11, %p6443_p10 }
  0x41   : > { %p6452_p3 = por %p6451_p2, %p6450_p1 }
  0x42   : > { %p6446_p13 = pneg %p6445_p12 }
  0x44   : > { %p6453_p5 = pnand %p6452_p3, %p6446_p13 }
  0x46   : > { %6456 = shalt.err (!%p6453_p5)
}
  0x47   : > { %s6596_s18 = smov [#allocation8]   ;;  %s6457_s20 = scalar_lea.vmem %s204_s30, 16 }
  0x48   : > { %6340 = dma.vmem_to_smem (!%p6724_p9), %s215_s27, 16, %s6596_s18, [#allocation9]  }
  0x49   : > { %p6458_p8 = scmp.ne.s32.totalorder %s204_s30, %s6457_s20  ;;  %p6465_p7 = scmp.lt.s32.totalorder %s204_s30, %s204_s30 }
  0x4a   : > { %p6466_p6 = scmp.lt.s32.totalorder %s6457_s20, %s6457_s20 }
  0x4b   : > { %p6460_p4 = pnand %p6458_p8, %p6444_p11 }
  0x4c   : > { %p6467_p10 = por %p6466_p6, %p6465_p7 }
  0x4d   : > { %p6461_p0 = pneg %p6460_p4 }
  0x4f   : > { %p6468_p12 = pnand %p6467_p10, %p6461_p0 }
  0x51   : > { %6471 = shalt.err (!%p6468_p12)
}
  0x52   : > { %s6597_s25 = smov [#allocation5]   ;;  %s6472_s26 = scalar_lea.vmem %s226_s15, 48 }
  0x53   : > { %6337 = dma.vmem_to_smem (!%p6724_p9), %s204_s30, 16, %s6597_s25, [#allocation7]  }
  0x54   : > { %p6473_p13 = scmp.ne.s32.totalorder %s226_s15, %s6472_s26  ;;  %s6479_s27 = scalar_lea.vmem %s226_s15, 64 }
  0x55   : > { %p6480_p3 = scmp.lt.s32.totalorder %s226_s15, %s226_s15  ;;  %p6481_p4 = scmp.lt.s32.totalorder %s6479_s27, %s6472_s26 }
  0x56   : > { %p6475_p1 = pnand %p6473_p13, %p6444_p11 }
  0x57   : > { %p6482_p5 = por %p6481_p4, %p6480_p3 }
  0x58   : > { %p6476_p2 = pneg %p6475_p1 }
  0x5a   : > { %p6483_p8 = pnand %p6482_p5, %p6476_p2 }
  0x5c   : > { %6486 = shalt.err (!%p6483_p8)
}
  0x5d   : > { %s6598_s28 = smov [#allocation10]   ;;  %s11981_s6 = sld [smem:[#allocation154_spill]] }
  0x5e   : > { %6343 = dma.vmem_to_smem (!%p6724_p9), %s226_s15, 48, %s6598_s28, [#allocation9]  }
  0x63   : > { %s236_s9 = sshll.u32 %s11981_s6, 4  ;;  %s237_s9 = int_to_ptr.vmem [resolvable:$true] %s236_s9 }
  0x64   : > { %s6487_s0 = scalar_lea.vmem %s237_s9, 16  ;;  %p6495_p10 = scmp.lt.s32.totalorder %s237_s9, %s237_s9 }
  0x65   : > { %p6488_p0 = scmp.ne.s32.totalorder %s237_s9, %s6487_s0  ;;  %p6496_p12 = scmp.lt.s32.totalorder %s6487_s0, %s6487_s0 }
  0x67   : > { %p6490_p6 = pnand %p6488_p0, %p6444_p11  ;;  %p6497_p13 = por %p6496_p12, %p6495_p10 }
  0x69   : > { %p6491_p7 = pneg %p6490_p6 }
  0x6b   : > { %p6498_p1 = pnand %p6497_p13, %p6491_p7 }
  0x6d   : > { %6501 = shalt.err (!%p6498_p1)
}
  0x6e   : > { %s6599_s16 = smov [#allocation11]   ;;  %p11982_p2 = scmp.ne.s32.totalorder %s11975_s23, 0 }
  0x6f   : > { %6346 = dma.vmem_to_smem (!%p6724_p9), %s237_s9, 16, %s6599_s16, [#allocation12]  }
  0x70   : > { %259 = sbr.rel (%p11982_p2) target bundleno = 1233 (0x4d1), region = 40 }
  0x75   : > { %p11983_p3 = scmp.ne.s32.totalorder %s11976_s24, 0 }
  0x77   : > { %6555 = dma.done.wait (%p11983_p3), [#allocation7], 16  }
  0x78   : > { %6557 = vsyncadd (%p11983_p3), [#allocation7], 4294967280 }
  0x79   : > { %6559 = dma.done.wait (%p11983_p3), [#allocation9], 64  }
  0x7a   : > { %6561 = vsyncadd (%p11983_p3), [#allocation9], 4294967232 }
  0x7b   : > { %6563 = dma.done.wait (%p11983_p3), [#allocation12], 16  }
  0x7c   : > { %6565 = vsyncadd (%p11983_p3), [#allocation12], 4294967280 }
  0x7d   : > { %277 = sfence }
  0x7e   : > { %p302_p9 = scmp.lt.s32.totalorder %s6584_s12, 1  ;;  %s5968_s23 = sld [smem:[#allocation5 + $0x2]]  ;;  %vm768_vm0 = vcmask 1046528   ;;  %vm457_vm1 = vcmask 1039360   ;;  %vm1862_vm13 = vcmask 1045504   ;;  %vm1305_vm14 = vcmask 1031168  }
  0x7f   : > { %s5969_s8 = sld [smem:[#allocation5 + $0xb]]  ;;  %s11942_s24 = smov 127  }
  0x80   : > { %s303_s15 = scalar_select %p302_p9, %s6584_s12, 1 }
  0x81   : > { %s11984_s2 = sld [smem:[#allocation150_spill]]  ;;  %s12140_s3 = smov 127  }
  0x82   : > { %s6314_s18 = sshll.u32 %s303_s15, 7  ;;  %s5970_s27 = sld [smem:[#allocation5 + $0x14]] }
  0x83   : > { %s5971_s28 = sld [smem:[#allocation5 + $0x1d]]  ;;  %s12149_s10 = smov 126  }
  0x84   : > { %v440_v1 = vstv %s5968_s23  ;;  %s342_s29 = sld [smem:[#allocation8]] }
  0x85   : > { %v469_v9 = vstv %s5969_s8  ;;  %s354_s30 = sld [smem:[#allocation5]] }
  0x86   : > { %s5964_s9 = sld [smem:[#allocation5 + $0x1]] }
  0x87   : > { %s6775_s26 = scalar_lea.vmem %s11984_s2, %s6314_s18  ;;  %s5988_s0 = sld [smem:[#allocation5 + $0x5]] }
  0x88   : > { %v6778_v0 = vld [vmem:[%s6775_s26 + $0x10] sm:$0x3]  ;;  %v6781_v2 = vld [vmem:[%s6775_s26] sm:$0xff]  ;;  %v6784_v3 = vld [vmem:[%s6775_s26 + $0x18] sm:$0x3]  ;;  %v497_v14 = vstv %s5970_s27  ;;  %s6807_s16 = sld [smem:[#allocation8 + $0x1]] }
  0x89   : > { %v443_v4 = vmul.f32 %v440_v1, %v6778_v0  ;;  %v441_v5 = vmul.f32 %v440_v1, %v6781_v2  ;;  %v6789_v6 = vld [vmem:[%s6775_s26 + $0x8] sm:$0xff]  ;;  %v444_v7 = vmul.f32 %v440_v1, %v6784_v3  ;;  %v470_v11 = vmul.f32 %v469_v9, %v6781_v2  ;;  %s6813_s23 = sld [smem:[#allocation5 + $0x9]]  ;;  %v6816_v20 = vld [vmem:[%s6775_s26 + $0x38] sm:$0x3]  ;;  %v6821_v23 = vld [vmem:[%s6775_s26 + $0x30] sm:$0x3] }
  0x8a   : > { %v442_v8 = vmul.f32 %v440_v1, %v6789_v6  ;;  %v471_v10 = vmul.f32 %v469_v9, %v6789_v6  ;;  %v473_v12 = vmul.f32 %v469_v9, %v6784_v3  ;;  %v472_v13 = vmul.f32 %v469_v9, %v6778_v0  ;;  %s6818_s8 = sld [smem:[#allocation5 + $0xa]]  ;;  %v6830_v29 = vld [vmem:[%s6775_s26 + $0x28] sm:$0xff]  ;;  %v6837_v33 = vld [vmem:[%s6775_s26 + $0x20] sm:$0xff]  ;;  %v6878_v57 = vld [vmem:[%s6775_s26 + $0x58] sm:$0x3] }
  0x8b   : > { %453 = vrot.lane.b32.xlu1 %v443_v4, %s11942_s24  ;;  %449 = vrot.lane.b32.xlu0 %v441_v5, %s11942_s24  ;;  %v499_v15 = vmul.f32 %v497_v14, %v6789_v6  ;;  %v498_v16 = vmul.f32 %v497_v14, %v6781_v2  ;;  %v501_v17 = vmul.f32 %v497_v14, %v6784_v3  ;;  %v525_v19 = vstv %s5971_s28  ;;  %s6832_s15 = sld [smem:[#allocation5 + $0xe]]  ;;  %v6844_v37 = vld [vmem:[%s6775_s26 + $0x48] sm:$0xff] }
  0x8c   : > { %v500_v18 = vmul.f32 %v497_v14, %v6778_v0  ;;  %v343_v21 = vstv %s342_s29  ;;  %v355_v22 = vstv %s354_s30  ;;  %v400_v25 = vstv %s5964_s9  ;;  %s6840_s18 = sld [smem:[#allocation5 + $0x12]]  ;;  %v6855_v42 = vld [vmem:[%s6775_s26 + $0x40] sm:$0xff] }
  0x8d   : > { %v359_v24 = vmul.f32 %v355_v22, %v6784_v3  ;;  %v527_v26 = vmul.f32 %v525_v19, %v6789_v6  ;;  %v526_v27 = vmul.f32 %v525_v19, %v6781_v2  ;;  %v404_v28 = vmul.f32 %v6816_v20, %v400_v25  ;;  %s6849_s20 = sld [smem:[#allocation5 + $0x13]]  ;;  %v6885_v61 = vld [vmem:[%s6775_s26 + $0x50] sm:$0x3] }
  0x8e   : > { %v403_v31 = vmul.f32 %v6821_v23, %v400_v25  ;;  %v358_v32 = vmul.f32 %v355_v22, %v6778_v0  ;;  %v643_v34 = vstv %s5988_s0  ;;  %v357_v35 = vmul.f32 %v355_v22, %v6789_v6  ;;  %s6859_s25 = sld [smem:[#allocation8 + $0x2]] }
  0x8f   : > { %455 = vrot.lane.b32.xlu1 %v444_v7, %s11942_s24  ;;  %451 = vrot.lane.b32.xlu0 %v442_v8, %s11942_s24  ;;  %v363_v30 = vadd.f32 %v359_v24, %v343_v21  ;;  %v529_v36 = vmul.f32 %v525_v19, %v6784_v3  ;;  %v402_v40 = vmul.f32 %v6830_v29, %v400_v25  ;;  %v345_v45 = vstv %s6807_s16  ;;  %s6872_s27 = sld [smem:[#allocation5 + $0x17]] }
  0x90   : > { %v362_v39 = vadd.f32 %v358_v32, %v343_v21  ;;  %v528_v41 = vmul.f32 %v525_v19, %v6778_v0  ;;  %v361_v43 = vadd.f32 %v357_v35, %v343_v21  ;;  %v401_v44 = vmul.f32 %v6837_v33, %v400_v25  ;;  %s6882_s28 = sld [smem:[#allocation5 + $0x1b]] }
  0x91   : > { %v6846_v38 = vadd.f32 %v404_v28, %v363_v30  ;;  %v356_v47 = vmul.f32 %v355_v22, %v6781_v2  ;;  %v365_v48 = vstv %s6813_s23  ;;  %v410_v49 = vstv %s6818_s8  ;;  %s6892_s29 = sld [smem:[#allocation5 + $0x1c]] }
  0x92   : > { %v6861_v46 = vadd.f32 %v403_v31, %v362_v39  ;;  %v6866_v50 = vadd.f32 %v402_v40, %v361_v43  ;;  %v412_v51 = vmul.f32 %v6830_v29, %v410_v49  ;;  %v367_v52 = vmul.f32 %v365_v48, %v6789_v6  ;;  %s6897_s30 = sld [smem:[#allocation8 + $0x3]] }
  0x93   : > { %480 = vrot.lane.b32.xlu1 %v471_v10, %s11942_s24  ;;  %478 = vrot.lane.b32.xlu0 %v470_v11, %s11942_s24  ;;  %v645_v53 = vmul.f32 %v6844_v37, %v643_v34  ;;  %v644_v54 = vmul.f32 %v6855_v42, %v643_v34  ;;  %v360_v55 = vadd.f32 %v356_v47, %v343_v21  ;;  %v671_v62 = vstv %s6832_s15  ;;  %s6905_s9 = sld [smem:[#allocation5 + $0x20]] }
  0x94   : > { %v411_v56 = vmul.f32 %v6837_v33, %v410_v49  ;;  %v371_v58 = vadd.f32 %v367_v52, %v345_v45  ;;  %v366_v59 = vmul.f32 %v365_v48, %v6781_v2  ;;  %v369_v60 = vmul.f32 %v365_v48, %v6784_v3  ;;  %s6924_s0 = sld [smem:[#allocation5 + $0x6]] }
  0x95   : > { %v6888_v63 = vadd.f32 %v401_v44, %v360_v55  ;;  %v414_v1 = vmul.f32 %v6816_v20, %v410_v49  ;;  %v368_v4 = vmul.f32 %v365_v48, %v6778_v0  ;;  %v413_v9 = vmul.f32 %v6821_v23, %v410_v49  ;;  %s6934_s16 = sld [smem:[#allocation5 + $0x8]] }
  0x96   : > { %v6894_v5 = vadd.f32 %v412_v51, %v371_v58  ;;  %v370_v7 = vadd.f32 %v366_v59, %v345_v45  ;;  %v373_v8 = vadd.f32 %v369_v60, %v345_v45  ;;  %v647_v10 = vmul.f32 %v6878_v57, %v643_v34  ;;  %s6946_s23 = sld [smem:[#allocation5 + $0xf]] }
  0x97   : > { %484 = vrot.lane.b32.xlu1 %v473_v12, %s11942_s24  ;;  %482 = vrot.lane.b32.xlu0 %v472_v13, %s11942_s24  ;;  %v372_v11 = vadd.f32 %v368_v4, %v345_v45  ;;  %v375_v12 = vstv %s6840_s18  ;;  %v420_v13 = vstv %s6849_s20  ;;  %v646_v14 = vmul.f32 %v6885_v61, %v643_v34  ;;  %s6966_s8 = sld [smem:[#allocation5 + $0x18]] }
  0x98   : > { %v422_v21 = vmul.f32 %v6830_v29, %v420_v13  ;;  %v377_v22 = vmul.f32 %v375_v12, %v6789_v6  ;;  %v421_v24 = vmul.f32 %v6837_v33, %v420_v13  ;;  %v376_v25 = vmul.f32 %v375_v12, %v6781_v2  ;;  %s6993_s15 = sld [smem:[#allocation5 + $0x11]] }
  0x99   : > { %v6913_v19 = vadd.f32 %v413_v9, %v372_v11  ;;  %v672_v28 = vmul.f32 %v6855_v42, %v671_v62  ;;  %v378_v31 = vmul.f32 %v375_v12, %v6778_v0  ;;  %v423_v32 = vmul.f32 %v6821_v23, %v420_v13  ;;  %s7001_s18 = sld [smem:[#allocation5 + $0x21]] }
  0x9a   : > { %v675_v34 = vmul.f32 %v6878_v57, %v671_v62  ;;  %v430_v43 = vstv %s6892_s29  ;;  %v699_v44 = vstv %s6872_s27  ;;  %v349_v48 = vstv %s6897_s30  ;;  %s7022_s20 = sld [smem:[#allocation5 + $0x1a]] }
  0x9b   : > { %508 = vrot.lane.b32.xlu1 %v499_v15, %s11942_s24  ;;  %506 = vrot.lane.b32.xlu0 %v498_v16, %s11942_s24  ;;  %v6907_v15 = vadd.f32 %v411_v56, %v370_v7  ;;  %v6909_v16 = vadd.f32 %v414_v1, %v373_v8  ;;  %v674_v49 = vmul.f32 %v6885_v61, %v671_v62  ;;  %v759_v9 = vstv %s6924_s0  ;;  %s7083_s27 = sld [smem:[#allocation5 + $0x23]] }
  0x9c   : > { %v432_v52 = vmul.f32 %v6830_v29, %v430_v43  ;;  %v431_v55 = vmul.f32 %v6837_v33, %v430_v43  ;;  %v701_v59 = vmul.f32 %v6844_v37, %v699_v44  ;;  %v433_v7 = vmul.f32 %v6821_v23, %v430_v43  ;;  %v6961_v33 = vld [vmem:[%s6775_s26 + $0x8] sm:$0xfe]  ;;  %s7122_s29 = sld [smem:[#allocation5 + $0x22]] }
  0x9d   : > { %v761_v11 = vmul.f32 %v759_v9, %v6961_v33  ;;  %s5976_s30 = sld [smem:[#allocation5 + $0x3]] }
  0x9e   : > { %s5977_s0 = sld [smem:[#allocation5 + $0xc]] }
  0x9f   : > { %512 = vrot.lane.b32.xlu1 %v501_v17, %s11942_s24  ;;  %510 = vrot.lane.b32.xlu0 %v500_v18, %s11942_s24  ;;  %v347_v17 = vstv %s6859_s25  ;;  %v673_v18 = vmul.f32 %v6844_v37, %v671_v62  ;;  %v700_v62 = vmul.f32 %v6855_v42, %v699_v44  ;;  %s7044_s25 = sld [smem:[#allocation5 + $0x10]] }
  0xa0   : > { %v381_v30 = vadd.f32 %v377_v22, %v347_v17  ;;  %v380_v35 = vadd.f32 %v376_v25, %v347_v17  ;;  %v382_v40 = vadd.f32 %v378_v31, %v347_v17  ;;  %s8521_s2 = sld [smem:[#allocation11 + $0x5]] }
  0xa1   : > { %s8540_s4 = sld [smem:[#allocation10 + $0x35]] }
  0xa2   : > { %v6929_v39 = vadd.f32 %v422_v21, %v381_v30  ;;  %v6936_v45 = vadd.f32 %v421_v24, %v380_v35  ;;  %v6942_v51 = vadd.f32 %v423_v32, %v382_v40  ;;  %v772_v24 = vrot.slane %v761_v11, 1  ;;  %s8542_s5 = sld [smem:[#allocation10 + $0xfc]] }
  0xa3   : > { %536 = vrot.lane.b32.xlu1 %v527_v26, %s11942_s24  ;;  %534 = vrot.lane.b32.xlu0 %v526_v27, %s11942_s24  ;;  %v379_v26 = vmul.f32 %v375_v12, %v6784_v3  ;;  %v424_v27 = vmul.f32 %v6816_v20, %v420_v13  ;;  %v702_v12 = vmul.f32 %v6885_v61, %v699_v44  ;;  %v6983_v13 = vld [vmem:[%s6775_s26 + $0x10] sm:$0x7]  ;;  %v784_v30 = vstv %s6946_s23  ;;  %s7242_s23 = sld [smem:[#allocation5 + $0x15]] }
  0xa4   : > { %v6996_v25 = vmul.f32 %v759_v9, %v6983_v13  ;;  %s8549_s6 = sld [smem:[#allocation11 + $0x7]] }
  0xa5   : > { %s8565_s17 = sld [smem:[#allocation10 + $0x59]] }
  0xa6   : > { %v11916_v32 = vrot.slane %v6996_v25, 1  ;;  %s8568_s13 = sld [smem:[#allocation10 + $0x27]] }
  0xa7   : > { %540 = vrot.lane.b32.xlu1 %v529_v36, %s11942_s24  ;;  %538 = vrot.lane.b32.xlu0 %v528_v41, %s11942_s24  ;;  %v383_v36 = vadd.f32 %v379_v26, %v347_v17  ;;  %v385_v41 = vstv %s6882_s28  ;;  %v956_v26 = vstv %s6934_s16  ;;  %s7115_s28 = sld [smem:[#allocation5 + $0x19]] }
  0xa8   : > { %v386_v56 = vmul.f32 %v385_v41, %v6781_v2  ;;  %v389_v58 = vmul.f32 %v385_v41, %v6784_v3  ;;  %v388_v60 = vmul.f32 %v385_v41, %v6778_v0  ;;  %v703_v2 = vmul.f32 %v6878_v57, %v699_v44  ;;  %v6971_v0 = vld [vmem:[%s6775_s26 + $0x18] sm:$0x7]  ;;  %s5985_s16 = sld [smem:[#allocation5 + $0xd]] }
  0xa9   : > { %v6938_v47 = vadd.f32 %v424_v27, %v383_v36  ;;  %v6988_v17 = vmul.f32 %v759_v9, %v6971_v0  ;;  %v7009_v35 = vmul.f32 %v784_v30, %v6971_v0  ;;  %v958_v44 = vmul.f32 %v956_v26, %v6961_v33  ;;  %s8575_s22 = sld [smem:[#allocation10 + $0x4b]] }
  0xaa   : > { %v390_v1 = vadd.f32 %v386_v56, %v349_v48  ;;  %v393_v4 = vadd.f32 %v389_v58, %v349_v48  ;;  %v392_v8 = vadd.f32 %v388_v60, %v349_v48  ;;  %v808_v56 = vstv %s6966_s8  ;;  %s7272_s8 = sld [smem:[#allocation5 + $0x1e]] }
  0xab   : > { %654 = vrot.lane.b32.xlu1 %v645_v53, %s11942_s24  ;;  %652 = vrot.lane.b32.xlu0 %v644_v54, %s11942_s24  ;;  %v387_v53 = vmul.f32 %v385_v41, %v6789_v6  ;;  %v727_v54 = vstv %s6905_s9  ;;  %v434_v6 = vmul.f32 %v6816_v20, %v430_v43  ;;  %v6974_v20 = vld [vmem:[%s6775_s26] sm:$0xfe]  ;;  %v11917_v27 = vrot.slane %v6988_v17, 1  ;;  %s5984_s9 = sld [smem:[#allocation5 + $0x4]] }
  0xac   : > { %v6976_v23 = vadd.f32 %v431_v55, %v390_v1  ;;  %v729_v21 = vmul.f32 %v6844_v37, %v727_v54  ;;  %v728_v22 = vmul.f32 %v6855_v42, %v727_v54  ;;  %v731_v31 = vmul.f32 %v6878_v57, %v727_v54  ;;  %s8591_s11 = sld [smem:[#allocation10 + $0x7d]] }
  0xad   : > { %v391_v29 = vadd.f32 %v387_v53, %v349_v48  ;;  %v730_v36 = vmul.f32 %v6885_v61, %v727_v54  ;;  %v7015_v40 = vsel %vm768_vm0, %v772_v24, %v11917_v27  ;;  %v785_v41 = vmul.f32 %v784_v30, %v6974_v20  ;;  %s8594_s21 = sld [smem:[#allocation10 + $0x93]] }
  0xae   : > { %v7019_v43 = vmul.f32 %v784_v30, %v6983_v13  ;;  %v7031_v53 = vmul.f32 %v956_v26, %v6971_v0  ;;  %v957_v58 = vmul.f32 %v956_v26, %v6974_v20  ;;  %v809_v1 = vmul.f32 %v808_v56, %v6974_v20  ;;  %s8601_s1 = sld [smem:[#allocation10 + $0xb7]] }
  0xaf   : > { %658 = vrot.lane.b32.xlu1 %v647_v10, %s11942_s24  ;;  %656 = vrot.lane.b32.xlu0 %v646_v14, %s11942_s24  ;;  %v6963_v3 = vadd.f32 %v432_v52, %v391_v29  ;;  %v6978_v10 = vadd.f32 %v434_v6, %v393_v4  ;;  %v6985_v14 = vadd.f32 %v433_v7, %v392_v8  ;;  %v11915_v52 = vrot.slane %v7009_v35, 1  ;;  %s8617_s14 = sld [smem:[#allocation10 + $0xa1]] }
  0xb0   : > { %v793_v54 = vrot.slane %v785_v41, 1  ;;  %v11914_v55 = vrot.slane %v7019_v43, 1  ;;  %v810_v29 = vmul.f32 %v808_v56, %v6961_v33  ;;  %v7047_v6 = vmul.f32 %v956_v26, %v6983_v13  ;;  %s8620_s7 = sld [smem:[#allocation10 + $0xff]] }
  0xb1   : > { %v968_v4 = vrot.slane %v958_v44, 1  ;;  %v990_v7 = vstv %s6993_s15  ;;  %v7060_v8 = vmul.f32 %v808_v56, %v6983_v13  ;;  %v965_v24 = vrot.slane %v957_v58, 1  ;;  %s7276_s15 = sld [smem:[#allocation5 + $0x1f]] }
  0xb2   : > { %v7052_v60 = vsel %vm768_vm0, %v793_v54, %v11914_v55  ;;  %v7093_v58 = vmul.f32 %v990_v7, %v6971_v0  ;;  %v1058_v55 = vstv %s7083_s27  ;;  %s7453_s27 = sld [smem:[#allocation10 + $0x25]] }
  0xb3   : > { %682 = vrot.lane.b32.xlu1 %v673_v18, %s11942_s24  ;;  %680 = vrot.lane.b32.xlu0 %v672_v28, %s11942_s24  ;;  %v760_v18 = vmul.f32 %v759_v9, %v6974_v20  ;;  %11986 = vst [vmem:[#allocation29_spill] sm:$0xff] %v7060_v8  ;;  %v969_v9 = vrot.slane %v7031_v53, 1  ;;  %v11912_v26 = vrot.slane %v7060_v8, 1  ;;  %s8627_s19 = sld [smem:[#allocation10 + $0x6]] }
  0xb5   : > { %v769_v28 = vrot.slane %v760_v18, 1  ;;  %v832_v18 = vstv %s7001_s18  ;;  %s6000_s18 = sld [smem:[#allocation5 + $0x7]] }
  0xb6   : > { %v833_v44 = vmul.f32 %v832_v18, %v6974_v20 }
  0xb7   : > { %686 = vrot.lane.b32.xlu1 %v675_v34, %s11942_s24  ;;  %684 = vrot.lane.b32.xlu0 %v674_v49, %s11942_s24  ;;  %v786_v34 = vmul.f32 %v784_v30, %v6961_v33  ;;  %v7027_v48 = vsel %vm768_vm0, %v769_v28, %v11916_v32  ;;  %v834_v28 = vmul.f32 %v832_v18, %v6961_v33  ;;  %v7138_v32 = vld [vmem:[%s6775_s26 + $0x30] sm:$0x7] }
  0xb8   : > { %v7070_v30 = vmul.f32 %v832_v18, %v6971_v0 }
  0xb9   : > { %v796_v49 = vrot.slane %v786_v34, 1  ;;  %v966_v34 = vrot.slane %v7047_v6, 1  ;;  %v844_v53 = vrot.slane %v834_v28, 1  ;;  %v970_v28 = vsel %vm768_vm0, %v968_v4, %v969_v9 }
  0xba   : > { %11987 = vst [vmem:[#allocation30_spill] sm:$0xff] %v7070_v30  ;;  %v11911_v54 = vrot.slane %v7070_v30, 1 }
  0xbb   : > { %710 = vrot.lane.b32.xlu1 %v701_v59, %s11942_s24  ;;  %708 = vrot.lane.b32.xlu0 %v700_v62, %s11942_s24  ;;  %v7041_v59 = vsel %vm768_vm0, %v796_v49, %v11915_v52  ;;  %v7055_v62 = vmul.f32 %v808_v56, %v6971_v0  ;;  %v992_v56 = vmul.f32 %v990_v7, %v6961_v33  ;;  %v7135_v52 = vld [vmem:[%s6775_s26 + $0x20] sm:$0xfe] }
  0xbd   : > { %11985 = vst [vmem:[#allocation28_spill] sm:$0xff] %v7055_v62  ;;  %v11913_v11 = vrot.slane %v7055_v62, 1 }
  0xbf   : > { %714 = vrot.lane.b32.xlu1 %v703_v2, %s11942_s24  ;;  %712 = vrot.lane.b32.xlu0 %v702_v12, %s11942_s24  ;;  %v820_v2 = vrot.slane %v810_v29, 1  ;;  %v817_v12 = vrot.slane %v809_v1, 1  ;;  %v841_v29 = vrot.slane %v833_v44, 1  ;;  %v991_v1 = vmul.f32 %v990_v7, %v6974_v20 }
  0xc0   : > { %v967_v44 = vsel %vm768_vm0, %v965_v24, %v966_v34  ;;  %v1003_v24 = vrot.slane %v7093_v58, 1 }
  0xc1   : > { %v7076_v41 = vsel %vm768_vm0, %v820_v2, %v11913_v11  ;;  %v7088_v49 = vsel %vm768_vm0, %v817_v12, %v11912_v26  ;;  %v7100_v2 = vmul.f32 %v990_v7, %v6983_v13  ;;  %v7105_v12 = vsel %vm768_vm0, %v844_v53, %v11911_v54  ;;  %v7119_v7 = vld [vmem:[%s6775_s26 + $0x28] sm:$0xfe]  ;;  %v7131_v11 = vld [vmem:[%s6775_s26 + $0x38] sm:$0x7] }
  0xc2   : > { %11988 = vst [vmem:[#allocation31_spill] sm:$0xff] %v7076_v41  ;;  %11990 = vst [vmem:[#allocation33_spill] sm:$0xff] %v7088_v49  ;;  %v1002_v53 = vrot.slane %v992_v56, 1 }
  0xc3   : > { %738 = vrot.lane.b32.xlu1 %v729_v21, %s11942_s24  ;;  %736 = vrot.lane.b32.xlu0 %v728_v22, %s11942_s24  ;;  %v7080_v21 = vmul.f32 %v832_v18, %v6983_v13  ;;  %v1024_v22 = vstv %s7022_s20  ;;  %11991 = vst [vmem:[#allocation34_spill] sm:$0xff] %v7105_v12  ;;  %v884_v18 = vstv %s7044_s25  ;;  %s7404_s20 = sld [smem:[#allocation3 + %s6584_s12]] }
  0xc4   : > { %v886_v4 = vmul.f32 %v7119_v7, %v884_v18  ;;  %v1028_v54 = vmul.f32 %v1024_v22, %v6971_v0  ;;  %v1025_v26 = vmul.f32 %v1024_v22, %v6974_v20  ;;  %v1027_v58 = vmul.f32 %v1024_v22, %v6983_v13  ;;  %s7432_s25 = sld [smem:[#allocation10 + $0x1]] }
  0xc5   : > { %11989 = vst [vmem:[#allocation32_spill] sm:$0xff] %v7080_v21  ;;  %v11910_v6 = vrot.slane %v7080_v21, 1  ;;  %v908_v12 = vstv %s7115_s28  ;;  %s7483_s28 = sld [smem:[#allocation10 + $0x49]] }
  0xc6   : > { %v1037_v21 = vrot.slane %v1028_v54, 1  ;;  %v1034_v54 = vrot.slane %v1027_v58, 1 }
  0xc7   : > { %742 = vrot.lane.b32.xlu1 %v731_v31, %s11942_s24  ;;  %740 = vrot.lane.b32.xlu0 %v730_v36, %s11942_s24  ;;  %v7113_v31 = vsel %vm768_vm0, %v841_v29, %v11910_v6  ;;  %v1026_v36 = vmul.f32 %v1024_v22, %v6961_v33  ;;  %v999_v29 = vrot.slane %v991_v1, 1  ;;  %v1000_v6 = vrot.slane %v7100_v2, 1 }
  0xc8   : > { %11992 = vst [vmem:[#allocation35_spill] sm:$0xff] %v7113_v31  ;;  %v896_v1 = vrot.slane %v886_v4, 1  ;;  %v885_v2 = vmul.f32 %v7135_v52, %v884_v18  ;;  %v1033_v31 = vrot.slane %v1025_v26, 1 }
  0xc9   : > { %v1036_v56 = vrot.slane %v1026_v36, 1  ;;  %v1004_v36 = vsel %vm768_vm0, %v1002_v53, %v1003_v24  ;;  %v1001_v27 = vsel %vm768_vm0, %v999_v29, %v1000_v6  ;;  %v909_v53 = vmul.f32 %v7135_v52, %v908_v12 }
  0xca   : > { %v893_v22 = vrot.slane %v885_v2, 1  ;;  %v7171_v29 = vmul.f32 %v7138_v32, %v908_v12  ;;  %v932_v2 = vstv %s7122_s29  ;;  %s7501_s29 = sld [smem:[#allocation10 + $0x6d]] }
  0xcb   : > { %973 = vrot.lane.b32.xlu1 %v970_v28, %s11942_s24  ;;  %971 = vrot.lane.b32.xlu0 %v967_v44, %s11942_s24  ;;  %v7141_v28 = vmul.f32 %v7131_v11, %v884_v18  ;;  %v7146_v44 = vmul.f32 %v7138_v32, %v884_v18  ;;  %v917_v8 = vrot.slane %v909_v53, 1  ;;  %v934_v62 = vmul.f32 %v7119_v7, %v932_v2 }
  0xcc   : > { %11995 = vst [vmem:[#allocation38_spill] sm:$0xff] %v7171_v29  ;;  %v11927_v58 = vrot.slane %v7171_v29, 1  ;;  %v7180_v49 = vmul.f32 %v7131_v11, %v932_v2 }
  0xcd   : > { %11993 = vst [vmem:[#allocation36_spill] sm:$0xff] %v7146_v44  ;;  %v11920_v30 = vrot.slane %v7141_v28, 1  ;;  %v11923_v4 = vrot.slane %v7146_v44, 1 }
  0xce   : > { %11996 = vst [vmem:[#allocation39_spill] sm:$0xff] %v7180_v49  ;;  %v7195_v53 = vsel %vm768_vm0, %v917_v8, %v11927_v58  ;;  %v1061_v8 = vmul.f32 %v1058_v55, %v6983_v13 }
  0xcf   : > { %977 = vrot.lane.b32.xlu1 %v969_v9, %s11942_s24  ;;  %975 = vrot.lane.b32.xlu0 %v966_v34, %s11942_s24  ;;  %v7158_v18 = vsel %vm768_vm0, %v896_v1, %v11920_v30  ;;  %v910_v9 = vmul.f32 %v7119_v7, %v908_v12  ;;  %v7162_v34 = vmul.f32 %v7131_v11, %v908_v12 }
  0xd0   : > { %v7168_v26 = vsel %vm768_vm0, %v893_v22, %v11923_v4  ;;  %v933_v22 = vmul.f32 %v7135_v52, %v932_v2  ;;  %v7184_v12 = vmul.f32 %v7138_v32, %v932_v2  ;;  %11998 = vst [vmem:[#allocation41_spill] sm:$0xff] %v7195_v53  ;;  %v11926_v4 = vrot.slane %v7180_v49, 1 }
  0xd1   : > { %11994 = vst [vmem:[#allocation37_spill] sm:$0xff] %v7162_v34  ;;  %v920_v1 = vrot.slane %v910_v9, 1  ;;  %v11928_v30 = vrot.slane %v7162_v34, 1  ;;  %v944_v9 = vrot.slane %v934_v62, 1  ;;  %v1062_v2 = vmul.f32 %v1058_v55, %v6971_v0 }
  0xd2   : > { %11997 = vst [vmem:[#allocation40_spill] sm:$0xff] %v7184_v12  ;;  %v941_v41 = vrot.slane %v933_v22, 1  ;;  %v11925_v44 = vrot.slane %v7184_v12, 1  ;;  %v1059_v62 = vmul.f32 %v1058_v55, %v6974_v20 }
  0xd3   : > { %1007 = vrot.lane.b32.xlu1 %v1004_v36, %s11942_s24  ;;  %1005 = vrot.lane.b32.xlu0 %v1001_v27, %s11942_s24  ;;  %v1060_v36 = vmul.f32 %v1058_v55, %v6961_v33  ;;  %v7190_v27 = vsel %vm768_vm0, %v920_v1, %v11928_v30  ;;  %v1038_v33 = vsel %vm768_vm0, %v1036_v56, %v1037_v21  ;;  %v1071_v20 = vrot.slane %v1062_v2, 1 }
  0xd4   : > { %v1035_v1 = vsel %vm768_vm0, %v1033_v31, %v1034_v54  ;;  %v7209_v22 = vsel %vm768_vm0, %v944_v9, %v11926_v4  ;;  %v1068_v31 = vrot.slane %v1061_v8, 1  ;;  %v558_v56 = vstv %s5976_s30  ;;  %v7230_v9 = vld [vmem:[%s6775_s26 + $0x78] sm:$0x3]  ;;  %v7237_v8 = vld [vmem:[%s6775_s26 + $0x60] sm:$0xff]  ;;  %s7512_s30 = sld [smem:[#allocation10 + $0x91]] }
  0xd5   : > { %11999 = vst [vmem:[#allocation42_spill] sm:$0xff] %v7209_v22  ;;  %v1070_v0 = vrot.slane %v1060_v36, 1  ;;  %v603_v36 = vstv %s5984_s9  ;;  %v562_v2 = vmul.f32 %v6878_v57, %v558_v56  ;;  %s7537_s9 = sld [smem:[#allocation10 + $0xb5]] }
  0xd7   : > { %1011 = vrot.lane.b32.xlu1 %v1003_v24, %s11942_s24  ;;  %1009 = vrot.lane.b32.xlu0 %v1000_v6, %s11942_s24  ;;  %v7214_v24 = vsel %vm768_vm0, %v941_v41, %v11925_v44  ;;  %v1067_v6 = vrot.slane %v1059_v62, 1  ;;  %v1072_v13 = vsel %vm768_vm0, %v1070_v0, %v1071_v20  ;;  %v559_v62 = vmul.f32 %v6855_v42, %v558_v56  ;;  %v7240_v0 = vld [vmem:[%s6775_s26 + $0x70] sm:$0x3] }
  0xd8   : > { %12000 = vst [vmem:[#allocation43_spill] sm:$0xff] %v7214_v24  ;;  %v613_v44 = vstv %s5985_s16  ;;  %v604_v24 = vmul.f32 %v7237_v8, %v603_v36  ;;  %v606_v22 = vmul.f32 %v7240_v0, %v603_v36  ;;  %s7591_s16 = sld [smem:[#allocation10 + $0xfd]] }
  0xd9   : > { %v1069_v55 = vsel %vm768_vm0, %v1067_v6, %v1068_v31 }
  0xdb   : > { %1041 = vrot.lane.b32.xlu1 %v1038_v33, %s11942_s24  ;;  %1039 = vrot.lane.b32.xlu0 %v1035_v1, %s11942_s24  ;;  %v561_v33 = vmul.f32 %v6885_v61, %v558_v56  ;;  %v560_v1 = vmul.f32 %v6844_v37, %v558_v56 }
  0xdf   : > { %1045 = vrot.lane.b32.xlu1 %v1037_v21, %s11942_s24  ;;  %1043 = vrot.lane.b32.xlu0 %v1034_v54, %s11942_s24  ;;  %v7227_v54 = vld [vmem:[%s6775_s26 + $0x68] sm:$0xff]  ;;  %s7254_s26 = sld [smem:[#allocation5 + $0x16]] }
  0xe3   : > { %1075 = vrot.lane.b32.xlu1 %v1072_v13, %s11942_s24  ;;  %1073 = vrot.lane.b32.xlu0 %v1069_v55, %s11942_s24  ;;  %v605_v13 = vmul.f32 %v7227_v54, %v603_v36  ;;  %v607_v55 = vmul.f32 %v7230_v9, %v603_v36 }
  0xe7   : > { %1079 = vrot.lane.b32.xlu1 %v1071_v20, %s11942_s24  ;;  %1077 = vrot.lane.b32.xlu0 %v1068_v31, %s11942_s24  ;;  %v568_v31 = vstv %s5977_s0  ;;  %s7570_s0 = sld [smem:[#allocation10 + $0xd9]] }
  0xfd   : > { %v454_v41 = vpop.permute.xlu1 %453  ;;  %v450_v21 = vpop.permute.xlu0 %449 }
 0x101   : > { %v456_v20 = vpop.permute.xlu1 %455  ;;  %v452_v6 = vpop.permute.xlu0 %451 }
 0x102   : > { %v459_v4 = vsel %vm457_vm1, %v454_v41, %v456_v20  ;;  %v467_v58 = vadd.f32 %v456_v20, %v6846_v38  ;;  %v458_v56 = vsel %vm457_vm1, %v450_v21, %v452_v6  ;;  %v465_v30 = vadd.f32 %v452_v6, %v6866_v50 }
 0x103   : > { %v466_v12 = vadd.f32 %v459_v4, %v6861_v46  ;;  %v464_v49 = vadd.f32 %v458_v56, %v6888_v63  ;;  %v570_v41 = vmul.f32 %v6844_v37, %v568_v31  ;;  %v569_v21 = vmul.f32 %v6855_v42, %v568_v31 }
 0x104   : > { %v566_v29 = vadd.f32 %v562_v2, %v467_v58  ;;  %v564_v34 = vadd.f32 %v560_v1, %v465_v30  ;;  %v615_v46 = vmul.f32 %v7227_v54, %v613_v44  ;;  %v572_v2 = vmul.f32 %v6878_v57, %v568_v31 }
 0x105   : > { %v565_v53 = vadd.f32 %v561_v33, %v466_v12  ;;  %v563_v38 = vadd.f32 %v559_v62, %v464_v49  ;;  %v481_v20 = vpop.permute.xlu1 %480  ;;  %v479_v50 = vpop.permute.xlu0 %478  ;;  %v614_v12 = vmul.f32 %v7237_v8, %v613_v44  ;;  %v578_v1 = vstv %s7242_s23  ;;  %s6030_s23 = sld [smem:[#allocation10 + $0x2]] }
 0x106   : > { %v493_v63 = vadd.f32 %v481_v20, %v6894_v5  ;;  %v486_v4 = vsel %vm457_vm1, %v479_v50, %v481_v20  ;;  %v7261_v36 = vadd.f32 %v605_v13, %v564_v34  ;;  %v7263_v6 = vadd.f32 %v607_v55, %v566_v29 }
 0x107   : > { %v492_v30 = vadd.f32 %v486_v4, %v6907_v15  ;;  %v7266_v58 = vadd.f32 %v604_v24, %v563_v38  ;;  %v7268_v49 = vadd.f32 %v606_v22, %v565_v53  ;;  %v571_v34 = vmul.f32 %v6885_v61, %v568_v31 }
 0x108   : > { %v574_v33 = vadd.f32 %v570_v41, %v493_v63  ;;  %v617_v24 = vmul.f32 %v7230_v9, %v613_v44  ;;  %v616_v56 = vmul.f32 %v7240_v0, %v613_v44  ;;  %v623_v41 = vstv %s7254_s26  ;;  %s6031_s26 = sld [smem:[#allocation10 + $0x26]] }
 0x109   : > { %v573_v5 = vadd.f32 %v569_v21, %v492_v30  ;;  %v485_v62 = vpop.permute.xlu1 %484  ;;  %v483_v29 = vpop.permute.xlu0 %482  ;;  %v580_v38 = vmul.f32 %v6844_v37, %v578_v1  ;;  %v625_v44 = vmul.f32 %v7227_v54, %v623_v41 }
 0x10a   : > { %v495_v15 = vadd.f32 %v485_v62, %v6909_v16  ;;  %v487_v53 = vsel %vm457_vm1, %v483_v29, %v485_v62  ;;  %v7280_v22 = vadd.f32 %v615_v46, %v574_v33  ;;  %v579_v16 = vmul.f32 %v6855_v42, %v578_v1 }
 0x10b   : > { %v494_v13 = vadd.f32 %v487_v53, %v6913_v19  ;;  %v7284_v55 = vadd.f32 %v614_v12, %v573_v5  ;;  %v624_v12 = vmul.f32 %v7237_v8, %v623_v41  ;;  %v588_v29 = vstv %s7272_s8  ;;  %s6032_s8 = sld [smem:[#allocation10 + $0x4a]] }
 0x10c   : > { %v576_v31 = vadd.f32 %v572_v2, %v495_v15  ;;  %v582_v2 = vmul.f32 %v6878_v57, %v578_v1  ;;  %v633_v15 = vstv %s7276_s15  ;;  %s6033_s15 = sld [smem:[#allocation10 + $0x6e]] }
 0x10d   : > { %v575_v20 = vadd.f32 %v571_v34, %v494_v13  ;;  %v509_v21 = vpop.permute.xlu1 %508  ;;  %v507_v50 = vpop.permute.xlu0 %506  ;;  %v581_v34 = vmul.f32 %v6885_v61, %v578_v1  ;;  %v590_v1 = vmul.f32 %v6844_v37, %v588_v29 }
 0x10e   : > { %v521_v46 = vadd.f32 %v509_v21, %v6929_v39  ;;  %v514_v19 = vsel %vm457_vm1, %v507_v50, %v509_v21  ;;  %v7292_v63 = vadd.f32 %v617_v24, %v576_v31  ;;  %v860_v21 = vstv %s6000_s18  ;;  %s11940_s18 = smov 126  }
 0x10f   : > { %v520_v4 = vadd.f32 %v514_v19, %v6936_v45  ;;  %v7296_v30 = vadd.f32 %v616_v56, %v575_v20  ;;  %v627_v45 = vmul.f32 %v7230_v9, %v623_v41  ;;  %v635_v19 = vmul.f32 %v7227_v54, %v633_v15 }
 0x110   : > { %v584_v33 = vadd.f32 %v580_v38, %v521_v46  ;;  %v626_v38 = vmul.f32 %v7240_v0, %v623_v41  ;;  %v862_v37 = vmul.f32 %v7119_v7, %v860_v21  ;;  %v861_v54 = vmul.f32 %v7135_v52, %v860_v21 }
 0x111   : > { %v583_v5 = vadd.f32 %v579_v16, %v520_v4  ;;  %v513_v62 = vpop.permute.xlu1 %512  ;;  %v511_v39 = vpop.permute.xlu0 %510 }
 0x112   : > { %v523_v53 = vadd.f32 %v513_v62, %v6938_v47  ;;  %v515_v24 = vsel %vm457_vm1, %v511_v39, %v513_v62  ;;  %v7305_v13 = vadd.f32 %v625_v44, %v584_v33  ;;  %v589_v47 = vmul.f32 %v6855_v42, %v588_v29 }
 0x113   : > { %v522_v56 = vadd.f32 %v515_v24, %v6942_v51  ;;  %v7309_v31 = vadd.f32 %v624_v12, %v583_v5  ;;  %v634_v12 = vmul.f32 %v7237_v8, %v633_v15  ;;  %v592_v5 = vmul.f32 %v6878_v57, %v588_v29 }
 0x114   : > { %v586_v20 = vadd.f32 %v582_v2, %v523_v53  ;;  %v864_v2 = vmul.f32 %v7131_v11, %v860_v21  ;;  %v591_v39 = vmul.f32 %v6885_v61, %v588_v29  ;;  %v636_v11 = vmul.f32 %v7240_v0, %v633_v15 }
 0x115   : > { %v585_v16 = vadd.f32 %v581_v34, %v522_v56  ;;  %v537_v50 = vpop.permute.xlu1 %536  ;;  %v535_v46 = vpop.permute.xlu0 %534 }
 0x116   : > { %v549_v44 = vadd.f32 %v537_v50, %v6963_v3  ;;  %v542_v4 = vsel %vm457_vm1, %v535_v46, %v537_v50  ;;  %v7317_v51 = vadd.f32 %v627_v45, %v586_v20  ;;  %v863_v3 = vmul.f32 %v7138_v32, %v860_v21 }
 0x117   : > { %v548_v41 = vadd.f32 %v542_v4, %v6976_v23  ;;  %v7321_v33 = vadd.f32 %v626_v38, %v585_v16  ;;  %v637_v23 = vmul.f32 %v7230_v9, %v633_v15  ;;  %v872_v32 = vrot.slane %v862_v37, 1 }
 0x118   : > { %v594_v42 = vadd.f32 %v590_v1, %v549_v44  ;;  %v873_v45 = vrot.slane %v864_v2, 1  ;;  %v869_v38 = vrot.slane %v861_v54, 1  ;;  %v870_v61 = vrot.slane %v863_v3, 1 }
 0x119   : > { %v593_v62 = vadd.f32 %v589_v47, %v548_v41  ;;  %v541_v34 = vpop.permute.xlu1 %540  ;;  %v539_v8 = vpop.permute.xlu0 %538  ;;  %v12001_v41 = vrot.slane %v6988_v17, 1 }
 0x11a   : > { %v551_v53 = vadd.f32 %v541_v34, %v6978_v10  ;;  %v543_v7 = vsel %vm457_vm1, %v539_v8, %v541_v34  ;;  %v7332_v24 = vadd.f32 %v635_v19, %v594_v42  ;;  %v871_v50 = vsel %vm768_vm0, %v869_v38, %v870_v61 }
 0x11b   : > { %v550_v57 = vadd.f32 %v543_v7, %v6985_v14  ;;  %v7336_v52 = vadd.f32 %v634_v12, %v593_v62  ;;  %v874_v14 = vsel %vm768_vm0, %v872_v32, %v873_v45 }
 0x11c   : > { %v596_v56 = vadd.f32 %v592_v5, %v551_v53 }
 0x11d   : > { %v595_v29 = vadd.f32 %v591_v39, %v550_v57  ;;  %v655_v20 = vpop.permute.xlu1 %654  ;;  %v653_v9 = vpop.permute.xlu0 %652 }
 0x11e   : > { %v667_v10 = vadd.f32 %v655_v20, %v7261_v36  ;;  %v660_v1 = vsel %vm457_vm1, %v653_v9, %v655_v20  ;;  %v7340_v21 = vadd.f32 %v637_v23, %v596_v56  ;;  %v12006_v56 = vld [vmem:[#allocation36_spill] sm:$0xff] }
 0x11f   : > { %v666_v0 = vadd.f32 %v660_v1, %v7266_v58  ;;  %v7343_v15 = vadd.f32 %v636_v11, %v595_v29  ;;  %v12009_v29 = vld [vmem:[#allocation33_spill] sm:$0xff] }
 0x120   : > { %v780_v16 = vadd.f32 %v7015_v40, %v667_v10  ;;  %v12002_v40 = vrot.slane %v6996_v25, 1 }
 0x121   : > { %v779_v47 = vadd.f32 %v7027_v48, %v666_v0  ;;  %v659_v46 = vpop.permute.xlu1 %658  ;;  %v657_v19 = vpop.permute.xlu0 %656 }
 0x122   : > { %v669_v36 = vadd.f32 %v659_v46, %v7263_v6  ;;  %v661_v44 = vsel %vm457_vm1, %v657_v19, %v659_v46  ;;  %v7351_v4 = vadd.f32 %v874_v14, %v780_v16  ;;  %v12011_v14 = vld [vmem:[#allocation41_spill] sm:$0xff] }
 0x123   : > { %v668_v58 = vadd.f32 %v661_v44, %v7268_v49  ;;  %v7354_v12 = vadd.f32 %v871_v50, %v779_v47  ;;  %v12012_v50 = vld [vmem:[#allocation28_spill] sm:$0xff] }
 0x124   : > { %v782_v37 = vadd.f32 %v12001_v41, %v669_v36  ;;  %v12013_v47 = vrot.slane %v12012_v50, 1  ;;  %v12014_v36 = vld [vmem:[#allocation29_spill] sm:$0xff] }
 0x125   : > { %v781_v2 = vadd.f32 %v12002_v40, %v668_v58  ;;  %v683_v42 = vpop.permute.xlu1 %682  ;;  %v681_v48 = vpop.permute.xlu0 %680  ;;  %v12016_v40 = vld [vmem:[#allocation37_spill] sm:$0xff] }
 0x126   : > { %v695_v5 = vadd.f32 %v683_v42, %v7280_v22  ;;  %v688_v6 = vsel %vm457_vm1, %v681_v48, %v683_v42  ;;  %v7362_v54 = vadd.f32 %v873_v45, %v782_v37  ;;  %v12005_v45 = vrot.slane %v7141_v28, 1 }
 0x127   : > { %v694_v3 = vadd.f32 %v688_v6, %v7284_v55  ;;  %v7365_v62 = vadd.f32 %v870_v61, %v781_v2  ;;  %v12003_v55 = vrot.slane %v7009_v35, 1  ;;  %v12007_v35 = vrot.slane %v12006_v56, 1 }
 0x128   : > { %v804_v49 = vadd.f32 %v7041_v59, %v695_v5  ;;  %v12004_v59 = vrot.slane %v7019_v43, 1  ;;  %v12008_v43 = vld [vmem:[#allocation31_spill] sm:$0xff]  ;;  %v12017_v2 = vrot.slane %v12016_v40, 1  ;;  %v12018_v5 = vld [vmem:[#allocation38_spill] sm:$0xff] }
 0x129   : > { %v803_v17 = vadd.f32 %v7052_v60, %v694_v3  ;;  %v687_v34 = vpop.permute.xlu1 %686  ;;  %v685_v39 = vpop.permute.xlu0 %684  ;;  %v12019_v6 = vrot.slane %v12018_v5, 1 }
 0x12a   : > { %v697_v25 = vadd.f32 %v687_v34, %v7292_v63  ;;  %v689_v8 = vsel %vm457_vm1, %v685_v39, %v687_v34  ;;  %v7372_v22 = vadd.f32 %v7158_v18, %v804_v49  ;;  %v311_v18 = vlaneseq  ;;  %v12020_v49 = vld [vmem:[#allocation34_spill] sm:$0xff]  ;;  %v12021_v39 = vld [vmem:[#allocation35_spill] sm:$0xff] }
 0x12b   : > { %v696_v23 = vadd.f32 %v689_v8, %v7296_v30  ;;  %v7376_v53 = vadd.f32 %v7168_v26, %v803_v17 }
 0x12c   : > { %v806_v7 = vadd.f32 %v12003_v55, %v697_v25  ;;  %v7397_v0 = vand.u32 127, %v311_v18  ;;  %v312_v19 = vshrl.u32 %v311_v18, 7  ;;  %v12024_v18 = vld [vmem:[#allocation30_spill] sm:$0xff] }
 0x12d   : > { %v805_v60 = vadd.f32 %v12004_v59, %v696_v23  ;;  %v711_v11 = vpop.permute.xlu1 %710  ;;  %v709_v57 = vpop.permute.xlu0 %708 }
 0x12e   : > { %v723_v63 = vadd.f32 %v711_v11, %v7305_v13  ;;  %v716_v32 = vsel %vm457_vm1, %v709_v57, %v711_v11  ;;  %v7386_v30 = vadd.f32 %v12005_v45, %v806_v7  ;;  %12010 = vst [vmem:[#allocation36_spill] sm:$0xff] %v7397_v0  ;;  %v5952_v34 = vadd.s32 4294967295, %v312_v19 }
 0x12f   : > { %v722_v26 = vadd.f32 %v716_v32, %v7309_v31  ;;  %v7391_v38 = vadd.f32 %v12007_v35, %v805_v60  ;;  %v335_v57 = vstv %s7404_s20  ;;  %v12025_v45 = vrot.slane %v12024_v18, 1  ;;  %s6034_s20 = sld [smem:[#allocation10 + $0x92]] }
 0x130   : > { %v828_v61 = vadd.f32 %v12008_v43, %v723_v63  ;;  %v12023_v63 = vld [vmem:[#allocation43_spill] sm:$0xff]  ;;  %vm323_vm2 = vcmp.ge.s32.totalorder %v5952_v34, 0  ;;  %v1205_v34 = vstv %s7453_s27  ;;  %s6036_s27 = sld [smem:[#allocation10 + $0xda]] }
 0x131   : > { %v827_v20 = vadd.f32 %v12009_v29, %v722_v26  ;;  %v715_v9 = vpop.permute.xlu1 %714  ;;  %v713_v10 = vpop.permute.xlu0 %712 }
 0x132   : > { %v725_v13 = vadd.f32 %v715_v9, %v7317_v51  ;;  %v717_v1 = vsel %vm457_vm1, %v713_v10, %v715_v9  ;;  %v7400_v28 = vadd.f32 %v7190_v27, %v828_v61  ;;  %v12015_v51 = vrot.slane %v12014_v36, 1  ;;  %v12030_v9 = vld [vmem:[#allocation39_spill] sm:$0xff] }
 0x133   : > { %v724_v31 = vadd.f32 %v717_v1, %v7321_v33  ;;  %v7407_v16 = vadd.f32 %v12011_v14, %v827_v20  ;;  %v319_v33 = vadd.s32 128, %v7397_v0  ;;  %v12031_v10 = vrot.slane %v12030_v9, 1 }
 0x134   : > { %v830_v46 = vadd.f32 %v12013_v47, %v725_v13 }
 0x135   : > { %v829_v44 = vadd.f32 %v12015_v51, %v724_v31  ;;  %v739_v58 = vpop.permute.xlu1 %738  ;;  %v737_v41 = vpop.permute.xlu0 %736  ;;  %v322_v59 = vadd.s32 4294967295, %v319_v33  ;;  %v12034_v31 = vld [vmem:[#allocation40_spill] sm:$0xff]  ;;  %v313_v51 = vadd.s32 8, %v312_v19 }
 0x136   : > { %v751_v37 = vadd.f32 %v739_v58, %v7332_v24  ;;  %v744_v27 = vsel %vm457_vm1, %v737_v41, %v739_v58  ;;  %v7418_v42 = vadd.f32 %v12017_v2, %v830_v46  ;;  %v7427_v24 = vadd.s32 4294967295, %v7397_v0 }
 0x137   : > { %v750_v48 = vadd.f32 %v744_v27, %v7336_v52  ;;  %v7423_v3 = vadd.f32 %v12019_v6, %v829_v44  ;;  %v12022_v52 = vld [vmem:[#allocation42_spill] sm:$0xff]  ;;  %vm7447_vm4 = vcmp.lt.s32.totalorder %v322_v59, %v335_v57  ;;  %v12035_v14 = vrot.slane %v12034_v31, 1 }
 0x138   : > { %v852_v17 = vadd.f32 %v12020_v49, %v751_v37  ;;  %vm329_vm3 = vcmp.ge.s32.totalorder %v7427_v24, 0  ;;  %vm7463_vm6 = vcmp.lt.s32.totalorder %v7427_v24, %v335_v57  ;;  %vm7475_vm7 = vmand %vm323_vm2, %vm7447_vm4  ;;  %v1192_v37 = vstv %s7432_s25  ;;  %s6035_s25 = sld [smem:[#allocation10 + $0xb6]] }
 0x139   : > { %v851_v25 = vadd.f32 %v12021_v39, %v750_v48  ;;  %v743_v8 = vpop.permute.xlu1 %742  ;;  %v741_v23 = vpop.permute.xlu0 %740  ;;  %vm331_vm5 = vmand %vm323_vm2, %vm329_vm3  ;;  %v5953_v40 = vadd.s32 4294967295, %v313_v51  ;;  %v1218_v59 = vstv %s7483_s28  ;;  %v1244_v51 = vstv %s7512_s30  ;;  %s6046_s28 = sld [smem:[#allocation10 + $0x4]] }
 0x13a   : > { %v753_v55 = vadd.f32 %v743_v8, %v7340_v21  ;;  %v745_v7 = vsel %vm457_vm1, %v741_v23, %v743_v8  ;;  %v7435_v60 = vadd.f32 %v12022_v52, %v852_v17  ;;  %v12026_v21 = vld [vmem:[#allocation32_spill] sm:$0xff]  ;;  %vm7487_vm8 = vmand %vm331_vm5, %vm7463_vm6  ;;  %s6047_s30 = sld [smem:[#allocation10 + $0x28]] }
 0x13b   : > { %v752_v11 = vadd.f32 %v745_v7, %v7343_v15  ;;  %v7440_v32 = vadd.f32 %v12023_v63, %v851_v25  ;;  %v12027_v56 = vrot.slane %v12026_v21, 1  ;;  %vm326_vm9 = vcmp.lt.s32.totalorder %v5953_v40, 8 }
 0x13c   : > { %v854_v26 = vadd.f32 %v12025_v45, %v753_v55  ;;  %vm7527_vm10 = vmand %vm326_vm9, %vm329_vm3 }
 0x13d   : > { %v853_v35 = vadd.f32 %v12027_v56, %v752_v11  ;;  %v974_v43 = vpop.permute.xlu1 %973  ;;  %v972_v61 = vpop.permute.xlu0 %971  ;;  %vm7545_vm11 = vmand %vm326_vm9, %vm7447_vm4 }
 0x13e   : > { %v986_v15 = vadd.f32 %v974_v43, %v7351_v4  ;;  %v979_v20 = vsel %vm457_vm1, %v972_v61, %v974_v43  ;;  %v7457_v13 = vadd.f32 %v12031_v10, %v854_v26  ;;  %v1231_v43 = vstv %s7501_s29  ;;  %vm7555_vm12 = vmand %vm7527_vm10, %vm7463_vm6  ;;  %s6037_s29 = sld [smem:[#allocation10 + $0xfe]] }
 0x13f   : > { %v985_v4 = vadd.f32 %v979_v20, %v7354_v12  ;;  %v7470_v50 = vadd.f32 %v12035_v14, %v853_v35 }
 0x140   : > { %v1092_v47 = vmax.f32 %v986_v15, 0.0 }
 0x141   : > { %v1091_v36 = vmax.f32 %v985_v4, 0.0  ;;  %v7479_v44 = vpop.permute.xlu1 %977  ;;  %v7481_v58 = vpop.permute.xlu0 %975 }
 0x142   : > { %v1096_v12 = vmin.f32 %v1092_v47, 20.0 }
 0x143   : > { %v1095_v27 = vmin.f32 %v1091_v36, 20.0 }
 0x144   : > { %v7494_v33 = vsel %vm7475_vm7, %v1096_v12, 0.0 }
 0x145   : > { %v7498_v19 = vsel %vm7487_vm8, %v1095_v27, 0.0  ;;  %v1008_v2 = vpop.permute.xlu1 %1007  ;;  %v1006_v48 = vpop.permute.xlu0 %1005  ;;  %v1194_v5 = vmul.f32 %v1192_v37, %v7494_v33  ;;  %v1207_v7 = vmul.f32 %v1205_v34, %v7494_v33  ;;  %v1220_v35 = vmul.f32 %v1218_v59, %v7494_v33 }
 0x146   : > { %v1020_v6 = vadd.f32 %v1008_v2, %v7372_v22  ;;  %v1013_v49 = vsel %vm457_vm1, %v1006_v48, %v1008_v2  ;;  %v1193_v17 = vmul.f32 %v1192_v37, %v7498_v19  ;;  %v1206_v11 = vmul.f32 %v1205_v34, %v7498_v19 }
 0x147   : > { %v1019_v39 = vadd.f32 %v1013_v49, %v7376_v53  ;;  %1199 = vrot.lane.b32.xlu1 %v1194_v5, %s11942_s24  ;;  %v1219_v20 = vmul.f32 %v1218_v59, %v7498_v19  ;;  %v1233_v36 = vmul.f32 %v1231_v43, %v7494_v33  ;;  %v1232_v40 = vmul.f32 %v1231_v43, %v7498_v19 }
 0x148   : > { %v1104_v25 = vmax.f32 %v1020_v6, 0.0  ;;  %1197 = vrot.lane.b32.xlu0 %v1193_v17, %s11942_s24 }
 0x149   : > { %v1103_v8 = vmax.f32 %v1019_v39, 0.0  ;;  %v1012_v23 = vpop.permute.xlu1 %1011  ;;  %v1010_v55 = vpop.permute.xlu0 %1009  ;;  %v1246_v39 = vmul.f32 %v1244_v51, %v7494_v33 }
 0x14a   : > { %v1108_v22 = vmin.f32 %v1104_v25, 20.0  ;;  %v1022_v52 = vadd.f32 %v1012_v23, %v7386_v30  ;;  %v1014_v53 = vsel %vm457_vm1, %v1010_v55, %v1012_v23  ;;  %v1257_v25 = vstv %s7537_s9  ;;  %s6048_s9 = sld [smem:[#allocation10 + $0x4c]] }
 0x14b   : > { %v1107_v57 = vmin.f32 %v1103_v8, 20.0  ;;  %v1021_v63 = vadd.f32 %v1014_v53, %v7391_v38  ;;  %1212 = vrot.lane.b32.xlu1 %v1207_v7, %s11942_s24  ;;  %v1245_v55 = vmul.f32 %v1244_v51, %v7498_v19  ;;  %v1310_v51 = vstv %s6031_s26  ;;  %s6052_s26 = sld [smem:[#allocation10 + $0xdc]] }
 0x14c   : > { %v7521_v18 = vsel %vm7475_vm7, %v1108_v22, 0.0  ;;  %v1106_v45 = vmax.f32 %v1022_v52, 0.0  ;;  %1210 = vrot.lane.b32.xlu0 %v1206_v11, %s11942_s24 }
 0x14d   : > { %v7533_v26 = vsel %vm7487_vm8, %v1107_v57, 0.0  ;;  %v1105_v38 = vmax.f32 %v1021_v63, 0.0  ;;  %v1042_v21 = vpop.permute.xlu1 %1041  ;;  %v1040_v56 = vpop.permute.xlu0 %1039  ;;  %v1259_v63 = vmul.f32 %v1257_v25, %v7494_v33 }
 0x14e   : > { %v1110_v61 = vmin.f32 %v1106_v45, 20.0  ;;  %v1054_v24 = vadd.f32 %v1042_v21, %v7400_v28  ;;  %v1047_v15 = vsel %vm457_vm1, %v1040_v56, %v1042_v21  ;;  %v1270_v45 = vstv %s7570_s0  ;;  %s6049_s0 = sld [smem:[#allocation10 + $0x70]] }
 0x14f   : > { %v1109_v10 = vmin.f32 %v1105_v38, 20.0  ;;  %v1053_v4 = vadd.f32 %v1047_v15, %v7407_v16  ;;  %1225 = vrot.lane.b32.xlu1 %v1220_v35, %s11942_s24  ;;  %v1258_v21 = vmul.f32 %v1257_v25, %v7498_v19  ;;  %v1272_v15 = vmul.f32 %v1270_v45, %v7494_v33 }
 0x150   : > { %v7561_v29 = vsel %vm7545_vm11, %v1110_v61, 0.0  ;;  %v1116_v31 = vmax.f32 %v1054_v24, 0.0  ;;  %1223 = vrot.lane.b32.xlu0 %v1219_v20, %s11942_s24 }
 0x151   : > { %v7566_v16 = vsel %vm7555_vm12, %v1109_v10, 0.0  ;;  %v1115_v14 = vmax.f32 %v1053_v4, 0.0  ;;  %v1046_v47 = vpop.permute.xlu1 %1045  ;;  %v1044_v1 = vpop.permute.xlu0 %1043  ;;  %v1271_v10 = vmul.f32 %v1270_v45, %v7498_v19  ;;  %v1388_v45 = vstv %s6037_s29  ;;  %s6059_s29 = sld [smem:[#allocation10 + $0xb9]] }
 0x152   : > { %12046 = vst [vmem:[#allocation31_spill] sm:$0xff] %v7566_v16  ;;  %v1120_v12 = vmin.f32 %v1116_v31, 20.0  ;;  %v1056_v37 = vadd.f32 %v1046_v47, %v7418_v42  ;;  %v1048_v27 = vsel %vm457_vm1, %v1044_v1, %v1046_v47  ;;  %v1296_v47 = vstv %s6030_s23  ;;  %s6051_s23 = sld [smem:[#allocation10 + $0xb8]] }
 0x153   : > { %v1119_v2 = vmin.f32 %v1115_v14, 20.0  ;;  %v1055_v48 = vadd.f32 %v1048_v27, %v7423_v3  ;;  %1238 = vrot.lane.b32.xlu1 %v1233_v36, %s11942_s24  ;;  %v1298_v1 = vmul.f32 %v1296_v47, %v7494_v33  ;;  %v1297_v36 = vmul.f32 %v1296_v47, %v7498_v19 }
 0x154   : > { %v7579_v5 = vsel %vm7475_vm7, %v1120_v12, 0.0  ;;  %v1118_v6 = vmax.f32 %v1056_v37, 0.0  ;;  %1236 = vrot.lane.b32.xlu0 %v1232_v40, %s11942_s24  ;;  %v1312_v12 = vmul.f32 %v1310_v51, %v7494_v33  ;;  %v1311_v37 = vmul.f32 %v1310_v51, %v7498_v19 }
 0x155   : > { %v7584_v49 = vsel %vm7487_vm8, %v1119_v2, 0.0  ;;  %v1117_v42 = vmax.f32 %v1055_v48, 0.0  ;;  %v1076_v17 = vpop.permute.xlu1 %1075  ;;  %v1074_v34 = vpop.permute.xlu0 %1073  ;;  %v1323_v27 = vstv %s6032_s8  ;;  %v980_v40 = vsel %vm457_vm1, %v7481_v58, %v7479_v44  ;;  %s6053_s8 = sld [smem:[#allocation10 + $0x100]] }
 0x156   : > { %v1122_v3 = vmin.f32 %v1118_v6, 20.0  ;;  %v1088_v8 = vadd.f32 %v1076_v17, %v7435_v60  ;;  %v1081_v23 = vsel %vm457_vm1, %v1074_v34, %v1076_v17  ;;  %v1325_v2 = vmul.f32 %v1323_v27, %v7494_v33 }
 0x157   : > { %v1121_v7 = vmin.f32 %v1117_v42, 20.0  ;;  %v1087_v59 = vadd.f32 %v1081_v23, %v7440_v32  ;;  %1251 = vrot.lane.b32.xlu1 %v1246_v39, %s11942_s24  ;;  %v1324_v48 = vmul.f32 %v1323_v27, %v7498_v19  ;;  %v1336_v6 = vstv %s6033_s15  ;;  %s6054_s15 = sld [smem:[#allocation10 + $0x5]] }
 0x158   : > { %v7597_v22 = vsel %vm7545_vm11, %v1122_v3, 0.0  ;;  %v1128_v52 = vmax.f32 %v1088_v8, 0.0  ;;  %1249 = vrot.lane.b32.xlu0 %v1245_v55, %s11942_s24  ;;  %v988_v42 = vadd.f32 %v7479_v44, %v7362_v54  ;;  %v987_v17 = vadd.f32 %v980_v40, %v7365_v62 }
 0x159   : > { %12047 = vst [vmem:[#allocation33_spill] sm:$0xff] %v7597_v22  ;;  %v7602_v60 = vsel %vm7555_vm12, %v1121_v7, 0.0  ;;  %v1127_v53 = vmax.f32 %v1087_v59, 0.0  ;;  %v1080_v11 = vpop.permute.xlu1 %1079  ;;  %v1078_v57 = vpop.permute.xlu0 %1077  ;;  %v1338_v34 = vmul.f32 %v1336_v6, %v7494_v33  ;;  %v1337_v39 = vmul.f32 %v1336_v6, %v7498_v19 }
 0x15a   : > { %12048 = vst [vmem:[#allocation41_spill] sm:$0xff] %v7602_v60  ;;  %v1132_v32 = vmin.f32 %v1128_v52, 20.0  ;;  %v1090_v30 = vadd.f32 %v1080_v11, %v7457_v13  ;;  %v1082_v38 = vsel %vm457_vm1, %v1078_v57, %v1080_v11  ;;  %v1349_v58 = vstv %s6034_s20  ;;  %s6055_s20 = sld [smem:[#allocation10 + $0x29]] }
 0x15b   : > { %v1131_v56 = vmin.f32 %v1127_v53, 20.0  ;;  %v1089_v35 = vadd.f32 %v1082_v38, %v7470_v50  ;;  %1264 = vrot.lane.b32.xlu1 %v1259_v63, %s11942_s24  ;;  %v1283_v50 = vstv %s7591_s16  ;;  %v1094_v25 = vmax.f32 %v988_v42, 0.0  ;;  %s6050_s16 = sld [smem:[#allocation10 + $0x94]] }
 0x15c   : > { %v7613_v43 = vsel %vm7475_vm7, %v1132_v32, 0.0  ;;  %v1130_v61 = vmax.f32 %v1090_v30, 0.0  ;;  %1262 = vrot.lane.b32.xlu0 %v1258_v21, %s11942_s24  ;;  %v1285_v31 = vmul.f32 %v1283_v50, %v7494_v33  ;;  %v1284_v14 = vmul.f32 %v1283_v50, %v7498_v19 }
 0x15d   : > { %12049 = vst [vmem:[#allocation28_spill] sm:$0xff] %v7613_v43  ;;  %v7618_v13 = vsel %vm7487_vm8, %v1131_v56, 0.0  ;;  %v1129_v24 = vmax.f32 %v1089_v35, 0.0  ;;  %v1093_v3 = vmax.f32 %v987_v17, 0.0  ;;  %v1351_v54 = vmul.f32 %v1349_v58, %v7494_v33 }
 0x15e   : > { %12050 = vst [vmem:[#allocation29_spill] sm:$0xff] %v7618_v13  ;;  %v1134_v20 = vmin.f32 %v1130_v61, 20.0  ;;  %v1350_v44 = vmul.f32 %v1349_v58, %v7498_v19  ;;  %v1362_v62 = vstv %s6035_s25  ;;  %v1098_v8 = vmin.f32 %v1094_v25, 20.0  ;;  %s6056_s25 = sld [smem:[#allocation10 + $0x4d]] }
 0x15f   : > { %v1133_v4 = vmin.f32 %v1129_v24, 20.0  ;;  %1277 = vrot.lane.b32.xlu1 %v1272_v15, %s11942_s24  ;;  %v1097_v23 = vmin.f32 %v1093_v3, 20.0  ;;  %v1364_v55 = vmul.f32 %v1362_v62, %v7494_v33  ;;  %v1363_v7 = vmul.f32 %v1362_v62, %v7498_v19 }
 0x160   : > { %v7626_v46 = vsel %vm7545_vm11, %v1134_v20, 0.0  ;;  %1275 = vrot.lane.b32.xlu0 %v1271_v10, %s11942_s24  ;;  %v1375_v59 = vstv %s6036_s27  ;;  %v7667_v52 = vsel %vm7545_vm11, %v1098_v8, 0.0  ;;  %v1489_v57 = vstv %s6046_s28  ;;  %s6057_s27 = sld [smem:[#allocation10 + $0x71]] }
 0x161   : > { %12051 = vst [vmem:[#allocation37_spill] sm:$0xff] %v7626_v46  ;;  %v7631_v41 = vsel %vm7555_vm12, %v1133_v4, 0.0  ;;  %v7672_v53 = vsel %vm7555_vm12, %v1097_v23, 0.0  ;;  %v1377_v11 = vmul.f32 %v1375_v59, %v7494_v33  ;;  %v1376_v63 = vmul.f32 %v1375_v59, %v7498_v19  ;;  %s6058_s28 = sld [smem:[#allocation10 + $0x95]] }
 0x162   : > { %12052 = vst [vmem:[#allocation38_spill] sm:$0xff] %v7631_v41  ;;  %v1493_v32 = vmul.f32 %v1489_v57, %v7667_v52  ;;  %v1492_v9 = vmul.f32 %v1489_v57, %v7672_v53  ;;  %v1491_v28 = vmul.f32 %v1489_v57, %v7494_v33  ;;  %v1390_v30 = vmul.f32 %v1388_v45, %v7494_v33 }
 0x163   : > { %1290 = vrot.lane.b32.xlu1 %v1285_v31, %s11942_s24  ;;  %v1490_v38 = vmul.f32 %v1489_v57, %v7498_v19  ;;  %v1512_v21 = vstv %s6047_s30  ;;  %v1389_v56 = vmul.f32 %v1388_v45, %v7498_v19  ;;  %v1535_v31 = vstv %s6048_s9  ;;  %s6060_s30 = sld [smem:[#allocation10 + $0xdd]] }
 0x164   : > { %1288 = vrot.lane.b32.xlu0 %v1284_v14, %s11942_s24  ;;  %v1502_v35 = vrot.slane %v1493_v32, 1  ;;  %v1516_v61 = vmul.f32 %v1512_v21, %v7667_v52  ;;  %v1499_v24 = vrot.slane %v1492_v9, 1  ;;  %v1515_v15 = vmul.f32 %v1512_v21, %v7672_v53  ;;  %s6061_s9 = sld [smem:[#allocation10 + $0x101]] }
 0x165   : > { %v1501_v20 = vrot.slane %v1491_v28, 1  ;;  %v1514_v10 = vmul.f32 %v1512_v21, %v7494_v33  ;;  %v1498_v50 = vrot.slane %v1490_v38, 1  ;;  %v1513_v4 = vmul.f32 %v1512_v21, %v7498_v19 }
 0x166   : > { %v1525_v47 = vrot.slane %v1516_v61, 1  ;;  %v1522_v51 = vrot.slane %v1515_v15, 1  ;;  %v1537_v27 = vmul.f32 %v1535_v31, %v7494_v33  ;;  %v1581_v62 = vstv %s6050_s16  ;;  %s7797_s16 = sld [smem:[#allocation10 + $0x2b]] }
 0x167   : > { %1303 = vrot.lane.b32.xlu1 %v1298_v1, %s11940_s18  ;;  %v1503_v14 = vsel %vm768_vm0, %v1501_v20, %v1502_v35  ;;  %v1539_v1 = vmul.f32 %v1535_v31, %v7667_v52  ;;  %v1521_v40 = vrot.slane %v1513_v4, 1  ;;  %v1582_v32 = vmul.f32 %v1581_v62, %v7498_v19 }
 0x168   : > { %1301 = vrot.lane.b32.xlu0 %v1297_v36, %s11940_s18  ;;  %v1500_v36 = vsel %vm768_vm0, %v1498_v50, %v1499_v24  ;;  %v1547_v25 = vrot.slane %v1537_v27, 1  ;;  %v1604_v9 = vstv %s6051_s23  ;;  %v1650_v27 = vstv %s6053_s8  ;;  %s7811_s23 = sld [smem:[#allocation10 + $0x4f]] }
 0x169   : > { %v1548_v42 = vrot.slane %v1539_v1, 1  ;;  %v1608_v38 = vmul.f32 %v1604_v9, %v7667_v52  ;;  %v1607_v35 = vmul.f32 %v1604_v9, %v7672_v53  ;;  %v1606_v24 = vmul.f32 %v1604_v9, %v7494_v33  ;;  %s7841_s8 = sld [smem:[#allocation10 + $0x97]] }
 0x16a   : > { %v1590_v15 = vrot.slane %v1582_v32, 1  ;;  %v1605_v20 = vmul.f32 %v1604_v9, %v7498_v19 }
 0x16b   : > { %1317 = vrot.lane.b32.xlu1 %v1312_v12, %s11940_s18  ;;  %v1538_v12 = vmul.f32 %v1535_v31, %v7672_v53  ;;  %v1549_v8 = vsel %vm768_vm0, %v1547_v25, %v1548_v42  ;;  %v1617_v4 = vrot.slane %v1608_v38, 1  ;;  %v1651_v25 = vmul.f32 %v1650_v27, %v7498_v19 }
 0x16c   : > { %1315 = vrot.lane.b32.xlu0 %v1311_v37, %s11940_s18  ;;  %v1524_v37 = vrot.slane %v1514_v10, 1  ;;  %v1627_v10 = vstv %s6052_s26  ;;  %s7826_s26 = sld [smem:[#allocation10 + $0x73]] }
 0x16d   : > { %v1630_v1 = vmul.f32 %v1627_v10, %v7672_v53 }
 0x16e   : > { %v1526_v6 = vsel %vm768_vm0, %v1524_v37, %v1525_v47  ;;  %v1614_v47 = vrot.slane %v1607_v35, 1  ;;  %v1628_v37 = vmul.f32 %v1627_v10, %v7498_v19 }
 0x16f   : > { %1330 = vrot.lane.b32.xlu1 %v1325_v2, %s11940_s18  ;;  %v1536_v2 = vmul.f32 %v1535_v31, %v7498_v19  ;;  %v1631_v31 = vmul.f32 %v1627_v10, %v7667_v52  ;;  %v1637_v42 = vrot.slane %v1630_v1, 1 }
 0x170   : > { %1328 = vrot.lane.b32.xlu0 %v1324_v48, %s11940_s18  ;;  %v1558_v48 = vstv %s6049_s0  ;;  %s6070_s0 = sld [smem:[#allocation10 + $0x7]] }
 0x171   : > { %v1562_v17 = vmul.f32 %v1558_v48, %v7667_v52  ;;  %v1561_v58 = vmul.f32 %v1558_v48, %v7672_v53  ;;  %v1560_v3 = vmul.f32 %v1558_v48, %v7494_v33 }
 0x173   : > { %1343 = vrot.lane.b32.xlu1 %v1338_v34, %s11940_s18  ;;  %v1523_v34 = vsel %vm768_vm0, %v1521_v40, %v1522_v51  ;;  %v1571_v23 = vrot.slane %v1562_v17, 1  ;;  %v1568_v59 = vrot.slane %v1561_v58, 1  ;;  %v1570_v57 = vrot.slane %v1560_v3, 1 }
 0x174   : > { %1341 = vrot.lane.b32.xlu0 %v1337_v39, %s11940_s18  ;;  %v1545_v39 = vrot.slane %v1538_v12, 1  ;;  %v1629_v51 = vmul.f32 %v1627_v10, %v7494_v33  ;;  %v1613_v12 = vrot.slane %v1605_v20, 1  ;;  %v1653_v17 = vmul.f32 %v1650_v27, %v7672_v53 }
 0x175   : > { %v1572_v28 = vsel %vm768_vm0, %v1570_v57, %v1571_v23  ;;  %v1636_v58 = vrot.slane %v1628_v37, 1  ;;  %v1673_v3 = vstv %s6054_s15  ;;  %s7856_s15 = sld [smem:[#allocation10 + $0xbb]] }
 0x176   : > { %v1660_v23 = vrot.slane %v1653_v17, 1  ;;  %v1674_v57 = vmul.f32 %v1673_v3, %v7498_v19 }
 0x177   : > { %1356 = vrot.lane.b32.xlu1 %v1351_v54, %s11940_s18  ;;  %v1544_v54 = vrot.slane %v1536_v2, 1  ;;  %v1640_v2 = vrot.slane %v1631_v31, 1 }
 0x178   : > { %1354 = vrot.lane.b32.xlu0 %v1350_v44, %s11940_s18  ;;  %v1559_v44 = vmul.f32 %v1558_v48, %v7498_v19  ;;  %v1654_v48 = vmul.f32 %v1650_v27, %v7667_v52  ;;  %v1682_v35 = vrot.slane %v1674_v57, 1 }
 0x17a   : > { %v1567_v45 = vrot.slane %v1559_v44, 1  ;;  %v1663_v44 = vrot.slane %v1654_v48, 1 }
 0x17b   : > { %1369 = vrot.lane.b32.xlu1 %v1364_v55, %s11940_s18  ;;  %v1585_v55 = vmul.f32 %v1581_v62, %v7667_v52 }
 0x17c   : > { %1367 = vrot.lane.b32.xlu0 %v1363_v7, %s11940_s18  ;;  %v1546_v7 = vsel %vm768_vm0, %v1544_v54, %v1545_v39  ;;  %v1569_v21 = vsel %vm768_vm0, %v1567_v45, %v1568_v59  ;;  %v1652_v39 = vmul.f32 %v1650_v27, %v7494_v33  ;;  %v1675_v59 = vmul.f32 %v1673_v3, %v7494_v33 }
 0x17f   : > { %1382 = vrot.lane.b32.xlu1 %v1377_v11, %s11940_s18  ;;  %v1584_v11 = vmul.f32 %v1581_v62, %v7672_v53 }
 0x180   : > { %1380 = vrot.lane.b32.xlu0 %v1376_v63, %s11940_s18  ;;  %v1583_v63 = vmul.f32 %v1581_v62, %v7494_v33  ;;  %v1677_v62 = vmul.f32 %v1673_v3, %v7667_v52 }
 0x182   : > { %v1593_v61 = vrot.slane %v1583_v63, 1  ;;  %v1696_v63 = vstv %s6055_s20  ;;  %v1686_v32 = vrot.slane %v1677_v62, 1  ;;  %s7871_s20 = sld [smem:[#allocation10 + $0xdf]] }
 0x183   : > { %1395 = vrot.lane.b32.xlu1 %v1390_v30, %s11940_s18  ;;  %v1594_v30 = vrot.slane %v1585_v55, 1  ;;  %v1676_v55 = vmul.f32 %v1673_v3, %v7672_v53  ;;  %v1700_v9 = vmul.f32 %v1696_v63, %v7667_v52  ;;  %v1699_v38 = vmul.f32 %v1696_v63, %v7672_v53 }
 0x184   : > { %1393 = vrot.lane.b32.xlu0 %v1389_v56, %s11940_s18  ;;  %v1591_v56 = vrot.slane %v1584_v11, 1  ;;  %v1659_v11 = vrot.slane %v1651_v25, 1 }
 0x185   : > { %v1595_v50 = vsel %vm768_vm0, %v1593_v61, %v1594_v30  ;;  %v1683_v30 = vrot.slane %v1676_v55, 1  ;;  %v1697_v61 = vmul.f32 %v1696_v63, %v7498_v19  ;;  %v1709_v20 = vrot.slane %v1700_v9, 1 }
 0x187   : > { %1506 = vrot.lane.b32.xlu1 %v1503_v14, %s11942_s24  ;;  %v1592_v14 = vsel %vm768_vm0, %v1590_v15, %v1591_v56  ;;  %v1698_v56 = vmul.f32 %v1696_v63, %v7494_v33  ;;  %v1705_v1 = vrot.slane %v1697_v61, 1 }
 0x188   : > { %1504 = vrot.lane.b32.xlu0 %v1500_v36, %s11942_s24  ;;  %v1616_v36 = vrot.slane %v1606_v24, 1  ;;  %v1719_v24 = vstv %s6056_s25  ;;  %s7886_s25 = sld [smem:[#allocation10 + $0x103]] }
 0x189   : > { %v1723_v10 = vmul.f32 %v1719_v24, %v7667_v52  ;;  %v1722_v31 = vmul.f32 %v1719_v24, %v7672_v53 }
 0x18a   : > { %v1618_v40 = vsel %vm768_vm0, %v1616_v36, %v1617_v4  ;;  %v1706_v4 = vrot.slane %v1699_v38, 1  ;;  %v1720_v36 = vmul.f32 %v1719_v24, %v7498_v19 }
 0x18b   : > { %1529 = vrot.lane.b32.xlu1 %v1526_v6, %s11942_s24  ;;  %v1615_v6 = vsel %vm768_vm0, %v1613_v12, %v1614_v47  ;;  %v1721_v47 = vmul.f32 %v1719_v24, %v7494_v33  ;;  %v1732_v37 = vrot.slane %v1723_v10, 1 }
 0x18c   : > { %1527 = vrot.lane.b32.xlu0 %v1523_v34, %s11942_s24  ;;  %v1639_v34 = vrot.slane %v1629_v51, 1  ;;  %v1742_v51 = vstv %s6057_s27  ;;  %v1728_v17 = vrot.slane %v1720_v36, 1  ;;  %s7901_s27 = sld [smem:[#allocation10 + $0x8]] }
 0x18d   : > { %v1746_v27 = vmul.f32 %v1742_v51, %v7667_v52  ;;  %v1745_v48 = vmul.f32 %v1742_v51, %v7672_v53 }
 0x18e   : > { %v1641_v54 = vsel %vm768_vm0, %v1639_v34, %v1640_v2  ;;  %v1729_v2 = vrot.slane %v1722_v31, 1  ;;  %v1743_v34 = vmul.f32 %v1742_v51, %v7498_v19 }
 0x18f   : > { %1552 = vrot.lane.b32.xlu1 %v1549_v8, %s11942_s24  ;;  %v1638_v8 = vsel %vm768_vm0, %v1636_v58, %v1637_v42  ;;  %v1744_v42 = vmul.f32 %v1742_v51, %v7494_v33  ;;  %v1755_v25 = vrot.slane %v1746_v27, 1 }
 0x190   : > { %1550 = vrot.lane.b32.xlu0 %v1546_v7, %s11942_s24  ;;  %v1662_v7 = vrot.slane %v1652_v39, 1  ;;  %v1765_v39 = vstv %s6058_s28  ;;  %v1751_v55 = vrot.slane %v1743_v34, 1  ;;  %s7916_s28 = sld [smem:[#allocation10 + $0x2c]] }
 0x191   : > { %v1769_v3 = vmul.f32 %v1765_v39, %v7667_v52  ;;  %v1768_v62 = vmul.f32 %v1765_v39, %v7672_v53 }
 0x192   : > { %v1664_v45 = vsel %vm768_vm0, %v1662_v7, %v1663_v44  ;;  %v1752_v44 = vrot.slane %v1745_v48, 1  ;;  %v1766_v7 = vmul.f32 %v1765_v39, %v7498_v19 }
 0x193   : > { %1575 = vrot.lane.b32.xlu1 %v1572_v28, %s11942_s24  ;;  %v1661_v28 = vsel %vm768_vm0, %v1659_v11, %v1660_v23  ;;  %v1767_v23 = vmul.f32 %v1765_v39, %v7494_v33  ;;  %v1778_v57 = vrot.slane %v1769_v3, 1  ;;  %v1946_v39 = vstv %s6070_s0  ;;  %s7976_s0 = sld [smem:[#allocation10 + $0xbc]] }
 0x194   : > { %1573 = vrot.lane.b32.xlu0 %v1569_v21, %s11942_s24  ;;  %v1685_v21 = vrot.slane %v1675_v59, 1  ;;  %v1788_v59 = vstv %s6059_s29  ;;  %v1774_v38 = vrot.slane %v1766_v7, 1  ;;  %s7931_s29 = sld [smem:[#allocation10 + $0x50]] }
 0x195   : > { %v1792_v63 = vmul.f32 %v1788_v59, %v7667_v52  ;;  %v1791_v9 = vmul.f32 %v1788_v59, %v7672_v53 }
 0x196   : > { %v1687_v15 = vsel %vm768_vm0, %v1685_v21, %v1686_v32  ;;  %v1775_v32 = vrot.slane %v1768_v62, 1  ;;  %v1789_v21 = vmul.f32 %v1788_v59, %v7498_v19 }
 0x197   : > { %1598 = vrot.lane.b32.xlu1 %v1595_v50, %s11942_s24  ;;  %v1684_v50 = vsel %vm768_vm0, %v1682_v35, %v1683_v30  ;;  %v1790_v30 = vmul.f32 %v1788_v59, %v7494_v33  ;;  %v1801_v61 = vrot.slane %v1792_v63, 1 }
 0x198   : > { %1596 = vrot.lane.b32.xlu0 %v1592_v14, %s11942_s24  ;;  %v1708_v14 = vrot.slane %v1698_v56, 1  ;;  %v1811_v56 = vstv %s6060_s30  ;;  %s7946_s30 = sld [smem:[#allocation10 + $0x74]] }
 0x199   : > { %v1815_v24 = vmul.f32 %v1811_v56, %v7667_v52  ;;  %v1814_v10 = vmul.f32 %v1811_v56, %v7672_v53 }
 0x19a   : > { %v1710_v12 = vsel %vm768_vm0, %v1708_v14, %v1709_v20  ;;  %v1798_v20 = vrot.slane %v1791_v9, 1  ;;  %v1797_v14 = vrot.slane %v1789_v21, 1 }
 0x19b   : > { %1621 = vrot.lane.b32.xlu1 %v1618_v40, %s11942_s24  ;;  %v1707_v40 = vsel %vm768_vm0, %v1705_v1, %v1706_v4  ;;  %v1813_v4 = vmul.f32 %v1811_v56, %v7494_v33  ;;  %v1834_v1 = vstv %s6061_s9  ;;  %s7961_s9 = sld [smem:[#allocation10 + $0x98]] }
 0x19c   : > { %1619 = vrot.lane.b32.xlu0 %v1615_v6, %s11942_s24  ;;  %v1731_v6 = vrot.slane %v1721_v47, 1  ;;  %v1812_v47 = vmul.f32 %v1811_v56, %v7498_v19  ;;  %v1799_v27 = vsel %vm768_vm0, %v1797_v14, %v1798_v20  ;;  %v1835_v34 = vmul.f32 %v1834_v1, %v7498_v19 }
 0x19d   : > { %v1823_v48 = vrot.slane %v1813_v4, 1 }
 0x19e   : > { %v1733_v58 = vsel %vm768_vm0, %v1731_v6, %v1732_v37  ;;  %v1838_v37 = vmul.f32 %v1834_v1, %v7667_v52  ;;  %v1836_v6 = vmul.f32 %v1834_v1, %v7494_v33  ;;  %v1843_v59 = vrot.slane %v1835_v34, 1 }
 0x19f   : > { %1644 = vrot.lane.b32.xlu1 %v1641_v54, %s11942_s24  ;;  %v1730_v54 = vsel %vm768_vm0, %v1728_v17, %v1729_v2  ;;  %v1837_v2 = vmul.f32 %v1834_v1, %v7672_v53  ;;  %v1820_v17 = vrot.slane %v1812_v47, 1 }
 0x1a0   : > { %1642 = vrot.lane.b32.xlu0 %v1638_v8, %s11942_s24  ;;  %v1754_v8 = vrot.slane %v1744_v42, 1  ;;  %v1847_v3 = vrot.slane %v1838_v37, 1 }
 0x1a1   : > { %v1844_v62 = vrot.slane %v1837_v2, 1  ;;  %v2015_v2 = vstv %s7826_s26  ;;  %s8035_s26 = sld [smem:[#allocation10 + $0xa]] }
 0x1a2   : > { %v1756_v11 = vsel %vm768_vm0, %v1754_v8, %v1755_v25  ;;  %v1949_v8 = vmul.f32 %v1946_v39, %v7672_v53  ;;  %v2019_v34 = vmul.f32 %v2015_v2, %v7667_v52 }
 0x1a3   : > { %1667 = vrot.lane.b32.xlu1 %v1664_v45, %s11942_s24  ;;  %v1753_v45 = vsel %vm768_vm0, %v1751_v55, %v1752_v44  ;;  %v1948_v55 = vmul.f32 %v1946_v39, %v7494_v33 }
 0x1a4   : > { %1665 = vrot.lane.b32.xlu0 %v1661_v28, %s11942_s24  ;;  %v1777_v28 = vrot.slane %v1767_v23, 1  ;;  %v1846_v23 = vrot.slane %v1836_v6, 1 }
 0x1a5   : > { %v1958_v21 = vrot.slane %v1948_v55, 2  ;;  %v2038_v55 = vstv %s7841_s8  ;;  %s6095_s8 = sld [smem:[#allocation10 + $0x2e]] }
 0x1a6   : > { %v1779_v35 = vsel %vm768_vm0, %v1777_v28, %v1778_v57  ;;  %v1969_v57 = vstv %s7797_s16  ;;  %v1845_v28 = vsel %vm768_vm0, %v1843_v59, %v1844_v62  ;;  %s7991_s16 = sld [smem:[#allocation10 + $0xe0]] }
 0x1a7   : > { %1690 = vrot.lane.b32.xlu1 %v1687_v15, %s11940_s18  ;;  %v1776_v15 = vsel %vm768_vm0, %v1774_v38, %v1775_v32  ;;  %v1973_v9 = vmul.f32 %v1969_v57, %v7667_v52  ;;  %v1972_v38 = vmul.f32 %v1969_v57, %v7672_v53  ;;  %v1971_v56 = vmul.f32 %v1969_v57, %v7494_v33 }
 0x1a8   : > { %1688 = vrot.lane.b32.xlu0 %v1684_v50, %s11940_s18  ;;  %v1800_v50 = vrot.slane %v1790_v30, 1  ;;  %v1956_v30 = vrot.slane %v1949_v8, 2 }
 0x1a9   : > { %v1979_v47 = vrot.slane %v1972_v38, 2  ;;  %v2040_v38 = vmul.f32 %v2038_v55, %v7494_v33 }
 0x1aa   : > { %v1802_v51 = vsel %vm768_vm0, %v1800_v50, %v1801_v61  ;;  %v1982_v50 = vrot.slane %v1973_v9, 2 }
 0x1ab   : > { %1713 = vrot.lane.b32.xlu1 %v1710_v12, %s11940_s18  ;;  %v1824_v12 = vrot.slane %v1815_v24, 1  ;;  %v1970_v24 = vmul.f32 %v1969_v57, %v7498_v19  ;;  %v2028_v57 = vrot.slane %v2019_v34, 2 }
 0x1ac   : > { %1711 = vrot.lane.b32.xlu0 %v1707_v40, %s11940_s18  ;;  %v1821_v40 = vrot.slane %v1814_v10, 1 }
 0x1ad   : > { %v1825_v25 = vsel %vm768_vm0, %v1823_v48, %v1824_v12 }
 0x1ae   : > { %v1822_v44 = vsel %vm768_vm0, %v1820_v17, %v1821_v40 }
 0x1af   : > { %1736 = vrot.lane.b32.xlu1 %v1733_v58, %s11940_s18 }
 0x1b0   : > { %1734 = vrot.lane.b32.xlu0 %v1730_v54, %s11940_s18  ;;  %v1950_v54 = vmul.f32 %v1946_v39, %v7667_v52 }
 0x1b2   : > { %v1959_v32 = vrot.slane %v1950_v54, 2 }
 0x1b3   : > { %1759 = vrot.lane.b32.xlu1 %v1756_v11, %s11940_s18  ;;  %v1947_v11 = vmul.f32 %v1946_v39, %v7498_v19 }
 0x1b4   : > { %1757 = vrot.lane.b32.xlu0 %v1753_v45, %s11940_s18  ;;  %v1848_v45 = vsel %vm768_vm0, %v1846_v23, %v1847_v3  ;;  %v1960_v10 = vsel %vm1862_vm13, %v1958_v21, %v1959_v32  ;;  %v2018_v3 = vmul.f32 %v2015_v2, %v7672_v53  ;;  %v2016_v23 = vmul.f32 %v2015_v2, %v7498_v19 }
 0x1b5   : > { %v1955_v61 = vrot.slane %v1947_v11, 2 }
 0x1b6   : > { %v2025_v9 = vrot.slane %v2018_v3, 2 }
 0x1b7   : > { %1782 = vrot.lane.b32.xlu1 %v1779_v35, %s11940_s18  ;;  %v1957_v14 = vsel %vm1862_vm13, %v1955_v61, %v1956_v30  ;;  %v2039_v61 = vmul.f32 %v2038_v55, %v7498_v19 }
 0x1b8   : > { %1780 = vrot.lane.b32.xlu0 %v1776_v15, %s11940_s18  ;;  %v1992_v15 = vstv %s7811_s23  ;;  %s6085_s23 = sld [smem:[#allocation10 + $0x104]] }
 0x1b9   : > { %v7794_v31 = vpop.permute.xlu1 %1199  ;;  %v1996_v4 = vmul.f32 %v1992_v15, %v7667_v52  ;;  %v1995_v1 = vmul.f32 %v1992_v15, %v7672_v53  ;;  %v1994_v12 = vmul.f32 %v1992_v15, %v7494_v33  ;;  %v1993_v40 = vmul.f32 %v1992_v15, %v7498_v19 }
 0x1ba   : > { %v7799_v36 = vpop.permute.xlu0 %1197 }
 0x1bb   : > { %1805 = vrot.lane.b32.xlu1 %v1802_v51, %s11940_s18  ;;  %v1981_v51 = vrot.slane %v1971_v56, 2  ;;  %v2005_v17 = vrot.slane %v1996_v4, 2  ;;  %v2004_v54 = vrot.slane %v1994_v12, 2  ;;  %v2001_v8 = vrot.slane %v1993_v40, 2 }
 0x1bc   : > { %1803 = vrot.lane.b32.xlu0 %v1799_v27, %s11940_s18  ;;  %v1978_v27 = vrot.slane %v1970_v24, 2  ;;  %v2024_v56 = vrot.slane %v2016_v23, 2  ;;  %v2061_v24 = vstv %s7856_s15  ;;  %v2047_v40 = vrot.slane %v2039_v61, 2  ;;  %s6096_s15 = sld [smem:[#allocation10 + $0x52]] }
 0x1bd   : > { %v7808_v42 = vpop.permute.xlu1 %1212  ;;  %v1983_v6 = vsel %vm1862_vm13, %v1981_v51, %v1982_v50  ;;  %v2006_v11 = vsel %vm1862_vm13, %v2004_v54, %v2005_v17  ;;  %v2065_v4 = vmul.f32 %v2061_v24, %v7667_v52  ;;  %v2050_v51 = vrot.slane %v2040_v38, 2 }
 0x1be   : > { %v7813_v58 = vpop.permute.xlu0 %1210  ;;  %v1980_v39 = vsel %vm1862_vm13, %v1978_v27, %v1979_v47  ;;  %v2063_v12 = vmul.f32 %v2061_v24, %v7494_v33 }
 0x1bf   : > { %1828 = vrot.lane.b32.xlu1 %v1825_v25, %s11940_s18  ;;  %v2002_v25 = vrot.slane %v1995_v1, 2  ;;  %v2064_v1 = vmul.f32 %v2061_v24, %v7672_v53 }
 0x1c0   : > { %1826 = vrot.lane.b32.xlu0 %v1822_v44, %s11940_s18  ;;  %v2017_v44 = vmul.f32 %v2015_v2, %v7494_v33  ;;  %v2062_v2 = vmul.f32 %v2061_v24, %v7498_v19 }
 0x1c1   : > { %v7822_v7 = vpop.permute.xlu1 %1225  ;;  %v2003_v32 = vsel %vm1862_vm13, %v2001_v8, %v2002_v25  ;;  %v2071_v54 = vrot.slane %v2064_v1, 2  ;;  %v2073_v8 = vrot.slane %v2063_v12, 2 }
 0x1c2   : > { %v7828_v63 = vpop.permute.xlu0 %1223  ;;  %v2027_v30 = vrot.slane %v2017_v44, 2 }
 0x1c3   : > { %1851 = vrot.lane.b32.xlu1 %v1848_v45, %s11940_s18  ;;  %v2042_v45 = vmul.f32 %v2038_v55, %v7667_v52 }
 0x1c4   : > { %1849 = vrot.lane.b32.xlu0 %v1845_v28, %s11940_s18  ;;  %v2041_v28 = vmul.f32 %v2038_v55, %v7672_v53 }
 0x1c5   : > { %v7837_v35 = vpop.permute.xlu1 %1238  ;;  %v2051_v50 = vrot.slane %v2042_v45, 2  ;;  %v2107_v45 = vstv %s7886_s25  ;;  %s6098_s25 = sld [smem:[#allocation10 + $0x9a]] }
 0x1c6   : > { %v7843_v20 = vpop.permute.xlu0 %1236  ;;  %v2048_v47 = vrot.slane %v2041_v28, 2  ;;  %v2110_v61 = vmul.f32 %v2107_v45, %v7672_v53 }
 0x1c7   : > { %1963 = vrot.lane.b32.xlu1 %v1960_v10, %s11942_s24  ;;  %v2029_v10 = vsel %vm1862_vm13, %v2027_v30, %v2028_v57  ;;  %v2052_v34 = vsel %vm1862_vm13, %v2050_v51, %v2051_v50  ;;  %v2111_v30 = vmul.f32 %v2107_v45, %v7667_v52 }
 0x1c8   : > { %1961 = vrot.lane.b32.xlu0 %v1957_v14, %s11942_s24  ;;  %v2026_v14 = vsel %vm1862_vm13, %v2024_v56, %v2025_v9  ;;  %v2049_v3 = vsel %vm1862_vm13, %v2047_v40, %v2048_v47  ;;  %v2130_v47 = vstv %s7901_s27  ;;  %s6099_s27 = sld [smem:[#allocation10 + $0xbe]] }
 0x1c9   : > { %v7852_v37 = vpop.permute.xlu1 %1251  ;;  %v2120_v12 = vrot.slane %v2111_v30, 2  ;;  %v2134_v40 = vmul.f32 %v2130_v47, %v7667_v52 }
 0x1ca   : > { %v7858_v48 = vpop.permute.xlu0 %1249 }
 0x1cb   : > { %1986 = vrot.lane.b32.xlu1 %v1983_v6, %s11942_s24  ;;  %v2084_v6 = vstv %s7871_s20  ;;  %s6097_s20 = sld [smem:[#allocation10 + $0x76]] }
 0x1cc   : > { %1984 = vrot.lane.b32.xlu0 %v1980_v39, %s11942_s24  ;;  %v2074_v39 = vrot.slane %v2065_v4, 2  ;;  %v2088_v25 = vmul.f32 %v2084_v6, %v7667_v52  ;;  %v2087_v44 = vmul.f32 %v2084_v6, %v7672_v53  ;;  %v2086_v23 = vmul.f32 %v2084_v6, %v7494_v33 }
 0x1cd   : > { %v7867_v62 = vpop.permute.xlu1 %1264  ;;  %v2085_v57 = vmul.f32 %v2084_v6, %v7498_v19  ;;  %v2117_v6 = vrot.slane %v2110_v61, 2 }
 0x1ce   : > { %v7873_v59 = vpop.permute.xlu0 %1262  ;;  %v2075_v9 = vsel %vm1862_vm13, %v2073_v8, %v2074_v39  ;;  %v2097_v28 = vrot.slane %v2088_v25, 2  ;;  %v2094_v56 = vrot.slane %v2087_v44, 2  ;;  %v2096_v24 = vrot.slane %v2086_v23, 2 }
 0x1cf   : > { %2009 = vrot.lane.b32.xlu1 %v2006_v11, %s11942_s24  ;;  %v2070_v11 = vrot.slane %v2062_v2, 2  ;;  %v2093_v4 = vrot.slane %v2085_v57, 2  ;;  %v2132_v25 = vmul.f32 %v2130_v47, %v7494_v33  ;;  %v2131_v44 = vmul.f32 %v2130_v47, %v7498_v19 }
 0x1d0   : > { %2007 = vrot.lane.b32.xlu0 %v2003_v32, %s11942_s24  ;;  %v2098_v51 = vsel %vm1862_vm13, %v2096_v24, %v2097_v28  ;;  %v2153_v8 = vstv %s7916_s28  ;;  %v2143_v57 = vrot.slane %v2134_v40, 2  ;;  %s6100_s28 = sld [smem:[#allocation10 + $0xe2]]  ;;  %v2411_v60 = vstv %s6099_s27 }
 0x1d1   : > { %v7882_v21 = vpop.permute.xlu1 %1277  ;;  %v2072_v38 = vsel %vm1862_vm13, %v2070_v11, %v2071_v54  ;;  %v2095_v2 = vsel %vm1862_vm13, %v2093_v4, %v2094_v56  ;;  %v2156_v30 = vmul.f32 %v2153_v8, %v7672_v53  ;;  %v2155_v56 = vmul.f32 %v2153_v8, %v7494_v33  ;;  %s6120_s27 = sld [smem:[#allocation10 + $0x55]] }
 0x1d2   : > { %v7888_v15 = vpop.permute.xlu0 %1275  ;;  %v2139_v24 = vrot.slane %v2131_v44, 2  ;;  %v2176_v4 = vstv %s7931_s29  ;;  %s6101_s29 = sld [smem:[#allocation10 + $0x106]] }
 0x1d3   : > { %2032 = vrot.lane.b32.xlu1 %v2029_v10, %s11942_s24  ;;  %v2109_v10 = vmul.f32 %v2107_v45, %v7494_v33  ;;  %v2177_v44 = vmul.f32 %v2176_v4, %v7498_v19 }
 0x1d4   : > { %2030 = vrot.lane.b32.xlu0 %v2026_v14, %s11942_s24  ;;  %v2108_v14 = vmul.f32 %v2107_v45, %v7498_v19  ;;  %v2157_v45 = vmul.f32 %v2153_v8, %v7667_v52 }
 0x1d5   : > { %v7897_v27 = vpop.permute.xlu1 %1290  ;;  %v2119_v39 = vrot.slane %v2109_v10, 2  ;;  %v2154_v10 = vmul.f32 %v2153_v8, %v7498_v19  ;;  %v2199_v8 = vstv %s7946_s30  ;;  %s6102_s30 = sld [smem:[#allocation10 + $0xb]] }
 0x1d6   : > { %v7903_v17 = vpop.permute.xlu0 %1288  ;;  %v2116_v54 = vrot.slane %v2108_v14, 2 }
 0x1d7   : > { %2055 = vrot.lane.b32.xlu1 %v2052_v34, %s11942_s24  ;;  %v2133_v34 = vmul.f32 %v2130_v47, %v7672_v53  ;;  %v2121_v11 = vsel %vm1862_vm13, %v2119_v39, %v2120_v12  ;;  %v2180_v12 = vmul.f32 %v2176_v4, %v7667_v52  ;;  %v2178_v39 = vmul.f32 %v2176_v4, %v7494_v33 }
 0x1d8   : > { %2053 = vrot.lane.b32.xlu0 %v2049_v3, %s11942_s24 }
 0x1d9   : > { %v7912_v55 = vpop.permute.xlu1 %1303  ;;  %v2140_v28 = vrot.slane %v2133_v34, 2  ;;  %v2165_v34 = vrot.slane %v2155_v56, 2  ;;  %v2188_v56 = vrot.slane %v2178_v39, 2 }
 0x1da   : > { %v7918_v32 = vpop.permute.xlu0 %1301 }
 0x1db   : > { %2078 = vrot.lane.b32.xlu1 %v2075_v9, %s11942_s24  ;;  %v2118_v9 = vsel %vm1862_vm13, %v2116_v54, %v2117_v6  ;;  %v2141_v40 = vsel %vm1862_vm13, %v2139_v24, %v2140_v28  ;;  %v2179_v6 = vmul.f32 %v2176_v4, %v7672_v53  ;;  %v2162_v54 = vrot.slane %v2154_v10, 2 }
 0x1dc   : > { %2076 = vrot.lane.b32.xlu0 %v2072_v38, %s11942_s24  ;;  %v2142_v38 = vrot.slane %v2132_v25, 2  ;;  %v2201_v24 = vmul.f32 %v2199_v8, %v7494_v33  ;;  %v2185_v4 = vrot.slane %v2177_v44, 2 }
 0x1dd   : > { %v7927_v50 = vpop.permute.xlu1 %1317 }
 0x1de   : > { %v7933_v1 = vpop.permute.xlu0 %1315  ;;  %v2144_v47 = vsel %vm1862_vm13, %v2142_v38, %v2143_v57  ;;  %v2202_v38 = vmul.f32 %v2199_v8, %v7672_v53  ;;  %v2211_v44 = vrot.slane %v2201_v24, 2 }
 0x1df   : > { %2101 = vrot.lane.b32.xlu1 %v2098_v51, %s11942_s24  ;;  %v2166_v51 = vrot.slane %v2157_v45, 2  ;;  %v2189_v45 = vrot.slane %v2180_v12, 2 }
 0x1e0   : > { %2099 = vrot.lane.b32.xlu0 %v2095_v2, %s11942_s24  ;;  %v2163_v2 = vrot.slane %v2156_v30, 2  ;;  %v2186_v30 = vrot.slane %v2179_v6, 2  ;;  %v2209_v39 = vrot.slane %v2202_v38, 2 }
 0x1e1   : > { %v7942_v3 = vpop.permute.xlu1 %1330  ;;  %v2167_v57 = vsel %vm1862_vm13, %v2165_v34, %v2166_v51  ;;  %v2222_v51 = vstv %s7961_s9  ;;  %s6103_s9 = sld [smem:[#allocation10 + $0x2f]] }
 0x1e2   : > { %v7948_v23 = vpop.permute.xlu0 %1328  ;;  %v2164_v28 = vsel %vm1862_vm13, %v2162_v54, %v2163_v2  ;;  %v2226_v6 = vmul.f32 %v2222_v51, %v7667_v52  ;;  %v2187_v34 = vsel %vm1862_vm13, %v2185_v4, %v2186_v30  ;;  %v2225_v54 = vmul.f32 %v2222_v51, %v7672_v53 }
 0x1e3   : > { %2124 = vrot.lane.b32.xlu1 %v2121_v11, %s11942_s24 }
 0x1e4   : > { %2122 = vrot.lane.b32.xlu0 %v2118_v9, %s11942_s24  ;;  %v2203_v9 = vmul.f32 %v2199_v8, %v7667_v52  ;;  %v2235_v38 = vrot.slane %v2226_v6, 2  ;;  %v2268_v6 = vstv %s7991_s16  ;;  %s6105_s16 = sld [smem:[#allocation10 + $0x77]] }
 0x1e5   : > { %v7957_v61 = vpop.permute.xlu1 %1343 }
 0x1e6   : > { %v7963_v14 = vpop.permute.xlu0 %1341  ;;  %v2212_v2 = vrot.slane %v2203_v9, 2  ;;  %v2245_v9 = vstv %s7976_s0  ;;  %s6104_s0 = sld [smem:[#allocation10 + $0x53]] }
 0x1e7   : > { %2147 = vrot.lane.b32.xlu1 %v2144_v47, %s11940_s18  ;;  %v2200_v47 = vmul.f32 %v2199_v8, %v7498_v19  ;;  %v2224_v8 = vmul.f32 %v2222_v51, %v7494_v33  ;;  %v2249_v4 = vmul.f32 %v2245_v9, %v7667_v52 }
 0x1e8   : > { %2145 = vrot.lane.b32.xlu0 %v2141_v40, %s11940_s18  ;;  %v2190_v40 = vsel %vm1862_vm13, %v2188_v56, %v2189_v45  ;;  %v2223_v45 = vmul.f32 %v2222_v51, %v7498_v19  ;;  %v2213_v30 = vsel %vm1862_vm13, %v2211_v44, %v2212_v2  ;;  %v2247_v51 = vmul.f32 %v2245_v9, %v7494_v33 }
 0x1e9   : > { %v7972_v25 = vpop.permute.xlu1 %1356  ;;  %v2246_v2 = vmul.f32 %v2245_v9, %v7498_v19  ;;  %v2258_v46 = vrot.slane %v2249_v4, 2  ;;  %v2291_v4 = vstv %s6085_s23  ;;  %s6106_s23 = sld [smem:[#allocation10 + $0x9b]] }
 0x1ea   : > { %v7978_v11 = vpop.permute.xlu0 %1354  ;;  %v2231_v41 = vrot.slane %v2223_v45, 2  ;;  %v2257_v45 = vrot.slane %v2247_v51, 2  ;;  %v2294_v51 = vmul.f32 %v2291_v4, %v7672_v53 }
 0x1eb   : > { %12053 = vst [vmem:[#allocation34_spill] sm:$0xff] %v7978_v11  ;;  %2170 = vrot.lane.b32.xlu1 %v2167_v57, %s11940_s18  ;;  %v2254_v13 = vrot.slane %v2246_v2, 2 }
 0x1ec   : > { %2168 = vrot.lane.b32.xlu0 %v2164_v28, %s11940_s18  ;;  %v2208_v28 = vrot.slane %v2200_v47, 2  ;;  %v2234_v47 = vrot.slane %v2224_v8, 2 }
 0x1ed   : > { %v7987_v10 = vpop.permute.xlu1 %1369 }
 0x1ee   : > { %12054 = vst [vmem:[#allocation35_spill] sm:$0xff] %v7987_v10  ;;  %v7993_v12 = vpop.permute.xlu0 %1367  ;;  %v2210_v24 = vsel %vm1862_vm13, %v2208_v28, %v2209_v39  ;;  %v2272_v39 = vmul.f32 %v2268_v6, %v7667_v52  ;;  %v2271_v28 = vmul.f32 %v2268_v6, %v7672_v53 }
 0x1ef   : > { %12055 = vst [vmem:[#allocation42_spill] sm:$0xff] %v7993_v12  ;;  %2193 = vrot.lane.b32.xlu1 %v2190_v40, %s11940_s18  ;;  %v2232_v40 = vrot.slane %v2225_v54, 2 }
 0x1f0   : > { %2191 = vrot.lane.b32.xlu0 %v2187_v34, %s11940_s18  ;;  %v2248_v34 = vmul.f32 %v2245_v9, %v7672_v53  ;;  %v2270_v9 = vmul.f32 %v2268_v6, %v7494_v33  ;;  %v2281_v43 = vrot.slane %v2272_v39, 2 }
 0x1f1   : > { %v8002_v57 = vpop.permute.xlu1 %1382  ;;  %v2233_v54 = vsel %vm1862_vm13, %v2231_v41, %v2232_v40  ;;  %v2295_v41 = vmul.f32 %v2291_v4, %v7667_v52  ;;  %v2292_v52 = vmul.f32 %v2291_v4, %v7498_v19 }
 0x1f2   : > { %12056 = vst [vmem:[#allocation43_spill] sm:$0xff] %v8002_v57  ;;  %v8006_v56 = vpop.permute.xlu0 %1380  ;;  %v2255_v8 = vrot.slane %v2248_v34, 2  ;;  %v2278_v34 = vrot.slane %v2271_v28, 2  ;;  %v2280_v2 = vrot.slane %v2270_v9, 2  ;;  %v12178_v57 = vstv %s8575_s22  ;;  %s8873_s22 = sld [smem:[#allocation10 + $0x96]] }
 0x1f3   : > { %12057 = vst [vmem:[#allocation30_spill] sm:$0xff] %v8006_v56  ;;  %2216 = vrot.lane.b32.xlu1 %v2213_v30, %s11940_s18  ;;  %v2236_v30 = vsel %vm1862_vm13, %v2234_v47, %v2235_v38  ;;  %v2269_v38 = vmul.f32 %v2268_v6, %v7498_v19  ;;  %v2293_v6 = vmul.f32 %v2291_v4, %v7494_v33  ;;  %v2300_v9 = vrot.slane %v2292_v52, 2 }
 0x1f4   : > { %2214 = vrot.lane.b32.xlu0 %v2210_v24, %s11940_s18  ;;  %v2256_v40 = vsel %vm1862_vm13, %v2254_v13, %v2255_v8  ;;  %v2301_v8 = vrot.slane %v2294_v51, 2  ;;  %v12176_v56 = vstv %s8568_s13  ;;  %s8818_s13 = sld [smem:[#allocation10 + $0x5b]] }
 0x1f5   : > { %v8015_v0 = vpop.permute.xlu1 %1395  ;;  %v2303_v33 = vrot.slane %v2293_v6, 2  ;;  %v2359_v6 = vstv %s6095_s8  ;;  %s6108_s8 = sld [smem:[#allocation10 + $0xe3]] }
 0x1f6   : > { %12058 = vst [vmem:[#allocation32_spill] sm:$0xff] %v8015_v0  ;;  %v8019_v44 = vpop.permute.xlu0 %1393  ;;  %v2361_v52 = vmul.f32 %v2359_v6, %v7521_v18 }
 0x1f7   : > { %12059 = vst [vmem:[#allocation39_spill] sm:$0xff] %v8019_v44  ;;  %2239 = vrot.lane.b32.xlu1 %v2236_v30, %s11940_s18  ;;  %v2259_v30 = vsel %vm1862_vm13, %v2257_v45, %v2258_v46  ;;  %v2277_v46 = vrot.slane %v2269_v38, 2  ;;  %v2282_v45 = vsel %vm1862_vm13, %v2280_v2, %v2281_v43  ;;  %v2302_v43 = vsel %vm1862_vm13, %v2300_v9, %v2301_v8 }
 0x1f8   : > { %2237 = vrot.lane.b32.xlu0 %v2233_v54, %s11940_s18 }
 0x1f9   : > { %v8028_v24 = vpop.permute.xlu1 %1506  ;;  %v2279_v13 = vsel %vm1862_vm13, %v2277_v46, %v2278_v34 }
 0x1fa   : > { %12060 = vst [vmem:[#allocation40_spill] sm:$0xff] %v8028_v24  ;;  %v8031_v47 = vpop.permute.xlu0 %1504 }
 0x1fb   : > { %12061 = vst [vmem:[#allocation44_spill] sm:$0xff] %v8031_v47  ;;  %2262 = vrot.lane.b32.xlu1 %v2259_v30, %s11940_s18  ;;  %v2304_v30 = vrot.slane %v2295_v41, 2 }
 0x1fc   : > { %2260 = vrot.lane.b32.xlu0 %v2256_v40, %s11940_s18  ;;  %v2346_v40 = vstv %s8035_s26  ;;  %s6107_s26 = sld [smem:[#allocation10 + $0xbf]] }
 0x1fd   : > { %v8042_v54 = vpop.permute.xlu1 %1529  ;;  %v2305_v4 = vsel %vm1862_vm13, %v2303_v33, %v2304_v30  ;;  %v2348_v34 = vmul.f32 %v2346_v40, %v7521_v18  ;;  %v2347_v2 = vmul.f32 %v2346_v40, %v7533_v26  ;;  %v2360_v30 = vmul.f32 %v2359_v6, %v7533_v26 }
 0x1fe   : > { %12062 = vst [vmem:[#allocation45_spill] sm:$0xff] %v8042_v54  ;;  %v8045_v39 = vpop.permute.xlu0 %1527  ;;  %v2385_v40 = vstv %s6097_s20  ;;  %s6109_s20 = sld [smem:[#allocation10 + $0x107]] }
 0x1ff   : > { %12063 = vst [vmem:[#allocation46_spill] sm:$0xff] %v8045_v39  ;;  %2285 = vrot.lane.b32.xlu1 %v2282_v45, %s11940_s18  ;;  %v2386_v6 = vmul.f32 %v2385_v40, %v7533_v26 }
 0x200   : > { %2283 = vrot.lane.b32.xlu0 %v2279_v13, %s11940_s18  ;;  %v2372_v13 = vstv %s6096_s15  ;;  %s6118_s15 = sld [smem:[#allocation10 + $0xd]] }
 0x201   : > { %v8051_v28 = vpop.permute.xlu1 %1552  ;;  %v2374_v33 = vmul.f32 %v2372_v13, %v7521_v18 }
 0x202   : > { %12064 = vst [vmem:[#allocation47_spill] sm:$0xff] %v8051_v28  ;;  %v8053_v38 = vpop.permute.xlu0 %1550 }
 0x203   : > { %12065 = vst [vmem:[#allocation48_spill] sm:$0xff] %v8053_v38  ;;  %2308 = vrot.lane.b32.xlu1 %v2305_v4, %s11940_s18  ;;  %v2373_v4 = vmul.f32 %v2372_v13, %v7533_v26 }
 0x204   : > { %2306 = vrot.lane.b32.xlu0 %v2302_v43, %s11940_s18 }
 0x205   : > { %v8060_v41 = vpop.permute.xlu1 %1575 }
 0x206   : > { %12066 = vst [vmem:[#allocation49_spill] sm:$0xff] %v8060_v41  ;;  %v8063_v51 = vpop.permute.xlu0 %1573  ;;  %v2688_v41 = vstv %s6120_s27  ;;  %s8362_s27 = sld [smem:[#allocation10 + $0x10a]] }
 0x207   : > { %12067 = vst [vmem:[#allocation50_spill] sm:$0xff] %v8063_v51  ;;  %2353 = vrot.lane.b32.xlu1 %v2348_v34, %s11942_s24  ;;  %v2387_v34 = vmul.f32 %v2385_v40, %v7521_v18 }
 0x208   : > { %2351 = vrot.lane.b32.xlu0 %v2347_v2, %s11942_s24 }
 0x209   : > { %v8068_v46 = vpop.permute.xlu1 %1598 }
 0x20a   : > { %12068 = vst [vmem:[#allocation51_spill] sm:$0xff] %v8068_v46  ;;  %v8071_v45 = vpop.permute.xlu0 %1596 }
 0x20b   : > { %12069 = vst [vmem:[#allocation52_spill] sm:$0xff] %v8071_v45  ;;  %2366 = vrot.lane.b32.xlu1 %v2361_v52, %s11942_s24  ;;  %v2398_v52 = vstv %s6098_s25  ;;  %s6119_s25 = sld [smem:[#allocation10 + $0x31]] }
 0x20c   : > { %2364 = vrot.lane.b32.xlu0 %v2360_v30, %s11942_s24  ;;  %v2400_v13 = vmul.f32 %v2398_v52, %v7521_v18 }
 0x20d   : > { %v8076_v8 = vpop.permute.xlu1 %1621 }
 0x20e   : > { %12070 = vst [vmem:[#allocation53_spill] sm:$0xff] %v8076_v8  ;;  %v8079_v9 = vpop.permute.xlu0 %1619 }
 0x20f   : > { %12071 = vst [vmem:[#allocation54_spill] sm:$0xff] %v8079_v9  ;;  %2379 = vrot.lane.b32.xlu1 %v2374_v33, %s11942_s24 }
 0x210   : > { %2377 = vrot.lane.b32.xlu0 %v2373_v4, %s11942_s24  ;;  %v2399_v4 = vmul.f32 %v2398_v52, %v7533_v26 }
 0x211   : > { %v8084_v43 = vpop.permute.xlu1 %1644 }
 0x212   : > { %12072 = vst [vmem:[#allocation55_spill] sm:$0xff] %v8084_v43  ;;  %v8087_v2 = vpop.permute.xlu0 %1642 }
 0x213   : > { %12073 = vst [vmem:[#allocation56_spill] sm:$0xff] %v8087_v2  ;;  %2392 = vrot.lane.b32.xlu1 %v2387_v34, %s11942_s24  ;;  %v2413_v34 = vmul.f32 %v2411_v60, %v7521_v18  ;;  %v2541_v2 = vstv %s6109_s20  ;;  %s8332_s20 = sld [smem:[#allocation10 + $0xc2]] }
 0x214   : > { %2390 = vrot.lane.b32.xlu0 %v2386_v6, %s11942_s24  ;;  %v2412_v6 = vmul.f32 %v2411_v60, %v7533_v26  ;;  %v2542_v9 = vmul.f32 %v2541_v2, %v7533_v26 }
 0x215   : > { %v8092_v30 = vpop.permute.xlu1 %1667 }
 0x216   : > { %12074 = vst [vmem:[#allocation57_spill] sm:$0xff] %v8092_v30  ;;  %v8095_v33 = vpop.permute.xlu0 %1665  ;;  %v2424_v30 = vstv %s6100_s28  ;;  %s6121_s28 = sld [smem:[#allocation10 + $0x79]] }
 0x217   : > { %12075 = vst [vmem:[#allocation58_spill] sm:$0xff] %v8095_v33  ;;  %2405 = vrot.lane.b32.xlu1 %v2400_v13, %s11942_s24  ;;  %v2426_v13 = vmul.f32 %v2424_v30, %v7521_v18 }
 0x218   : > { %2403 = vrot.lane.b32.xlu0 %v2399_v4, %s11942_s24  ;;  %v2425_v4 = vmul.f32 %v2424_v30, %v7533_v26 }
 0x219   : > { %v8100_v40 = vpop.permute.xlu1 %1690 }
 0x21a   : > { %12076 = vst [vmem:[#allocation59_spill] sm:$0xff] %v8100_v40  ;;  %v8103_v22 = vpop.permute.xlu0 %1688  ;;  %v2437_v40 = vstv %s6101_s29  ;;  %s8198_s29 = sld [smem:[#allocation10 + $0x9d]] }
 0x21b   : > { %12077 = vst [vmem:[#allocation60_spill] sm:$0xff] %v8103_v22  ;;  %2418 = vrot.lane.b32.xlu1 %v2413_v34, %s11942_s24  ;;  %v2439_v34 = vmul.f32 %v2437_v40, %v7521_v18 }
 0x21c   : > { %2416 = vrot.lane.b32.xlu0 %v2412_v6, %s11942_s24  ;;  %v2438_v6 = vmul.f32 %v2437_v40, %v7533_v26 }
 0x21d   : > { %v8108_v52 = vpop.permute.xlu1 %1713 }
 0x21e   : > { %12078 = vst [vmem:[#allocation61_spill] sm:$0xff] %v8108_v52  ;;  %v8111_v33 = vpop.permute.xlu0 %1711  ;;  %v2450_v52 = vstv %s6102_s30  ;;  %s8212_s30 = sld [smem:[#allocation10 + $0xc1]] }
 0x21f   : > { %12079 = vst [vmem:[#allocation62_spill] sm:$0xff] %v8111_v33  ;;  %2431 = vrot.lane.b32.xlu1 %v2426_v13, %s11942_s24  ;;  %v2452_v13 = vmul.f32 %v2450_v52, %v7521_v18 }
 0x220   : > { %2429 = vrot.lane.b32.xlu0 %v2425_v4, %s11942_s24  ;;  %v2451_v4 = vmul.f32 %v2450_v52, %v7533_v26 }
 0x221   : > { %v8116_v60 = vpop.permute.xlu1 %1736 }
 0x222   : > { %12080 = vst [vmem:[#allocation63_spill] sm:$0xff] %v8116_v60  ;;  %v8119_v22 = vpop.permute.xlu0 %1734  ;;  %v2463_v60 = vstv %s6103_s9  ;;  %s8227_s9 = sld [smem:[#allocation10 + $0xe5]] }
 0x223   : > { %12081 = vst [vmem:[#allocation64_spill] sm:$0xff] %v8119_v22  ;;  %2444 = vrot.lane.b32.xlu1 %v2439_v34, %s11942_s24  ;;  %v2465_v34 = vmul.f32 %v2463_v60, %v7521_v18 }
 0x224   : > { %2442 = vrot.lane.b32.xlu0 %v2438_v6, %s11942_s24  ;;  %v2464_v6 = vmul.f32 %v2463_v60, %v7533_v26 }
 0x225   : > { %v8124_v30 = vpop.permute.xlu1 %1759 }
 0x226   : > { %12082 = vst [vmem:[#allocation65_spill] sm:$0xff] %v8124_v30  ;;  %v8127_v33 = vpop.permute.xlu0 %1757  ;;  %v2476_v30 = vstv %s6104_s0  ;;  %s8242_s0 = sld [smem:[#allocation10 + $0x109]] }
 0x227   : > { %12083 = vst [vmem:[#allocation66_spill] sm:$0xff] %v8127_v33  ;;  %2457 = vrot.lane.b32.xlu1 %v2452_v13, %s11940_s18  ;;  %v2478_v13 = vmul.f32 %v2476_v30, %v7521_v18 }
 0x228   : > { %2455 = vrot.lane.b32.xlu0 %v2451_v4, %s11940_s18  ;;  %v2477_v4 = vmul.f32 %v2476_v30, %v7533_v26 }
 0x229   : > { %v8132_v40 = vpop.permute.xlu1 %1782 }
 0x22a   : > { %12084 = vst [vmem:[#allocation67_spill] sm:$0xff] %v8132_v40  ;;  %v8135_v22 = vpop.permute.xlu0 %1780  ;;  %v2489_v40 = vstv %s6105_s16  ;;  %s8257_s16 = sld [smem:[#allocation10 + $0xe]] }
 0x22b   : > { %12085 = vst [vmem:[#allocation68_spill] sm:$0xff] %v8135_v22  ;;  %2470 = vrot.lane.b32.xlu1 %v2465_v34, %s11940_s18  ;;  %v2491_v34 = vmul.f32 %v2489_v40, %v7521_v18 }
 0x22c   : > { %2468 = vrot.lane.b32.xlu0 %v2464_v6, %s11940_s18  ;;  %v2490_v6 = vmul.f32 %v2489_v40, %v7533_v26 }
 0x22d   : > { %v8140_v52 = vpop.permute.xlu1 %1805 }
 0x22e   : > { %12086 = vst [vmem:[#allocation69_spill] sm:$0xff] %v8140_v52  ;;  %v8143_v33 = vpop.permute.xlu0 %1803  ;;  %v2502_v52 = vstv %s6106_s23  ;;  %s8272_s23 = sld [smem:[#allocation10 + $0x32]] }
 0x22f   : > { %12087 = vst [vmem:[#allocation70_spill] sm:$0xff] %v8143_v33  ;;  %2483 = vrot.lane.b32.xlu1 %v2478_v13, %s11940_s18  ;;  %v2504_v13 = vmul.f32 %v2502_v52, %v7521_v18  ;;  %v2515_v33 = vstv %s6107_s26  ;;  %s8287_s26 = sld [smem:[#allocation10 + $0x56]] }
 0x230   : > { %2481 = vrot.lane.b32.xlu0 %v2477_v4, %s11940_s18 }
 0x231   : > { %v8148_v60 = vpop.permute.xlu1 %1828 }
 0x232   : > { %12088 = vst [vmem:[#allocation71_spill] sm:$0xff] %v8148_v60  ;;  %v8151_v22 = vpop.permute.xlu0 %1826  ;;  %v2503_v60 = vmul.f32 %v2502_v52, %v7533_v26 }
 0x233   : > { %12089 = vst [vmem:[#allocation72_spill] sm:$0xff] %v8151_v22  ;;  %2496 = vrot.lane.b32.xlu1 %v2491_v34, %s11940_s18  ;;  %v2517_v34 = vmul.f32 %v2515_v33, %v7521_v18  ;;  %v2528_v22 = vstv %s6108_s8  ;;  %s8302_s8 = sld [smem:[#allocation10 + $0x7a]] }
 0x234   : > { %2494 = vrot.lane.b32.xlu0 %v2490_v6, %s11940_s18 }
 0x235   : > { %v8156_v30 = vpop.permute.xlu1 %1851 }
 0x236   : > { %12090 = vst [vmem:[#allocation73_spill] sm:$0xff] %v8156_v30  ;;  %v8159_v4 = vpop.permute.xlu0 %1849  ;;  %v2516_v30 = vmul.f32 %v2515_v33, %v7533_v26 }
 0x237   : > { %12091 = vst [vmem:[#allocation74_spill] sm:$0xff] %v8159_v4  ;;  %2509 = vrot.lane.b32.xlu1 %v2504_v13, %s11940_s18  ;;  %v2530_v13 = vmul.f32 %v2528_v22, %v7521_v18  ;;  %v2642_v4 = vstv %s6118_s15  ;;  %s8317_s15 = sld [smem:[#allocation10 + $0x9e]] }
 0x238   : > { %2507 = vrot.lane.b32.xlu0 %v2503_v60, %s11940_s18  ;;  %v2645_v33 = vmul.f32 %v2642_v4, %v7566_v16  ;;  %v2643_v43 = vmul.f32 %v2642_v4, %v7533_v26 }
 0x239   : > { %v8164_v40 = vpop.permute.xlu1 %1963 }
 0x23a   : > { %12092 = vst [vmem:[#allocation75_spill] sm:$0xff] %v8164_v40  ;;  %v8167_v6 = vpop.permute.xlu0 %1961  ;;  %v2529_v40 = vmul.f32 %v2528_v22, %v7533_v26  ;;  %v2651_v51 = vrot.slane %v2643_v43, 1 }
 0x23b   : > { %12093 = vst [vmem:[#allocation76_spill] sm:$0xff] %v8167_v6  ;;  %2522 = vrot.lane.b32.xlu1 %v2517_v34, %s11940_s18  ;;  %v2646_v6 = vmul.f32 %v2642_v4, %v7561_v29 }
 0x23c   : > { %2520 = vrot.lane.b32.xlu0 %v2516_v30, %s11940_s18  ;;  %v2644_v30 = vmul.f32 %v2642_v4, %v7521_v18 }
 0x23d   : > { %v8172_v52 = vpop.permute.xlu1 %1986  ;;  %v2655_v8 = vrot.slane %v2646_v6, 1 }
 0x23e   : > { %12094 = vst [vmem:[#allocation77_spill] sm:$0xff] %v8172_v52  ;;  %v8175_v60 = vpop.permute.xlu0 %1984  ;;  %v2543_v52 = vmul.f32 %v2541_v2, %v7521_v18 }
 0x23f   : > { %12095 = vst [vmem:[#allocation78_spill] sm:$0xff] %v8175_v60  ;;  %2535 = vrot.lane.b32.xlu1 %v2530_v13, %s11940_s18  ;;  %v2665_v60 = vstv %s6119_s25  ;;  %s8347_s25 = sld [smem:[#allocation10 + $0xe6]] }
 0x240   : > { %2533 = vrot.lane.b32.xlu0 %v2529_v40, %s11940_s18  ;;  %v2669_v13 = vmul.f32 %v2665_v60, %v7561_v29  ;;  %v2652_v40 = vrot.slane %v2645_v33, 1  ;;  %v2668_v45 = vmul.f32 %v2665_v60, %v7566_v16  ;;  %v2667_v46 = vmul.f32 %v2665_v60, %v7521_v18 }
 0x241   : > { %v8183_v34 = vpop.permute.xlu1 %2009  ;;  %v2692_v33 = vmul.f32 %v2688_v41, %v7561_v29 }
 0x242   : > { %12096 = vst [vmem:[#allocation79_spill] sm:$0xff] %v8183_v34  ;;  %v8187_v22 = vpop.permute.xlu0 %2007  ;;  %v2654_v34 = vrot.slane %v2644_v30, 1  ;;  %v2675_v30 = vrot.slane %v2668_v45, 1  ;;  %v2677_v43 = vrot.slane %v2667_v46, 1 }
 0x243   : > { %12097 = vst [vmem:[#allocation80_spill] sm:$0xff] %v8187_v22  ;;  %2548 = vrot.lane.b32.xlu1 %v2543_v52, %s11940_s18  ;;  %v2666_v22 = vmul.f32 %v2665_v60, %v7533_v26  ;;  %v2678_v52 = vrot.slane %v2669_v13, 1  ;;  %v2690_v60 = vmul.f32 %v2688_v41, %v7521_v18  ;;  %v2701_v45 = vrot.slane %v2692_v33, 1 }
 0x244   : > { %2546 = vrot.lane.b32.xlu0 %v2542_v9, %s11940_s18  ;;  %v2656_v6 = vsel %vm768_vm0, %v2654_v34, %v2655_v8  ;;  %v2653_v9 = vsel %vm768_vm0, %v2651_v51, %v2652_v40  ;;  %v2689_v8 = vmul.f32 %v2688_v41, %v7533_v26  ;;  %v2711_v34 = vstv %s6121_s28  ;;  %s8377_s28 = sld [smem:[#allocation10 + $0x10]] }
 0x245   : > { %v8195_v4 = vpop.permute.xlu1 %2032  ;;  %v2679_v51 = vsel %vm768_vm0, %v2677_v43, %v2678_v52  ;;  %v2715_v40 = vmul.f32 %v2711_v34, %v7561_v29  ;;  %v2712_v52 = vmul.f32 %v2711_v34, %v7533_v26  ;;  %v2734_v33 = vstv %s8198_s29  ;;  %s8392_s29 = sld [smem:[#allocation10 + $0x34]] }
 0x246   : > { %12098 = vst [vmem:[#allocation81_spill] sm:$0xff] %v8195_v4  ;;  %v8200_v2 = vpop.permute.xlu0 %2030  ;;  %v2691_v4 = vmul.f32 %v2688_v41, %v7566_v16  ;;  %v2700_v41 = vrot.slane %v2690_v60, 1 }
 0x247   : > { %12099 = vst [vmem:[#allocation82_spill] sm:$0xff] %v8200_v2  ;;  %2659 = vrot.lane.b32.xlu1 %v2656_v6, %s11942_s24  ;;  %v2674_v2 = vrot.slane %v2666_v22, 1  ;;  %v2714_v22 = vmul.f32 %v2711_v34, %v7566_v16 }
 0x248   : > { %2657 = vrot.lane.b32.xlu0 %v2653_v9, %s11942_s24  ;;  %v2698_v6 = vrot.slane %v2691_v4, 1  ;;  %v2713_v9 = vmul.f32 %v2711_v34, %v7521_v18  ;;  %v2702_v4 = vsel %vm768_vm0, %v2700_v41, %v2701_v45  ;;  %v2735_v45 = vmul.f32 %v2734_v33, %v7533_v26 }
 0x249   : > { %v8209_v38 = vpop.permute.xlu1 %2055  ;;  %v2676_v46 = vsel %vm768_vm0, %v2674_v2, %v2675_v30  ;;  %v2724_v2 = vrot.slane %v2715_v40, 1  ;;  %v2738_v30 = vmul.f32 %v2734_v33, %v7561_v29  ;;  %v2757_v40 = vstv %s8212_s30  ;;  %s8407_s30 = sld [smem:[#allocation10 + $0x58]] }
 0x24a   : > { %12100 = vst [vmem:[#allocation83_spill] sm:$0xff] %v8209_v38  ;;  %v8214_v13 = vpop.permute.xlu0 %2053  ;;  %v2723_v34 = vrot.slane %v2713_v9, 1 }
 0x24b   : > { %12101 = vst [vmem:[#allocation84_spill] sm:$0xff] %v8214_v13  ;;  %2682 = vrot.lane.b32.xlu1 %v2679_v51, %s11942_s24  ;;  %v2697_v13 = vrot.slane %v2689_v8, 1  ;;  %v2721_v51 = vrot.slane %v2714_v22, 1  ;;  %v2737_v8 = vmul.f32 %v2734_v33, %v7566_v16  ;;  %v2761_v22 = vmul.f32 %v2757_v40, %v7561_v29 }
 0x24c   : > { %2680 = vrot.lane.b32.xlu0 %v2676_v46, %s11942_s24  ;;  %v2736_v46 = vmul.f32 %v2734_v33, %v7521_v18 }
 0x24d   : > { %v8223_v38 = vpop.permute.xlu1 %2078  ;;  %v2699_v60 = vsel %vm768_vm0, %v2697_v13, %v2698_v6  ;;  %v2725_v13 = vsel %vm768_vm0, %v2723_v34, %v2724_v2  ;;  %v2747_v6 = vrot.slane %v2738_v30, 1  ;;  %v2758_v2 = vmul.f32 %v2757_v40, %v7533_v26 }
 0x24e   : > { %12102 = vst [vmem:[#allocation85_spill] sm:$0xff] %v8223_v38  ;;  %v8229_v43 = vpop.permute.xlu0 %2076  ;;  %v2746_v33 = vrot.slane %v2736_v46, 1  ;;  %v2780_v30 = vstv %s8227_s9  ;;  %s8422_s9 = sld [smem:[#allocation10 + $0x7c]] }
 0x24f   : > { %12103 = vst [vmem:[#allocation86_spill] sm:$0xff] %v8229_v43  ;;  %2705 = vrot.lane.b32.xlu1 %v2702_v4, %s11942_s24  ;;  %v2720_v43 = vrot.slane %v2712_v52, 1  ;;  %v2744_v4 = vrot.slane %v2737_v8, 1  ;;  %v2760_v52 = vmul.f32 %v2757_v40, %v7566_v16  ;;  %v2784_v8 = vmul.f32 %v2780_v30, %v7561_v29 }
 0x250   : > { %2703 = vrot.lane.b32.xlu0 %v2699_v60, %s11942_s24  ;;  %v2759_v60 = vmul.f32 %v2757_v40, %v7521_v18 }
 0x251   : > { %v8238_v38 = vpop.permute.xlu1 %2101  ;;  %v2722_v9 = vsel %vm768_vm0, %v2720_v43, %v2721_v51  ;;  %v2748_v43 = vsel %vm768_vm0, %v2746_v33, %v2747_v6  ;;  %v2770_v51 = vrot.slane %v2761_v22, 1  ;;  %v2781_v6 = vmul.f32 %v2780_v30, %v7533_v26 }
 0x252   : > { %12104 = vst [vmem:[#allocation87_spill] sm:$0xff] %v8238_v38  ;;  %v8244_v41 = vpop.permute.xlu0 %2099  ;;  %v2769_v40 = vrot.slane %v2759_v60, 1  ;;  %v2803_v22 = vstv %s8242_s0  ;;  %s8437_s0 = sld [smem:[#allocation10 + $0xa0]] }
 0x253   : > { %12105 = vst [vmem:[#allocation88_spill] sm:$0xff] %v8244_v41  ;;  %2728 = vrot.lane.b32.xlu1 %v2725_v13, %s11942_s24  ;;  %v2743_v41 = vrot.slane %v2735_v45, 1  ;;  %v2767_v13 = vrot.slane %v2760_v52, 1  ;;  %v2783_v45 = vmul.f32 %v2780_v30, %v7566_v16  ;;  %v2807_v52 = vmul.f32 %v2803_v22, %v7561_v29 }
 0x254   : > { %2726 = vrot.lane.b32.xlu0 %v2722_v9, %s11942_s24  ;;  %v2782_v9 = vmul.f32 %v2780_v30, %v7521_v18 }
 0x255   : > { %v8253_v38 = vpop.permute.xlu1 %2124  ;;  %v2745_v46 = vsel %vm768_vm0, %v2743_v41, %v2744_v4  ;;  %v2771_v41 = vsel %vm768_vm0, %v2769_v40, %v2770_v51  ;;  %v2793_v4 = vrot.slane %v2784_v8, 1  ;;  %v2804_v51 = vmul.f32 %v2803_v22, %v7533_v26 }
 0x256   : > { %12106 = vst [vmem:[#allocation89_spill] sm:$0xff] %v8253_v38  ;;  %v8259_v34 = vpop.permute.xlu0 %2122  ;;  %v2792_v30 = vrot.slane %v2782_v9, 1  ;;  %v2826_v8 = vstv %s8257_s16  ;;  %s8443_s16 = sld [smem:[#allocation10]] }
 0x257   : > { %12107 = vst [vmem:[#allocation90_spill] sm:$0xff] %v8259_v34  ;;  %2751 = vrot.lane.b32.xlu1 %v2748_v43, %s11942_s24  ;;  %v2766_v34 = vrot.slane %v2758_v2, 1  ;;  %v2790_v43 = vrot.slane %v2783_v45, 1  ;;  %v2806_v2 = vmul.f32 %v2803_v22, %v7566_v16  ;;  %v2830_v45 = vmul.f32 %v2826_v8, %v7561_v29 }
 0x258   : > { %2749 = vrot.lane.b32.xlu0 %v2745_v46, %s11942_s24  ;;  %v2805_v46 = vmul.f32 %v2803_v22, %v7521_v18 }
 0x259   : > { %v8268_v38 = vpop.permute.xlu1 %2147  ;;  %v2768_v60 = vsel %vm768_vm0, %v2766_v34, %v2767_v13  ;;  %v2794_v34 = vsel %vm768_vm0, %v2792_v30, %v2793_v4  ;;  %v2816_v13 = vrot.slane %v2807_v52, 1  ;;  %v2827_v4 = vmul.f32 %v2826_v8, %v7533_v26 }
 0x25a   : > { %12108 = vst [vmem:[#allocation91_spill] sm:$0xff] %v8268_v38  ;;  %v8274_v33 = vpop.permute.xlu0 %2145  ;;  %v2815_v22 = vrot.slane %v2805_v46, 1  ;;  %v2849_v52 = vstv %s8272_s23  ;;  %s8448_s23 = sld [smem:[#allocation11]] }
 0x25b   : > { %12109 = vst [vmem:[#allocation92_spill] sm:$0xff] %v8274_v33  ;;  %2774 = vrot.lane.b32.xlu1 %v2771_v41, %s11942_s24  ;;  %v2789_v33 = vrot.slane %v2781_v6, 1  ;;  %v2813_v41 = vrot.slane %v2806_v2, 1  ;;  %v2829_v6 = vmul.f32 %v2826_v8, %v7566_v16  ;;  %v2853_v2 = vmul.f32 %v2849_v52, %v7561_v29 }
 0x25c   : > { %2772 = vrot.lane.b32.xlu0 %v2768_v60, %s11942_s24  ;;  %v2828_v60 = vmul.f32 %v2826_v8, %v7521_v18 }
 0x25d   : > { %v8283_v38 = vpop.permute.xlu1 %2170  ;;  %v2791_v9 = vsel %vm768_vm0, %v2789_v33, %v2790_v43  ;;  %v2817_v33 = vsel %vm768_vm0, %v2815_v22, %v2816_v13  ;;  %v2839_v43 = vrot.slane %v2830_v45, 1  ;;  %v2850_v13 = vmul.f32 %v2849_v52, %v7533_v26 }
 0x25e   : > { %12110 = vst [vmem:[#allocation93_spill] sm:$0xff] %v8283_v38  ;;  %v8289_v40 = vpop.permute.xlu0 %2168  ;;  %v2838_v8 = vrot.slane %v2828_v60, 1  ;;  %v2872_v45 = vstv %s8287_s26  ;;  %s8456_s26 = sld [smem:[#allocation10 + $0xc4]] }
 0x25f   : > { %12111 = vst [vmem:[#allocation94_spill] sm:$0xff] %v8289_v40  ;;  %2797 = vrot.lane.b32.xlu1 %v2794_v34, %s11942_s24  ;;  %v2812_v40 = vrot.slane %v2804_v51, 1  ;;  %v2836_v34 = vrot.slane %v2829_v6, 1  ;;  %v2852_v51 = vmul.f32 %v2849_v52, %v7566_v16  ;;  %v2876_v6 = vmul.f32 %v2872_v45, %v7561_v29 }
 0x260   : > { %2795 = vrot.lane.b32.xlu0 %v2791_v9, %s11942_s24  ;;  %v2851_v9 = vmul.f32 %v2849_v52, %v7521_v18  ;;  %v12155_v28 = vstv %s8448_s23  ;;  %s8940_s23 = sld [smem:[#allocation10 + $0xde]] }
 0x261   : > { %v8298_v38 = vpop.permute.xlu1 %2193  ;;  %v2814_v46 = vsel %vm768_vm0, %v2812_v40, %v2813_v41  ;;  %v2840_v40 = vsel %vm768_vm0, %v2838_v8, %v2839_v43  ;;  %v2862_v41 = vrot.slane %v2853_v2, 1  ;;  %v2873_v43 = vmul.f32 %v2872_v45, %v7533_v26 }
 0x262   : > { %12112 = vst [vmem:[#allocation95_spill] sm:$0xff] %v8298_v38  ;;  %v8304_v30 = vpop.permute.xlu0 %2191  ;;  %v2861_v52 = vrot.slane %v2851_v9, 1  ;;  %v2895_v2 = vstv %s8302_s8  ;;  %s8458_s8 = sld [smem:[#allocation10 + $0x24]] }
 0x263   : > { %12113 = vst [vmem:[#allocation96_spill] sm:$0xff] %v8304_v30  ;;  %2820 = vrot.lane.b32.xlu1 %v2817_v33, %s11942_s24  ;;  %v2835_v30 = vrot.slane %v2827_v4, 1  ;;  %v2859_v33 = vrot.slane %v2852_v51, 1  ;;  %v2875_v4 = vmul.f32 %v2872_v45, %v7566_v16  ;;  %v2899_v51 = vmul.f32 %v2895_v2, %v7561_v29 }
 0x264   : > { %2818 = vrot.lane.b32.xlu0 %v2814_v46, %s11942_s24  ;;  %v2874_v46 = vmul.f32 %v2872_v45, %v7521_v18 }
 0x265   : > { %v8313_v38 = vpop.permute.xlu1 %2216  ;;  %v2837_v60 = vsel %vm768_vm0, %v2835_v30, %v2836_v34  ;;  %v2863_v30 = vsel %vm768_vm0, %v2861_v52, %v2862_v41  ;;  %v2885_v34 = vrot.slane %v2876_v6, 1  ;;  %v2896_v41 = vmul.f32 %v2895_v2, %v7533_v26 }
 0x266   : > { %12114 = vst [vmem:[#allocation97_spill] sm:$0xff] %v8313_v38  ;;  %v8319_v22 = vpop.permute.xlu0 %2214  ;;  %v2884_v45 = vrot.slane %v2874_v46, 1  ;;  %v2918_v6 = vstv %s8317_s15  ;;  %s8464_s15 = sld [smem:[#allocation11 + $0x1]] }
 0x267   : > { %12115 = vst [vmem:[#allocation98_spill] sm:$0xff] %v8319_v22  ;;  %2843 = vrot.lane.b32.xlu1 %v2840_v40, %s11940_s18  ;;  %v2858_v22 = vrot.slane %v2850_v13, 1  ;;  %v2882_v40 = vrot.slane %v2875_v4, 1  ;;  %v2898_v13 = vmul.f32 %v2895_v2, %v7566_v16  ;;  %v2922_v4 = vmul.f32 %v2918_v6, %v7561_v29 }
 0x268   : > { %2841 = vrot.lane.b32.xlu0 %v2837_v60, %s11940_s18  ;;  %v2897_v60 = vmul.f32 %v2895_v2, %v7521_v18 }
 0x269   : > { %v8328_v38 = vpop.permute.xlu1 %2239  ;;  %v2860_v9 = vsel %vm768_vm0, %v2858_v22, %v2859_v33  ;;  %v2886_v22 = vsel %vm768_vm0, %v2884_v45, %v2885_v34  ;;  %v2908_v33 = vrot.slane %v2899_v51, 1  ;;  %v2919_v34 = vmul.f32 %v2918_v6, %v7533_v26 }
 0x26a   : > { %12116 = vst [vmem:[#allocation99_spill] sm:$0xff] %v8328_v38  ;;  %v8334_v8 = vpop.permute.xlu0 %2237  ;;  %v2907_v2 = vrot.slane %v2897_v60, 1  ;;  %v2941_v51 = vstv %s8332_s20  ;;  %s8469_s20 = sld [smem:[#allocation10 + $0x48]] }
 0x26b   : > { %12117 = vst [vmem:[#allocation100_spill] sm:$0xff] %v8334_v8  ;;  %2866 = vrot.lane.b32.xlu1 %v2863_v30, %s11940_s18  ;;  %v2881_v8 = vrot.slane %v2873_v43, 1  ;;  %v2905_v30 = vrot.slane %v2898_v13, 1  ;;  %v2921_v43 = vmul.f32 %v2918_v6, %v7566_v16  ;;  %v2945_v13 = vmul.f32 %v2941_v51, %v7561_v29 }
 0x26c   : > { %2864 = vrot.lane.b32.xlu0 %v2860_v9, %s11940_s18  ;;  %v2920_v9 = vmul.f32 %v2918_v6, %v7521_v18 }
 0x26d   : > { %v8343_v38 = vpop.permute.xlu1 %2262  ;;  %v2883_v46 = vsel %vm768_vm0, %v2881_v8, %v2882_v40  ;;  %v2909_v8 = vsel %vm768_vm0, %v2907_v2, %v2908_v33  ;;  %v2931_v40 = vrot.slane %v2922_v4, 1  ;;  %v2942_v33 = vmul.f32 %v2941_v51, %v7533_v26 }
 0x26e   : > { %12118 = vst [vmem:[#allocation101_spill] sm:$0xff] %v8343_v38  ;;  %v8349_v52 = vpop.permute.xlu0 %2260  ;;  %v2930_v6 = vrot.slane %v2920_v9, 1  ;;  %v2964_v4 = vstv %s8347_s25  ;;  %s8477_s25 = sld [smem:[#allocation10 + $0xe8]] }
 0x26f   : > { %12119 = vst [vmem:[#allocation102_spill] sm:$0xff] %v8349_v52  ;;  %2889 = vrot.lane.b32.xlu1 %v2886_v22, %s11940_s18  ;;  %v2904_v52 = vrot.slane %v2896_v41, 1  ;;  %v2928_v22 = vrot.slane %v2921_v43, 1  ;;  %v2944_v41 = vmul.f32 %v2941_v51, %v7566_v16  ;;  %v2968_v43 = vmul.f32 %v2964_v4, %v7561_v29 }
 0x270   : > { %2887 = vrot.lane.b32.xlu0 %v2883_v46, %s11940_s18  ;;  %v2943_v46 = vmul.f32 %v2941_v51, %v7521_v18 }
 0x271   : > { %v8358_v38 = vpop.permute.xlu1 %2285  ;;  %v2906_v60 = vsel %vm768_vm0, %v2904_v52, %v2905_v30  ;;  %v2932_v52 = vsel %vm768_vm0, %v2930_v6, %v2931_v40  ;;  %v2954_v30 = vrot.slane %v2945_v13, 1  ;;  %v2965_v40 = vmul.f32 %v2964_v4, %v7533_v26 }
 0x272   : > { %12120 = vst [vmem:[#allocation103_spill] sm:$0xff] %v8358_v38  ;;  %v8364_v45 = vpop.permute.xlu0 %2283  ;;  %v2953_v51 = vrot.slane %v2943_v46, 1  ;;  %v2987_v13 = vstv %s8362_s27  ;;  %s8479_s27 = sld [smem:[#allocation11 + $0x2]] }
 0x273   : > { %12121 = vst [vmem:[#allocation104_spill] sm:$0xff] %v8364_v45  ;;  %2912 = vrot.lane.b32.xlu1 %v2909_v8, %s11940_s18  ;;  %v2927_v45 = vrot.slane %v2919_v34, 1  ;;  %v2951_v8 = vrot.slane %v2944_v41, 1  ;;  %v2967_v34 = vmul.f32 %v2964_v4, %v7566_v16  ;;  %v2991_v41 = vmul.f32 %v2987_v13, %v7561_v29 }
 0x274   : > { %2910 = vrot.lane.b32.xlu0 %v2906_v60, %s11940_s18  ;;  %v2966_v60 = vmul.f32 %v2964_v4, %v7521_v18 }
 0x275   : > { %v8373_v38 = vpop.permute.xlu1 %2308  ;;  %v2929_v9 = vsel %vm768_vm0, %v2927_v45, %v2928_v22  ;;  %v2955_v45 = vsel %vm768_vm0, %v2953_v51, %v2954_v30  ;;  %v2977_v22 = vrot.slane %v2968_v43, 1  ;;  %v2988_v30 = vmul.f32 %v2987_v13, %v7533_v26 }
 0x276   : > { %12122 = vst [vmem:[#allocation105_spill] sm:$0xff] %v8373_v38  ;;  %v8379_v2 = vpop.permute.xlu0 %2306  ;;  %v2976_v4 = vrot.slane %v2966_v60, 1  ;;  %v3098_v43 = vstv %s8377_s28  ;;  %s8485_s28 = sld [smem:[#allocation10 + $0x6c]] }
 0x277   : > { %12123 = vst [vmem:[#allocation106_spill] sm:$0xff] %v8379_v2  ;;  %2935 = vrot.lane.b32.xlu1 %v2932_v52, %s11940_s18  ;;  %v2950_v2 = vrot.slane %v2942_v33, 1  ;;  %v2974_v52 = vrot.slane %v2967_v34, 1  ;;  %v2990_v33 = vmul.f32 %v2987_v13, %v7566_v16  ;;  %v3102_v34 = vmul.f32 %v3098_v43, %v7561_v29 }
 0x278   : > { %2933 = vrot.lane.b32.xlu0 %v2929_v9, %s11940_s18  ;;  %v2989_v9 = vmul.f32 %v2987_v13, %v7521_v18 }
 0x279   : > { %v8388_v38 = vpop.permute.xlu1 %2353  ;;  %v2952_v46 = vsel %vm768_vm0, %v2950_v2, %v2951_v8  ;;  %v2978_v2 = vsel %vm768_vm0, %v2976_v4, %v2977_v22  ;;  %v3000_v8 = vrot.slane %v2991_v41, 1  ;;  %v3099_v22 = vmul.f32 %v3098_v43, %v7533_v26 }
 0x27a   : > { %12124 = vst [vmem:[#allocation107_spill] sm:$0xff] %v8388_v38  ;;  %v8394_v6 = vpop.permute.xlu0 %2351  ;;  %v2999_v13 = vrot.slane %v2989_v9, 1  ;;  %v3121_v41 = vstv %s8392_s29  ;;  %s8490_s29 = sld [smem:[#allocation11 + $0x3]] }
 0x27b   : > { %12125 = vst [vmem:[#allocation108_spill] sm:$0xff] %v8394_v6  ;;  %2958 = vrot.lane.b32.xlu1 %v2955_v45, %s11940_s18  ;;  %v2973_v6 = vrot.slane %v2965_v40, 1  ;;  %v2997_v45 = vrot.slane %v2990_v33, 1  ;;  %v3101_v40 = vmul.f32 %v3098_v43, %v7566_v16  ;;  %v3125_v33 = vmul.f32 %v3121_v41, %v7561_v29 }
 0x27c   : > { %2956 = vrot.lane.b32.xlu0 %v2952_v46, %s11940_s18  ;;  %v3100_v46 = vmul.f32 %v3098_v43, %v7521_v18 }
 0x27d   : > { %v8403_v38 = vpop.permute.xlu1 %2366  ;;  %v2975_v60 = vsel %vm768_vm0, %v2973_v6, %v2974_v52  ;;  %v3001_v6 = vsel %vm768_vm0, %v2999_v13, %v3000_v8  ;;  %v3111_v52 = vrot.slane %v3102_v34, 2  ;;  %v3122_v8 = vmul.f32 %v3121_v41, %v7533_v26 }
 0x27e   : > { %12126 = vst [vmem:[#allocation109_spill] sm:$0xff] %v8403_v38  ;;  %v8409_v51 = vpop.permute.xlu0 %2364  ;;  %v3110_v43 = vrot.slane %v3100_v46, 2  ;;  %v3144_v34 = vstv %s8407_s30  ;;  %s8498_s30 = sld [smem:[#allocation10 + $0x10c]] }
 0x27f   : > { %12127 = vst [vmem:[#allocation110_spill] sm:$0xff] %v8409_v51  ;;  %2981 = vrot.lane.b32.xlu1 %v2978_v2, %s11940_s18  ;;  %v2996_v51 = vrot.slane %v2988_v30, 1  ;;  %v3108_v2 = vrot.slane %v3101_v40, 2  ;;  %v3124_v30 = vmul.f32 %v3121_v41, %v7566_v16  ;;  %v3148_v40 = vmul.f32 %v3144_v34, %v7561_v29 }
 0x280   : > { %2979 = vrot.lane.b32.xlu0 %v2975_v60, %s11940_s18  ;;  %v3123_v60 = vmul.f32 %v3121_v41, %v7521_v18  ;;  %v3147_v41 = vmul.f32 %v3144_v34, %v7566_v16 }
 0x281   : > { %v8418_v38 = vpop.permute.xlu1 %2379  ;;  %v2998_v9 = vsel %vm768_vm0, %v2996_v51, %v2997_v45  ;;  %v3112_v51 = vsel %vm1862_vm13, %v3110_v43, %v3111_v52  ;;  %v3134_v45 = vrot.slane %v3125_v33, 2  ;;  %v3130_v33 = vrot.slane %v3122_v8, 2 }
 0x282   : > { %12128 = vst [vmem:[#allocation111_spill] sm:$0xff] %v8418_v38  ;;  %v8424_v4 = vpop.permute.xlu0 %2377  ;;  %v3145_v43 = vmul.f32 %v3144_v34, %v7533_v26 }
 0x283   : > { %12129 = vst [vmem:[#allocation112_spill] sm:$0xff] %v8424_v4  ;;  %3004 = vrot.lane.b32.xlu1 %v3001_v6, %s11940_s18  ;;  %v3107_v4 = vrot.slane %v3099_v22, 2  ;;  %v3131_v22 = vrot.slane %v3124_v30, 2  ;;  %v3133_v6 = vrot.slane %v3123_v60, 2  ;;  %v3157_v30 = vrot.slane %v3148_v40, 2 }
 0x284   : > { %3002 = vrot.lane.b32.xlu0 %v2998_v9, %s11940_s18  ;;  %v3146_v9 = vmul.f32 %v3144_v34, %v7521_v18  ;;  %v3154_v34 = vrot.slane %v3147_v41, 2  ;;  %v3153_v40 = vrot.slane %v3145_v43, 2  ;;  %s8519_s18 = sld [smem:[#allocation10 + $0x11]] }
 0x285   : > { %v8433_v38 = vpop.permute.xlu1 %2392  ;;  %v3109_v46 = vsel %vm1862_vm13, %v3107_v4, %v3108_v2  ;;  %v3135_v2 = vsel %vm1862_vm13, %v3133_v6, %v3134_v45  ;;  %v3132_v8 = vsel %vm1862_vm13, %v3130_v33, %v3131_v22 }
 0x286   : > { %12130 = vst [vmem:[#allocation113_spill] sm:$0xff] %v8433_v38  ;;  %v8439_v13 = vpop.permute.xlu0 %2390  ;;  %v3155_v43 = vsel %vm1862_vm13, %v3153_v40, %v3154_v34 }
 0x287   : > { %12131 = vst [vmem:[#allocation114_spill] sm:$0xff] %v8439_v13  ;;  %3115 = vrot.lane.b32.xlu1 %v3112_v51, %s11942_s24  ;;  %v3167_v13 = vstv %s8422_s9  ;;  %s8500_s9 = sld [smem:[#allocation10 + $0x90]] }
 0x288   : > { %3113 = vrot.lane.b32.xlu0 %v3109_v46, %s11942_s24  ;;  %v3171_v60 = vmul.f32 %v3167_v13, %v7561_v29  ;;  %v3170_v51 = vmul.f32 %v3167_v13, %v7566_v16  ;;  %v3156_v46 = vrot.slane %v3146_v9, 2  ;;  %v3168_v6 = vmul.f32 %v3167_v13, %v7533_v26 }
 0x289   : > { %v8452_v52 = vpop.permute.xlu1 %2405 }
 0x28a   : > { %12132 = vst [vmem:[#allocation115_spill] sm:$0xff] %v8452_v52  ;;  %v8460_v4 = vpop.permute.xlu0 %2403  ;;  %v3190_v52 = vstv %s8437_s0  ;;  %v3158_v41 = vsel %vm1862_vm13, %v3156_v46, %v3157_v30  ;;  %v3180_v33 = vrot.slane %v3171_v60, 2  ;;  %v3176_v60 = vrot.slane %v3168_v6, 2  ;;  %s8506_s0 = sld [smem:[#allocation11 + $0x4]] }
 0x28b   : > { %12133 = vst [vmem:[#allocation116_spill] sm:$0xff] %v8460_v4  ;;  %3138 = vrot.lane.b32.xlu1 %v3135_v2, %s11942_s24  ;;  %v3169_v4 = vmul.f32 %v3167_v13, %v7521_v18  ;;  %v3194_v9 = vmul.f32 %v3190_v52, %v7561_v29  ;;  %v3177_v13 = vrot.slane %v3170_v51, 2  ;;  %v3193_v2 = vmul.f32 %v3190_v52, %v7566_v16 }
 0x28c   : > { %3136 = vrot.lane.b32.xlu0 %v3132_v8, %s11942_s24  ;;  %v3191_v46 = vmul.f32 %v3190_v52, %v7533_v26 }
 0x28d   : > { %v8473_v45 = vpop.permute.xlu1 %2418  ;;  %v3179_v8 = vrot.slane %v3169_v4, 2  ;;  %v3203_v40 = vrot.slane %v3194_v9, 2  ;;  %v3178_v6 = vsel %vm1862_vm13, %v3176_v60, %v3177_v13 }
 0x28e   : > { %12134 = vst [vmem:[#allocation117_spill] sm:$0xff] %v8473_v45  ;;  %v8481_v22 = vpop.permute.xlu0 %2416  ;;  %v3213_v45 = vstv %s8456_s26  ;;  %s8511_s26 = sld [smem:[#allocation10 + $0xb4]]  ;;  %v3199_v9 = vrot.slane %v3191_v46, 2 }
 0x28f   : > { %12135 = vst [vmem:[#allocation118_spill] sm:$0xff] %v8481_v22  ;;  %3161 = vrot.lane.b32.xlu1 %v3158_v41, %s11942_s24  ;;  %v3192_v22 = vmul.f32 %v3190_v52, %v7521_v18  ;;  %v3181_v51 = vsel %vm1862_vm13, %v3179_v8, %v3180_v33  ;;  %v3217_v4 = vmul.f32 %v3213_v45, %v7561_v29  ;;  %v3200_v52 = vrot.slane %v3193_v2, 2 }
 0x290   : > { %3159 = vrot.lane.b32.xlu0 %v3155_v43, %s11942_s24  ;;  %v3216_v41 = vmul.f32 %v3213_v45, %v7566_v16  ;;  %v3214_v8 = vmul.f32 %v3213_v45, %v7533_v26 }
 0x291   : > { %v8494_v30 = vpop.permute.xlu1 %2431  ;;  %v3202_v43 = vrot.slane %v3192_v22, 2  ;;  %v3226_v60 = vrot.slane %v3217_v4, 2  ;;  %v3201_v46 = vsel %vm1862_vm13, %v3199_v9, %v3200_v52 }
 0x292   : > { %12136 = vst [vmem:[#allocation119_spill] sm:$0xff] %v8494_v30  ;;  %v8502_v34 = vpop.permute.xlu0 %2429  ;;  %v3236_v30 = vstv %s8477_s25  ;;  %s8532_s25 = sld [smem:[#allocation11 + $0x6]] }
 0x293   : > { %12137 = vst [vmem:[#allocation120_spill] sm:$0xff] %v8502_v34  ;;  %3184 = vrot.lane.b32.xlu1 %v3181_v51, %s11942_s24  ;;  %v3215_v34 = vmul.f32 %v3213_v45, %v7521_v18  ;;  %v3204_v2 = vsel %vm1862_vm13, %v3202_v43, %v3203_v40  ;;  %v3240_v22 = vmul.f32 %v3236_v30, %v7561_v29  ;;  %v3223_v45 = vrot.slane %v3216_v41, 2 }
 0x294   : > { %3182 = vrot.lane.b32.xlu0 %v3178_v6, %s11942_s24  ;;  %s8527_s24 = sld [smem:[#allocation10 + $0xd8]]  ;;  %v3239_v51 = vmul.f32 %v3236_v30, %v7566_v16  ;;  %v3238_v40 = vmul.f32 %v3236_v30, %v7521_v18  ;;  %v3222_v43 = vrot.slane %v3214_v8, 2 }
 0x295   : > { %v8515_v33 = vpop.permute.xlu1 %2444  ;;  %v3225_v6 = vrot.slane %v3215_v34, 2  ;;  %v3249_v34 = vrot.slane %v3240_v22, 2 }
 0x296   : > { %12138 = vst [vmem:[#allocation121_spill] sm:$0xff] %v8515_v33  ;;  %v8523_v13 = vpop.permute.xlu0 %2442  ;;  %v3246_v8 = vrot.slane %v3239_v51, 2  ;;  %v3282_v51 = vstv %s8519_s18  ;;  %s8582_s18 = sld [smem:[#allocation10 + $0x6f]] }
 0x297   : > { %12139 = vst [vmem:[#allocation122_spill] sm:$0xff] %v8523_v13  ;;  %3207 = vrot.lane.b32.xlu1 %v3204_v2, %s12140_s3  ;;  %v3237_v2 = vmul.f32 %v3236_v30, %v7533_v26  ;;  %v3259_v13 = vstv %s8498_s30  ;;  %v3227_v41 = vsel %vm1862_vm13, %v3225_v6, %v3226_v60  ;;  %v3224_v30 = vsel %vm1862_vm13, %v3222_v43, %v3223_v45  ;;  %s8556_s30 = sld [smem:[#allocation10 + $0x3]] }
 0x298   : > { %3205 = vrot.lane.b32.xlu0 %v3201_v46, %s12140_s3  ;;  %v3263_v9 = vmul.f32 %v3259_v13, %v7561_v29  ;;  %v3262_v33 = vmul.f32 %v3259_v13, %v7566_v16  ;;  %v3248_v60 = vrot.slane %v3238_v40, 2  ;;  %v3261_v22 = vmul.f32 %v3259_v13, %v7521_v18 }
 0x299   : > { %v8536_v4 = vpop.permute.xlu1 %2457  ;;  %v3260_v45 = vmul.f32 %v3259_v13, %v7533_v26  ;;  %v3286_v6 = vmul.f32 %v3282_v51, %v7561_v29  ;;  %v3285_v43 = vmul.f32 %v3282_v51, %v7566_v16  ;;  %v12181_v12 = vstv %s8532_s25  ;;  %s9076_s25 = sld [smem:[#allocation10 + $0x99]] }
 0x29a   : > { %12141 = vst [vmem:[#allocation123_spill] sm:$0xff] %v8536_v4  ;;  %v8544_v52 = vpop.permute.xlu0 %2455  ;;  %v3250_v40 = vsel %vm1862_vm13, %v3248_v60, %v3249_v34  ;;  %v3271_v34 = vrot.slane %v3261_v22, 2 }
 0x29b   : > { %12142 = vst [vmem:[#allocation124_spill] sm:$0xff] %v8544_v52  ;;  %3230 = vrot.lane.b32.xlu1 %v3227_v41, %s12140_s3  ;;  %v3245_v41 = vrot.slane %v3237_v2, 2  ;;  %v3269_v2 = vrot.slane %v3262_v33, 2  ;;  %v3305_v33 = vstv %s8540_s4  ;;  %s8608_s4 = sld [smem:[#allocation10 + $0xdb]] }
 0x29c   : > { %3228 = vrot.lane.b32.xlu0 %v3224_v30, %s12140_s3  ;;  %v3272_v30 = vrot.slane %v3263_v9, 2  ;;  %v3284_v9 = vmul.f32 %v3282_v51, %v7521_v18  ;;  %v3309_v60 = vmul.f32 %v3305_v33, %v7561_v29 }
 0x29d   : > { %v8561_v46 = vpop.permute.xlu1 %2470  ;;  %v3247_v13 = vsel %vm1862_vm13, %v3245_v41, %v3246_v8  ;;  %v3283_v8 = vmul.f32 %v3282_v51, %v7533_v26  ;;  %v3292_v51 = vrot.slane %v3285_v43, 2  ;;  %v3308_v41 = vmul.f32 %v3305_v33, %v7566_v16 }
 0x29e   : > { %12143 = vst [vmem:[#allocation125_spill] sm:$0xff] %v8561_v46  ;;  %v8570_v52 = vpop.permute.xlu0 %2468  ;;  %v3273_v22 = vsel %vm1862_vm13, %v3271_v34, %v3272_v30  ;;  %v3307_v30 = vmul.f32 %v3305_v33, %v7521_v18  ;;  %v3328_v43 = vstv %s8565_s17  ;;  %s8641_s17 = sld [smem:[#allocation10 + $0xc5]] }
 0x29f   : > { %12144 = vst [vmem:[#allocation126_spill] sm:$0xff] %v8570_v52  ;;  %3253 = vrot.lane.b32.xlu1 %v3250_v40, %s12140_s3  ;;  %v3268_v40 = vrot.slane %v3260_v45, 2  ;;  %v3332_v34 = vmul.f32 %v3328_v43, %v7561_v29 }
 0x2a0   : > { %3251 = vrot.lane.b32.xlu0 %v3247_v13, %s12140_s3  ;;  %v3295_v13 = vrot.slane %v3286_v6, 2  ;;  %v3294_v6 = vrot.slane %v3284_v9, 2 }
 0x2a1   : > { %v8587_v4 = vpop.permute.xlu1 %2483  ;;  %v3270_v45 = vsel %vm1862_vm13, %v3268_v40, %v3269_v2  ;;  %v3306_v2 = vmul.f32 %v3305_v33, %v7533_v26  ;;  %v3315_v40 = vrot.slane %v3308_v41, 2 }
 0x2a2   : > { %12145 = vst [vmem:[#allocation127_spill] sm:$0xff] %v8587_v4  ;;  %v8596_v46 = vpop.permute.xlu0 %2481  ;;  %v3296_v9 = vsel %vm1862_vm13, %v3294_v6, %v3295_v13  ;;  %v3331_v4 = vmul.f32 %v3328_v43, %v7566_v16  ;;  %v3330_v13 = vmul.f32 %v3328_v43, %v7521_v18 }
 0x2a3   : > { %12146 = vst [vmem:[#allocation128_spill] sm:$0xff] %v8596_v46  ;;  %3276 = vrot.lane.b32.xlu1 %v3273_v22, %s12140_s3  ;;  %v3291_v22 = vrot.slane %v3283_v8, 2  ;;  %v3314_v38 = vrot.slane %v3306_v2, 2 }
 0x2a4   : > { %3274 = vrot.lane.b32.xlu0 %v3270_v45, %s12140_s3  ;;  %v3318_v45 = vrot.slane %v3309_v60, 2  ;;  %v3317_v60 = vrot.slane %v3307_v30, 2  ;;  %v3341_v30 = vrot.slane %v3332_v34, 2  ;;  %v3340_v34 = vrot.slane %v3330_v13, 2 }
 0x2a5   : > { %v8613_v52 = vpop.permute.xlu1 %2496  ;;  %v3293_v33 = vsel %vm1862_vm13, %v3291_v22, %v3292_v51  ;;  %v3351_v51 = vstv %s8591_s11  ;;  %v3316_v2 = vsel %vm1862_vm13, %v3314_v38, %v3315_v40  ;;  %s8663_s11 = sld [smem:[#allocation10 + $0xe9]]  ;;  %v12156_v40 = vstv %s8458_s8 }
 0x2a6   : > { %12147 = vst [vmem:[#allocation129_spill] sm:$0xff] %v8613_v52  ;;  %v8622_v46 = vpop.permute.xlu0 %2494  ;;  %v3355_v6 = vmul.f32 %v3351_v51, %v7561_v29  ;;  %v3354_v52 = vmul.f32 %v3351_v51, %v7566_v16  ;;  %v3352_v38 = vmul.f32 %v3351_v51, %v7533_v26  ;;  %s8950_s8 = sld [smem:[#allocation10 + $0x102]] }
 0x2a7   : > { %12148 = vst [vmem:[#allocation130_spill] sm:$0xff] %v8622_v46  ;;  %3299 = vrot.lane.b32.xlu1 %v3296_v9, %s12149_s10  ;;  %v3329_v9 = vmul.f32 %v3328_v43, %v7533_v26  ;;  %v3338_v43 = vrot.slane %v3331_v4, 2  ;;  %v3374_v4 = vstv %s8617_s14  ;;  %s8690_s14 = sld [smem:[#allocation10 + $0x10d]] }
 0x2a8   : > { %3297 = vrot.lane.b32.xlu0 %v3293_v33, %s12149_s10  ;;  %v3319_v33 = vsel %vm1862_vm13, %v3317_v60, %v3318_v45  ;;  %v3353_v45 = vmul.f32 %v3351_v51, %v7521_v18  ;;  %v3364_v13 = vrot.slane %v3355_v6, 2  ;;  %v3378_v60 = vmul.f32 %v3374_v4, %v7561_v29 }
 0x2a9   : > { %v8637_v8 = vpop.permute.xlu1 %2509  ;;  %v3361_v51 = vrot.slane %v3354_v52, 2  ;;  %v3360_v52 = vrot.slane %v3352_v38, 2 }
 0x2aa   : > { %12150 = vst [vmem:[#allocation131_spill] sm:$0xff] %v8637_v8  ;;  %v8644_v22 = vpop.permute.xlu0 %2507  ;;  %v12152_v8 = vstv %s8443_s16  ;;  %v3363_v6 = vrot.slane %v3353_v45, 2  ;;  %s8895_s16 = sld [smem:[#allocation10 + $0xa3]] }
 0x2ab   : > { %12151 = vst [vmem:[#allocation132_spill] sm:$0xff] %v8644_v22  ;;  %3322 = vrot.lane.b32.xlu1 %v3319_v33, %s12149_s10  ;;  %v1161_v41 = vmul.f32 %v12152_v8, %v7498_v19  ;;  %v3337_v33 = vrot.slane %v3329_v9, 2  ;;  %v12157_v22 = vstv %s8469_s20  ;;  %s8991_s20 = sld [smem:[#allocation10 + $0x10f]] }
 0x2ac   : > { %3320 = vrot.lane.b32.xlu0 %v3316_v2, %s12149_s10  ;;  %v3342_v2 = vsel %vm1862_vm13, %v3340_v34, %v3341_v30  ;;  %v1165_v30 = vmul.f32 %v12156_v40, %v7498_v19  ;;  %v3376_v34 = vmul.f32 %v3374_v4, %v7521_v18 }
 0x2ad   : > { %v8659_v46 = vpop.permute.xlu1 %2522  ;;  %v3339_v9 = vsel %vm1862_vm13, %v3337_v33, %v3338_v43  ;;  %v8676_v39 = vadd.f32 %v1161_v41, %v12155_v28  ;;  %v3375_v28 = vmul.f32 %v3374_v4, %v7533_v26  ;;  %v3397_v41 = vstv %s8641_s17  ;;  %s9110_s17 = sld [smem:[#allocation10 + $0x105]] }
 0x2ae   : > { %12153 = vst [vmem:[#allocation133_spill] sm:$0xff] %v8659_v46  ;;  %v8666_v8 = vpop.permute.xlu0 %2520  ;;  %v3377_v46 = vmul.f32 %v3374_v4, %v7566_v16  ;;  %v12159_v33 = vstv %s8485_s28  ;;  %v3362_v4 = vsel %vm1862_vm13, %v3360_v52, %v3361_v51  ;;  %v3400_v47 = vmul.f32 %v3397_v41, %v7566_v16  ;;  %s9033_s28 = sld [smem:[#allocation10 + $0x9]] }
 0x2af   : > { %12154 = vst [vmem:[#allocation134_spill] sm:$0xff] %v8666_v8  ;;  %3345 = vrot.lane.b32.xlu1 %v3342_v2, %s12149_s10  ;;  %v1169_v2 = vmul.f32 %v12157_v22, %v7498_v19  ;;  %v1173_v40 = vmul.f32 %v12159_v33, %v7498_v19  ;;  %v3387_v8 = vrot.slane %v3378_v60, 2  ;;  %v3401_v22 = vmul.f32 %v3397_v41, %v7561_v29 }
 0x2b0   : > { %3343 = vrot.lane.b32.xlu0 %v3339_v9, %s12149_s10  ;;  %v3365_v9 = vsel %vm1862_vm13, %v3363_v6, %v3364_v13  ;;  %v3384_v54 = vrot.slane %v3377_v46, 2  ;;  %v12162_v33 = vstv %s8464_s15  ;;  %v12163_v60 = vstv %s8511_s26  ;;  %s8963_s15 = sld [smem:[#allocation10 + $0xeb]] }
 0x2b1   : > { %v8686_v43 = vpop.permute.xlu1 %2535  ;;  %v1181_v13 = vmul.f32 %v12163_v60, %v7498_v19  ;;  %v3386_v6 = vrot.slane %v3376_v34, 2  ;;  %v3399_v24 = vmul.f32 %v3397_v41, %v7521_v18  ;;  %v3383_v51 = vrot.slane %v3375_v28, 2  ;;  %s9070_s26 = sld [smem:[#allocation10 + $0x75]] }
 0x2b2   : > { %12158 = vst [vmem:[#allocation135_spill] sm:$0xff] %v8686_v43  ;;  %v8695_v45 = vpop.permute.xlu0 %2533  ;;  %v12161_v43 = vstv %s8500_s9  ;;  %v3398_v52 = vmul.f32 %v3397_v41, %v7533_v26  ;;  %v3407_v41 = vrot.slane %v3400_v47, 2  ;;  %s9055_s9 = sld [smem:[#allocation10 + $0x51]] }
 0x2b3   : > { %12160 = vst [vmem:[#allocation136_spill] sm:$0xff] %v8695_v45  ;;  %v1177_v38 = vmul.f32 %v12161_v43, %v7498_v19  ;;  %3368 = vrot.lane.b32.xlu1 %v3365_v9, %s12149_s10  ;;  %v8707_v45 = vadd.f32 %v1165_v30, %v12162_v33  ;;  %v12164_v43 = vstv %s8479_s27  ;;  %v3420_v30 = vstv %s8663_s11  ;;  %s9023_s27 = sld [smem:[#allocation10 + $0x14]] }
 0x2b4   : > { %3366 = vrot.lane.b32.xlu0 %v3362_v4, %s12149_s10  ;;  %v8716_v9 = vadd.f32 %v1169_v2, %v12164_v43  ;;  %v12166_v33 = vstv %s8490_s29  ;;  %v3388_v34 = vsel %vm1862_vm13, %v3386_v6, %v3387_v8  ;;  %v3410_v4 = vrot.slane %v3401_v22, 2  ;;  %s9043_s29 = sld [smem:[#allocation10 + $0x2d]] }
 0x2b5   : > { %v8718_v46 = vpop.permute.xlu1 %2548  ;;  %v8724_v44 = vadd.f32 %v1173_v40, %v12166_v33  ;;  %v3424_v2 = vmul.f32 %v3420_v30, %v7561_v29  ;;  %v12168_v43 = vstv %s8506_s0  ;;  %v3385_v28 = vsel %vm1862_vm13, %v3383_v51, %v3384_v54  ;;  %s9066_s0 = sld [smem:[#allocation10 + $0x38]] }
 0x2b6   : > { %12165 = vst [vmem:[#allocation137_spill] sm:$0xff] %v8718_v46  ;;  %v8726_v60 = vpop.permute.xlu0 %2546  ;;  %v8732_v0 = vadd.f32 %v1177_v38, %v12168_v43  ;;  %v3423_v40 = vmul.f32 %v3420_v30, %v7566_v16  ;;  %v12169_v33 = vstv %s8521_s2  ;;  %v12170_v8 = vstv %s8527_s24  ;;  %s8760_s2 = sld [smem:[#allocation10 + $0x13]] }
 0x2b7   : > { %12167 = vst [vmem:[#allocation138_spill] sm:$0xff] %v8726_v60  ;;  %3391 = vrot.lane.b32.xlu1 %v3388_v34, %s12149_s10  ;;  %v8739_v46 = vadd.f32 %v1181_v13, %v12169_v33  ;;  %v1185_v22 = vmul.f32 %v12170_v8, %v7498_v19  ;;  %v3409_v6 = vrot.slane %v3399_v24, 2  ;;  %v3422_v38 = vmul.f32 %v3420_v30, %v7521_v18  ;;  %s8880_s24 = sld [smem:[#allocation10 + $0xba]] }
 0x2b8   : > { %3389 = vrot.lane.b32.xlu0 %v3385_v28, %s12149_s10  ;;  %v12171_v43 = vstv %s8542_s5  ;;  %v3406_v47 = vrot.slane %v3398_v52, 2  ;;  %v3421_v13 = vmul.f32 %v3420_v30, %v7533_v26  ;;  %v3443_v51 = vstv %s8690_s14  ;;  %s8795_s5 = sld [smem:[#allocation10 + $0x37]] }
 0x2b9   : > { %v1189_v34 = vmul.f32 %v12171_v43, %v7498_v19  ;;  %v8749_v54 = vpop.permute.xlu1 %2659  ;;  %v12173_v33 = vstv %s8556_s30  ;;  %v3411_v24 = vsel %vm1862_vm13, %v3409_v6, %v3410_v4  ;;  %v3433_v28 = vrot.slane %v3424_v2, 2  ;;  %s9083_s30 = sld [smem:[#allocation10 + $0xbd]] }
 0x2ba   : > { %12172 = vst [vmem:[#allocation139_spill] sm:$0xff] %v8749_v54  ;;  %v1402_v60 = vmul.f32 %v12173_v33, %v7498_v19  ;;  %v8756_v8 = vpop.permute.xlu0 %2657  ;;  %v3447_v43 = vmul.f32 %v3443_v51, %v7561_v29  ;;  %v12175_v54 = vmov %v12173_v33  ;;  %v3408_v30 = vsel %vm1862_vm13, %v3406_v47, %v3407_v41  ;;  %s9129_s11 = sld [smem:[#allocation10 + $0x80]] }
 0x2bb   : > { %12174 = vst [vmem:[#allocation140_spill] sm:$0xff] %v8756_v8  ;;  %v1403_v52 = vmul.f32 %v12175_v54, %v7672_v53  ;;  %3414 = vrot.lane.b32.xlu1 %v3411_v24, %s12149_s10  ;;  %v3430_v33 = vrot.slane %v3423_v40, 2  ;;  %v3446_v8 = vmul.f32 %v3443_v51, %v7566_v16  ;;  %v1413_v4 = vmul.f32 %v12176_v56, %v7498_v19  ;;  %s9144_s14 = sld [smem:[#allocation10 + $0xc]] }
 0x2bc   : > { %v12177_v2 = vmov %v12176_v56  ;;  %3412 = vrot.lane.b32.xlu0 %v3408_v30, %s12149_s10  ;;  %v3432_v6 = vrot.slane %v3422_v38, 2  ;;  %v3445_v54 = vmul.f32 %v3443_v51, %v7521_v18  ;;  %v1424_v24 = vmul.f32 %v12178_v57, %v7498_v19 }
 0x2bd   : > { %v1414_v29 = vmul.f32 %v12177_v2, %v7672_v53  ;;  %v12179_v41 = vmov %v12178_v57  ;;  %v8782_v47 = vpop.permute.xlu1 %2682  ;;  %v3429_v16 = vrot.slane %v3421_v13, 2  ;;  %v3444_v56 = vmul.f32 %v3443_v51, %v7533_v26 }
 0x2be   : > { %v1425_v40 = vmul.f32 %v12179_v41, %v7672_v53  ;;  %12180 = vst [vmem:[#allocation141_spill] sm:$0xff] %v8782_v47  ;;  %v8787_v10 = vadd.f32 %v1185_v22, %v12181_v12  ;;  %v12182_v30 = vstv %s8582_s18  ;;  %v8792_v2 = vpop.permute.xlu0 %2680  ;;  %v3434_v18 = vsel %vm1862_vm13, %v3432_v6, %v3433_v28  ;;  %s9094_s18 = sld [smem:[#allocation10 + $0x5c]] }
 0x2bf   : > { %v1436_v38 = vmul.f32 %v12182_v30, %v7672_v53  ;;  %12183 = vst [vmem:[#allocation142_spill] sm:$0xff] %v8792_v2  ;;  %v3456_v57 = vrot.slane %v3447_v43, 2  ;;  %v12184_v41 = vstv %s8549_s6  ;;  %v1406_v47 = vrot.slane %v1402_v60, 1  ;;  %3437 = vrot.lane.b32.xlu1 %v3434_v18, %s12149_s10  ;;  %s8807_s6 = sld [smem:[#allocation10 + $0x2a]] }
 0x2c0   : > { %v8799_v11 = vadd.f32 %v1189_v34, %v12184_v41  ;;  %v3431_v12 = vsel %vm1862_vm13, %v3429_v16, %v3430_v33  ;;  %v3453_v22 = vrot.slane %v3446_v8, 2  ;;  %v1407_v13 = vrot.slane %v1403_v52, 1 }
 0x2c1   : > { %v1417_v51 = vrot.slane %v1413_v4, 1  ;;  %v1435_v28 = vmul.f32 %v12182_v30, %v7498_v19  ;;  %3435 = vrot.lane.b32.xlu0 %v3431_v12, %s12149_s10  ;;  %v3455_v34 = vrot.slane %v3445_v54, 2  ;;  %v1418_v43 = vrot.slane %v1414_v29, 1  ;;  %v8809_v16 = vpop.permute.xlu1 %2705 }
 0x2c2   : > { %v1428_v60 = vrot.slane %v1424_v24, 1  ;;  %v1429_v6 = vrot.slane %v1425_v40, 1  ;;  %12185 = vst [vmem:[#allocation143_spill] sm:$0xff] %v8809_v16  ;;  %v3452_v8 = vrot.slane %v3444_v56, 2  ;;  %v1440_v52 = vrot.slane %v1436_v38, 1  ;;  %v8814_v18 = vpop.permute.xlu0 %2703 }
 0x2c3   : > { %v12186_v33 = vstv %s8594_s21  ;;  %12187 = vst [vmem:[#allocation144_spill] sm:$0xff] %v8814_v18  ;;  %v3457_v41 = vsel %vm1862_vm13, %v3455_v34, %v3456_v57  ;;  %v3498_v29 = vstv %s8760_s2  ;;  %v12189_v40 = vstv %s8601_s1  ;;  %s8840_s21 = sld [smem:[#allocation10 + $0x4e]] }
 0x2c4   : > { %v1446_v4 = vmul.f32 %v12186_v33, %v7498_v19  ;;  %v12188_v54 = vmov %v12186_v33  ;;  %v1457_v12 = vmul.f32 %v12189_v40, %v7498_v19  ;;  %v12190_v56 = vmov %v12189_v40  ;;  %3460 = vrot.lane.b32.xlu1 %v3457_v41, %s12149_s10  ;;  %s8852_s1 = sld [smem:[#allocation10 + $0x72]] }
 0x2c5   : > { %v1447_v24 = vmul.f32 %v12188_v54, %v7672_v53  ;;  %v1458_v38 = vmul.f32 %v12190_v56, %v7672_v53  ;;  %v3454_v30 = vsel %vm1862_vm13, %v3452_v8, %v3453_v22  ;;  %v1439_v33 = vrot.slane %v1435_v28, 1  ;;  %v8854_v41 = vpop.permute.xlu1 %2728  ;;  %s9153_s2 = sld [smem:[#allocation10 + $0x30]] }
 0x2c6   : > { %v12191_v57 = vstv %s8608_s4  ;;  %v12193_v54 = vstv %s8620_s7  ;;  %3458 = vrot.lane.b32.xlu0 %v3454_v30, %s12149_s10  ;;  %v8844_v40 = vsel %vm768_vm0, %v1406_v47, %v1407_v13  ;;  %v8847_v22 = vsel %vm768_vm0, %v1417_v51, %v1418_v43  ;;  %v8863_v47 = vpop.permute.xlu0 %2726  ;;  %s8867_s7 = sld [smem:[#allocation10 + $0x7f]] }
 0x2c7   : > { %v1468_v34 = vmul.f32 %v12191_v57, %v7498_v19  ;;  %v12192_v18 = vmov %v12191_v57  ;;  %v1480_v2 = vmul.f32 %v12193_v54, %v7672_v53  ;;  %v12194_v28 = vmov %v12193_v54  ;;  %s9101_s4 = sld [smem:[#allocation10 + $0xe1]] }
 0x2c8   : > { %v1469_v16 = vmul.f32 %v12192_v18, %v7672_v53  ;;  %v1479_v8 = vmul.f32 %v12194_v28, %v7498_v19  ;;  %v3500_v18 = vmul.f32 %v3498_v29, %v7579_v5  ;;  %v8858_v56 = vsel %vm768_vm0, %v1428_v60, %v1429_v6 }
 0x2c9   : > { %v8861_v30 = vsel %vm768_vm0, %v1439_v33, %v1440_v52  ;;  %v3499_v13 = vmul.f32 %v3498_v29, %v7584_v49  ;;  %v3511_v51 = vstv %s8795_s5  ;;  %v1450_v43 = vrot.slane %v1446_v4, 1  ;;  %s9165_s5 = sld [smem:[#allocation10 + $0xa4]] }
 0x2ca   : > { %v1451_v57 = vrot.slane %v1447_v24, 1  ;;  %v1461_v54 = vrot.slane %v1457_v12, 1  ;;  %v1462_v28 = vrot.slane %v1458_v38, 1  ;;  %3505 = vrot.lane.b32.xlu1 %v3500_v18, %s12140_s3  ;;  %v1201_v60 = vsel %vm457_vm1, %v7799_v36, %v7794_v31  ;;  %v8882_v38 = vpop.permute.xlu1 %2751 }
 0x2cb   : > { %v1472_v6 = vrot.slane %v1468_v34, 1  ;;  %v1473_v52 = vrot.slane %v1469_v16, 1  ;;  %v1484_v33 = vrot.slane %v1480_v2, 1  ;;  %3503 = vrot.lane.b32.xlu0 %v3499_v13, %s12140_s3  ;;  %v1483_v29 = vrot.slane %v1479_v8, 1  ;;  %v8891_v16 = vpop.permute.xlu0 %2749 }
 0x2cc   : > { %v12195_v4 = vstv %s8627_s19  ;;  %v1869_v12 = vstv %s8807_s6  ;;  %v3513_v18 = vmul.f32 %v3511_v51, %v7579_v5  ;;  %v1214_v31 = vsel %vm457_vm1, %v7813_v58, %v7808_v42  ;;  %12197 = vst [vmem:[#allocation145_spill] sm:$0xff] %v8891_v16  ;;  %s8931_s19 = sld [smem:[#allocation10 + $0xc7]] }
 0x2cd   : > { %v1858_v24 = vmul.f32 %v12195_v4, %v7498_v19  ;;  %v12196_v36 = vmov %v12195_v4  ;;  %v3512_v34 = vmul.f32 %v3511_v51, %v7584_v49  ;;  %v3524_v8 = vstv %s8818_s13  ;;  %s9193_s6 = sld [smem:[#allocation10 + $0x54]] }
 0x2ce   : > { %v1859_v2 = vmul.f32 %v12196_v36, %v7672_v53  ;;  %v8898_v13 = vadd.f32 %v1201_v60, %v8676_v39  ;;  %v8901_v4 = vsel %vm768_vm0, %v1450_v43, %v1451_v57  ;;  %v8904_v42 = vsel %vm768_vm0, %v1461_v54, %v1462_v28  ;;  %3518 = vrot.lane.b32.xlu1 %v3513_v18, %s12140_s3  ;;  %v8923_v60 = vpop.permute.xlu1 %2774  ;;  %s9205_s13 = sld [smem:[#allocation10 + $0xc8]] }
 0x2cf   : > { %v1871_v58 = vmul.f32 %v1869_v12, %v7672_v53  ;;  %v1227_v51 = vsel %vm457_vm1, %v7828_v63, %v7822_v7  ;;  %v8912_v36 = vsel %vm768_vm0, %v1472_v6, %v1473_v52  ;;  %v8915_v39 = vsel %vm768_vm0, %v1483_v29, %v1484_v33  ;;  %3516 = vrot.lane.b32.xlu0 %v3512_v34, %s12140_s3  ;;  %v8927_v6 = vpop.permute.xlu0 %2772 }
 0x2d0   : > { %v1870_v43 = vmul.f32 %v1869_v12, %v7498_v19  ;;  %v8920_v57 = vadd.f32 %v1214_v31, %v8707_v45  ;;  %v1863_v54 = vrot.slane %v1858_v24, 2  ;;  %v1880_v28 = vstv %s8840_s21  ;;  %12198 = vst [vmem:[#allocation146_spill] sm:$0xff] %v8923_v60  ;;  %12199 = vst [vmem:[#allocation147_spill] sm:$0xff] %v8927_v6  ;;  %s9233_s21 = sld [smem:[#allocation10 + $0xec]] }
 0x2d1   : > { %v3526_v18 = vmul.f32 %v3524_v8, %v7579_v5  ;;  %v1864_v7 = vrot.slane %v1859_v2, 2  ;;  %v1891_v63 = vstv %s8852_s1  ;;  %v3525_v52 = vmul.f32 %v3524_v8, %v7584_v49  ;;  %s9243_s1 = sld [smem:[#allocation10 + $0x78]] }
 0x2d2   : > { %v3537_v33 = vstv %s8867_s7  ;;  %v8934_v45 = vadd.f32 %v1227_v51, %v8716_v9  ;;  %v1240_v29 = vsel %vm457_vm1, %v7843_v20, %v7837_v35  ;;  %v1875_v24 = vrot.slane %v1871_v58, 2  ;;  %v8952_v58 = vpop.permute.xlu1 %2797  ;;  %s9248_s7 = sld [smem:[#allocation10 + $0x9c]] }
 0x2d3   : > { %v1882_v12 = vmul.f32 %v1880_v28, %v7672_v53  ;;  %3531 = vrot.lane.b32.xlu1 %v3526_v18, %s12140_s3  ;;  %v1874_v31 = vrot.slane %v1870_v43, 2  ;;  %v1881_v2 = vmul.f32 %v1880_v28, %v7498_v19  ;;  %v1893_v34 = vmul.f32 %v1891_v63, %v7672_v53  ;;  %3529 = vrot.lane.b32.xlu0 %v3525_v52, %s12140_s3  ;;  %v8959_v18 = vpop.permute.xlu0 %2795 }
 0x2d4   : > { %v1902_v9 = vstv %s8873_s22  ;;  %v1892_v8 = vmul.f32 %v1891_v63, %v7498_v19  ;;  %v1913_v20 = vstv %s8880_s24  ;;  %12200 = vst [vmem:[#allocation148_spill] sm:$0xff] %v8952_v58  ;;  %v3539_v51 = vmul.f32 %v3537_v33, %v7579_v5  ;;  %12201 = vst [vmem:[#allocation149_spill] sm:$0xff] %v8959_v18  ;;  %s9257_s22 = sld [smem:[#allocation10 + $0x16]] }
 0x2d5   : > { %v1904_v35 = vmul.f32 %v1902_v9, %v7672_v53  ;;  %v8956_v43 = vsel %vm1862_vm13, %v1863_v54, %v1864_v7  ;;  %v1915_v28 = vmul.f32 %v1913_v20, %v7672_v53  ;;  %v3538_v52 = vmul.f32 %v3537_v33, %v7584_v49  ;;  %s9263_s24 = sld [smem:[#allocation10 + $0x110]] }
 0x2d6   : > { %v3550_v6 = vstv %s8895_s16  ;;  %v8966_v63 = vadd.f32 %v1240_v29, %v8724_v44  ;;  %v8969_v60 = vsel %vm1862_vm13, %v1874_v31, %v1875_v24  ;;  %v1886_v58 = vrot.slane %v1882_v12, 2  ;;  %v8981_v12 = vpop.permute.xlu1 %2820  ;;  %s9283_s16 = sld [smem:[#allocation10 + $0x3a]] }
 0x2d7   : > { %v1903_v16 = vmul.f32 %v1902_v9, %v7498_v19  ;;  %3544 = vrot.lane.b32.xlu1 %v3539_v51, %s12140_s3  ;;  %v1253_v54 = vsel %vm457_vm1, %v7858_v48, %v7852_v37  ;;  %v1885_v7 = vrot.slane %v1881_v2, 2  ;;  %v1897_v33 = vrot.slane %v1893_v34, 2  ;;  %3542 = vrot.lane.b32.xlu0 %v3538_v52, %s12140_s3  ;;  %v8987_v2 = vpop.permute.xlu0 %2818 }
 0x2d8   : > { %v1914_v18 = vmul.f32 %v1913_v20, %v7498_v19  ;;  %v1266_v44 = vsel %vm457_vm1, %v7873_v59, %v7867_v62  ;;  %v1896_v29 = vrot.slane %v1892_v8, 2  ;;  %v1908_v24 = vrot.slane %v1904_v35, 2 }
 0x2d9   : > { %v3552_v31 = vmul.f32 %v3550_v6, %v7579_v5  ;;  %v1279_v37 = vsel %vm457_vm1, %v7888_v15, %v7882_v21  ;;  %v1919_v48 = vrot.slane %v1915_v28, 2  ;;  %v3551_v34 = vmul.f32 %v3550_v6, %v7584_v49 }
 0x2da   : > { %v3563_v9 = vstv %s8931_s19  ;;  %v1255_v62 = vadd.f32 %v1253_v54, %v8732_v0  ;;  %v8995_v59 = vsel %vm1862_vm13, %v1885_v7, %v1886_v58  ;;  %v1907_v8 = vrot.slane %v1903_v16, 2  ;;  %v9010_v51 = vpop.permute.xlu1 %2843  ;;  %s9309_s19 = sld [smem:[#allocation10 + $0xc0]] }
 0x2db   : > { %v1924_v35 = vstv %s8940_s23  ;;  %3557 = vrot.lane.b32.xlu1 %v3552_v31, %s12140_s3  ;;  %v1268_v21 = vadd.f32 %v1266_v44, %v8739_v46  ;;  %v9001_v15 = vsel %vm1862_vm13, %v1896_v29, %v1897_v33  ;;  %v1918_v20 = vrot.slane %v1914_v18, 2  ;;  %3555 = vrot.lane.b32.xlu0 %v3551_v34, %s12140_s3  ;;  %v9019_v52 = vpop.permute.xlu0 %2841  ;;  %v12203_v29 = vld [vmem:[#allocation35_spill] sm:$0xff]  ;;  %v12206_v31 = vld [vmem:[#allocation30_spill] sm:$0xff]  ;;  %s9320_s23 = sld [smem:[#allocation10 + $0x5e]] }
 0x2dc   : > { %v1926_v6 = vmul.f32 %v1924_v35, %v7672_v53  ;;  %v1281_v0 = vadd.f32 %v1279_v37, %v8787_v10  ;;  %v9007_v58 = vsel %vm1862_vm13, %v1907_v8, %v1908_v24  ;;  %v1935_v16 = vstv %s8950_s8  ;;  %v12204_v24 = vld [vmem:[#allocation42_spill] sm:$0xff]  ;;  %s9351_s8 = sld [smem:[#allocation10 + $0x82]] }
 0x2dd   : > { %v3565_v28 = vmul.f32 %v3563_v9, %v7579_v5  ;;  %v1292_v46 = vsel %vm457_vm1, %v7903_v17, %v7897_v27  ;;  %v9017_v18 = vsel %vm1862_vm13, %v1918_v20, %v1919_v48  ;;  %v3564_v54 = vmul.f32 %v3563_v9, %v7584_v49 }
 0x2de   : > { %v3576_v10 = vstv %s8963_s15  ;;  %v1306_v7 = vsel %vm1305_vm14, %v7918_v32, %v7912_v55  ;;  %v1319_v33 = vsel %vm1305_vm14, %v7933_v1, %v7927_v50  ;;  %v1925_v27 = vmul.f32 %v1924_v35, %v7498_v19  ;;  %s9353_s15 = sld [smem:[#allocation10 + $0xe4]] }
 0x2df   : > { %v1937_v17 = vmul.f32 %v1935_v16, %v7672_v53  ;;  %3570 = vrot.lane.b32.xlu1 %v3565_v28, %s12140_s3  ;;  %v1332_v44 = vsel %vm1305_vm14, %v7948_v23, %v7942_v3  ;;  %v1345_v55 = vsel %vm1305_vm14, %v7963_v14, %v7957_v61  ;;  %v1930_v32 = vrot.slane %v1926_v6, 2  ;;  %3568 = vrot.lane.b32.xlu0 %v3564_v54, %s12140_s3  ;;  %v12202_v53 = vld [vmem:[#allocation34_spill] sm:$0xff]  ;;  %v12205_v23 = vld [vmem:[#allocation43_spill] sm:$0xff]  ;;  %v9057_v61 = vpop.permute.xlu1 %2866  ;;  %v9062_v34 = vpop.permute.xlu0 %2864  ;;  %v12207_v28 = vld [vmem:[#allocation32_spill] sm:$0xff] }
 0x2e0   : > { %v1936_v50 = vmul.f32 %v1935_v16, %v7498_v19  ;;  %v1358_v1 = vsel %vm1305_vm14, %v12202_v53, %v7972_v25  ;;  %v1371_v3 = vsel %vm1305_vm14, %v12204_v24, %v12203_v29  ;;  %v1384_v37 = vsel %vm1305_vm14, %v12206_v31, %v12205_v23  ;;  %v12208_v54 = vld [vmem:[#allocation39_spill] sm:$0xff]  ;;  %v12214_v29 = vld [vmem:[#allocation46_spill] sm:$0xff] }
 0x2e1   : > { %v3578_v19 = vmul.f32 %v3576_v10, %v7579_v5  ;;  %v1308_v14 = vadd.f32 %v1306_v7, %v8898_v13  ;;  %v1321_v48 = vadd.f32 %v1319_v33, %v8920_v57  ;;  %v3577_v25 = vmul.f32 %v3576_v10, %v7584_v49 }
 0x2e2   : > { %v3589_v9 = vstv %s8991_s20  ;;  %v1334_v8 = vadd.f32 %v1332_v44, %v8934_v45  ;;  %v1347_v35 = vadd.f32 %v1345_v55, %v8966_v63  ;;  %v1929_v20 = vrot.slane %v1925_v27, 2  ;;  %s9371_s20 = sld [smem:[#allocation10 + $0xa6]] }
 0x2e3   : > { %v1941_v6 = vrot.slane %v1937_v17, 2  ;;  %3583 = vrot.lane.b32.xlu1 %v3578_v19, %s12140_s3  ;;  %v1360_v13 = vadd.f32 %v1358_v1, %v1255_v62  ;;  %v1373_v57 = vadd.f32 %v1371_v3, %v1268_v21  ;;  %v1386_v16 = vadd.f32 %v1384_v37, %v1281_v0  ;;  %3581 = vrot.lane.b32.xlu0 %v3577_v25, %s12140_s3  ;;  %v9085_v62 = vpop.permute.xlu1 %2889  ;;  %v9090_v27 = vpop.permute.xlu0 %2887  ;;  %v12216_v37 = vld [vmem:[#allocation47_spill] sm:$0xff] }
 0x2e4   : > { %v1397_v10 = vsel %vm1305_vm14, %v12208_v54, %v12207_v28  ;;  %v1294_v45 = vadd.f32 %v1292_v46, %v8799_v11  ;;  %v9081_v63 = vsel %vm1862_vm13, %v1929_v20, %v1930_v32  ;;  %v1940_v7 = vrot.slane %v1936_v50, 2  ;;  %12209 = vst [vmem:[#allocation34_spill] sm:$0xff] %v9085_v62  ;;  %12210 = vst [vmem:[#allocation35_spill] sm:$0xff] %v9090_v27  ;;  %v12222_v28 = vld [vmem:[#allocation52_spill] sm:$0xff] }
 0x2e5   : > { %v3591_v21 = vmul.f32 %v3589_v9, %v7579_v5  ;;  %v1410_v0 = vadd.f32 %v8844_v40, %v1308_v14  ;;  %v1421_v33 = vadd.f32 %v8847_v22, %v1321_v48  ;;  %v3590_v17 = vmul.f32 %v3589_v9, %v7584_v49  ;;  %v12211_v40 = vld [vmem:[#allocation40_spill] sm:$0xff] }
 0x2e6   : > { %v3602_v11 = vstv %s9023_s27  ;;  %v1399_v46 = vadd.f32 %v1397_v10, %v1294_v45  ;;  %v1432_v44 = vadd.f32 %v8858_v56, %v1334_v8  ;;  %v1443_v55 = vadd.f32 %v8861_v30, %v1347_v35  ;;  %v12212_v22 = vld [vmem:[#allocation44_spill] sm:$0xff]  ;;  %v12213_v30 = vld [vmem:[#allocation45_spill] sm:$0xff]  ;;  %v12220_v35 = vld [vmem:[#allocation50_spill] sm:$0xff]  ;;  %s9376_s27 = sld [smem:[#allocation10 + $0x108]] }
 0x2e7   : > { %v9099_v32 = vsel %vm1862_vm13, %v1940_v7, %v1941_v6  ;;  %3596 = vrot.lane.b32.xlu1 %v3591_v21, %s12140_s3  ;;  %v1508_v50 = vsel %vm457_vm1, %v12212_v22, %v12211_v40  ;;  %v1454_v53 = vadd.f32 %v8901_v4, %v1360_v13  ;;  %v1465_v1 = vadd.f32 %v8904_v42, %v1373_v57  ;;  %v9118_v31 = vpop.permute.xlu1 %2912  ;;  %v12217_v42 = vld [vmem:[#allocation48_spill] sm:$0xff]  ;;  %v9125_v14 = vpop.permute.xlu0 %2910  ;;  %v12219_v8 = vld [vmem:[#allocation49_spill] sm:$0xff] }
 0x2e8   : > { %v1476_v56 = vadd.f32 %v8912_v36, %v1386_v16  ;;  %3594 = vrot.lane.b32.xlu0 %v3590_v17, %s12140_s3  ;;  %v1531_v24 = vsel %vm457_vm1, %v12214_v29, %v12213_v30  ;;  %v2314_v3 = vstv %s9033_s28  ;;  %v2318_v23 = vstv %s9043_s29  ;;  %12215 = vst [vmem:[#allocation42_spill] sm:$0xff] %v9118_v31  ;;  %12218 = vst [vmem:[#allocation43_spill] sm:$0xff] %v9125_v14  ;;  %v12221_v16 = vld [vmem:[#allocation51_spill] sm:$0xff]  ;;  %v12226_v30 = vld [vmem:[#allocation54_spill] sm:$0xff]  ;;  %s9399_s28 = sld [smem:[#allocation10 + $0xca]] }
 0x2e9   : > { %v3604_v4 = vmul.f32 %v3602_v11, %v7579_v5  ;;  %v1554_v36 = vsel %vm457_vm1, %v12217_v42, %v12216_v37  ;;  %v2322_v19 = vstv %s9055_s9  ;;  %v3603_v48 = vmul.f32 %v3602_v11, %v7584_v49  ;;  %v12229_v37 = vld [vmem:[#allocation57_spill] sm:$0xff]  ;;  %v12230_v42 = vld [vmem:[#allocation58_spill] sm:$0xff]  ;;  %s9417_s29 = sld [smem:[#allocation10 + $0xee]] }
 0x2ea   : > { %v3615_v25 = vstv %s9066_s0  ;;  %v1510_v9 = vadd.f32 %v1508_v50, %v1410_v0  ;;  %v1577_v20 = vsel %vm457_vm1, %v12220_v35, %v12219_v8  ;;  %v1487_v6 = vadd.f32 %v8915_v39, %v1399_v46  ;;  %v12225_v50 = vld [vmem:[#allocation53_spill] sm:$0xff]  ;;  %s9433_s9 = sld [smem:[#allocation10 + $0xf]] }
 0x2eb   : > { %v2326_v13 = vstv %s9070_s26  ;;  %3609 = vrot.lane.b32.xlu1 %v3604_v4, %s12149_s10  ;;  %v1533_v57 = vadd.f32 %v1531_v24, %v1421_v33  ;;  %v1600_v54 = vsel %vm457_vm1, %v12222_v28, %v12221_v16  ;;  %v9141_v10 = vmul.f32 %v2314_v3, %v7533_v26  ;;  %v9155_v0 = vpop.permute.xlu1 %2935  ;;  %v9161_v46 = vpop.permute.xlu0 %2933  ;;  %v12233_v35 = vld [vmem:[#allocation61_spill] sm:$0xff]  ;;  %v12235_v16 = vld [vmem:[#allocation63_spill] sm:$0xff]  ;;  %v12236_v28 = vld [vmem:[#allocation64_spill] sm:$0xff]  ;;  %s9441_s0 = sld [smem:[#allocation10 + $0x112]] }
 0x2ec   : > { %v2330_v45 = vstv %s9076_s25  ;;  %3607 = vrot.lane.b32.xlu0 %v3603_v48, %s12149_s10  ;;  %v1556_v7 = vadd.f32 %v1554_v36, %v1432_v44  ;;  %v9148_v39 = vmul.f32 %v2318_v23, %v7533_v26  ;;  %v9151_v21 = vmul.f32 %v2322_v19, %v7533_v26  ;;  %12223 = vst [vmem:[#allocation30_spill] sm:$0xff] %v9155_v0  ;;  %v12228_v23 = vld [vmem:[#allocation56_spill] sm:$0xff]  ;;  %v12231_v48 = vld [vmem:[#allocation59_spill] sm:$0xff]  ;;  %v12279_v0 = vld [vmem:[#allocation86_spill] sm:$0xff]  ;;  %s9467_s26 = sld [smem:[#allocation10 + $0x17]] }
 0x2ed   : > { %v3617_v33 = vmul.f32 %v3615_v25, %v7579_v5  ;;  %v1579_v17 = vadd.f32 %v1577_v20, %v1443_v55  ;;  %v9159_v11 = vmul.f32 %v2326_v13, %v7533_v26  ;;  %12224 = vst [vmem:[#allocation32_spill] sm:$0xff] %v9161_v46  ;;  %v3616_v44 = vmul.f32 %v3615_v25, %v7584_v49  ;;  %v12227_v55 = vld [vmem:[#allocation55_spill] sm:$0xff]  ;;  %v12232_v25 = vld [vmem:[#allocation60_spill] sm:$0xff]  ;;  %v12234_v20 = vld [vmem:[#allocation62_spill] sm:$0xff]  ;;  %s9469_s25 = sld [smem:[#allocation10 + $0x33]] }
 0x2ee   : > { %v3628_v40 = vstv %s9094_s18  ;;  %v1602_v22 = vadd.f32 %v1600_v54, %v1454_v53  ;;  %v1623_v29 = vsel %vm457_vm1, %v12226_v30, %v12225_v50  ;;  %v9171_v24 = vmul.f32 %v2330_v45, %v7533_v26  ;;  %v12239_v30 = vld [vmem:[#allocation66_spill] sm:$0xff]  ;;  %s9493_s18 = sld [smem:[#allocation10 + $0x3b]] }
 0x2ef   : > { %v2334_v3 = vstv %s9083_s30  ;;  %3622 = vrot.lane.b32.xlu1 %v3617_v33, %s12149_s10  ;;  %v1646_v4 = vsel %vm457_vm1, %v12228_v23, %v12227_v55  ;;  %v1669_v36 = vsel %vm457_vm1, %v12230_v42, %v12229_v37  ;;  %v2338_v53 = vstv %s9101_s4  ;;  %v9195_v45 = vpop.permute.xlu1 %2958  ;;  %v9201_v23 = vpop.permute.xlu0 %2956  ;;  %s9475_s30 = sld [smem:[#allocation10 + $0x57]] }
 0x2f0   : > { %v2342_v19 = vstv %s9110_s17  ;;  %3620 = vrot.lane.b32.xlu0 %v3616_v44, %s12149_s10  ;;  %v1692_v8 = vsel %vm1305_vm14, %v12232_v25, %v12231_v48  ;;  %v1715_v13 = vsel %vm1305_vm14, %v12234_v20, %v12233_v35  ;;  %v1738_v54 = vsel %vm1305_vm14, %v12236_v28, %v12235_v16  ;;  %12237 = vst [vmem:[#allocation39_spill] sm:$0xff] %v9195_v45  ;;  %v12238_v44 = vld [vmem:[#allocation65_spill] sm:$0xff]  ;;  %v12244_v28 = vld [vmem:[#allocation70_spill] sm:$0xff]  ;;  %s9519_s4 = sld [smem:[#allocation10 + $0x5f]] }
 0x2f1   : > { %v3630_v33 = vmul.f32 %v3628_v40, %v7579_v5  ;;  %v1625_v50 = vadd.f32 %v1623_v29, %v1465_v1  ;;  %v1761_v55 = vsel %vm1305_vm14, %v12239_v30, %v12238_v44  ;;  %12240 = vst [vmem:[#allocation40_spill] sm:$0xff] %v9201_v23  ;;  %v3629_v37 = vmul.f32 %v3628_v40, %v7584_v49  ;;  %v12249_v30 = vld [vmem:[#allocation73_spill] sm:$0xff]  ;;  %v12270_v23 = vld [vmem:[#allocation83_spill] sm:$0xff]  ;;  %s9537_s17 = sld [smem:[#allocation10 + $0x83]] }
 0x2f2   : > { %v3641_v42 = vstv %s9129_s11  ;;  %v1648_v48 = vadd.f32 %v1646_v4, %v1476_v56  ;;  %v1671_v25 = vadd.f32 %v1669_v36, %v1487_v6  ;;  %v9208_v35 = vmul.f32 %v2334_v3, %v7533_v26  ;;  %v12241_v4 = vld [vmem:[#allocation67_spill] sm:$0xff]  ;;  %v12242_v6 = vld [vmem:[#allocation68_spill] sm:$0xff]  ;;  %v12243_v36 = vld [vmem:[#allocation69_spill] sm:$0xff]  ;;  %s9545_s11 = sld [smem:[#allocation10 + $0x7b]] }
 0x2f3   : > { %v9211_v1 = vmul.f32 %v2338_v53, %v7533_v26  ;;  %3635 = vrot.lane.b32.xlu1 %v3630_v33, %s12149_s10  ;;  %v1694_v29 = vadd.f32 %v1692_v8, %v1510_v9  ;;  %v1717_v20 = vadd.f32 %v1715_v13, %v1533_v57  ;;  %v1740_v16 = vadd.f32 %v1738_v54, %v1556_v7  ;;  %v9224_v44 = vpop.permute.xlu1 %2981  ;;  %v9229_v8 = vpop.permute.xlu0 %2979  ;;  %v12248_v54 = vld [vmem:[#allocation72_spill] sm:$0xff] }
 0x2f4   : > { %v9215_v40 = vmul.f32 %v2342_v19, %v7533_v26  ;;  %3633 = vrot.lane.b32.xlu0 %v3629_v37, %s12149_s10  ;;  %v1763_v56 = vadd.f32 %v1761_v55, %v1579_v17  ;;  %v1784_v3 = vsel %vm1305_vm14, %v12242_v6, %v12241_v4  ;;  %v1807_v53 = vsel %vm1305_vm14, %v12244_v28, %v12243_v36  ;;  %v12247_v17 = vld [vmem:[#allocation71_spill] sm:$0xff]  ;;  %v12250_v55 = vld [vmem:[#allocation74_spill] sm:$0xff] }
 0x2f5   : > { %12245 = vst [vmem:[#allocation44_spill] sm:$0xff] %v9224_v44  ;;  %v3643_v9 = vmul.f32 %v3641_v42, %v7579_v5  ;;  %v2554_v57 = vstv %s9144_s14  ;;  %v2565_v7 = vstv %s9153_s2  ;;  %12246 = vst [vmem:[#allocation45_spill] sm:$0xff] %v9229_v8  ;;  %v3642_v19 = vmul.f32 %v3641_v42, %v7584_v49  ;;  %v12251_v4 = vld [vmem:[#allocation31_spill] sm:$0xff]  ;;  %s9556_s14 = sld [smem:[#allocation10 + $0x9f]] }
 0x2f6   : > { %v3654_v13 = vstv %s9165_s5  ;;  %v1830_v33 = vsel %vm1305_vm14, %v12248_v54, %v12247_v17  ;;  %v1853_v37 = vsel %vm1305_vm14, %v12250_v55, %v12249_v30  ;;  %v2556_v6 = vmul.f32 %v2554_v57, %v12251_v4  ;;  %s9567_s2 = sld [smem:[#allocation10 + $0xa7]] }
 0x2f7   : > { %v2567_v36 = vmul.f32 %v2565_v7, %v12251_v4  ;;  %3648 = vrot.lane.b32.xlu1 %v3643_v9, %s12149_s10  ;;  %v1786_v42 = vadd.f32 %v1784_v3, %v1602_v22  ;;  %v1809_v28 = vadd.f32 %v1807_v53, %v1625_v50  ;;  %v1867_v8 = vadd.f32 %v8956_v43, %v1694_v29  ;;  %v9254_v55 = vpop.permute.xlu1 %3004  ;;  %v9259_v43 = vpop.permute.xlu0 %3002  ;;  %s9587_s5 = sld [smem:[#allocation10 + $0xcb]] }
 0x2f8   : > { %v1878_v44 = vadd.f32 %v8969_v60, %v1717_v20  ;;  %3646 = vrot.lane.b32.xlu0 %v3642_v19, %s12149_s10  ;;  %v2555_v17 = vmul.f32 %v2554_v57, %v7533_v26  ;;  %v2566_v54 = vmul.f32 %v2565_v7, %v7533_v26  ;;  %v2576_v30 = vstv %s9193_s6  ;;  %12252 = vst [vmem:[#allocation46_spill] sm:$0xff] %v9254_v55  ;;  %v12254_v7 = vld [vmem:[#allocation75_spill] sm:$0xff]  ;;  %v12255_v19 = vld [vmem:[#allocation76_spill] sm:$0xff]  ;;  %s9608_s6 = sld [smem:[#allocation10 + $0xef]] }
 0x2f9   : > { %v3656_v9 = vmul.f32 %v3654_v13, %v7579_v5  ;;  %v1832_v22 = vadd.f32 %v1830_v33, %v1648_v48  ;;  %v1855_v50 = vadd.f32 %v1853_v37, %v1671_v25  ;;  %12253 = vst [vmem:[#allocation47_spill] sm:$0xff] %v9259_v43  ;;  %v3655_v60 = vmul.f32 %v3654_v13, %v7584_v49 }
 0x2fa   : > { %v3667_v29 = vstv %s9205_s13  ;;  %v1889_v20 = vadd.f32 %v8995_v59, %v1740_v16  ;;  %v1900_v3 = vadd.f32 %v9001_v15, %v1763_v56  ;;  %v2560_v53 = vrot.slane %v2556_v6, 1  ;;  %s9625_s13 = sld [smem:[#allocation10 + $0xc3]] }
 0x2fb   : > { %v2571_v57 = vrot.slane %v2567_v36, 1  ;;  %3661 = vrot.lane.b32.xlu1 %v3656_v9, %s12149_s10  ;;  %v1965_v48 = vsel %vm457_vm1, %v12255_v19, %v12254_v7  ;;  %v9272_v25 = vadd.f32 %v9007_v58, %v1786_v42  ;;  %v2577_v13 = vmul.f32 %v2576_v30, %v7533_v26  ;;  %v9280_v56 = vpop.permute.xlu1 %3115  ;;  %v9291_v36 = vpop.permute.xlu0 %3113 }
 0x2fc   : > { %v2578_v33 = vmul.f32 %v2576_v30, %v12251_v4  ;;  %3659 = vrot.lane.b32.xlu0 %v3655_v60, %s12149_s10  ;;  %v9278_v59 = vadd.f32 %v9017_v18, %v1809_v28  ;;  %v2559_v15 = vrot.slane %v2555_v17, 1  ;;  %v2570_v16 = vrot.slane %v2566_v54, 1  ;;  %12256 = vst [vmem:[#allocation48_spill] sm:$0xff] %v9280_v56  ;;  %12257 = vst [vmem:[#allocation49_spill] sm:$0xff] %v9291_v36  ;;  %v12258_v17 = vld [vmem:[#allocation77_spill] sm:$0xff]  ;;  %v12259_v54 = vld [vmem:[#allocation78_spill] sm:$0xff] }
 0x2fd   : > { %v3669_v37 = vmul.f32 %v3667_v29, %v7579_v5  ;;  %v9286_v58 = vadd.f32 %v9081_v63, %v1832_v22  ;;  %v9289_v6 = vadd.f32 %v9099_v32, %v1855_v50  ;;  %v3668_v18 = vmul.f32 %v3667_v29, %v7584_v49  ;;  %v12261_v29 = vld [vmem:[#allocation80_spill] sm:$0xff]  ;;  %v12267_v36 = vld [vmem:[#allocation41_spill] sm:$0xff] }
 0x2fe   : > { %v3680_v42 = vstv %s9233_s21  ;;  %v9295_v28 = vadd.f32 %v1965_v48, %v1867_v8  ;;  %v1988_v30 = vsel %vm457_vm1, %v12259_v54, %v12258_v17  ;;  %v9301_v9 = vsel %vm768_vm0, %v2559_v15, %v2560_v53  ;;  %v12260_v8 = vld [vmem:[#allocation79_spill] sm:$0xff]  ;;  %v12266_v17 = vld [vmem:[#allocation33_spill] sm:$0xff]  ;;  %s9636_s21 = sld [smem:[#allocation10 + $0x113]] }
 0x2ff   : > { %v9304_v63 = vsel %vm768_vm0, %v2570_v16, %v2571_v57  ;;  %3674 = vrot.lane.b32.xlu1 %v3669_v37, %s12149_s10  ;;  %v2581_v32 = vrot.slane %v2577_v13, 1  ;;  %v2582_v22 = vrot.slane %v2578_v33, 1  ;;  %v2587_v50 = vstv %s9243_s1  ;;  %v9316_v19 = vpop.permute.xlu1 %3138  ;;  %v12263_v13 = vld [vmem:[#allocation81_spill] sm:$0xff]  ;;  %v12264_v33 = vld [vmem:[#allocation82_spill] sm:$0xff]  ;;  %v9325_v16 = vpop.permute.xlu0 %3136  ;;  %s9656_s1 = sld [smem:[#allocation10 + $0x19]] }
 0x300   : > { %v2598_v60 = vstv %s9248_s7  ;;  %3672 = vrot.lane.b32.xlu0 %v3668_v18, %s12149_s10  ;;  %v2011_v7 = vsel %vm457_vm1, %v12261_v29, %v12260_v8  ;;  %v2589_v53 = vmul.f32 %v2587_v50, %v12251_v4  ;;  %12262 = vst [vmem:[#allocation50_spill] sm:$0xff] %v9316_v19  ;;  %v3682_v57 = vmul.f32 %v3680_v42, %v7579_v5  ;;  %s9680_s7 = sld [smem:[#allocation10 + $0x3d]] }
 0x301   : > { %v3794_v48 = vstv %s9257_s22  ;;  %v2034_v15 = vsel %vm457_vm1, %v12264_v33, %v12263_v13  ;;  %12265 = vst [vmem:[#allocation51_spill] sm:$0xff] %v9325_v16  ;;  %v3681_v37 = vmul.f32 %v3680_v42, %v7584_v49  ;;  %v3693_v18 = vstv %s9263_s24  ;;  %s9682_s22 = sld [smem:[#allocation10 + $0xe7]] }
 0x302   : > { %v3798_v54 = vmul.f32 %v3794_v48, %v12266_v17  ;;  %v9330_v8 = vadd.f32 %v1988_v30, %v1878_v44  ;;  %v2588_v29 = vmul.f32 %v2587_v50, %v7533_v26  ;;  %v2599_v19 = vmul.f32 %v2598_v60, %v7533_v26  ;;  %s9704_s24 = sld [smem:[#allocation10 + $0x61]] }
 0x303   : > { %3687 = vrot.lane.b32.xlu1 %v3682_v57, %s12149_s10  ;;  %v3797_v56 = vmul.f32 %v3794_v48, %v12267_v36  ;;  %v9336_v43 = vadd.f32 %v2011_v7, %v1889_v20  ;;  %v9339_v13 = vsel %vm768_vm0, %v2581_v32, %v2582_v22  ;;  %v2600_v42 = vmul.f32 %v2598_v60, %v12251_v4  ;;  %v9346_v50 = vpop.permute.xlu1 %3161  ;;  %v9355_v22 = vpop.permute.xlu0 %3159 }
 0x304   : > { %3685 = vrot.lane.b32.xlu0 %v3681_v37, %s12149_s10  ;;  %v3796_v44 = vmul.f32 %v3794_v48, %v7579_v5  ;;  %v9344_v30 = vadd.f32 %v2034_v15, %v1900_v3  ;;  %12268 = vst [vmem:[#allocation52_spill] sm:$0xff] %v9346_v50  ;;  %v3695_v33 = vmul.f32 %v3693_v18, %v7579_v5  ;;  %v3817_v20 = vstv %s9283_s16  ;;  %s9727_s16 = sld [smem:[#allocation10 + $0x85]] }
 0x305   : > { %v3795_v57 = vmul.f32 %v3794_v48, %v7584_v49  ;;  %v2593_v32 = vrot.slane %v2589_v53, 1  ;;  %12269 = vst [vmem:[#allocation53_spill] sm:$0xff] %v9355_v22  ;;  %v3694_v60 = vmul.f32 %v3693_v18, %v7584_v49  ;;  %v3807_v7 = vrot.slane %v3798_v54, 1  ;;  %v12271_v18 = vld [vmem:[#allocation84_spill] sm:$0xff] }
 0x306   : > { %v3821_v3 = vmul.f32 %v3817_v20, %v12266_v17  ;;  %v2592_v15 = vrot.slane %v2588_v29, 1  ;;  %v2603_v37 = vrot.slane %v2599_v19, 1  ;;  %v3804_v50 = vrot.slane %v3797_v56, 1 }
 0x307   : > { %3700 = vrot.lane.b32.xlu1 %v3695_v33, %s12149_s10  ;;  %v3820_v48 = vmul.f32 %v3817_v20, %v12267_v36  ;;  %v2604_v16 = vrot.slane %v2600_v42, 1  ;;  %v2609_v55 = vstv %s9309_s19  ;;  %v3806_v53 = vrot.slane %v3796_v44, 1  ;;  %v9367_v45 = vpop.permute.xlu1 %3184  ;;  %v9378_v42 = vpop.permute.xlu0 %3182  ;;  %s9734_s19 = sld [smem:[#allocation10 + $0x10b]] }
 0x308   : > { %3698 = vrot.lane.b32.xlu0 %v3694_v60, %s12149_s10  ;;  %v3819_v22 = vmul.f32 %v3817_v20, %v7579_v5  ;;  %v2057_v54 = vsel %vm457_vm1, %v12271_v18, %v12270_v23  ;;  %12272 = vst [vmem:[#allocation54_spill] sm:$0xff] %v9367_v45  ;;  %v3803_v29 = vrot.slane %v3795_v57, 1  ;;  %v3818_v19 = vmul.f32 %v3817_v20, %v7584_v49 }
 0x309   : > { %v3840_v33 = vstv %s9320_s23  ;;  %v9374_v56 = vsel %vm768_vm0, %v2592_v15, %v2593_v32  ;;  %12273 = vst [vmem:[#allocation55_spill] sm:$0xff] %v9378_v42  ;;  %v3808_v44 = vsel %vm768_vm0, %v3806_v53, %v3807_v7  ;;  %v3830_v60 = vrot.slane %v3821_v3, 1  ;;  %s9750_s23 = sld [smem:[#allocation10 + $0xa9]] }
 0x30a   : > { %v3844_v23 = vmul.f32 %v3840_v33, %v12266_v17  ;;  %v2610_v57 = vmul.f32 %v2609_v55, %v7533_v26  ;;  %v3805_v20 = vsel %vm768_vm0, %v3803_v29, %v3804_v50  ;;  %v3827_v18 = vrot.slane %v3820_v48, 1 }
 0x30b   : > { %3811 = vrot.lane.b32.xlu1 %v3808_v44, %s12140_s3  ;;  %v3843_v32 = vmul.f32 %v3840_v33, %v12267_v36  ;;  %v9387_v15 = vadd.f32 %v2057_v54, %v9272_v25  ;;  %v2611_v42 = vmul.f32 %v2609_v55, %v12251_v4  ;;  %v3829_v7 = vrot.slane %v3819_v22, 1  ;;  %v9395_v45 = vpop.permute.xlu1 %3207  ;;  %v9402_v54 = vpop.permute.xlu0 %3205 }
 0x30c   : > { %3809 = vrot.lane.b32.xlu0 %v3805_v20, %s12140_s3  ;;  %v3842_v3 = vmul.f32 %v3840_v33, %v7579_v5  ;;  %v9393_v53 = vsel %vm768_vm0, %v2603_v37, %v2604_v16  ;;  %12274 = vst [vmem:[#allocation56_spill] sm:$0xff] %v9395_v45  ;;  %v3826_v44 = vrot.slane %v3818_v19, 1  ;;  %v3841_v50 = vmul.f32 %v3840_v33, %v7584_v49 }
 0x30d   : > { %v3863_v48 = vstv %s9351_s8  ;;  %v2620_v25 = vstv %s9353_s15  ;;  %12275 = vst [vmem:[#allocation57_spill] sm:$0xff] %v9402_v54  ;;  %v3831_v55 = vsel %vm768_vm0, %v3829_v7, %v3830_v60  ;;  %v3853_v29 = vrot.slane %v3844_v23, 1  ;;  %s9775_s8 = sld [smem:[#allocation10 + $0xcd]] }
 0x30e   : > { %v3867_v22 = vmul.f32 %v3863_v48, %v12266_v17  ;;  %v2614_v20 = vrot.slane %v2610_v57, 1  ;;  %v3828_v16 = vsel %vm768_vm0, %v3826_v44, %v3827_v18  ;;  %v3850_v37 = vrot.slane %v3843_v32, 1  ;;  %s9796_s15 = sld [smem:[#allocation10 + $0xf1]] }
 0x30f   : > { %3834 = vrot.lane.b32.xlu1 %v3831_v55, %s12140_s3  ;;  %v3866_v19 = vmul.f32 %v3863_v48, %v12267_v36  ;;  %v2615_v33 = vrot.slane %v2611_v42, 1  ;;  %v2622_v45 = vmul.f32 %v2620_v25, %v12251_v4  ;;  %v3852_v54 = vrot.slane %v3842_v3, 1  ;;  %v9413_v7 = vpop.permute.xlu1 %3230  ;;  %v9420_v32 = vpop.permute.xlu0 %3228 }
 0x310   : > { %3832 = vrot.lane.b32.xlu0 %v3828_v16, %s12140_s3  ;;  %v3865_v60 = vmul.f32 %v3863_v48, %v7579_v5  ;;  %v2621_v23 = vmul.f32 %v2620_v25, %v7533_v26  ;;  %12276 = vst [vmem:[#allocation58_spill] sm:$0xff] %v9413_v7  ;;  %v3849_v57 = vrot.slane %v3841_v50, 1  ;;  %v3864_v55 = vmul.f32 %v3863_v48, %v7584_v49  ;;  %v12278_v16 = vld [vmem:[#allocation85_spill] sm:$0xff] }
 0x311   : > { %v3886_v46 = vstv %s9371_s20  ;;  %v2631_v18 = vstv %s9376_s27  ;;  %12277 = vst [vmem:[#allocation59_spill] sm:$0xff] %v9420_v32  ;;  %v3854_v42 = vsel %vm768_vm0, %v3852_v54, %v3853_v29  ;;  %v3876_v44 = vrot.slane %v3867_v22, 1  ;;  %s9819_s20 = sld [smem:[#allocation10 + $0x115]] }
 0x312   : > { %v3890_v3 = vmul.f32 %v3886_v46, %v12266_v17  ;;  %v2080_v25 = vsel %vm457_vm1, %v12279_v0, %v12278_v16  ;;  %v3851_v50 = vsel %vm768_vm0, %v3849_v57, %v3850_v37  ;;  %v3873_v48 = vrot.slane %v3866_v19, 1  ;;  %s9837_s27 = sld [smem:[#allocation10 + $0x12]] }
 0x313   : > { %3857 = vrot.lane.b32.xlu1 %v3854_v42, %s12140_s3  ;;  %v3889_v7 = vmul.f32 %v3886_v46, %v12267_v36  ;;  %v9431_v14 = vsel %vm768_vm0, %v2614_v20, %v2615_v33  ;;  %v2626_v32 = vrot.slane %v2622_v45, 1  ;;  %v3875_v54 = vrot.slane %v3865_v60, 1  ;;  %v9437_v0 = vpop.permute.xlu1 %3253  ;;  %v9444_v33 = vpop.permute.xlu0 %3251 }
 0x314   : > { %3855 = vrot.lane.b32.xlu0 %v3851_v50, %s12140_s3  ;;  %v3888_v29 = vmul.f32 %v3886_v46, %v7579_v5  ;;  %v2625_v22 = vrot.slane %v2621_v23, 1  ;;  %12280 = vst [vmem:[#allocation60_spill] sm:$0xff] %v9437_v0  ;;  %v3872_v42 = vrot.slane %v3864_v55, 1  ;;  %v3887_v37 = vmul.f32 %v3886_v46, %v7584_v49  ;;  %12281 = vst [vmem:[#allocation61_spill] sm:$0xff] %v9444_v33 }
 0x315   : > { %v3909_v19 = vstv %s9399_s28  ;;  %v2633_v20 = vmul.f32 %v2631_v18, %v12251_v4  ;;  %v3877_v45 = vsel %vm768_vm0, %v3875_v54, %v3876_v44  ;;  %v3899_v57 = vrot.slane %v3890_v3, 1  ;;  %v12282_v54 = vld [vmem:[#allocation87_spill] sm:$0xff]  ;;  %s9848_s28 = sld [smem:[#allocation10 + $0x1a]] }
 0x316   : > { %v3913_v60 = vmul.f32 %v3909_v19, %v12266_v17  ;;  %v2632_v23 = vmul.f32 %v2631_v18, %v7533_v26  ;;  %v3874_v55 = vsel %vm768_vm0, %v3872_v42, %v3873_v48  ;;  %v3896_v46 = vrot.slane %v3889_v7, 1  ;;  %v12283_v18 = vld [vmem:[#allocation88_spill] sm:$0xff] }
 0x317   : > { %3880 = vrot.lane.b32.xlu1 %v3877_v45, %s12140_s3  ;;  %v3912_v16 = vmul.f32 %v3909_v19, %v12267_v36  ;;  %v9453_v50 = vadd.f32 %v2080_v25, %v9278_v59  ;;  %v9456_v33 = vsel %vm768_vm0, %v2625_v22, %v2626_v32  ;;  %v3898_v44 = vrot.slane %v3888_v29, 1  ;;  %v9463_v0 = vpop.permute.xlu1 %3276  ;;  %v9471_v32 = vpop.permute.xlu0 %3274 }
 0x318   : > { %3878 = vrot.lane.b32.xlu0 %v3874_v55, %s12140_s3  ;;  %v3911_v3 = vmul.f32 %v3909_v19, %v7579_v5  ;;  %v2103_v45 = vsel %vm457_vm1, %v12283_v18, %v12282_v54  ;;  %12284 = vst [vmem:[#allocation62_spill] sm:$0xff] %v9463_v0  ;;  %v3895_v7 = vrot.slane %v3887_v37, 1  ;;  %v3910_v48 = vmul.f32 %v3909_v19, %v7584_v49  ;;  %v12286_v18 = vld [vmem:[#allocation89_spill] sm:$0xff] }
 0x319   : > { %v3932_v42 = vstv %s9417_s29  ;;  %v2637_v59 = vrot.slane %v2633_v20, 1  ;;  %12285 = vst [vmem:[#allocation63_spill] sm:$0xff] %v9471_v32  ;;  %v3900_v25 = vsel %vm768_vm0, %v3898_v44, %v3899_v57  ;;  %v3922_v29 = vrot.slane %v3913_v60, 1  ;;  %v12287_v32 = vld [vmem:[#allocation90_spill] sm:$0xff]  ;;  %s9878_s29 = sld [smem:[#allocation10 + $0x3e]] }
 0x31a   : > { %v3936_v22 = vmul.f32 %v3932_v42, %v12266_v17  ;;  %v2636_v55 = vrot.slane %v2632_v23, 1  ;;  %v3897_v37 = vsel %vm768_vm0, %v3895_v7, %v3896_v46  ;;  %v3919_v19 = vrot.slane %v3912_v16, 1 }
 0x31b   : > { %3903 = vrot.lane.b32.xlu1 %v3900_v25, %s12140_s3  ;;  %v3935_v20 = vmul.f32 %v3932_v42, %v12267_v36  ;;  %v9481_v54 = vadd.f32 %v2103_v45, %v9286_v58  ;;  %v2126_v57 = vsel %vm457_vm1, %v12287_v32, %v12286_v18  ;;  %v3921_v60 = vrot.slane %v3911_v3, 1  ;;  %v9489_v0 = vpop.permute.xlu1 %3299  ;;  %v9498_v45 = vpop.permute.xlu0 %3297 }
 0x31c   : > { %3901 = vrot.lane.b32.xlu0 %v3897_v37, %s12140_s3  ;;  %v3934_v23 = vmul.f32 %v3932_v42, %v7579_v5  ;;  %v3010_v44 = vstv %s9433_s9  ;;  %12288 = vst [vmem:[#allocation64_spill] sm:$0xff] %v9489_v0  ;;  %v3918_v25 = vrot.slane %v3910_v48, 1  ;;  %v3933_v46 = vmul.f32 %v3932_v42, %v7584_v49  ;;  %12289 = vst [vmem:[#allocation65_spill] sm:$0xff] %v9498_v45  ;;  %s9883_s9 = sld [smem:[#allocation10 + $0x36]] }
 0x31d   : > { %v3955_v16 = vstv %s9441_s0  ;;  %v9496_v58 = vsel %vm768_vm0, %v2636_v55, %v2637_v59  ;;  %v3923_v7 = vsel %vm768_vm0, %v3921_v60, %v3922_v29  ;;  %v3945_v32 = vrot.slane %v3936_v22, 1  ;;  %s9899_s0 = sld [smem:[#allocation10 + $0x5a]] }
 0x31e   : > { %v3959_v3 = vmul.f32 %v3955_v16, %v12266_v17  ;;  %v9503_v37 = vadd.f32 %v2126_v57, %v9289_v6  ;;  %v3920_v48 = vsel %vm768_vm0, %v3918_v25, %v3919_v19  ;;  %v3942_v42 = vrot.slane %v3935_v20, 1  ;;  %v12290_v6 = vld [vmem:[#allocation91_spill] sm:$0xff]  ;;  %v12291_v57 = vld [vmem:[#allocation92_spill] sm:$0xff] }
 0x31f   : > { %3926 = vrot.lane.b32.xlu1 %v3923_v7, %s12140_s3  ;;  %v3958_v59 = vmul.f32 %v3955_v16, %v12267_v36  ;;  %v3011_v55 = vmul.f32 %v3010_v44, %v7533_v26  ;;  %v3012_v29 = vmul.f32 %v3010_v44, %v12251_v4  ;;  %v3944_v22 = vrot.slane %v3934_v23, 1  ;;  %v9515_v7 = vpop.permute.xlu1 %3322  ;;  %v9522_v0 = vpop.permute.xlu0 %3320 }
 0x320   : > { %3924 = vrot.lane.b32.xlu0 %v3920_v48, %s12140_s3  ;;  %v3957_v18 = vmul.f32 %v3955_v16, %v7579_v5  ;;  %v2149_v60 = vsel %vm1305_vm14, %v12291_v57, %v12290_v6  ;;  %12292 = vst [vmem:[#allocation66_spill] sm:$0xff] %v9515_v7  ;;  %v3941_v19 = vrot.slane %v3933_v46, 1  ;;  %v3956_v20 = vmul.f32 %v3955_v16, %v7584_v49 }
 0x321   : > { %v3978_v25 = vstv %s9467_s26  ;;  %v3021_v45 = vstv %s9469_s25  ;;  %12293 = vst [vmem:[#allocation67_spill] sm:$0xff] %v9522_v0  ;;  %v3946_v44 = vsel %vm768_vm0, %v3944_v22, %v3945_v32  ;;  %v3968_v23 = vrot.slane %v3959_v3, 1  ;;  %s9910_s26 = sld [smem:[#allocation10 + $0x62]] }
 0x322   : > { %v3982_v48 = vmul.f32 %v3978_v25, %v12266_v17  ;;  %v3032_v31 = vstv %s9475_s30  ;;  %v3943_v6 = vsel %vm768_vm0, %v3941_v19, %v3942_v42  ;;  %v3965_v46 = vrot.slane %v3958_v59, 1  ;;  %s9931_s25 = sld [smem:[#allocation10 + $0x7e]] }
 0x323   : > { %3949 = vrot.lane.b32.xlu1 %v3946_v44, %s12140_s3  ;;  %v3981_v16 = vmul.f32 %v3978_v25, %v12267_v36  ;;  %v2151_v57 = vadd.f32 %v2149_v60, %v9295_v28  ;;  %v3015_v7 = vrot.slane %v3011_v55, 2  ;;  %v3967_v0 = vrot.slane %v3957_v18, 1  ;;  %v9533_v22 = vpop.permute.xlu1 %3345  ;;  %v9540_v59 = vpop.permute.xlu0 %3343  ;;  %s9942_s30 = sld [smem:[#allocation10 + $0x86]] }
 0x324   : > { %3947 = vrot.lane.b32.xlu0 %v3943_v6, %s12140_s3  ;;  %v3980_v32 = vmul.f32 %v3978_v25, %v7579_v5  ;;  %v3016_v3 = vrot.slane %v3012_v29, 2  ;;  %12294 = vst [vmem:[#allocation68_spill] sm:$0xff] %v9533_v22  ;;  %v3964_v27 = vrot.slane %v3956_v20, 1  ;;  %v3979_v62 = vmul.f32 %v3978_v25, %v7584_v49  ;;  %12295 = vst [vmem:[#allocation69_spill] sm:$0xff] %v9540_v59  ;;  %v12298_v59 = vld [vmem:[#allocation93_spill] sm:$0xff] }
 0x325   : > { %v4001_v44 = vstv %s9493_s18  ;;  %v3022_v42 = vmul.f32 %v3021_v45, %v7533_v26  ;;  %v3969_v28 = vsel %vm768_vm0, %v3967_v0, %v3968_v23  ;;  %v3991_v55 = vrot.slane %v3982_v48, 1  ;;  %s9957_s18 = sld [smem:[#allocation10 + $0xa2]] }
 0x326   : > { %v4005_v18 = vmul.f32 %v4001_v44, %v12266_v17  ;;  %v3023_v60 = vmul.f32 %v3021_v45, %v12251_v4  ;;  %v3966_v29 = vsel %vm768_vm0, %v3964_v27, %v3965_v46  ;;  %v3988_v19 = vrot.slane %v3981_v16, 1 }
 0x327   : > { %3972 = vrot.lane.b32.xlu1 %v3969_v28, %s12140_s3  ;;  %v4004_v20 = vmul.f32 %v4001_v44, %v12267_v36  ;;  %v9551_v25 = vadd.f32 %v9141_v10, %v2151_v57  ;;  %v9554_v0 = vmul.f32 %v3032_v31, %v7533_v26  ;;  %v3990_v45 = vrot.slane %v3980_v32, 1  ;;  %v9563_v27 = vpop.permute.xlu1 %3368  ;;  %v9569_v57 = vpop.permute.xlu0 %3366 }
 0x328   : > { %3970 = vrot.lane.b32.xlu0 %v3966_v29, %s12140_s3  ;;  %v4003_v23 = vmul.f32 %v4001_v44, %v7579_v5  ;;  %v9561_v48 = vsel %vm1862_vm13, %v3015_v7, %v3016_v3  ;;  %12296 = vst [vmem:[#allocation70_spill] sm:$0xff] %v9563_v27  ;;  %v3987_v6 = vrot.slane %v3979_v62, 1  ;;  %v4002_v46 = vmul.f32 %v4001_v44, %v7584_v49  ;;  %v12299_v7 = vld [vmem:[#allocation94_spill] sm:$0xff] }
 0x329   : > { %v4024_v10 = vstv %s9519_s4  ;;  %v3026_v16 = vrot.slane %v3022_v42, 2  ;;  %12297 = vst [vmem:[#allocation71_spill] sm:$0xff] %v9569_v57  ;;  %v3992_v28 = vsel %vm768_vm0, %v3990_v45, %v3991_v55  ;;  %v4014_v29 = vrot.slane %v4005_v18, 1  ;;  %s9968_s4 = sld [smem:[#allocation10 + $0xaa]] }
 0x32a   : > { %v4028_v32 = vmul.f32 %v4024_v10, %v12266_v17  ;;  %v2172_v3 = vsel %vm1305_vm14, %v12299_v7, %v12298_v59  ;;  %v3989_v62 = vsel %vm768_vm0, %v3987_v6, %v3988_v19  ;;  %v4011_v44 = vrot.slane %v4004_v20, 1 }
 0x32b   : > { %3995 = vrot.lane.b32.xlu1 %v3992_v28, %s12149_s10  ;;  %v4027_v27 = vmul.f32 %v4024_v10, %v12267_v36  ;;  %v3027_v42 = vrot.slane %v3023_v60, 2  ;;  %v3034_v57 = vmul.f32 %v3032_v31, %v12251_v4  ;;  %v4013_v55 = vrot.slane %v4003_v23, 1  ;;  %v9583_v22 = vpop.permute.xlu1 %3391  ;;  %v9590_v20 = vpop.permute.xlu0 %3389 }
 0x32c   : > { %3993 = vrot.lane.b32.xlu0 %v3989_v62, %s12149_s10  ;;  %v4026_v18 = vmul.f32 %v4024_v10, %v7579_v5  ;;  %v3037_v45 = vrot.slane %v9554_v0, 2  ;;  %12300 = vst [vmem:[#allocation72_spill] sm:$0xff] %v9583_v22  ;;  %v4010_v59 = vrot.slane %v4002_v46, 1  ;;  %v4025_v28 = vmul.f32 %v4024_v10, %v7584_v49  ;;  %12301 = vst [vmem:[#allocation73_spill] sm:$0xff] %v9590_v20 }
 0x32d   : > { %v4047_v19 = vstv %s9537_s17  ;;  %v2174_v60 = vadd.f32 %v2172_v3, %v9330_v8  ;;  %v4015_v31 = vsel %vm768_vm0, %v4013_v55, %v4014_v29  ;;  %v4037_v23 = vrot.slane %v4028_v32, 1  ;;  %s9989_s17 = sld [smem:[#allocation10 + $0xc6]] }
 0x32e   : > { %v4051_v6 = vmul.f32 %v4047_v19, %v12266_v17  ;;  %v3043_v0 = vstv %s9545_s11  ;;  %v4012_v46 = vsel %vm768_vm0, %v4010_v59, %v4011_v44  ;;  %v4034_v10 = vrot.slane %v4027_v27, 1  ;;  %v12305_v59 = vld [vmem:[#allocation96_spill] sm:$0xff]  ;;  %s9998_s11 = sld [smem:[#allocation10 + $0xce]] }
 0x32f   : > { %4018 = vrot.lane.b32.xlu1 %v4015_v31, %s12149_s10  ;;  %v4050_v7 = vmul.f32 %v4047_v19, %v12267_v36  ;;  %v9599_v62 = vsel %vm1862_vm13, %v3026_v16, %v3027_v42  ;;  %v3038_v8 = vrot.slane %v3034_v57, 2  ;;  %v4036_v3 = vrot.slane %v4026_v18, 1  ;;  %v9604_v55 = vpop.permute.xlu1 %3414  ;;  %v9611_v44 = vpop.permute.xlu0 %3412  ;;  %v12304_v18 = vld [vmem:[#allocation95_spill] sm:$0xff] }
 0x330   : > { %12302 = vst [vmem:[#allocation74_spill] sm:$0xff] %v9599_v62  ;;  %4016 = vrot.lane.b32.xlu0 %v4012_v46, %s12149_s10  ;;  %v4049_v29 = vmul.f32 %v4047_v19, %v7579_v5  ;;  %v3054_v32 = vstv %s9556_s14  ;;  %12303 = vst [vmem:[#allocation31_spill] sm:$0xff] %v9604_v55  ;;  %v4033_v20 = vrot.slane %v4025_v28, 1  ;;  %v4048_v31 = vmul.f32 %v4047_v19, %v7584_v49  ;;  %s10015_s14 = sld [smem:[#allocation10 + $0xea]] }
 0x331   : > { %v4070_v22 = vstv %s9567_s2  ;;  %v3044_v27 = vmul.f32 %v3043_v0, %v7533_v26  ;;  %v4038_v16 = vsel %vm768_vm0, %v4036_v3, %v4037_v23  ;;  %v4060_v57 = vrot.slane %v4051_v6, 1  ;;  %s10024_s2 = sld [smem:[#allocation10 + $0xf2]] }
 0x332   : > { %v4074_v42 = vmul.f32 %v4070_v22, %v12266_v17  ;;  %v2195_v46 = vsel %vm1305_vm14, %v12305_v59, %v12304_v18  ;;  %v4035_v28 = vsel %vm768_vm0, %v4033_v20, %v4034_v10  ;;  %v4057_v19 = vrot.slane %v4050_v7, 1 }
 0x333   : > { %4041 = vrot.lane.b32.xlu1 %v4038_v16, %s12149_s10  ;;  %v4073_v55 = vmul.f32 %v4070_v22, %v12267_v36  ;;  %v9622_v62 = vadd.f32 %v9148_v39, %v2174_v60  ;;  %v3045_v23 = vmul.f32 %v3043_v0, %v12251_v4  ;;  %v4059_v6 = vrot.slane %v4049_v29, 1  ;;  %v9632_v16 = vpop.permute.xlu1 %3437  ;;  %v9639_v60 = vpop.permute.xlu0 %3435 }
 0x334   : > { %4039 = vrot.lane.b32.xlu0 %v4035_v28, %s12149_s10  ;;  %v4072_v3 = vmul.f32 %v4070_v22, %v7579_v5  ;;  %v9630_v18 = vsel %vm1862_vm13, %v3037_v45, %v3038_v8  ;;  %12306 = vst [vmem:[#allocation75_spill] sm:$0xff] %v9632_v16  ;;  %v4056_v20 = vrot.slane %v4048_v31, 1  ;;  %v4071_v10 = vmul.f32 %v4070_v22, %v7584_v49 }
 0x335   : > { %v4093_v7 = vstv %s9587_s5  ;;  %v2197_v39 = vadd.f32 %v2195_v46, %v9336_v43  ;;  %12307 = vst [vmem:[#allocation76_spill] sm:$0xff] %v9639_v60  ;;  %v4061_v0 = vsel %vm768_vm0, %v4059_v6, %v4060_v57  ;;  %v4083_v29 = vrot.slane %v4074_v42, 1  ;;  %v12308_v42 = vld [vmem:[#allocation97_spill] sm:$0xff]  ;;  %v12309_v46 = vld [vmem:[#allocation98_spill] sm:$0xff]  ;;  %s10043_s5 = sld [smem:[#allocation10 + $0x10e]] }
 0x336   : > { %v4097_v59 = vmul.f32 %v4093_v7, %v12266_v17  ;;  %v3048_v45 = vrot.slane %v3044_v27, 2  ;;  %v4058_v8 = vsel %vm768_vm0, %v4056_v20, %v4057_v19  ;;  %v4080_v31 = vrot.slane %v4073_v55, 1 }
 0x337   : > { %4064 = vrot.lane.b32.xlu1 %v4061_v0, %s12149_s10  ;;  %v4096_v22 = vmul.f32 %v4093_v7, %v12267_v36  ;;  %v3049_v28 = vrot.slane %v3045_v23, 2  ;;  %v3055_v16 = vmul.f32 %v3054_v32, %v7533_v26  ;;  %v4082_v43 = vrot.slane %v4072_v3, 1  ;;  %v9652_v27 = vpop.permute.xlu1 %3460 }
 0x338   : > { %4062 = vrot.lane.b32.xlu0 %v4058_v8, %s12149_s10  ;;  %v4095_v57 = vmul.f32 %v4093_v7, %v7579_v5  ;;  %v2218_v6 = vsel %vm1305_vm14, %v12309_v46, %v12308_v42  ;;  %v4079_v0 = vrot.slane %v4071_v10, 1  ;;  %v4094_v19 = vmul.f32 %v4093_v7, %v7584_v49  ;;  %v9659_v20 = vpop.permute.xlu0 %3458 }
 0x339   : > { %v4116_v55 = vstv %s9608_s6  ;;  %v3056_v23 = vmul.f32 %v3054_v32, %v12251_v4  ;;  %12310 = vst [vmem:[#allocation77_spill] sm:$0xff] %v9659_v20  ;;  %v4084_v3 = vsel %vm768_vm0, %v4082_v43, %v4083_v29  ;;  %v4106_v8 = vrot.slane %v4097_v59, 1  ;;  %s10052_s6 = sld [smem:[#allocation10 + $0x116]] }
 0x33a   : > { %v4120_v60 = vmul.f32 %v4116_v55, %v12266_v17  ;;  %v9664_v42 = vadd.f32 %v9151_v21, %v2197_v39  ;;  %v4081_v10 = vsel %vm768_vm0, %v4079_v0, %v4080_v31  ;;  %v4103_v7 = vrot.slane %v4096_v22, 1 }
 0x33b   : > { %4087 = vrot.lane.b32.xlu1 %v4084_v3, %s12149_s10  ;;  %v4119_v46 = vmul.f32 %v4116_v55, %v12267_v36  ;;  %v2220_v32 = vadd.f32 %v2218_v6, %v9344_v30  ;;  %v9671_v20 = vsel %vm1862_vm13, %v3048_v45, %v3049_v28  ;;  %v4105_v29 = vrot.slane %v4095_v57, 1 }
 0x33c   : > { %4085 = vrot.lane.b32.xlu0 %v4081_v10, %s12149_s10  ;;  %v4118_v59 = vmul.f32 %v4116_v55, %v7579_v5  ;;  %v3065_v43 = vstv %s9625_s13  ;;  %v9676_v21 = vpop.permute.xlu1 %3505  ;;  %v4102_v39 = vrot.slane %v4094_v19, 1  ;;  %v4117_v3 = vmul.f32 %v4116_v55, %v7584_v49  ;;  %s10090_s13 = sld [smem:[#allocation10 + $0x15]] }
 0x33d   : > { %12311 = vst [vmem:[#allocation78_spill] sm:$0xff] %v9676_v21  ;;  %v4139_v31 = vstv %s9636_s21  ;;  %v3060_v22 = vrot.slane %v3056_v23, 2  ;;  %v9684_v30 = vpop.permute.xlu0 %3503  ;;  %v4107_v45 = vsel %vm768_vm0, %v4105_v29, %v4106_v8  ;;  %v4129_v28 = vrot.slane %v4120_v60, 1  ;;  %v12313_v29 = vld [vmem:[#allocation99_spill] sm:$0xff]  ;;  %s10104_s21 = sld [smem:[#allocation10 + $0x39]] }
 0x33e   : > { %12312 = vst [vmem:[#allocation79_spill] sm:$0xff] %v9684_v30  ;;  %v4143_v57 = vmul.f32 %v4139_v31, %v12266_v17  ;;  %v3059_v6 = vrot.slane %v3055_v16, 2  ;;  %v4104_v0 = vsel %vm768_vm0, %v4102_v39, %v4103_v7  ;;  %v4126_v19 = vrot.slane %v4119_v46, 1  ;;  %v12314_v30 = vld [vmem:[#allocation100_spill] sm:$0xff] }
 0x33f   : > { %4110 = vrot.lane.b32.xlu1 %v4107_v45, %s12149_s10  ;;  %v4142_v55 = vmul.f32 %v4139_v31, %v12267_v36  ;;  %v9692_v23 = vadd.f32 %v9159_v11, %v2220_v32  ;;  %v3066_v10 = vmul.f32 %v3065_v43, %v7533_v26  ;;  %v4128_v8 = vrot.slane %v4118_v59, 1 }
 0x340   : > { %4108 = vrot.lane.b32.xlu0 %v4104_v0, %s12149_s10  ;;  %v4141_v60 = vmul.f32 %v4139_v31, %v7579_v5  ;;  %v2241_v16 = vsel %vm1305_vm14, %v12314_v30, %v12313_v29  ;;  %v9700_v45 = vpop.permute.xlu1 %3518  ;;  %v4125_v7 = vrot.slane %v4117_v3, 1  ;;  %v4140_v46 = vmul.f32 %v4139_v31, %v7584_v49 }
 0x341   : > { %12315 = vst [vmem:[#allocation80_spill] sm:$0xff] %v9700_v45  ;;  %v4250_v39 = vstv %s9656_s1  ;;  %v9707_v11 = vsel %vm1862_vm13, %v3059_v6, %v3060_v22  ;;  %v9709_v32 = vpop.permute.xlu0 %3516  ;;  %v4130_v59 = vsel %vm768_vm0, %v4128_v8, %v4129_v28  ;;  %v4152_v0 = vrot.slane %v4143_v57, 1  ;;  %v12317_v8 = vld [vmem:[#allocation101_spill] sm:$0xff]  ;;  %s10113_s1 = sld [smem:[#allocation10 + $0x1c]] }
 0x342   : > { %12316 = vst [vmem:[#allocation81_spill] sm:$0xff] %v9709_v32  ;;  %v4254_v21 = vmul.f32 %v4250_v39, %v12266_v17  ;;  %v3067_v30 = vmul.f32 %v3065_v43, %v12251_v4  ;;  %v4127_v3 = vsel %vm768_vm0, %v4125_v7, %v4126_v19  ;;  %v4149_v31 = vrot.slane %v4142_v55, 1  ;;  %v12318_v32 = vld [vmem:[#allocation102_spill] sm:$0xff] }
 0x343   : > { %4133 = vrot.lane.b32.xlu1 %v4130_v59, %s12149_s10  ;;  %v4253_v29 = vmul.f32 %v4250_v39, %v12267_v36  ;;  %v2243_v22 = vadd.f32 %v2241_v16, %v9387_v15  ;;  %v3070_v6 = vrot.slane %v3066_v10, 2  ;;  %v4151_v28 = vrot.slane %v4141_v60, 1 }
 0x344   : > { %4131 = vrot.lane.b32.xlu0 %v4127_v3, %s12149_s10  ;;  %v4252_v57 = vmul.f32 %v4250_v39, %v7579_v5  ;;  %v2264_v43 = vsel %vm1305_vm14, %v12318_v32, %v12317_v8  ;;  %v4148_v59 = vrot.slane %v4140_v46, 1  ;;  %v4251_v19 = vmul.f32 %v4250_v39, %v7584_v49 }
 0x345   : > { %v9723_v45 = vpop.permute.xlu1 %3531  ;;  %v4273_v55 = vstv %s9680_s7  ;;  %v3076_v7 = vstv %s9682_s22  ;;  %v9730_v15 = vpop.permute.xlu0 %3529  ;;  %v4153_v10 = vsel %vm768_vm0, %v4151_v28, %v4152_v0  ;;  %v4263_v60 = vrot.slane %v4254_v21, 2  ;;  %s10118_s7 = sld [smem:[#allocation10 + $0x5d]] }
 0x346   : > { %12319 = vst [vmem:[#allocation82_spill] sm:$0xff] %v9723_v45  ;;  %12320 = vst [vmem:[#allocation33_spill] sm:$0xff] %v9730_v15  ;;  %v4277_v16 = vmul.f32 %v4273_v55, %v12266_v17  ;;  %v3071_v3 = vrot.slane %v3067_v30, 2  ;;  %v4150_v46 = vsel %vm768_vm0, %v4148_v59, %v4149_v31  ;;  %v4260_v39 = vrot.slane %v4253_v29, 2  ;;  %s10134_s22 = sld [smem:[#allocation10 + $0x81]] }
 0x347   : > { %4156 = vrot.lane.b32.xlu1 %v4153_v10, %s12149_s10  ;;  %v4276_v32 = vmul.f32 %v4273_v55, %v12267_v36  ;;  %v2266_v8 = vadd.f32 %v2264_v43, %v9453_v50  ;;  %v9741_v15 = vadd.f32 %v9171_v24, %v2243_v22  ;;  %v4262_v21 = vrot.slane %v4252_v57, 2 }
 0x348   : > { %4154 = vrot.lane.b32.xlu0 %v4150_v46, %s12149_s10  ;;  %v4275_v0 = vmul.f32 %v4273_v55, %v7579_v5  ;;  %v3077_v30 = vmul.f32 %v3076_v7, %v7533_v26  ;;  %v4259_v10 = vrot.slane %v4251_v19, 2  ;;  %v4274_v31 = vmul.f32 %v4273_v55, %v7584_v49 }
 0x349   : > { %v9746_v28 = vpop.permute.xlu1 %3544  ;;  %v4296_v29 = vstv %s9704_s24  ;;  %v3078_v50 = vmul.f32 %v3076_v7, %v12251_v4  ;;  %v9753_v43 = vpop.permute.xlu0 %3542  ;;  %v4264_v24 = vsel %vm1862_vm13, %v4262_v21, %v4263_v60  ;;  %v4286_v22 = vrot.slane %v4277_v16, 2  ;;  %v12324_v7 = vld [vmem:[#allocation104_spill] sm:$0xff]  ;;  %s10145_s24 = sld [smem:[#allocation10 + $0x40]] }
 0x34a   : > { %12321 = vst [vmem:[#allocation41_spill] sm:$0xff] %v9746_v28  ;;  %12322 = vst [vmem:[#allocation83_spill] sm:$0xff] %v9753_v43  ;;  %v4300_v57 = vmul.f32 %v4296_v29, %v12266_v17  ;;  %v9758_v59 = vsel %vm1862_vm13, %v3070_v6, %v3071_v3  ;;  %v4261_v19 = vsel %vm1862_vm13, %v4259_v10, %v4260_v39  ;;  %v4283_v55 = vrot.slane %v4276_v32, 2  ;;  %v12323_v28 = vld [vmem:[#allocation103_spill] sm:$0xff] }
 0x34b   : > { %4267 = vrot.lane.b32.xlu1 %v4264_v24, %s12140_s3  ;;  %v4299_v46 = vmul.f32 %v4296_v29, %v12267_v36  ;;  %v2287_v43 = vsel %vm1305_vm14, %v12324_v7, %v12323_v28  ;;  %v9767_v60 = vadd.f32 %v9208_v35, %v2266_v8  ;;  %v4285_v16 = vrot.slane %v4275_v0, 2  ;;  %v12327_v7 = vld [vmem:[#allocation105_spill] sm:$0xff] }
 0x34c   : > { %4265 = vrot.lane.b32.xlu0 %v4261_v19, %s12140_s3  ;;  %v4298_v6 = vmul.f32 %v4296_v29, %v7579_v5  ;;  %v3081_v3 = vrot.slane %v3077_v30, 2  ;;  %v4282_v39 = vrot.slane %v4274_v31, 2  ;;  %v4297_v32 = vmul.f32 %v4296_v29, %v7584_v49 }
 0x34d   : > { %v9771_v21 = vpop.permute.xlu1 %3557  ;;  %v4319_v10 = vstv %s9727_s16  ;;  %v3082_v24 = vrot.slane %v3078_v50, 2  ;;  %v9777_v28 = vpop.permute.xlu0 %3555  ;;  %v4287_v35 = vsel %vm1862_vm13, %v4285_v16, %v4286_v22  ;;  %v4309_v8 = vrot.slane %v4300_v57, 2  ;;  %s10170_s16 = sld [smem:[#allocation10 + $0xa5]] }
 0x34e   : > { %12325 = vst [vmem:[#allocation84_spill] sm:$0xff] %v9771_v21  ;;  %12326 = vst [vmem:[#allocation85_spill] sm:$0xff] %v9777_v28  ;;  %v4323_v0 = vmul.f32 %v4319_v10, %v12266_v17  ;;  %v3087_v19 = vstv %s9734_s19  ;;  %v4284_v30 = vsel %vm1862_vm13, %v4282_v39, %v4283_v55  ;;  %v4306_v31 = vrot.slane %v4299_v46, 2  ;;  %v12328_v21 = vld [vmem:[#allocation106_spill] sm:$0xff]  ;;  %s10180_s19 = sld [smem:[#allocation10 + $0x64]] }
 0x34f   : > { %4290 = vrot.lane.b32.xlu1 %v4287_v35, %s12140_s3  ;;  %v4322_v29 = vmul.f32 %v4319_v10, %v12267_v36  ;;  %v2310_v50 = vsel %vm1305_vm14, %v12328_v21, %v12327_v7  ;;  %v3089_v28 = vmul.f32 %v3087_v19, %v12251_v4  ;;  %v4308_v22 = vrot.slane %v4298_v6, 2 }
 0x350   : > { %4288 = vrot.lane.b32.xlu0 %v4284_v30, %s12140_s3  ;;  %v4321_v57 = vmul.f32 %v4319_v10, %v7579_v5  ;;  %v2289_v16 = vadd.f32 %v2287_v43, %v9481_v54  ;;  %v4305_v35 = vrot.slane %v4297_v32, 2  ;;  %v4320_v55 = vmul.f32 %v4319_v10, %v7584_v49 }
 0x351   : > { %v9792_v45 = vpop.permute.xlu1 %3570  ;;  %v4342_v46 = vstv %s9750_s23  ;;  %v3088_v39 = vmul.f32 %v3087_v19, %v7533_v26  ;;  %v9799_v21 = vpop.permute.xlu0 %3568  ;;  %v4310_v4 = vsel %vm1862_vm13, %v4308_v22, %v4309_v8  ;;  %v4332_v30 = vrot.slane %v4323_v0, 2  ;;  %s10207_s23 = sld [smem:[#allocation10 + $0xc9]] }
 0x352   : > { %12329 = vst [vmem:[#allocation86_spill] sm:$0xff] %v9792_v45  ;;  %12330 = vst [vmem:[#allocation87_spill] sm:$0xff] %v9799_v21  ;;  %v4346_v6 = vmul.f32 %v4342_v46, %v12266_v17  ;;  %v2312_v54 = vadd.f32 %v2310_v50, %v9503_v37  ;;  %v4307_v43 = vsel %vm1862_vm13, %v4305_v35, %v4306_v31  ;;  %v4329_v32 = vrot.slane %v4322_v29, 2 }
 0x353   : > { %4313 = vrot.lane.b32.xlu1 %v4310_v4, %s12140_s3  ;;  %v4345_v10 = vmul.f32 %v4342_v46, %v12267_v36  ;;  %v9808_v7 = vsel %vm1862_vm13, %v3081_v3, %v3082_v24  ;;  %v3093_v26 = vrot.slane %v3089_v28, 2  ;;  %v4331_v8 = vrot.slane %v4321_v57, 2 }
 0x354   : > { %4311 = vrot.lane.b32.xlu0 %v4307_v43, %s12140_s3  ;;  %v4344_v0 = vmul.f32 %v4342_v46, %v7579_v5  ;;  %v9813_v19 = vadd.f32 %v9211_v1, %v2289_v16  ;;  %v4328_v50 = vrot.slane %v4320_v55, 2  ;;  %v4343_v31 = vmul.f32 %v4342_v46, %v7584_v49  ;;  %v12333_v46 = vld [vmem:[#allocation107_spill] sm:$0xff]  ;;  %v12336_v43 = vld [vmem:[#allocation110_spill] sm:$0xff] }
 0x355   : > { %v9815_v37 = vpop.permute.xlu1 %3583  ;;  %v4365_v29 = vstv %s9775_s8  ;;  %v3092_v22 = vrot.slane %v3088_v39, 2  ;;  %v9821_v3 = vpop.permute.xlu0 %3581  ;;  %v4333_v24 = vsel %vm1862_vm13, %v4331_v8, %v4332_v30  ;;  %v4355_v28 = vrot.slane %v4346_v6, 2  ;;  %v12334_v39 = vld [vmem:[#allocation108_spill] sm:$0xff]  ;;  %s10217_s8 = sld [smem:[#allocation10 + $0x88]] }
 0x356   : > { %12331 = vst [vmem:[#allocation88_spill] sm:$0xff] %v9815_v37  ;;  %12332 = vst [vmem:[#allocation89_spill] sm:$0xff] %v9821_v3  ;;  %v4369_v57 = vmul.f32 %v4365_v29, %v12266_v17  ;;  %v9826_v1 = vadd.f32 %v9215_v40, %v2312_v54  ;;  %v4330_v16 = vsel %vm1862_vm13, %v4328_v50, %v4329_v32  ;;  %v4352_v35 = vrot.slane %v4345_v10, 2  ;;  %v12335_v54 = vld [vmem:[#allocation109_spill] sm:$0xff]  ;;  %v12342_v3 = vld [vmem:[#allocation114_spill] sm:$0xff] }
 0x357   : > { %4336 = vrot.lane.b32.xlu1 %v4333_v24, %s12140_s3  ;;  %v4368_v55 = vmul.f32 %v4365_v29, %v12267_v36  ;;  %v2355_v4 = vsel %vm457_vm1, %v12334_v39, %v12333_v46  ;;  %v9835_v30 = vsel %vm1862_vm13, %v3092_v22, %v3093_v26  ;;  %v4354_v40 = vrot.slane %v4344_v0, 2  ;;  %v12338_v26 = vld [vmem:[#allocation111_spill] sm:$0xff]  ;;  %v12339_v22 = vld [vmem:[#allocation112_spill] sm:$0xff] }
 0x358   : > { %4334 = vrot.lane.b32.xlu0 %v4330_v16, %s12140_s3  ;;  %v4367_v6 = vmul.f32 %v4365_v29, %v7579_v5  ;;  %v2368_v32 = vsel %vm457_vm1, %v12336_v43, %v12335_v54  ;;  %v4351_v8 = vrot.slane %v4343_v31, 2  ;;  %v4366_v50 = vmul.f32 %v4365_v29, %v7584_v49  ;;  %v12341_v43 = vld [vmem:[#allocation113_spill] sm:$0xff] }
 0x359   : > { %v9844_v10 = vpop.permute.xlu1 %3596  ;;  %v4388_v24 = vstv %s9796_s15  ;;  %v2381_v46 = vsel %vm457_vm1, %v12339_v22, %v12338_v26  ;;  %v4356_v0 = vsel %vm1862_vm13, %v4354_v40, %v4355_v28  ;;  %v4378_v39 = vrot.slane %v4369_v57, 2  ;;  %s10221_s15 = sld [smem:[#allocation10 + $0xed]] }
 0x35a   : > { %12337 = vst [vmem:[#allocation90_spill] sm:$0xff] %v9844_v10  ;;  %v9853_v16 = vpop.permute.xlu0 %3594  ;;  %v4392_v54 = vmul.f32 %v4388_v24, %v12266_v17  ;;  %v2394_v31 = vsel %vm457_vm1, %v12342_v3, %v12341_v43  ;;  %v4353_v29 = vsel %vm1862_vm13, %v4351_v8, %v4352_v35  ;;  %v4375_v37 = vrot.slane %v4368_v55, 2  ;;  %v12347_v43 = vld [vmem:[#allocation117_spill] sm:$0xff] }
 0x35b   : > { %12340 = vst [vmem:[#allocation91_spill] sm:$0xff] %v9853_v16  ;;  %4359 = vrot.lane.b32.xlu1 %v4356_v0, %s12140_s3  ;;  %v4391_v10 = vmul.f32 %v4388_v24, %v12267_v36  ;;  %v9864_v26 = vadd.f32 %v2355_v4, %v9551_v25  ;;  %v9867_v28 = vadd.f32 %v2368_v32, %v9622_v62  ;;  %v4377_v57 = vrot.slane %v4367_v6, 2  ;;  %v12345_v32 = vld [vmem:[#allocation115_spill] sm:$0xff] }
 0x35c   : > { %4357 = vrot.lane.b32.xlu0 %v4353_v29, %s12140_s3  ;;  %v4390_v40 = vmul.f32 %v4388_v24, %v7579_v5  ;;  %v9872_v3 = vadd.f32 %v2381_v46, %v9664_v42  ;;  %v4374_v35 = vrot.slane %v4366_v50, 2  ;;  %v4389_v55 = vmul.f32 %v4388_v24, %v7584_v49  ;;  %v12346_v50 = vld [vmem:[#allocation116_spill] sm:$0xff] }
 0x35d   : > { %v9874_v22 = vpop.permute.xlu1 %3609  ;;  %v4411_v8 = vstv %s9819_s20  ;;  %v9881_v25 = vadd.f32 %v2394_v31, %v9692_v23  ;;  %v4379_v4 = vsel %vm1862_vm13, %v4377_v57, %v4378_v39  ;;  %v4401_v42 = vrot.slane %v4392_v54, 2  ;;  %v12348_v31 = vld [vmem:[#allocation118_spill] sm:$0xff]  ;;  %s10230_s20 = sld [smem:[#allocation10 + $0x111]] }
 0x35e   : > { %12343 = vst [vmem:[#allocation92_spill] sm:$0xff] %v9874_v22  ;;  %v9885_v62 = vpop.permute.xlu0 %3607  ;;  %v4415_v6 = vmul.f32 %v4411_v8, %v12266_v17  ;;  %v2407_v24 = vsel %vm457_vm1, %v12346_v50, %v12345_v32  ;;  %v4376_v46 = vsel %vm1862_vm13, %v4374_v35, %v4375_v37  ;;  %v4398_v23 = vrot.slane %v4391_v10, 2  ;;  %v12349_v32 = vld [vmem:[#allocation119_spill] sm:$0xff]  ;;  %v12350_v50 = vld [vmem:[#allocation120_spill] sm:$0xff] }
 0x35f   : > { %12344 = vst [vmem:[#allocation93_spill] sm:$0xff] %v9885_v62  ;;  %4382 = vrot.lane.b32.xlu1 %v4379_v4, %s12140_s3  ;;  %v4414_v0 = vmul.f32 %v4411_v8, %v12267_v36  ;;  %v2420_v29 = vsel %vm457_vm1, %v12348_v31, %v12347_v43  ;;  %v3466_v39 = vstv %s9837_s27  ;;  %v4400_v54 = vrot.slane %v4390_v40, 2  ;;  %s10245_s27 = sld [smem:[#allocation10 + $0xac]] }
 0x360   : > { %4380 = vrot.lane.b32.xlu0 %v4376_v46, %s12140_s3  ;;  %v4413_v57 = vmul.f32 %v4411_v8, %v7579_v5  ;;  %v2433_v4 = vsel %vm457_vm1, %v12350_v50, %v12349_v32  ;;  %v4397_v10 = vrot.slane %v4389_v55, 2  ;;  %v4412_v35 = vmul.f32 %v4411_v8, %v7584_v49 }
 0x361   : > { %v9906_v37 = vpop.permute.xlu1 %3622  ;;  %v4434_v62 = vstv %s9848_s28  ;;  %v9913_v43 = vadd.f32 %v2407_v24, %v9741_v15  ;;  %v4402_v40 = vsel %vm1862_vm13, %v4400_v54, %v4401_v42  ;;  %v4424_v46 = vrot.slane %v4415_v6, 2  ;;  %v12354_v54 = vld [vmem:[#allocation124_spill] sm:$0xff]  ;;  %s10266_s28 = sld [smem:[#allocation10 + $0x18]] }
 0x362   : > { %12351 = vst [vmem:[#allocation94_spill] sm:$0xff] %v9906_v37  ;;  %v9915_v31 = vpop.permute.xlu0 %3620  ;;  %v4438_v22 = vmul.f32 %v4434_v62, %v12266_v17  ;;  %v9920_v32 = vadd.f32 %v2420_v29, %v9767_v60  ;;  %v4399_v55 = vsel %vm1862_vm13, %v4397_v10, %v4398_v23  ;;  %v4421_v8 = vrot.slane %v4414_v0, 2  ;;  %v12353_v29 = vld [vmem:[#allocation123_spill] sm:$0xff]  ;;  %v12358_v37 = vld [vmem:[#allocation122_spill] sm:$0xff] }
 0x363   : > { %12352 = vst [vmem:[#allocation95_spill] sm:$0xff] %v9915_v31  ;;  %4405 = vrot.lane.b32.xlu1 %v4402_v40, %s12140_s3  ;;  %v4437_v15 = vmul.f32 %v4434_v62, %v12267_v36  ;;  %v9926_v24 = vadd.f32 %v2433_v4, %v9813_v19  ;;  %v9929_v42 = vmul.f32 %v3466_v39, %v7584_v49  ;;  %v4423_v60 = vrot.slane %v4413_v57, 2  ;;  %v12357_v31 = vld [vmem:[#allocation121_spill] sm:$0xff] }
 0x364   : > { %4403 = vrot.lane.b32.xlu0 %v4399_v55, %s12140_s3  ;;  %v4436_v6 = vmul.f32 %v4434_v62, %v7579_v5  ;;  %v2459_v23 = vsel %vm1305_vm14, %v12354_v54, %v12353_v29  ;;  %v4420_v50 = vrot.slane %v4412_v35, 2  ;;  %v4435_v19 = vmul.f32 %v4434_v62, %v7584_v49 }
 0x365   : > { %v9938_v0 = vpop.permute.xlu1 %3635  ;;  %v4457_v4 = vstv %s9878_s29  ;;  %v3470_v39 = vstv %s9883_s9  ;;  %v4425_v57 = vsel %vm1862_vm13, %v4423_v60, %v4424_v46  ;;  %v4447_v40 = vrot.slane %v4438_v22, 2  ;;  %s10277_s29 = sld [smem:[#allocation10 + $0xd0]] }
 0x366   : > { %12355 = vst [vmem:[#allocation96_spill] sm:$0xff] %v9938_v0  ;;  %v9945_v10 = vpop.permute.xlu0 %3633  ;;  %v4461_v55 = vmul.f32 %v4457_v4, %v12266_v17  ;;  %v2446_v29 = vsel %vm457_vm1, %v12358_v37, %v12357_v31  ;;  %v4422_v62 = vsel %vm1862_vm13, %v4420_v50, %v4421_v8  ;;  %v4444_v35 = vrot.slane %v4437_v15, 2  ;;  %s10284_s9 = sld [smem:[#allocation10 + $0xf4]] }
 0x367   : > { %12356 = vst [vmem:[#allocation97_spill] sm:$0xff] %v9945_v10  ;;  %4428 = vrot.lane.b32.xlu1 %v4425_v57, %s12140_s3  ;;  %v4460_v54 = vmul.f32 %v4457_v4, %v12267_v36  ;;  %v2461_v0 = vadd.f32 %v2459_v23, %v9864_v26  ;;  %v3474_v10 = vstv %s9899_s0  ;;  %v4446_v22 = vrot.slane %v4436_v6, 2  ;;  %s10293_s0 = sld [smem:[#allocation10 + $0x118]] }
 0x368   : > { %4426 = vrot.lane.b32.xlu0 %v4422_v62, %s12140_s3  ;;  %v4459_v46 = vmul.f32 %v4457_v4, %v7579_v5  ;;  %v9962_v60 = vmul.f32 %v3470_v39, %v7584_v49  ;;  %v4443_v31 = vrot.slane %v4435_v19, 2  ;;  %v4458_v8 = vmul.f32 %v4457_v4, %v7584_v49  ;;  %v12362_v62 = vld [vmem:[#allocation126_spill] sm:$0xff] }
 0x369   : > { %v9964_v37 = vpop.permute.xlu1 %3648  ;;  %v4480_v15 = vstv %s9910_s26  ;;  %v9971_v26 = vadd.f32 %v2446_v29, %v9826_v1  ;;  %v4448_v6 = vsel %vm1862_vm13, %v4446_v22, %v4447_v40  ;;  %v4470_v50 = vrot.slane %v4461_v55, 2  ;;  %v12361_v29 = vld [vmem:[#allocation125_spill] sm:$0xff]  ;;  %s10298_s26 = sld [smem:[#allocation10 + $0x1d]] }
 0x36a   : > { %12359 = vst [vmem:[#allocation98_spill] sm:$0xff] %v9964_v37  ;;  %v9973_v23 = vpop.permute.xlu0 %3646  ;;  %v4484_v39 = vmul.f32 %v4480_v15, %v12266_v17  ;;  %v9978_v57 = vmul.f32 %v3474_v10, %v7584_v49  ;;  %v4445_v19 = vsel %vm1862_vm13, %v4443_v31, %v4444_v35  ;;  %v4467_v4 = vrot.slane %v4460_v54, 2 }
 0x36b   : > { %12360 = vst [vmem:[#allocation99_spill] sm:$0xff] %v9973_v23  ;;  %4451 = vrot.lane.b32.xlu1 %v4448_v6, %s12149_s10  ;;  %v4483_v1 = vmul.f32 %v4480_v15, %v12267_v36  ;;  %v2472_v23 = vsel %vm1305_vm14, %v12362_v62, %v12361_v29  ;;  %v9987_v40 = vadd.f32 %v9301_v9, %v2461_v0  ;;  %v4469_v10 = vrot.slane %v4459_v46, 2  ;;  %v12364_v29 = vld [vmem:[#allocation127_spill] sm:$0xff]  ;;  %v12365_v9 = vld [vmem:[#allocation128_spill] sm:$0xff] }
 0x36c   : > { %4449 = vrot.lane.b32.xlu0 %v4445_v19, %s12149_s10  ;;  %v4482_v55 = vmul.f32 %v4480_v15, %v7579_v5  ;;  %v3478_v22 = vstv %s9931_s25  ;;  %v4466_v35 = vrot.slane %v4458_v8, 2  ;;  %v4481_v54 = vmul.f32 %v4480_v15, %v7584_v49  ;;  %s10308_s25 = sld [smem:[#allocation10 + $0x41]] }
 0x36d   : > { %v9994_v6 = vpop.permute.xlu1 %3661  ;;  %v4503_v31 = vstv %s9942_s30  ;;  %v2485_v0 = vsel %vm1305_vm14, %v12365_v9, %v12364_v29  ;;  %v4471_v46 = vsel %vm1862_vm13, %v4469_v10, %v4470_v50  ;;  %v4493_v19 = vrot.slane %v4484_v39, 2  ;;  %s10316_s30 = sld [smem:[#allocation10 + $0x65]] }
 0x36e   : > { %12363 = vst [vmem:[#allocation100_spill] sm:$0xff] %v9994_v6  ;;  %v10003_v62 = vpop.permute.xlu0 %3659  ;;  %v4507_v37 = vmul.f32 %v4503_v31, %v12266_v17  ;;  %v2474_v6 = vadd.f32 %v2472_v23, %v9867_v28  ;;  %v4468_v8 = vsel %vm1862_vm13, %v4466_v35, %v4467_v4  ;;  %v4490_v15 = vrot.slane %v4483_v1, 2  ;;  %v12369_v35 = vld [vmem:[#allocation130_spill] sm:$0xff] }
 0x36f   : > { %12366 = vst [vmem:[#allocation101_spill] sm:$0xff] %v10003_v62  ;;  %4474 = vrot.lane.b32.xlu1 %v4471_v46, %s12149_s10  ;;  %v4506_v16 = vmul.f32 %v4503_v31, %v12267_v36  ;;  %v10012_v21 = vmul.f32 %v3478_v22, %v7584_v49  ;;  %v3482_v29 = vstv %s9957_s18  ;;  %v4492_v50 = vrot.slane %v4482_v55, 2  ;;  %v12368_v22 = vld [vmem:[#allocation129_spill] sm:$0xff]  ;;  %v12378_v62 = vld [vmem:[#allocation134_spill] sm:$0xff]  ;;  %s10326_s18 = sld [smem:[#allocation10 + $0x89]] }
 0x370   : > { %4472 = vrot.lane.b32.xlu0 %v4468_v8, %s12149_s10  ;;  %v4505_v39 = vmul.f32 %v4503_v31, %v7579_v5  ;;  %v2487_v28 = vadd.f32 %v2485_v0, %v9872_v3  ;;  %v4489_v4 = vrot.slane %v4481_v54, 2  ;;  %v4504_v1 = vmul.f32 %v4503_v31, %v7584_v49 }
 0x371   : > { %v10020_v23 = vpop.permute.xlu1 %3674  ;;  %v4526_v10 = vstv %s9968_s4  ;;  %v2498_v9 = vsel %vm1305_vm14, %v12369_v35, %v12368_v22  ;;  %v4494_v55 = vsel %vm1862_vm13, %v4492_v50, %v4493_v19  ;;  %v4516_v8 = vrot.slane %v4507_v37, 2  ;;  %s10336_s4 = sld [smem:[#allocation10 + $0xad]] }
 0x372   : > { %12367 = vst [vmem:[#allocation102_spill] sm:$0xff] %v10020_v23  ;;  %v10029_v46 = vpop.permute.xlu0 %3672  ;;  %v4530_v3 = vmul.f32 %v4526_v10, %v12266_v17  ;;  %v10034_v0 = vadd.f32 %v9304_v63, %v2474_v6  ;;  %v4491_v54 = vsel %vm1862_vm13, %v4489_v4, %v4490_v15  ;;  %v4513_v31 = vrot.slane %v4506_v16, 2 }
 0x373   : > { %12370 = vst [vmem:[#allocation103_spill] sm:$0xff] %v10029_v46  ;;  %4497 = vrot.lane.b32.xlu1 %v4494_v55, %s12149_s10  ;;  %v4529_v23 = vmul.f32 %v4526_v10, %v12267_v36  ;;  %v10040_v22 = vmul.f32 %v3482_v29, %v7584_v49  ;;  %v3486_v35 = vstv %s9989_s17  ;;  %v4515_v37 = vrot.slane %v4505_v39, 2  ;;  %v12377_v46 = vld [vmem:[#allocation133_spill] sm:$0xff]  ;;  %s10342_s17 = sld [smem:[#allocation10 + $0x3c]] }
 0x374   : > { %4495 = vrot.lane.b32.xlu0 %v4491_v54, %s12149_s10  ;;  %v4528_v19 = vmul.f32 %v4526_v10, %v7579_v5  ;;  %v2500_v63 = vadd.f32 %v2498_v9, %v9881_v25  ;;  %v4512_v15 = vrot.slane %v4504_v1, 2  ;;  %v4527_v16 = vmul.f32 %v4526_v10, %v7584_v49  ;;  %v12373_v9 = vld [vmem:[#allocation131_spill] sm:$0xff]  ;;  %v12374_v54 = vld [vmem:[#allocation132_spill] sm:$0xff] }
 0x375   : > { %v10048_v6 = vpop.permute.xlu1 %3687  ;;  %v4549_v50 = vstv %s9998_s11  ;;  %v10055_v29 = vadd.f32 %v9339_v13, %v2487_v28  ;;  %v4517_v39 = vsel %vm1862_vm13, %v4515_v37, %v4516_v8  ;;  %v4539_v55 = vrot.slane %v4530_v3, 2  ;;  %s10351_s11 = sld [smem:[#allocation10 + $0xd1]] }
 0x376   : > { %12371 = vst [vmem:[#allocation104_spill] sm:$0xff] %v10048_v6  ;;  %v10057_v4 = vpop.permute.xlu0 %3685  ;;  %v4553_v25 = vmul.f32 %v4549_v50, %v12266_v17  ;;  %v2511_v1 = vsel %vm1305_vm14, %v12374_v54, %v12373_v9  ;;  %v4514_v10 = vsel %vm1862_vm13, %v4512_v15, %v4513_v31  ;;  %v4536_v6 = vrot.slane %v4529_v23, 2 }
 0x377   : > { %12372 = vst [vmem:[#allocation105_spill] sm:$0xff] %v10057_v4  ;;  %4520 = vrot.lane.b32.xlu1 %v4517_v39, %s12149_s10  ;;  %v4552_v13 = vmul.f32 %v4549_v50, %v12267_v36  ;;  %v10068_v28 = vmul.f32 %v3486_v35, %v7584_v49  ;;  %v3490_v4 = vstv %s10015_s14  ;;  %v4538_v8 = vrot.slane %v4528_v19, 2  ;;  %s10368_s14 = sld [smem:[#allocation10 + $0x60]] }
 0x378   : > { %4518 = vrot.lane.b32.xlu0 %v4514_v10, %s12149_s10  ;;  %v4551_v3 = vmul.f32 %v4549_v50, %v7579_v5  ;;  %v10074_v37 = vadd.f32 %v9374_v56, %v2500_v63  ;;  %v4535_v39 = vrot.slane %v4527_v16, 2  ;;  %v4550_v23 = vmul.f32 %v4549_v50, %v7584_v49  ;;  %v12379_v50 = vld [vmem:[#allocation135_spill] sm:$0xff] }
 0x379   : > { %v10076_v9 = vpop.permute.xlu1 %3700  ;;  %v4572_v31 = vstv %s10024_s2  ;;  %v2513_v15 = vadd.f32 %v2511_v1, %v9913_v43  ;;  %v4540_v54 = vsel %vm1862_vm13, %v4538_v8, %v4539_v55  ;;  %v4562_v10 = vrot.slane %v4553_v25, 2  ;;  %v12380_v1 = vld [vmem:[#allocation136_spill] sm:$0xff]  ;;  %s10380_s2 = sld [smem:[#allocation10 + $0x84]] }
 0x37a   : > { %12375 = vst [vmem:[#allocation106_spill] sm:$0xff] %v10076_v9  ;;  %v10081_v35 = vpop.permute.xlu0 %3698  ;;  %v4576_v19 = vmul.f32 %v4572_v31, %v12266_v17  ;;  %v2524_v56 = vsel %vm1305_vm14, %v12378_v62, %v12377_v46  ;;  %v4537_v63 = vsel %vm1862_vm13, %v4535_v39, %v4536_v6  ;;  %v4559_v16 = vrot.slane %v4552_v13, 2  ;;  %v12381_v46 = vld [vmem:[#allocation137_spill] sm:$0xff] }
 0x37b   : > { %12376 = vst [vmem:[#allocation107_spill] sm:$0xff] %v10081_v35  ;;  %4543 = vrot.lane.b32.xlu1 %v4540_v54, %s12149_s10  ;;  %v4575_v43 = vmul.f32 %v4572_v31, %v12267_v36  ;;  %v2537_v55 = vsel %vm1305_vm14, %v12380_v1, %v12379_v50  ;;  %v3494_v25 = vstv %s10043_s5  ;;  %v4561_v8 = vrot.slane %v4551_v3, 2  ;;  %v12382_v35 = vld [vmem:[#allocation138_spill] sm:$0xff]  ;;  %s10388_s5 = sld [smem:[#allocation10 + $0xf5]] }
 0x37c   : > { %4541 = vrot.lane.b32.xlu0 %v4537_v63, %s12149_s10  ;;  %v4574_v62 = vmul.f32 %v4572_v31, %v7579_v5  ;;  %v2550_v54 = vsel %vm1305_vm14, %v12382_v35, %v12381_v46  ;;  %v4558_v39 = vrot.slane %v4550_v23, 2  ;;  %v4573_v13 = vmul.f32 %v4572_v31, %v7584_v49 }
 0x37d   : > { %v10102_v6 = vpop.permute.xlu1 %3811  ;;  %v4595_v9 = vstv %s10052_s6  ;;  %v2526_v50 = vadd.f32 %v2524_v56, %v9920_v32  ;;  %v4563_v3 = vsel %vm1862_vm13, %v4561_v8, %v4562_v10  ;;  %v4585_v63 = vrot.slane %v4576_v19, 2  ;;  %v12384_v19 = vld [vmem:[#allocation139_spill] sm:$0xff]  ;;  %v12385_v56 = vld [vmem:[#allocation140_spill] sm:$0xff]  ;;  %s10401_s6 = sld [smem:[#allocation10 + $0x119]] }
 0x37e   : > { %v10109_v1 = vpop.permute.xlu0 %3809  ;;  %v4599_v45 = vmul.f32 %v4595_v9, %v12266_v17  ;;  %v2539_v35 = vadd.f32 %v2537_v55, %v9926_v24  ;;  %v4560_v23 = vsel %vm1862_vm13, %v4558_v39, %v4559_v16  ;;  %v4582_v46 = vrot.slane %v4575_v43, 2 }
 0x37f   : > { %12383 = vst [vmem:[#allocation108_spill] sm:$0xff] %v10109_v1  ;;  %4566 = vrot.lane.b32.xlu1 %v4563_v3, %s12149_s10  ;;  %v4598_v32 = vmul.f32 %v4595_v9, %v12267_v36  ;;  %v2552_v31 = vadd.f32 %v2550_v54, %v9971_v26  ;;  %v10123_v10 = vmul.f32 %v3490_v4, %v7584_v49  ;;  %v4584_v17 = vrot.slane %v4574_v62, 2 }
 0x380   : > { %4564 = vrot.lane.b32.xlu0 %v4560_v23, %s12149_s10  ;;  %v4597_v24 = vmul.f32 %v4595_v9, %v7579_v5  ;;  %v2661_v16 = vsel %vm457_vm1, %v12385_v56, %v12384_v19  ;;  %v2607_v43 = vadd.f32 %v9393_v53, %v2513_v15  ;;  %v4581_v8 = vrot.slane %v4573_v13, 2  ;;  %v12388_v13 = vld [vmem:[#allocation141_spill] sm:$0xff] }
 0x381   : > { %v10131_v55 = vpop.permute.xlu1 %3834  ;;  %v4596_v26 = vmul.f32 %v4595_v9, %v7584_v49  ;;  %v10137_v4 = vadd.f32 %v9431_v14, %v2526_v50  ;;  %v10140_v62 = vmul.f32 %v3494_v25, %v7584_v49  ;;  %v4586_v54 = vsel %vm1862_vm13, %v4584_v17, %v4585_v63  ;;  %v12389_v50 = vld [vmem:[#allocation142_spill] sm:$0xff]  ;;  %v12390_v63 = vld [vmem:[#allocation143_spill] sm:$0xff] }
 0x382   : > { %12386 = vst [vmem:[#allocation109_spill] sm:$0xff] %v10131_v55  ;;  %v10142_v5 = vpop.permute.xlu0 %3832  ;;  %v4608_v39 = vrot.slane %v4599_v45, 2  ;;  %v10148_v53 = vadd.f32 %v9456_v33, %v2539_v35  ;;  %v3706_v9 = vstv %s10090_s13  ;;  %v4583_v14 = vsel %vm1862_vm13, %v4581_v8, %v4582_v46  ;;  %v12391_v35 = vld [vmem:[#allocation144_spill] sm:$0xff]  ;;  %s10410_s13 = sld [smem:[#allocation10 + $0x1f]] }
 0x383   : > { %12387 = vst [vmem:[#allocation110_spill] sm:$0xff] %v10142_v5  ;;  %4589 = vrot.lane.b32.xlu1 %v4586_v54, %s12149_s10  ;;  %v4605_v15 = vrot.slane %v4598_v32, 2  ;;  %v2663_v25 = vadd.f32 %v2661_v16, %v9987_v40  ;;  %v2684_v3 = vsel %vm457_vm1, %v12389_v50, %v12388_v13  ;;  %v10158_v45 = vadd.f32 %v9496_v58, %v2552_v31  ;;  %v12393_v58 = vld [vmem:[#allocation145_spill] sm:$0xff]  ;;  %v12395_v50 = vld [vmem:[#allocation146_spill] sm:$0xff] }
 0x384   : > { %4587 = vrot.lane.b32.xlu0 %v4583_v14, %s12149_s10  ;;  %v4607_v33 = vrot.slane %v4597_v24, 2  ;;  %v2707_v23 = vsel %vm457_vm1, %v12391_v35, %v12390_v63  ;;  %v2730_v46 = vsel %vm457_vm1, %v8863_v47, %v8854_v41  ;;  %v3717_v40 = vstv %s10104_s21  ;;  %s10439_s21 = sld [smem:[#allocation10 + $0xa8]] }
 0x385   : > { %v10168_v32 = vpop.permute.xlu1 %3857  ;;  %v4604_v17 = vrot.slane %v4596_v26, 2  ;;  %v2753_v31 = vsel %vm457_vm1, %v12393_v58, %v8882_v38  ;;  %v3707_v24 = vmul.f32 %v3706_v9, %v7584_v49  ;;  %v4650_v16 = vstv %s10113_s1  ;;  %s10471_s1 = sld [smem:[#allocation10 + $0x43]] }
 0x386   : > { %12392 = vst [vmem:[#allocation111_spill] sm:$0xff] %v10168_v32  ;;  %v10176_v19 = vpop.permute.xlu0 %3855  ;;  %v4609_v56 = vsel %vm1862_vm13, %v4607_v33, %v4608_v39  ;;  %v3708_v41 = vmul.f32 %v3706_v9, %v12267_v36  ;;  %v3719_v47 = vmul.f32 %v3717_v40, %v12267_v36  ;;  %v3728_v8 = vstv %s10118_s7  ;;  %s10482_s7 = sld [smem:[#allocation10 + $0xcc]] }
 0x387   : > { %12394 = vst [vmem:[#allocation112_spill] sm:$0xff] %v10176_v19  ;;  %4612 = vrot.lane.b32.xlu1 %v4609_v56, %s12149_s10  ;;  %v4606_v26 = vsel %vm1862_vm13, %v4604_v17, %v4605_v15  ;;  %v10188_v38 = vadd.f32 %v2684_v3, %v10034_v0  ;;  %v10191_v54 = vadd.f32 %v2707_v23, %v10055_v29  ;;  %v12396_v15 = vld [vmem:[#allocation147_spill] sm:$0xff]  ;;  %v12398_v3 = vld [vmem:[#allocation28_spill] sm:$0xff]  ;;  %v3739_v35 = vstv %s10134_s22  ;;  %s10503_s22 = sld [smem:[#allocation10 + $0xf0]] }
 0x388   : > { %v3718_v39 = vmul.f32 %v3717_v40, %v7584_v49  ;;  %v3730_v14 = vmul.f32 %v3728_v8, %v12267_v36  ;;  %4610 = vrot.lane.b32.xlu0 %v4606_v26, %s12149_s10  ;;  %v10197_v9 = vadd.f32 %v2730_v46, %v10074_v37  ;;  %v10199_v13 = vadd.f32 %v2753_v31, %v2607_v43  ;;  %v12400_v37 = vld [vmem:[#allocation29_spill] sm:$0xff]  ;;  %v12401_v56 = vld [vmem:[#allocation148_spill] sm:$0xff] }
 0x389   : > { %v2776_v33 = vsel %vm457_vm1, %v12396_v15, %v12395_v50  ;;  %v10204_v0 = vpop.permute.xlu1 %3880  ;;  %v4652_v29 = vmul.f32 %v4650_v16, %v12398_v3  ;;  %v2845_v63 = vsel %vm1305_vm14, %v9019_v52, %v9010_v51  ;;  %v4651_v43 = vmul.f32 %v4650_v16, %v12400_v37  ;;  %v12402_v51 = vld [vmem:[#allocation149_spill] sm:$0xff] }
 0x38a   : > { %12397 = vst [vmem:[#allocation113_spill] sm:$0xff] %v10204_v0  ;;  %v10213_v23 = vpop.permute.xlu0 %3878  ;;  %v4663_v46 = vstv %s10145_s24  ;;  %v3711_v40 = vrot.slane %v3707_v24, 1  ;;  %v3712_v17 = vrot.slane %v3708_v41, 1  ;;  %v3723_v58 = vrot.slane %v3719_v47, 1  ;;  %s10513_s24 = sld [smem:[#allocation10 + $0x67]] }
 0x38b   : > { %12399 = vst [vmem:[#allocation114_spill] sm:$0xff] %v10213_v23  ;;  %v3729_v31 = vmul.f32 %v3728_v8, %v7584_v49  ;;  %4657 = vrot.lane.b32.xlu1 %v4652_v29, %s12140_s3  ;;  %v2799_v52 = vsel %vm457_vm1, %v12402_v51, %v12401_v56  ;;  %v2822_v16 = vsel %vm457_vm1, %v8987_v2, %v8981_v12  ;;  %v3722_v26 = vrot.slane %v3718_v39, 1 }
 0x38c   : > { %v3734_v50 = vrot.slane %v3730_v14, 1  ;;  %4655 = vrot.lane.b32.xlu0 %v4651_v43, %s12140_s3  ;;  %v2847_v24 = vadd.f32 %v2845_v63, %v2663_v25  ;;  %v3740_v41 = vmul.f32 %v3739_v35, %v7584_v49  ;;  %v3750_v8 = vstv %s10170_s16  ;;  %s10561_s16 = sld [smem:[#allocation10 + $0x8b]] }
 0x38d   : > { %v10233_v47 = vpop.permute.xlu1 %3903  ;;  %v4665_v15 = vmul.f32 %v4663_v46, %v12398_v3  ;;  %v10238_v29 = vadd.f32 %v2776_v33, %v10137_v4  ;;  %v3741_v56 = vmul.f32 %v3739_v35, %v12267_v36  ;;  %v4664_v2 = vmul.f32 %v4663_v46, %v12400_v37 }
 0x38e   : > { %12403 = vst [vmem:[#allocation115_spill] sm:$0xff] %v10233_v47  ;;  %v10241_v12 = vpop.permute.xlu0 %3901  ;;  %v4676_v39 = vstv %s10180_s19  ;;  %v10248_v25 = vadd.f32 %v2799_v52, %v10148_v53  ;;  %v10251_v14 = vsel %vm768_vm0, %v3711_v40, %v3712_v17  ;;  %v10254_v63 = vsel %vm768_vm0, %v3722_v26, %v3723_v58  ;;  %v12411_v26 = vld [vmem:[#allocation35_spill] sm:$0xff]  ;;  %s10574_s19 = sld [smem:[#allocation10 + $0x114]] }
 0x38f   : > { %12404 = vst [vmem:[#allocation116_spill] sm:$0xff] %v10241_v12  ;;  %12405 = vst [vmem:[#allocation117_spill] sm:$0xff] %v10251_v14  ;;  %v3733_v4 = vrot.slane %v3729_v31, 1  ;;  %4670 = vrot.lane.b32.xlu1 %v4665_v15, %s12140_s3  ;;  %v10258_v33 = vadd.f32 %v2822_v16, %v10158_v45  ;;  %v2868_v35 = vsel %vm1305_vm14, %v9062_v34, %v9057_v61  ;;  %v3744_v40 = vrot.slane %v3740_v41, 1  ;;  %v12410_v16 = vld [vmem:[#allocation34_spill] sm:$0xff] }
 0x390   : > { %12406 = vst [vmem:[#allocation118_spill] sm:$0xff] %v10254_v63  ;;  %v3751_v53 = vmul.f32 %v3750_v8, %v7584_v49  ;;  %v3752_v43 = vmul.f32 %v3750_v8, %v12267_v36  ;;  %4668 = vrot.lane.b32.xlu0 %v4664_v2, %s12140_s3  ;;  %v10269_v46 = vadd.f32 %v9561_v48, %v2847_v24  ;;  %v3745_v34 = vrot.slane %v3741_v56, 1 }
 0x391   : > { %v10272_v45 = vsel %vm768_vm0, %v3733_v4, %v3734_v50  ;;  %v10274_v17 = vpop.permute.xlu1 %3926  ;;  %v4678_v61 = vmul.f32 %v4676_v39, %v12398_v3  ;;  %v3761_v58 = vstv %s10207_s23  ;;  %v4677_v51 = vmul.f32 %v4676_v39, %v12400_v37  ;;  %v12413_v39 = vld [vmem:[#allocation43_spill] sm:$0xff]  ;;  %s10582_s23 = sld [smem:[#allocation10 + $0xaf]] }
 0x392   : > { %12407 = vst [vmem:[#allocation119_spill] sm:$0xff] %v10272_v45  ;;  %12408 = vst [vmem:[#allocation120_spill] sm:$0xff] %v10274_v17  ;;  %v10280_v31 = vpop.permute.xlu0 %3924  ;;  %v4689_v48 = vstv %s10217_s8  ;;  %v2870_v52 = vadd.f32 %v2868_v35, %v10188_v38  ;;  %v2891_v50 = vsel %vm1305_vm14, %v12411_v26, %v12410_v16  ;;  %v3763_v24 = vmul.f32 %v3761_v58, %v12267_v36  ;;  %v12412_v38 = vld [vmem:[#allocation42_spill] sm:$0xff]  ;;  %s10593_s8 = sld [smem:[#allocation10 + $0xd3]] }
 0x393   : > { %12409 = vst [vmem:[#allocation123_spill] sm:$0xff] %v10280_v31  ;;  %4683 = vrot.lane.b32.xlu1 %v4678_v61, %s12140_s3  ;;  %v3772_v41 = vstv %s10221_s15  ;;  %v3755_v8 = vrot.slane %v3751_v53, 1  ;;  %v3756_v15 = vrot.slane %v3752_v43, 1  ;;  %v3783_v2 = vstv %s10230_s20  ;;  %s10654_s15 = sld [smem:[#allocation10 + $0xf7]] }
 0x394   : > { %4681 = vrot.lane.b32.xlu0 %v4677_v51, %s12140_s3  ;;  %v3774_v56 = vmul.f32 %v3772_v41, %v12267_v36  ;;  %v2914_v4 = vsel %vm1305_vm14, %v12413_v39, %v12412_v38  ;;  %v3762_v35 = vmul.f32 %v3761_v58, %v7584_v49  ;;  %v4691_v16 = vmul.f32 %v4689_v48, %v12398_v3  ;;  %v12416_v58 = vld [vmem:[#allocation74_spill] sm:$0xff]  ;;  %s10664_s20 = sld [smem:[#allocation10 + $0x11b]] }
 0x395   : > { %v10304_v61 = vpop.permute.xlu1 %3949  ;;  %v3785_v53 = vmul.f32 %v3783_v2, %v12267_v36  ;;  %v2893_v43 = vadd.f32 %v2891_v50, %v10191_v54  ;;  %v3773_v51 = vmul.f32 %v3772_v41, %v7584_v49  ;;  %v4690_v31 = vmul.f32 %v4689_v48, %v12400_v37  ;;  %v12418_v48 = vld [vmem:[#allocation30_spill] sm:$0xff]  ;;  %v12419_v41 = vld [vmem:[#allocation32_spill] sm:$0xff] }
 0x396   : > { %12414 = vst [vmem:[#allocation124_spill] sm:$0xff] %v10304_v61  ;;  %v10312_v26 = vpop.permute.xlu0 %3947  ;;  %v4702_v17 = vstv %s10245_s27  ;;  %v10319_v38 = vadd.f32 %v12416_v58, %v2870_v52  ;;  %v10322_v39 = vsel %vm768_vm0, %v3744_v40, %v3745_v34  ;;  %v3767_v61 = vrot.slane %v3763_v24, 1  ;;  %s10672_s27 = sld [smem:[#allocation10 + $0x20]] }
 0x397   : > { %12415 = vst [vmem:[#allocation121_spill] sm:$0xff] %v10312_v26  ;;  %12417 = vst [vmem:[#allocation122_spill] sm:$0xff] %v10322_v39  ;;  %4696 = vrot.lane.b32.xlu1 %v4691_v16, %s12140_s3  ;;  %v3784_v54 = vmul.f32 %v3783_v2, %v7584_v49  ;;  %v2916_v50 = vadd.f32 %v2914_v4, %v10197_v9  ;;  %v2937_v26 = vsel %vm1305_vm14, %v12419_v41, %v12418_v48 }
 0x398   : > { %v10333_v52 = vsel %vm768_vm0, %v3755_v8, %v3756_v15  ;;  %v3778_v58 = vrot.slane %v3774_v56, 1  ;;  %4694 = vrot.lane.b32.xlu0 %v4690_v31, %s12140_s3  ;;  %v3766_v40 = vrot.slane %v3762_v35, 1  ;;  %v3789_v24 = vrot.slane %v3785_v53, 1 }
 0x399   : > { %12420 = vst [vmem:[#allocation125_spill] sm:$0xff] %v10333_v52  ;;  %v10338_v34 = vpop.permute.xlu1 %3972  ;;  %v4704_v9 = vmul.f32 %v4702_v17, %v12398_v3  ;;  %v4715_v2 = vstv %s10277_s29  ;;  %v10345_v4 = vadd.f32 %v9630_v18, %v2893_v43  ;;  %v3777_v8 = vrot.slane %v3773_v51, 1  ;;  %s10748_s29 = sld [smem:[#allocation10 + $0x68]] }
 0x39a   : > { %v10347_v15 = vpop.permute.xlu0 %3970  ;;  %v4703_v31 = vmul.f32 %v4702_v17, %v12400_v37  ;;  %v4728_v56 = vstv %s10284_s9  ;;  %v2939_v35 = vadd.f32 %v2937_v26, %v10199_v13  ;;  %v10355_v16 = vsel %vm768_vm0, %v3766_v40, %v3767_v61  ;;  %v12423_v13 = vld [vmem:[#allocation39_spill] sm:$0xff]  ;;  %v12424_v61 = vld [vmem:[#allocation40_spill] sm:$0xff]  ;;  %s10757_s9 = sld [smem:[#allocation10 + $0x8c]] }
 0x39b   : > { %12421 = vst [vmem:[#allocation126_spill] sm:$0xff] %v10355_v16  ;;  %v3788_v53 = vrot.slane %v3784_v54, 1  ;;  %4709 = vrot.lane.b32.xlu1 %v4704_v9, %s12140_s3  ;;  %v4741_v48 = vstv %s10293_s0  ;;  %v10360_v18 = vadd.f32 %v9671_v20, %v2916_v50  ;;  %v10363_v43 = vsel %vm768_vm0, %v3777_v8, %v3778_v58  ;;  %s10776_s0 = sld [smem:[#allocation10 + $0xb0]] }
 0x39c   : > { %12422 = vst [vmem:[#allocation127_spill] sm:$0xff] %v10363_v43  ;;  %4707 = vrot.lane.b32.xlu0 %v4703_v31, %s12140_s3  ;;  %v4717_v17 = vmul.f32 %v4715_v2, %v12398_v3  ;;  %v4754_v51 = vstv %s10298_s26  ;;  %v2960_v26 = vsel %vm1305_vm14, %v12424_v61, %v12423_v13  ;;  %v4716_v50 = vmul.f32 %v4715_v2, %v12400_v37  ;;  %v12427_v13 = vld [vmem:[#allocation44_spill] sm:$0xff]  ;;  %v12428_v61 = vld [vmem:[#allocation45_spill] sm:$0xff]  ;;  %s10820_s26 = sld [smem:[#allocation10 + $0x1b]] }
 0x39d   : > { %v10374_v54 = vsel %vm768_vm0, %v3788_v53, %v3789_v24  ;;  %v10376_v20 = vpop.permute.xlu1 %3995  ;;  %v4730_v41 = vmul.f32 %v4728_v56, %v12398_v3  ;;  %v4729_v40 = vmul.f32 %v4728_v56, %v12400_v37  ;;  %v4743_v9 = vmul.f32 %v4741_v48, %v12398_v3 }
 0x39e   : > { %12425 = vst [vmem:[#allocation128_spill] sm:$0xff] %v10376_v20  ;;  %v10382_v58 = vpop.permute.xlu0 %3993  ;;  %v4742_v8 = vmul.f32 %v4741_v48, %v12400_v37  ;;  %v4767_v24 = vstv %s10308_s25  ;;  %v10391_v2 = vadd.f32 %v9707_v11, %v2939_v35  ;;  %v10395_v31 = vmul.f32 %v4754_v51, %v12398_v3  ;;  %s10829_s25 = sld [smem:[#allocation10 + $0xd4]] }
 0x39f   : > { %12426 = vst [vmem:[#allocation129_spill] sm:$0xff] %v10382_v58  ;;  %4722 = vrot.lane.b32.xlu1 %v4717_v17, %s12140_s3  ;;  %v10398_v53 = vmul.f32 %v4754_v51, %v12400_v37  ;;  %v4780_v56 = vstv %s10316_s30  ;;  %v2962_v48 = vadd.f32 %v2960_v26, %v10238_v29  ;;  %v2983_v11 = vsel %vm1305_vm14, %v12428_v61, %v12427_v13  ;;  %s10841_s30 = sld [smem:[#allocation10 + $0xf8]] }
 0x3a0   : > { %4720 = vrot.lane.b32.xlu0 %v4716_v50, %s12140_s3  ;;  %v4793_v35 = vstv %s10326_s18  ;;  %v4162_v17 = vstv %s10266_s28  ;;  %v10415_v51 = vmul.f32 %v4767_v24, %v12398_v3  ;;  %v10418_v16 = vmul.f32 %v4767_v24, %v12400_v37  ;;  %s10699_s28 = sld [smem:[#allocation10 + $0x44]] }
 0x3a1   : > { %v10412_v43 = vpop.permute.xlu1 %4018  ;;  %v4806_v12 = vstv %s10336_s4  ;;  %v4173_v29 = vstv %s10342_s17  ;;  %v10425_v13 = vmul.f32 %v4780_v56, %v12398_v3  ;;  %v10428_v50 = vmul.f32 %v4780_v56, %v12400_v37  ;;  %s10848_s18 = sld [smem:[#allocation10 + $0x3f]] }
 0x3a2   : > { %12429 = vst [vmem:[#allocation130_spill] sm:$0xff] %v10412_v43  ;;  %v10422_v26 = vpop.permute.xlu0 %4016  ;;  %v4164_v61 = vmul.f32 %v4162_v17, %v12267_v36  ;;  %v4819_v47 = vstv %s10351_s11  ;;  %v2985_v52 = vadd.f32 %v2983_v11, %v10248_v25  ;;  %v10435_v24 = vmul.f32 %v4793_v35, %v12398_v3  ;;  %s10872_s4 = sld [smem:[#allocation10 + $0x11c]] }
 0x3a3   : > { %12430 = vst [vmem:[#allocation131_spill] sm:$0xff] %v10422_v26  ;;  %4735 = vrot.lane.b32.xlu1 %v4730_v41, %s12140_s3  ;;  %v4163_v39 = vmul.f32 %v4162_v17, %v7584_v49  ;;  %v4175_v23 = vmul.f32 %v4173_v29, %v12267_v36  ;;  %v10442_v56 = vadd.f32 %v9758_v59, %v2962_v48  ;;  %v12432_v48 = vld [vmem:[#allocation46_spill] sm:$0xff]  ;;  %v4845_v63 = vstv %s10401_s6  ;;  %s10895_s17 = sld [smem:[#allocation10 + $0x63]] }
 0x3a4   : > { %4733 = vrot.lane.b32.xlu0 %v4729_v40, %s12140_s3  ;;  %v10446_v0 = vmul.f32 %v4793_v35, %v12400_v37  ;;  %v10449_v25 = vmul.f32 %v4806_v12, %v12398_v3  ;;  %v4174_v41 = vmul.f32 %v4173_v29, %v7584_v49  ;;  %v10455_v17 = vmul.f32 %v4806_v12, %v12400_v37  ;;  %v12433_v35 = vld [vmem:[#allocation47_spill] sm:$0xff]  ;;  %s10916_s11 = sld [smem:[#allocation10 + $0x87]] }
 0x3a5   : > { %v10452_v11 = vpop.permute.xlu1 %4041  ;;  %v10458_v45 = vmul.f32 %v4819_v47, %v12398_v3  ;;  %v10461_v59 = vmul.f32 %v4819_v47, %v12400_v37  ;;  %v4184_v40 = vstv %s10368_s14  ;;  %v3006_v19 = vsel %vm1305_vm14, %v12433_v35, %v12432_v48  ;;  %s10928_s14 = sld [smem:[#allocation10 + $0x22]] }
 0x3a6   : > { %12431 = vst [vmem:[#allocation132_spill] sm:$0xff] %v10452_v11  ;;  %v10467_v29 = vpop.permute.xlu0 %4039  ;;  %v4168_v32 = vrot.slane %v4164_v61, 2  ;;  %v4832_v11 = vstv %s10388_s5  ;;  %v4186_v12 = vmul.f32 %v4184_v40, %v12267_v36  ;;  %v10474_v26 = vadd.f32 %v9808_v7, %v2985_v52  ;;  %s10948_s5 = sld [smem:[#allocation10 + $0xab]] }
 0x3a7   : > { %12434 = vst [vmem:[#allocation133_spill] sm:$0xff] %v10467_v29  ;;  %4748 = vrot.lane.b32.xlu1 %v4743_v9, %s12140_s3  ;;  %v4167_v47 = vrot.slane %v4163_v39, 2  ;;  %v4179_v43 = vrot.slane %v4175_v23, 2  ;;  %v4178_v5 = vrot.slane %v4174_v41, 2  ;;  %v4185_v48 = vmul.f32 %v4184_v40, %v7584_v49  ;;  %v12436_v39 = vld [vmem:[#allocation37_spill] sm:$0xff]  ;;  %v12437_v9 = vld [vmem:[#allocation48_spill] sm:$0xff] }
 0x3a8   : > { %4746 = vrot.lane.b32.xlu0 %v4742_v8, %s12140_s3  ;;  %v4195_v35 = vstv %s10380_s2  ;;  %v4946_v61 = vstv %s10410_s13  ;;  %v3008_v29 = vadd.f32 %v3006_v19, %v10258_v33  ;;  %v10488_v7 = vmul.f32 %v4832_v11, %v12398_v3  ;;  %v12438_v8 = vld [vmem:[#allocation49_spill] sm:$0xff]  ;;  %s10942_s2 = sld [smem:[#allocation10 + $0x46]] }
 0x3a9   : > { %v10485_v55 = vpop.permute.xlu1 %4064  ;;  %v4197_v23 = vmul.f32 %v4195_v35, %v12267_v36  ;;  %v4950_v52 = vmul.f32 %v4946_v61, %v12436_v39  ;;  %v3117_v41 = vsel %vm457_vm1, %v12438_v8, %v12437_v9  ;;  %v10498_v58 = vsel %vm1862_vm13, %v4167_v47, %v4168_v32  ;;  %s10977_s6 = sld [smem:[#allocation10 + $0x6a]] }
 0x3aa   : > { %12435 = vst [vmem:[#allocation134_spill] sm:$0xff] %v10485_v55  ;;  %v10495_v40 = vpop.permute.xlu0 %4062  ;;  %12440 = vst [vmem:[#allocation136_spill] sm:$0xff] %v10498_v58  ;;  %v10501_v19 = vmul.f32 %v4832_v11, %v12400_v37  ;;  %v4190_v33 = vrot.slane %v4186_v12, 2  ;;  %v10508_v55 = vsel %vm1862_vm13, %v4178_v5, %v4179_v43  ;;  %v4196_v20 = vmul.f32 %v4195_v35, %v7584_v49  ;;  %s10995_s13 = sld [smem:[#allocation10 + $0xcf]] }
 0x3ab   : > { %12439 = vst [vmem:[#allocation135_spill] sm:$0xff] %v10495_v40  ;;  %4761 = vrot.lane.b32.xlu1 %v10395_v31, %s12149_s10  ;;  %12441 = vst [vmem:[#allocation137_spill] sm:$0xff] %v10508_v55  ;;  %v4948_v9 = vmul.f32 %v4946_v61, %v12398_v3  ;;  %v4206_v8 = vstv %s10439_s21  ;;  %v4189_v32 = vrot.slane %v4185_v48, 2  ;;  %v10518_v11 = vmul.f32 %v4845_v63, %v12398_v3  ;;  %s11003_s21 = sld [smem:[#allocation10 + $0x8e]] }
 0x3ac   : > { %4759 = vrot.lane.b32.xlu0 %v10398_v53, %s12149_s10  ;;  %v10521_v31 = vmul.f32 %v4845_v63, %v12400_v37  ;;  %v4947_v5 = vmul.f32 %v4946_v61, %v12400_v37  ;;  %v10525_v43 = vadd.f32 %v3117_v41, %v10269_v46  ;;  %v10528_v12 = vadd.f32 %v9835_v30, %v3008_v29  ;;  %v12445_v63 = vld [vmem:[#allocation38_spill] sm:$0xff]  ;;  %v12447_v41 = vld [vmem:[#allocation51_spill] sm:$0xff] }
 0x3ad   : > { %v10530_v47 = vpop.permute.xlu1 %4087  ;;  %v4201_v35 = vrot.slane %v4197_v23, 2  ;;  %v4959_v53 = vrot.slane %v4950_v52, 1  ;;  %v10535_v55 = vsel %vm1862_vm13, %v4189_v32, %v4190_v33  ;;  %v4949_v40 = vmul.f32 %v4946_v61, %v12445_v63  ;;  %v12446_v46 = vld [vmem:[#allocation50_spill] sm:$0xff] }
 0x3ae   : > { %12442 = vst [vmem:[#allocation138_spill] sm:$0xff] %v10530_v47  ;;  %v10532_v48 = vpop.permute.xlu0 %4085  ;;  %12444 = vst [vmem:[#allocation140_spill] sm:$0xff] %v10535_v55  ;;  %v4207_v58 = vmul.f32 %v4206_v8, %v7584_v49  ;;  %v4969_v14 = vstv %s10471_s1  ;;  %v3140_v30 = vsel %vm457_vm1, %v12447_v41, %v12446_v46  ;;  %v4200_v29 = vrot.slane %v4196_v20, 2  ;;  %v12452_v55 = vld [vmem:[#allocation53_spill] sm:$0xff]  ;;  %s11030_s1 = sld [smem:[#allocation10 + $0xf3]] }
 0x3af   : > { %12443 = vst [vmem:[#allocation139_spill] sm:$0xff] %v10532_v48  ;;  %4774 = vrot.lane.b32.xlu1 %v10415_v51, %s12149_s10  ;;  %v4958_v23 = vrot.slane %v4948_v9, 1  ;;  %v4208_v52 = vmul.f32 %v4206_v8, %v12267_v36  ;;  %v4955_v33 = vrot.slane %v4947_v5, 1  ;;  %v4973_v61 = vmul.f32 %v4969_v14, %v12436_v39 }
 0x3b0   : > { %4772 = vrot.lane.b32.xlu0 %v10418_v16, %s12149_s10  ;;  %v4972_v32 = vmul.f32 %v4969_v14, %v12445_v63  ;;  %v4217_v48 = vstv %s10482_s7  ;;  %v10554_v46 = vsel %vm1862_vm13, %v4200_v29, %v4201_v35  ;;  %v4971_v51 = vmul.f32 %v4969_v14, %v12398_v3  ;;  %s11041_s7 = sld [smem:[#allocation10 + $0xb2]] }
 0x3b1   : > { %v10551_v47 = vpop.permute.xlu1 %4110  ;;  %12449 = vst [vmem:[#allocation142_spill] sm:$0xff] %v10554_v46  ;;  %v10557_v20 = vsel %vm768_vm0, %v4958_v23, %v4959_v53  ;;  %v4219_v16 = vmul.f32 %v4217_v48, %v12267_v36  ;;  %v10564_v9 = vadd.f32 %v3140_v30, %v10319_v38  ;;  %v4956_v5 = vrot.slane %v4949_v40, 1  ;;  %v12451_v46 = vld [vmem:[#allocation52_spill] sm:$0xff] }
 0x3b2   : > { %12448 = vst [vmem:[#allocation141_spill] sm:$0xff] %v10551_v47  ;;  %v10566_v8 = vpop.permute.xlu0 %4108  ;;  %v4211_v41 = vrot.slane %v4207_v58, 2  ;;  %v4970_v47 = vmul.f32 %v4969_v14, %v12400_v37  ;;  %v4212_v35 = vrot.slane %v4208_v52, 2  ;;  %v4218_v53 = vmul.f32 %v4217_v48, %v7584_v49 }
 0x3b3   : > { %12450 = vst [vmem:[#allocation143_spill] sm:$0xff] %v10566_v8  ;;  %4787 = vrot.lane.b32.xlu1 %v10425_v13, %s12149_s10  ;;  %v4992_v29 = vstv %s10513_s24  ;;  %v4228_v23 = vstv %s10503_s22  ;;  %v3163_v38 = vsel %vm457_vm1, %v12452_v55, %v12451_v46  ;;  %v4982_v58 = vrot.slane %v4973_v61, 1  ;;  %s11060_s22 = sld [smem:[#allocation10 + $0x117]] }
 0x3b4   : > { %4785 = vrot.lane.b32.xlu0 %v10428_v50, %s12149_s10  ;;  %v4979_v40 = vrot.slane %v4972_v32, 1  ;;  %v4996_v14 = vmul.f32 %v4992_v29, %v12436_v39  ;;  %v4981_v48 = vrot.slane %v4971_v51, 1  ;;  %v4223_v30 = vrot.slane %v4219_v16, 2  ;;  %v12455_v51 = vld [vmem:[#allocation54_spill] sm:$0xff]  ;;  %v12456_v16 = vld [vmem:[#allocation55_spill] sm:$0xff]  ;;  %s11069_s24 = sld [smem:[#allocation10 + $0xd6]] }
 0x3b5   : > { %v10584_v13 = vpop.permute.xlu1 %4133  ;;  %v4995_v52 = vmul.f32 %v4992_v29, %v12445_v63  ;;  %v4230_v8 = vmul.f32 %v4228_v23, %v12267_v36  ;;  %v4978_v55 = vrot.slane %v4970_v47, 1  ;;  %v4994_v46 = vmul.f32 %v4992_v29, %v12398_v3 }
 0x3b6   : > { %12453 = vst [vmem:[#allocation144_spill] sm:$0xff] %v10584_v13  ;;  %v10588_v1 = vpop.permute.xlu0 %4131  ;;  %v4993_v50 = vmul.f32 %v4992_v29, %v12400_v37  ;;  %v4229_v61 = vmul.f32 %v4228_v23, %v7584_v49  ;;  %v10596_v32 = vadd.f32 %v3163_v38, %v10345_v4  ;;  %v3186_v13 = vsel %vm457_vm1, %v12456_v16, %v12455_v51 }
 0x3b7   : > { %12454 = vst [vmem:[#allocation145_spill] sm:$0xff] %v10588_v1  ;;  %4800 = vrot.lane.b32.xlu1 %v10435_v24, %s12149_s10  ;;  %v10604_v47 = vsel %vm768_vm0, %v4955_v33, %v4956_v5  ;;  %v4222_v1 = vrot.slane %v4218_v53, 2  ;;  %v10609_v29 = vsel %vm1862_vm13, %v4211_v41, %v4212_v35  ;;  %v10612_v4 = vsel %vm768_vm0, %v4981_v48, %v4982_v58  ;;  %v12461_v48 = vld [vmem:[#allocation56_spill] sm:$0xff] }
 0x3b8   : > { %4798 = vrot.lane.b32.xlu0 %v10446_v0, %s12149_s10  ;;  %12457 = vst [vmem:[#allocation146_spill] sm:$0xff] %v10609_v29  ;;  %v10615_v23 = vsel %vm768_vm0, %v4978_v55, %v4979_v40  ;;  %v5005_v38 = vrot.slane %v4996_v14, 1  ;;  %v5002_v33 = vrot.slane %v4995_v52, 1  ;;  %v4234_v5 = vrot.slane %v4230_v8, 2  ;;  %v12462_v55 = vld [vmem:[#allocation57_spill] sm:$0xff] }
 0x3b9   : > { %v10617_v51 = vpop.permute.xlu1 %4156  ;;  %v10620_v24 = vsel %vm1862_vm13, %v4222_v1, %v4223_v30  ;;  %v5015_v0 = vstv %s10561_s16  ;;  %v10624_v41 = vadd.f32 %v3186_v13, %v10360_v18  ;;  %v5004_v53 = vrot.slane %v4994_v46, 1  ;;  %v12470_v29 = vld [vmem:[#allocation61_spill] sm:$0xff]  ;;  %s11080_s16 = sld [smem:[#allocation10 + $0xfa]] }
 0x3ba   : > { %12458 = vst [vmem:[#allocation147_spill] sm:$0xff] %v10617_v51  ;;  %12459 = vst [vmem:[#allocation28_spill] sm:$0xff] %v10620_v24  ;;  %v10626_v35 = vpop.permute.xlu0 %4154  ;;  %v5001_v58 = vrot.slane %v4993_v50, 1  ;;  %v4233_v40 = vrot.slane %v4229_v61, 2  ;;  %v3209_v14 = vsel %vm457_vm1, %v12462_v55, %v12461_v48  ;;  %v5019_v1 = vmul.f32 %v5015_v0, %v12436_v39  ;;  %v12469_v24 = vld [vmem:[#allocation60_spill] sm:$0xff] }
 0x3bb   : > { %12460 = vst [vmem:[#allocation29_spill] sm:$0xff] %v10626_v35  ;;  %4813 = vrot.lane.b32.xlu1 %v10449_v25, %s12149_s10  ;;  %v5018_v8 = vmul.f32 %v5015_v0, %v12445_v63  ;;  %v4239_v30 = vstv %s10574_s19  ;;  %v10639_v18 = vsel %vm768_vm0, %v5004_v53, %v5005_v38  ;;  %v5017_v13 = vmul.f32 %v5015_v0, %v12398_v3  ;;  %s11131_s19 = sld [smem:[#allocation10 + $0x11e]] }
 0x3bc   : > { %4811 = vrot.lane.b32.xlu0 %v10455_v17, %s12149_s10  ;;  %v4241_v52 = vmul.f32 %v4239_v30, %v12267_v36  ;;  %v5038_v46 = vstv %s10582_s23  ;;  %v10647_v25 = vsel %vm768_vm0, %v5001_v58, %v5002_v33  ;;  %v10650_v61 = vsel %vm1862_vm13, %v4233_v40, %v4234_v5  ;;  %v12466_v5 = vld [vmem:[#allocation58_spill] sm:$0xff]  ;;  %v12467_v58 = vld [vmem:[#allocation59_spill] sm:$0xff]  ;;  %s11139_s23 = sld [smem:[#allocation10 + $0x23]] }
 0x3bd   : > { %v10644_v50 = vpop.permute.xlu1 %4267  ;;  %12464 = vst [vmem:[#allocation149_spill] sm:$0xff] %v10650_v61  ;;  %v5016_v16 = vmul.f32 %v5015_v0, %v12400_v37  ;;  %v5042_v17 = vmul.f32 %v5038_v46, %v12436_v39  ;;  %v10657_v38 = vadd.f32 %v3209_v14, %v10391_v2  ;;  %v4240_v36 = vmul.f32 %v4239_v30, %v7584_v49 }
 0x3be   : > { %12463 = vst [vmem:[#allocation148_spill] sm:$0xff] %v10644_v50  ;;  %v10659_v53 = vpop.permute.xlu0 %4265  ;;  %v5041_v48 = vmul.f32 %v5038_v46, %v12445_v63  ;;  %v5061_v33 = vstv %s10593_s8  ;;  %v3232_v0 = vsel %vm457_vm1, %v12467_v58, %v12466_v5  ;;  %v5028_v40 = vrot.slane %v5019_v1, 1  ;;  %s11196_s8 = sld [smem:[#allocation10 + $0x47]] }
 0x3bf   : > { %12465 = vst [vmem:[#allocation34_spill] sm:$0xff] %v10659_v53  ;;  %4826 = vrot.lane.b32.xlu1 %v10458_v45, %s12149_s10  ;;  %v5025_v55 = vrot.slane %v5018_v8, 1  ;;  %v5040_v2 = vmul.f32 %v5038_v46, %v12398_v3  ;;  %v4245_v49 = vrot.slane %v4241_v52, 2  ;;  %v5039_v14 = vmul.f32 %v5038_v46, %v12400_v37 }
 0x3c0   : > { %4824 = vrot.lane.b32.xlu0 %v10461_v59, %s12149_s10  ;;  %v5065_v30 = vmul.f32 %v5061_v33, %v12436_v39  ;;  %v5064_v61 = vmul.f32 %v5061_v33, %v12445_v63  ;;  %v5027_v58 = vrot.slane %v5017_v13, 1  ;;  %v5024_v45 = vrot.slane %v5016_v16, 1 }
 0x3c1   : > { %v10679_v5 = vpop.permute.xlu1 %4290  ;;  %v5051_v1 = vrot.slane %v5042_v17, 1  ;;  %v5063_v8 = vmul.f32 %v5061_v33, %v12398_v3  ;;  %v3255_v53 = vsel %vm457_vm1, %v12470_v29, %v12469_v24  ;;  %v4244_v59 = vrot.slane %v4240_v36, 2 }
 0x3c2   : > { %12468 = vst [vmem:[#allocation35_spill] sm:$0xff] %v10679_v5  ;;  %v10685_v50 = vpop.permute.xlu0 %4288  ;;  %v5048_v52 = vrot.slane %v5041_v48, 1  ;;  %v5062_v46 = vmul.f32 %v5061_v33, %v12400_v37  ;;  %v10689_v35 = vadd.f32 %v3232_v0, %v10442_v56  ;;  %v10694_v13 = vsel %vm768_vm0, %v5027_v58, %v5028_v40 }
 0x3c3   : > { %12471 = vst [vmem:[#allocation42_spill] sm:$0xff] %v10685_v50  ;;  %4839 = vrot.lane.b32.xlu1 %v10488_v7, %s12149_s10  ;;  %v10697_v16 = vsel %vm768_vm0, %v5024_v45, %v5025_v55  ;;  %v5050_v29 = vrot.slane %v5040_v2, 1  ;;  %v10704_v24 = vsel %vm1862_vm13, %v4244_v59, %v4245_v49  ;;  %v5047_v56 = vrot.slane %v5039_v14, 1 }
 0x3c4   : > { %4837 = vrot.lane.b32.xlu0 %v10501_v19, %s12149_s10  ;;  %12472 = vst [vmem:[#allocation43_spill] sm:$0xff] %v10704_v24  ;;  %v5074_v17 = vrot.slane %v5065_v30, 1  ;;  %v5071_v7 = vrot.slane %v5064_v61, 1  ;;  %v10707_v36 = vadd.f32 %v3255_v53, %v10474_v26  ;;  %v5073_v0 = vrot.slane %v5063_v8, 1  ;;  %v12475_v61 = vld [vmem:[#allocation62_spill] sm:$0xff]  ;;  %v12476_v30 = vld [vmem:[#allocation63_spill] sm:$0xff] }
 0x3c5   : > { %v10709_v48 = vpop.permute.xlu1 %4313  ;;  %v10712_v33 = vsel %vm768_vm0, %v5050_v29, %v5051_v1  ;;  %v5084_v40 = vstv %s10654_s15  ;;  %v10718_v19 = vsel %vm768_vm0, %v5047_v56, %v5048_v52  ;;  %v5070_v2 = vrot.slane %v5062_v46, 1  ;;  %v12477_v46 = vld [vmem:[#allocation64_spill] sm:$0xff]  ;;  %s11222_s15 = sld [smem:[#allocation10 + $0x6b]] }
 0x3c6   : > { %12473 = vst [vmem:[#allocation74_spill] sm:$0xff] %v10709_v48  ;;  %v10715_v55 = vpop.permute.xlu0 %4311  ;;  %v5088_v49 = vmul.f32 %v5084_v40, %v12436_v39  ;;  %v5107_v14 = vstv %s10664_s20  ;;  %v3278_v26 = vsel %vm457_vm1, %v12476_v30, %v12475_v61  ;;  %v5087_v53 = vmul.f32 %v5084_v40, %v12445_v63  ;;  %s11427_s20 = sld [smem:[#allocation10 + $0x8f]] }
 0x3c7   : > { %12474 = vst [vmem:[#allocation30_spill] sm:$0xff] %v10715_v55  ;;  %4852 = vrot.lane.b32.xlu1 %v10518_v11, %s12149_s10  ;;  %v5111_v58 = vmul.f32 %v5107_v14, %v12436_v39  ;;  %v5130_v45 = vstv %s10672_s27  ;;  %v10733_v1 = vsel %vm768_vm0, %v5073_v0, %v5074_v17  ;;  %v10736_v8 = vsel %vm768_vm0, %v5070_v2, %v5071_v7  ;;  %v12478_v11 = vld [vmem:[#allocation65_spill] sm:$0xff]  ;;  %s11448_s27 = sld [smem:[#allocation10 + $0xb3]] }
 0x3c8   : > { %4850 = vrot.lane.b32.xlu0 %v10521_v31, %s12149_s10  ;;  %v5086_v59 = vmul.f32 %v5084_v40, %v12398_v3  ;;  %v5110_v52 = vmul.f32 %v5107_v14, %v12445_v63  ;;  %v3301_v29 = vsel %vm1305_vm14, %v12478_v11, %v12477_v46  ;;  %v5085_v61 = vmul.f32 %v5084_v40, %v12400_v37 }
 0x3c9   : > { %v10743_v56 = vpop.permute.xlu1 %4336  ;;  %v5109_v31 = vmul.f32 %v5107_v14, %v12398_v3  ;;  %v5134_v17 = vmul.f32 %v5130_v45, %v12436_v39  ;;  %v10751_v7 = vadd.f32 %v3278_v26, %v10528_v12  ;;  %v5097_v2 = vrot.slane %v5088_v49, 1 }
 0x3ca   : > { %12479 = vst [vmem:[#allocation32_spill] sm:$0xff] %v10743_v56  ;;  %v10753_v0 = vpop.permute.xlu0 %4334  ;;  %v5108_v30 = vmul.f32 %v5107_v14, %v12400_v37  ;;  %v5133_v46 = vmul.f32 %v5130_v45, %v12445_v63  ;;  %v5094_v40 = vrot.slane %v5087_v53, 1  ;;  %v5120_v11 = vrot.slane %v5111_v58, 1  ;;  %v12482_v53 = vld [vmem:[#allocation66_spill] sm:$0xff]  ;;  %v12483_v58 = vld [vmem:[#allocation67_spill] sm:$0xff] }
 0x3cb   : > { %12480 = vst [vmem:[#allocation39_spill] sm:$0xff] %v10753_v0  ;;  %4963 = vrot.lane.b32.xlu1 %v10557_v20, %s12140_s3  ;;  %v5132_v56 = vmul.f32 %v5130_v45, %v12398_v3  ;;  %v5153_v55 = vstv %s10699_s28  ;;  %v3303_v12 = vadd.f32 %v3301_v29, %v10525_v43  ;;  %v5096_v49 = vrot.slane %v5086_v59, 1  ;;  %s11496_s28 = sld [smem:[#allocation10 + $0x1e]] }
 0x3cc   : > { %4961 = vrot.lane.b32.xlu0 %v10604_v47, %s12140_s3  ;;  %v5117_v26 = vrot.slane %v5110_v52, 1  ;;  %v5131_v14 = vmul.f32 %v5130_v45, %v12400_v37  ;;  %v5093_v48 = vrot.slane %v5085_v61, 1  ;;  %v5119_v50 = vrot.slane %v5109_v31, 1 }
 0x3cd   : > { %v10767_v0 = vpop.permute.xlu1 %4359  ;;  %v5143_v5 = vrot.slane %v5134_v17, 1  ;;  %v5157_v20 = vmul.f32 %v5153_v55, %v12436_v39  ;;  %v3324_v24 = vsel %vm1305_vm14, %v12483_v58, %v12482_v53  ;;  %v5116_v43 = vrot.slane %v5108_v30, 1  ;;  %v12490_v53 = vld [vmem:[#allocation71_spill] sm:$0xff] }
 0x3ce   : > { %12481 = vst [vmem:[#allocation40_spill] sm:$0xff] %v10767_v0  ;;  %v10773_v51 = vpop.permute.xlu0 %4357  ;;  %v5140_v29 = vrot.slane %v5133_v46, 1  ;;  %v5155_v47 = vmul.f32 %v5153_v55, %v12398_v3  ;;  %v10781_v45 = vsel %vm768_vm0, %v5096_v49, %v5097_v2  ;;  %v10784_v59 = vsel %vm768_vm0, %v5093_v48, %v5094_v40  ;;  %v12487_v49 = vld [vmem:[#allocation68_spill] sm:$0xff] }
 0x3cf   : > { %12484 = vst [vmem:[#allocation44_spill] sm:$0xff] %v10773_v51  ;;  %4986 = vrot.lane.b32.xlu1 %v10612_v4, %s12140_s3  ;;  %v10787_v52 = vsel %vm768_vm0, %v5119_v50, %v5120_v11  ;;  %v5142_v61 = vrot.slane %v5132_v56, 1  ;;  %v10790_v31 = vadd.f32 %v9929_v42, %v3303_v12  ;;  %v10795_v17 = vsel %vm768_vm0, %v5116_v43, %v5117_v26  ;;  %v12488_v26 = vld [vmem:[#allocation69_spill] sm:$0xff] }
 0x3d0   : > { %4984 = vrot.lane.b32.xlu0 %v10615_v23, %s12140_s3  ;;  %v5139_v4 = vrot.slane %v5131_v14, 1  ;;  %v5156_v2 = vmul.f32 %v5153_v55, %v12445_v63  ;;  %v3326_v48 = vadd.f32 %v3324_v24, %v10564_v9  ;;  %v5166_v56 = vrot.slane %v5157_v20, 1  ;;  %v12489_v20 = vld [vmem:[#allocation70_spill] sm:$0xff] }
 0x3d1   : > { %v10799_v30 = vpop.permute.xlu1 %4382  ;;  %v10802_v50 = vsel %vm768_vm0, %v5142_v61, %v5143_v5  ;;  %v5176_v46 = vstv %s10748_s29  ;;  %v5165_v23 = vrot.slane %v5155_v47, 1  ;;  %v5154_v11 = vmul.f32 %v5153_v55, %v12400_v37  ;;  %s11516_s29 = sld [smem:[#allocation10 + $0x42]] }
 0x3d2   : > { %12485 = vst [vmem:[#allocation45_spill] sm:$0xff] %v10799_v30  ;;  %v10805_v42 = vpop.permute.xlu0 %4380  ;;  %v10808_v40 = vsel %vm768_vm0, %v5139_v4, %v5140_v29  ;;  %v5199_v12 = vstv %s10757_s9  ;;  %v3347_v9 = vsel %vm1305_vm14, %v12488_v26, %v12487_v49  ;;  %v5180_v5 = vmul.f32 %v5176_v46, %v12436_v39  ;;  %s11534_s9 = sld [smem:[#allocation10 + $0xfb]] }
 0x3d3   : > { %12486 = vst [vmem:[#allocation46_spill] sm:$0xff] %v10805_v42  ;;  %5009 = vrot.lane.b32.xlu1 %v10639_v18, %s12140_s3  ;;  %v5179_v24 = vmul.f32 %v5176_v46, %v12445_v63  ;;  %v5203_v14 = vmul.f32 %v5199_v12, %v12436_v39  ;;  %v3370_v55 = vsel %vm1305_vm14, %v12490_v53, %v12489_v20  ;;  %v5163_v58 = vrot.slane %v5156_v2, 1 }
 0x3d4   : > { %5007 = vrot.lane.b32.xlu0 %v10647_v25, %s12140_s3  ;;  %v5178_v43 = vmul.f32 %v5176_v46, %v12398_v3  ;;  %v5202_v18 = vmul.f32 %v5199_v12, %v12445_v63  ;;  %v10832_v29 = vadd.f32 %v9962_v60, %v3326_v48  ;;  %v10837_v61 = vsel %vm768_vm0, %v5165_v23, %v5166_v56 }
 0x3d5   : > { %v10834_v47 = vpop.permute.xlu1 %4405  ;;  %v5177_v4 = vmul.f32 %v5176_v46, %v12400_v37  ;;  %v5201_v49 = vmul.f32 %v5199_v12, %v12398_v3  ;;  %v3349_v25 = vadd.f32 %v3347_v9, %v10596_v32  ;;  %v5162_v26 = vrot.slane %v5154_v11, 1 }
 0x3d6   : > { %12491 = vst [vmem:[#allocation47_spill] sm:$0xff] %v10834_v47  ;;  %v10844_v2 = vpop.permute.xlu0 %4403  ;;  %v5200_v20 = vmul.f32 %v5199_v12, %v12400_v37  ;;  %v5222_v60 = vstv %s10776_s0  ;;  %v3372_v48 = vadd.f32 %v3370_v55, %v10624_v41  ;;  %v5189_v56 = vrot.slane %v5180_v5, 1  ;;  %v12493_v5 = vld [vmem:[#allocation72_spill] sm:$0xff]  ;;  %s11552_s0 = sld [smem:[#allocation10 + $0x66]] }
 0x3d7   : > { %12492 = vst [vmem:[#allocation37_spill] sm:$0xff] %v10844_v2  ;;  %5032 = vrot.lane.b32.xlu1 %v10694_v13, %s12140_s3  ;;  %v5186_v46 = vrot.slane %v5179_v24, 1  ;;  %v5212_v23 = vrot.slane %v5203_v14, 1  ;;  %v10856_v32 = vsel %vm768_vm0, %v5162_v26, %v5163_v58  ;;  %v5188_v11 = vrot.slane %v5178_v43, 1  ;;  %v12494_v24 = vld [vmem:[#allocation73_spill] sm:$0xff] }
 0x3d8   : > { %5030 = vrot.lane.b32.xlu0 %v10697_v16, %s12140_s3  ;;  %v5209_v9 = vrot.slane %v5202_v18, 1  ;;  %v5226_v12 = vmul.f32 %v5222_v60, %v12436_v39  ;;  %v5185_v2 = vrot.slane %v5177_v4, 1  ;;  %v5211_v41 = vrot.slane %v5201_v49, 1 }
 0x3d9   : > { %v10859_v53 = vpop.permute.xlu1 %4428  ;;  %v5224_v55 = vmul.f32 %v5222_v60, %v12398_v3  ;;  %v5225_v13 = vmul.f32 %v5222_v60, %v12445_v63  ;;  %v3393_v16 = vsel %vm1305_vm14, %v12494_v24, %v12493_v5  ;;  %v10867_v14 = vadd.f32 %v9978_v57, %v3349_v25  ;;  %v12496_v24 = vld [vmem:[#allocation75_spill] sm:$0xff] }
 0x3da   : > { %v10869_v58 = vpop.permute.xlu0 %4426  ;;  %v5208_v43 = vrot.slane %v5200_v20, 1  ;;  %v5223_v18 = vmul.f32 %v5222_v60, %v12400_v37  ;;  %v10875_v4 = vadd.f32 %v10012_v21, %v3372_v48  ;;  %v10880_v49 = vsel %vm768_vm0, %v5188_v11, %v5189_v56 }
 0x3db   : > { %5055 = vrot.lane.b32.xlu1 %v10712_v33, %s12140_s3  ;;  %v10883_v57 = vsel %vm768_vm0, %v5185_v2, %v5186_v46  ;;  %v10886_v25 = vsel %vm768_vm0, %v5211_v41, %v5212_v23  ;;  %v5235_v21 = vrot.slane %v5226_v12, 1  ;;  %v4618_v20 = vstv %s10820_s26  ;;  %v12495_v12 = vld [vmem:[#allocation31_spill] sm:$0xff]  ;;  %s11556_s26 = sld [smem:[#allocation10 + $0x11f]] }
 0x3dc   : > { %5053 = vrot.lane.b32.xlu0 %v10718_v19, %s12140_s3  ;;  %v10891_v26 = vsel %vm768_vm0, %v5208_v43, %v5209_v9  ;;  %v5245_v60 = vstv %s10829_s25  ;;  %v3395_v33 = vadd.f32 %v3393_v16, %v10657_v38  ;;  %v5234_v2 = vrot.slane %v5224_v55, 1  ;;  %v12497_v16 = vld [vmem:[#allocation76_spill] sm:$0xff]  ;;  %s11570_s25 = sld [smem:[#allocation10 + $0x8a]] }
 0x3dd   : > { %v10898_v48 = vpop.permute.xlu1 %4451  ;;  %v5232_v56 = vrot.slane %v5225_v13, 1  ;;  %v5268_v46 = vstv %s10841_s30  ;;  %v5231_v11 = vrot.slane %v5223_v18, 1  ;;  %v5249_v19 = vmul.f32 %v5245_v60, %v12436_v39  ;;  %s11586_s30 = sld [smem:[#allocation10 + $0xae]] }
 0x3de   : > { %v10901_v23 = vpop.permute.xlu0 %4449  ;;  %v5248_v9 = vmul.f32 %v5245_v60, %v12445_v63  ;;  %v4622_v41 = vstv %s10848_s18  ;;  %v3416_v5 = vsel %vm1305_vm14, %v9611_v44, %v12495_v12  ;;  %v10912_v38 = vmul.f32 %v4618_v20, %v12400_v37  ;;  %s11603_s18 = sld [smem:[#allocation10 + $0xd2]] }
 0x3df   : > { %5078 = vrot.lane.b32.xlu1 %v10733_v1, %s12140_s3  ;;  %v5247_v55 = vmul.f32 %v5245_v60, %v12398_v3  ;;  %v5272_v13 = vmul.f32 %v5268_v46, %v12436_v39  ;;  %v3439_v43 = vsel %vm1305_vm14, %v12497_v16, %v12496_v24  ;;  %v10924_v44 = vsel %vm768_vm0, %v5234_v2, %v5235_v21 }
 0x3e0   : > { %5076 = vrot.lane.b32.xlu0 %v10736_v8, %s12140_s3  ;;  %v5246_v1 = vmul.f32 %v5245_v60, %v12400_v37  ;;  %v5270_v18 = vmul.f32 %v5268_v46, %v12398_v3  ;;  %v10931_v20 = vadd.f32 %v10040_v22, %v3395_v33  ;;  %v10936_v24 = vsel %vm768_vm0, %v5231_v11, %v5232_v56 }
 0x3e1   : > { %v10933_v12 = vpop.permute.xlu1 %4474  ;;  %v10939_v16 = vmul.f32 %v4622_v41, %v12400_v37  ;;  %v5271_v8 = vmul.f32 %v5268_v46, %v12445_v63  ;;  %v3418_v21 = vadd.f32 %v3416_v5, %v10689_v35  ;;  %v5258_v2 = vrot.slane %v5249_v19, 1 }
 0x3e2   : > { %v10945_v60 = vpop.permute.xlu0 %4472  ;;  %v5255_v22 = vrot.slane %v5248_v9, 1  ;;  %v5291_v33 = vstv %s10872_s4  ;;  %v3441_v56 = vadd.f32 %v3439_v43, %v10707_v36  ;;  %v5257_v11 = vrot.slane %v5247_v55, 1  ;;  %v12499_v9 = vld [vmem:[#allocation77_spill] sm:$0xff]  ;;  %s11618_s4 = sld [smem:[#allocation10 + $0xf6]] }
 0x3e3   : > { %12498 = vst [vmem:[#allocation48_spill] sm:$0xff] %v10939_v16  ;;  %5101 = vrot.lane.b32.xlu1 %v10781_v45, %s12140_s3  ;;  %v5281_v41 = vrot.slane %v5272_v13, 1  ;;  %v5269_v47 = vmul.f32 %v5268_v46, %v12400_v37  ;;  %v5254_v35 = vrot.slane %v5246_v1, 1  ;;  %v5280_v5 = vrot.slane %v5270_v18, 1 }
 0x3e4   : > { %5099 = vrot.lane.b32.xlu0 %v10784_v59, %s12140_s3  ;;  %v4626_v42 = vstv %s10895_s17  ;;  %v5295_v19 = vmul.f32 %v5291_v33, %v12436_v39  ;;  %v3462_v30 = vsel %vm1305_vm14, %v12499_v9, %v9652_v27  ;;  %v5278_v43 = vrot.slane %v5271_v8, 1  ;;  %s11632_s17 = sld [smem:[#allocation10 + $0x11a]] }
 0x3e5   : > { %v10961_v36 = vpop.permute.xlu1 %4497  ;;  %v5293_v45 = vmul.f32 %v5291_v33, %v12398_v3  ;;  %v5294_v46 = vmul.f32 %v5291_v33, %v12445_v63  ;;  %v10966_v59 = vadd.f32 %v10068_v28, %v3418_v21  ;;  %v10971_v13 = vsel %vm768_vm0, %v5257_v11, %v5258_v2 }
 0x3e6   : > { %12500 = vst [vmem:[#allocation49_spill] sm:$0xff] %v10961_v36  ;;  %v10968_v55 = vpop.permute.xlu0 %4495  ;;  %v10974_v1 = vsel %vm768_vm0, %v5254_v35, %v5255_v22  ;;  %v5292_v27 = vmul.f32 %v5291_v33, %v12400_v37  ;;  %v10980_v18 = vadd.f32 %v10123_v10, %v3441_v56  ;;  %v10985_v28 = vsel %vm768_vm0, %v5280_v5, %v5281_v41  ;;  %v12505_v5 = vld [vmem:[#allocation78_spill] sm:$0xff] }
 0x3e7   : > { %12501 = vst [vmem:[#allocation38_spill] sm:$0xff] %v10968_v55  ;;  %5124 = vrot.lane.b32.xlu1 %v10787_v52, %s12140_s3  ;;  %v5277_v8 = vrot.slane %v5269_v47, 1  ;;  %v10988_v21 = vmul.f32 %v4626_v42, %v12400_v37  ;;  %v3464_v2 = vadd.f32 %v3462_v30, %v10751_v7  ;;  %v5304_v22 = vrot.slane %v5295_v19, 1  ;;  %v12506_v19 = vld [vmem:[#allocation79_spill] sm:$0xff] }
 0x3e8   : > { %5122 = vrot.lane.b32.xlu0 %v10795_v17, %s12140_s3  ;;  %v4630_v10 = vstv %s10916_s11  ;;  %v5402_v33 = vstv %s10928_s14  ;;  %v5303_v47 = vrot.slane %v5293_v45, 1  ;;  %v5301_v42 = vrot.slane %v5294_v46, 1  ;;  %s6279_s11 = sld [smem:[#allocation10 + $0x45]] }
 0x3e9   : > { %12502 = vst [vmem:[#allocation50_spill] sm:$0xff] %v10988_v21  ;;  %v10997_v52 = vpop.permute.xlu1 %4520  ;;  %v11000_v56 = vsel %vm768_vm0, %v5277_v8, %v5278_v43  ;;  %v5406_v11 = vmul.f32 %v5402_v33, %v12436_v39  ;;  %v5300_v30 = vrot.slane %v5292_v27, 1  ;;  %v5405_v17 = vmul.f32 %v5402_v33, %v12445_v63  ;;  %s6280_s14 = sld [smem:[#allocation10 + $0x69]] }
 0x3ea   : > { %12503 = vst [vmem:[#allocation51_spill] sm:$0xff] %v10997_v52  ;;  %v11005_v7 = vpop.permute.xlu0 %4518  ;;  %v4634_v41 = vstv %s10948_s5  ;;  %v5425_v35 = vstv %s10942_s2  ;;  %v3507_v9 = vsel %vm457_vm1, %v12506_v19, %v12505_v5  ;;  %v11016_v43 = vmul.f32 %v4630_v10, %v12400_v37  ;;  %s11704_s2 = sld [smem:[#allocation10 + $0x8d]] }
 0x3eb   : > { %12504 = vst [vmem:[#allocation52_spill] sm:$0xff] %v11005_v7  ;;  %5147 = vrot.lane.b32.xlu1 %v10802_v50, %s12149_s10  ;;  %v5404_v45 = vmul.f32 %v5402_v33, %v12398_v3  ;;  %v5429_v46 = vmul.f32 %v5425_v35, %v12436_v39  ;;  %v11021_v27 = vadd.f32 %v10140_v62, %v3464_v2  ;;  %v5415_v62 = vrot.slane %v5406_v11, 2  ;;  %s11715_s5 = sld [smem:[#allocation4 + %s6584_s12]] }
 0x3ec   : > { %12507 = vst [vmem:[#allocation53_spill] sm:$0xff] %v11016_v43  ;;  %5145 = vrot.lane.b32.xlu0 %v10808_v40, %s12149_s10  ;;  %v11026_v8 = vsel %vm768_vm0, %v5303_v47, %v5304_v22  ;;  %v5403_v5 = vmul.f32 %v5402_v33, %v12400_v37  ;;  %v5428_v50 = vmul.f32 %v5425_v35, %v12445_v63  ;;  %v5412_v47 = vrot.slane %v5405_v17, 2 }
 0x3ed   : > { %v11032_v10 = vpop.permute.xlu1 %4543  ;;  %v11035_v19 = vsel %vm768_vm0, %v5300_v30, %v5301_v42  ;;  %v11038_v2 = vmul.f32 %v4634_v41, %v12400_v37  ;;  %v5427_v40 = vmul.f32 %v5425_v35, %v12398_v3  ;;  %v11044_v22 = vadd.f32 %v3507_v9, %v10790_v31  ;;  %v12511_v42 = vld [vmem:[#allocation80_spill] sm:$0xff]  ;;  %v12512_v30 = vld [vmem:[#allocation81_spill] sm:$0xff] }
 0x3ee   : > { %12508 = vst [vmem:[#allocation54_spill] sm:$0xff] %v11032_v10  ;;  %v11046_v33 = vpop.permute.xlu0 %4541  ;;  %v5426_v43 = vmul.f32 %v5425_v35, %v12400_v37  ;;  %v5448_v10 = vstv %s10977_s6  ;;  %v3520_v11 = vsel %vm457_vm1, %v12512_v30, %v12511_v42  ;;  %v5414_v41 = vrot.slane %v5404_v45, 2  ;;  %s11719_s6 = sld [smem:[#allocation10 + $0xb1]] }
 0x3ef   : > { %12509 = vst [vmem:[#allocation55_spill] sm:$0xff] %v11038_v2  ;;  %12510 = vst [vmem:[#allocation56_spill] sm:$0xff] %v11046_v33  ;;  %5170 = vrot.lane.b32.xlu1 %v10837_v61, %s12149_s10  ;;  %v5438_v2 = vrot.slane %v5429_v46, 2  ;;  %v5452_v21 = vmul.f32 %v5448_v10, %v12436_v39  ;;  %v5411_v31 = vrot.slane %v5403_v5, 2  ;;  %v5435_v17 = vrot.slane %v5428_v50, 2 }
 0x3f0   : > { %5168 = vrot.lane.b32.xlu0 %v10856_v32, %s12149_s10  ;;  %v4638_v9 = vstv %s10995_s13  ;;  %v5451_v35 = vmul.f32 %v5448_v10, %v12445_v63  ;;  %v11065_v42 = vsel %vm1862_vm13, %v5414_v41, %v5415_v62  ;;  %v5437_v61 = vrot.slane %v5427_v40, 2  ;;  %v12515_v62 = vld [vmem:[#allocation82_spill] sm:$0xff]  ;;  %v12516_v40 = vld [vmem:[#allocation33_spill] sm:$0xff]  ;;  %s11724_s13 = sld [smem:[#allocation10 + $0xd5]] }
 0x3f1   : > { %v11062_v33 = vpop.permute.xlu1 %4566  ;;  %v5450_v45 = vmul.f32 %v5448_v10, %v12398_v3  ;;  %v5471_v46 = vstv %s11003_s21  ;;  %v11072_v32 = vadd.f32 %v3520_v11, %v10832_v29  ;;  %v11077_v50 = vsel %vm1862_vm13, %v5411_v31, %v5412_v47  ;;  %s12625_s21 = sld [smem:[#allocation20_spill]] }
 0x3f2   : > { %12513 = vst [vmem:[#allocation57_spill] sm:$0xff] %v11062_v33  ;;  %v11074_v5 = vpop.permute.xlu0 %4564  ;;  %v5434_v30 = vrot.slane %v5426_v43, 2  ;;  %v5449_v33 = vmul.f32 %v5448_v10, %v12400_v37  ;;  %v3533_v41 = vsel %vm457_vm1, %v12516_v40, %v12515_v62  ;;  %v11088_v29 = vsel %vm1862_vm13, %v5437_v61, %v5438_v2 }
 0x3f3   : > { %12514 = vst [vmem:[#allocation58_spill] sm:$0xff] %v11074_v5  ;;  %5193 = vrot.lane.b32.xlu1 %v10880_v49, %s12149_s10  ;;  %v11091_v11 = vmul.f32 %v4638_v9, %v12400_v37  ;;  %v5461_v47 = vrot.slane %v5452_v21, 2  ;;  %v5458_v10 = vrot.slane %v5451_v35, 2  ;;  %v4642_v31 = vstv %s11030_s1  ;;  %v12521_v5 = vld [vmem:[#allocation83_spill] sm:$0xff] }
 0x3f4   : > { %5191 = vrot.lane.b32.xlu0 %v10883_v57, %s12149_s10  ;;  %v11096_v43 = vsel %vm1862_vm13, %v5434_v30, %v5435_v17  ;;  %v5473_v62 = vmul.f32 %v5471_v46, %v12398_v3  ;;  %v5460_v49 = vrot.slane %v5450_v45, 2  ;;  %v5475_v2 = vmul.f32 %v5471_v46, %v12436_v39 }
 0x3f5   : > { %12517 = vst [vmem:[#allocation59_spill] sm:$0xff] %v11091_v11  ;;  %v11100_v40 = vpop.permute.xlu1 %4589  ;;  %v5472_v9 = vmul.f32 %v5471_v46, %v12400_v37  ;;  %v5494_v61 = vstv %s11041_s7  ;;  %v11106_v21 = vadd.f32 %v3533_v41, %v10867_v14  ;;  %v5457_v17 = vrot.slane %v5449_v33, 2  ;;  %v12520_v11 = vld [vmem:[#allocation41_spill] sm:$0xff]  ;;  %s11746_s7 = sld [smem:[#allocation10 + $0xf9]] }
 0x3f6   : > { %12518 = vst [vmem:[#allocation60_spill] sm:$0xff] %v11100_v40  ;;  %v11108_v57 = vpop.permute.xlu0 %4587  ;;  %v5474_v35 = vmul.f32 %v5471_v46, %v12445_v63  ;;  %v5498_v30 = vmul.f32 %v5494_v61, %v12436_v39  ;;  %v3546_v45 = vsel %vm457_vm1, %v12521_v5, %v12520_v11  ;;  %v11118_v40 = vsel %vm1862_vm13, %v5460_v49, %v5461_v47 }
 0x3f7   : > { %12519 = vst [vmem:[#allocation61_spill] sm:$0xff] %v11108_v57  ;;  %5216 = vrot.lane.b32.xlu1 %v10886_v25, %s12149_s10  ;;  %v11121_v14 = vmul.f32 %v4642_v31, %v12400_v37  ;;  %v5497_v33 = vmul.f32 %v5494_v61, %v12445_v63  ;;  %v11127_v46 = vsel %vm1862_vm13, %v5457_v17, %v5458_v10  ;;  %v5483_v41 = vrot.slane %v5473_v62, 2  ;;  %v12523_v62 = vld [vmem:[#allocation84_spill] sm:$0xff]  ;;  %v12524_v17 = vld [vmem:[#allocation85_spill] sm:$0xff]  ;;  %s298_s1 = sand.u32 1, %s12625_s21  }
 0x3f8   : > { %5214 = vrot.lane.b32.xlu0 %v10891_v26, %s12149_s10  ;;  %v4646_v5 = vstv %s11060_s22  ;;  %v5496_v11 = vmul.f32 %v5494_v61, %v12398_v3  ;;  %v5484_v47 = vrot.slane %v5475_v2, 2  ;;  %v5480_v49 = vrot.slane %v5472_v9, 2  ;;  %s5949_s22 = sshll.u32 %s298_s1, 6 }
 0x3f9   : > { %12522 = vst [vmem:[#allocation62_spill] sm:$0xff] %v11121_v14  ;;  %v4613_v25 = vpop.permute.xlu1 %4612  ;;  %v5495_v31 = vmul.f32 %v5494_v61, %v12400_v37  ;;  %v5517_v14 = vstv %s11069_s24  ;;  %v11136_v57 = vadd.f32 %v3546_v45, %v10875_v4  ;;  %v5481_v26 = vrot.slane %v5474_v35, 2  ;;  %s11768_s24 = sld [smem:[#allocation10 + $0x11d]] }
 0x3fa   : > { %v4611_v51 = vpop.permute.xlu0 %4610  ;;  %v5507_v0 = vrot.slane %v5498_v30, 2  ;;  %v5540_v10 = vstv %s11080_s16  ;;  %v3559_v7 = vsel %vm457_vm1, %v12524_v17, %v12523_v62  ;;  %v11150_v2 = vmul.f32 %v4646_v5, %v12400_v37  ;;  %s11777_s16 = scalar_lea.vmem [#allocation13], %s5949_s22 }
 0x3fb   : > { %v11145_v52 = vsel %vm1305_vm14, %v4611_v51, %v4613_v25  ;;  %5239 = vrot.lane.b32.xlu1 %v10924_v44, %s12149_s10  ;;  %v5504_v4 = vrot.slane %v5497_v33, 2  ;;  %v5506_v9 = vrot.slane %v5496_v11, 2  ;;  %v5519_v61 = vmul.f32 %v5517_v14, %v12398_v3 }
 0x3fc   : > { %5237 = vrot.lane.b32.xlu0 %v10936_v24, %s12149_s10  ;;  %v5521_v35 = vmul.f32 %v5517_v14, %v12436_v39  ;;  %v5518_v30 = vmul.f32 %v5517_v14, %v12400_v37  ;;  %v11158_v51 = vsel %vm1862_vm13, %v5483_v41, %v5484_v47  ;;  %v5503_v25 = vrot.slane %v5495_v31, 2  ;;  %v12525_v41 = vld [vmem:[#allocation86_spill] sm:$0xff]  ;;  %v12526_v47 = vld [vmem:[#allocation87_spill] sm:$0xff] }
 0x3fd   : > { %v4658_v45 = vpop.permute.xlu1 %4657  ;;  %v5520_v44 = vmul.f32 %v5517_v14, %v12445_v63  ;;  %v5542_v33 = vmul.f32 %v5540_v10, %v12398_v3  ;;  %v11163_v5 = vadd.f32 %v3559_v7, %v10931_v20  ;;  %v11166_v11 = vsel %vm1862_vm13, %v5480_v49, %v5481_v26 }
 0x3fe   : > { %v4656_v24 = vpop.permute.xlu0 %4655  ;;  %v11169_v62 = vsel %vm1862_vm13, %v5506_v9, %v5507_v0  ;;  %v5544_v17 = vmul.f32 %v5540_v10, %v12436_v39  ;;  %v3572_v31 = vsel %vm457_vm1, %v12526_v47, %v12525_v41  ;;  %v11181_v20 = vsel %vm1862_vm13, %v5503_v25, %v5504_v4  ;;  %v12528_v41 = vld [vmem:[#allocation90_spill] sm:$0xff]  ;;  %v12529_v47 = vld [vmem:[#allocation91_spill] sm:$0xff] }
 0x3ff   : > { %v11176_v14 = vsel %vm457_vm1, %v4656_v24, %v4658_v45  ;;  %5262 = vrot.lane.b32.xlu1 %v10971_v13, %s12149_s10  ;;  %v5543_v7 = vmul.f32 %v5540_v10, %v12445_v63  ;;  %v5529_v0 = vrot.slane %v5519_v61, 2  ;;  %v5530_v49 = vrot.slane %v5521_v35, 2  ;;  %v12530_v35 = vld [vmem:[#allocation106_spill] sm:$0xff] }
 0x400   : > { %12527 = vst [vmem:[#allocation63_spill] sm:$0xff] %v11176_v14  ;;  %5260 = vrot.lane.b32.xlu0 %v10974_v1, %s12149_s10  ;;  %v5526_v26 = vrot.slane %v5518_v30, 2  ;;  %v5563_v9 = vstv %s11131_s19  ;;  %v3598_v45 = vsel %vm457_vm1, %v12529_v47, %v12528_v41  ;;  %v5527_v16 = vrot.slane %v5520_v44, 2  ;;  %v12531_v30 = vld [vmem:[#allocation107_spill] sm:$0xff]  ;;  %v12533_v44 = vld [vmem:[#allocation88_spill] sm:$0xff]  ;;  %s12629_s19 = sld [smem:[#allocation25_spill]] }
 0x401   : > { %v4671_v24 = vpop.permute.xlu1 %4670  ;;  %v5552_v13 = vrot.slane %v5542_v33, 2  ;;  %v5541_v4 = vmul.f32 %v5540_v10, %v12400_v37  ;;  %v11192_v25 = vadd.f32 %v3572_v31, %v10966_v59  ;;  %v5553_v55 = vrot.slane %v5544_v17, 2  ;;  %v12534_v33 = vld [vmem:[#allocation89_spill] sm:$0xff] }
 0x402   : > { %v4669_v14 = vpop.permute.xlu0 %4668  ;;  %v5567_v1 = vmul.f32 %v5563_v9, %v12436_v39  ;;  %v5586_v61 = vstv %s11139_s23  ;;  %v3702_v36 = vsel %vm1305_vm14, %v12531_v30, %v12530_v35  ;;  %v5550_v10 = vrot.slane %v5543_v7, 2  ;;  %v12536_v35 = vld [vmem:[#allocation93_spill] sm:$0xff]  ;;  %s6315_s23 = sshll.u32 %s6584_s12, 10  ;;  %s11853_s12 = scalar_lea.sflag [#allocation6], %s298_s1 }
 0x403   : > { %v11202_v41 = vsel %vm457_vm1, %v4669_v14, %v4671_v24  ;;  %5285 = vrot.lane.b32.xlu1 %v10985_v28, %s12149_s10  ;;  %v5565_v59 = vmul.f32 %v5563_v9, %v12398_v3  ;;  %v3585_v17 = vsel %vm457_vm1, %v12534_v33, %v12533_v44  ;;  %v3600_v31 = vadd.f32 %v3598_v45, %v11021_v27  ;;  %v12535_v24 = vld [vmem:[#allocation92_spill] sm:$0xff] }
 0x404   : > { %12532 = vst [vmem:[#allocation64_spill] sm:$0xff] %v11202_v41  ;;  %5283 = vrot.lane.b32.xlu0 %v11000_v56, %s12149_s10  ;;  %v5564_v47 = vmul.f32 %v5563_v9, %v12400_v37  ;;  %v5566_v14 = vmul.f32 %v5563_v9, %v12445_v63  ;;  %v3611_v28 = vsel %vm1305_vm14, %v12536_v35, %v12535_v24  ;;  %v5549_v41 = vrot.slane %v5541_v4, 2  ;;  %v12538_v4 = vld [vmem:[#allocation95_spill] sm:$0xff]  ;;  %v12541_v35 = vld [vmem:[#allocation29_spill] sm:$0xff] }
 0x405   : > { %v4684_v7 = vpop.permute.xlu1 %4683  ;;  %v11219_v30 = vsel %vm1862_vm13, %v5529_v0, %v5530_v49  ;;  %v5588_v44 = vmul.f32 %v5586_v61, %v12398_v3  ;;  %v3704_v27 = vadd.f32 %v3702_v36, %v3600_v31  ;;  %v11225_v56 = vsel %vm1862_vm13, %v5526_v26, %v5527_v16 }
 0x406   : > { %v4682_v45 = vpop.permute.xlu0 %4681  ;;  %v11228_v9 = vsel %vm1862_vm13, %v5552_v13, %v5553_v55  ;;  %v5576_v33 = vrot.slane %v5567_v1, 2  ;;  %v11231_v24 = vadd.f32 %v3585_v17, %v10980_v18  ;;  %v11239_v49 = vsel %vm1862_vm13, %v5549_v41, %v5550_v10  ;;  %v12537_v13 = vld [vmem:[#allocation94_spill] sm:$0xff]  ;;  %p12631_p4 = scmp.ne.s32.totalorder %s12629_s19, 0 }
 0x407   : > { %v11234_v0 = vsel %vm457_vm1, %v4682_v45, %v4684_v7  ;;  %5308 = vrot.lane.b32.xlu1 %v11026_v8, %s12149_s10  ;;  %v5590_v16 = vmul.f32 %v5586_v61, %v12436_v39  ;;  %v3613_v36 = vadd.f32 %v3611_v28, %v11044_v22  ;;  %v5575_v55 = vrot.slane %v5565_v59, 2 }
 0x408   : > { %5306 = vrot.lane.b32.xlu0 %v11035_v19, %s12149_s10  ;;  %v5572_v18 = vrot.slane %v5564_v47, 2  ;;  %v5573_v26 = vrot.slane %v5566_v14, 2  ;;  %v3624_v1 = vsel %vm1305_vm14, %v12538_v4, %v12537_v13  ;;  %v3974_v8 = vsel %vm457_vm1, %v10347_v15, %v10338_v34  ;;  %v12539_v14 = vld [vmem:[#allocation108_spill] sm:$0xff]  ;;  %v12540_v15 = vld [vmem:[#allocation147_spill] sm:$0xff]  ;;  %v12546_v4 = vld [vmem:[#allocation129_spill] sm:$0xff] }
 0x409   : > { %v4697_v41 = vpop.permute.xlu1 %4696  ;;  %v5598_v10 = vrot.slane %v5588_v44, 2  ;;  %v11252_v17 = vmul.f32 %v5586_v61, %v12400_v37  ;;  %v3792_v22 = vadd.f32 %v10374_v54, %v3704_v27  ;;  %v11256_v19 = vsel %vm1862_vm13, %v5575_v55, %v5576_v33  ;;  %v12542_v44 = vld [vmem:[#allocation96_spill] sm:$0xff]  ;;  %v12543_v27 = vld [vmem:[#allocation97_spill] sm:$0xff] }
 0x40a   : > { %v4695_v31 = vpop.permute.xlu0 %4694  ;;  %v11259_v59 = vmul.f32 %v5586_v61, %v12445_v63  ;;  %v5609_v47 = vstv %s11196_s8  ;;  %v3813_v34 = vsel %vm457_vm1, %v12539_v14, %v10102_v6  ;;  %v4158_v28 = vsel %vm1305_vm14, %v12541_v35, %v12540_v15  ;;  %v12544_v33 = vld [vmem:[#allocation117_spill] sm:$0xff]  ;;  %v12545_v13 = vld [vmem:[#allocation128_spill] sm:$0xff]  ;;  %v12548_v35 = vld [vmem:[#allocation110_spill] sm:$0xff]  ;;  %s5823_s8 = sshll.u32 %s11777_s16, 4  ;;  %s11846_s8 = int_to_ptr.vmem [resolvable:$true] %s5823_s8 }
 0x40b   : > { %v11269_v7 = vsel %vm457_vm1, %v4695_v31, %v4697_v41  ;;  %5419 = vrot.lane.b32.xlu1 %v11065_v42, %s12140_s3  ;;  %v5599_v54 = vrot.slane %v5590_v16, 2  ;;  %v3626_v61 = vadd.f32 %v3624_v1, %v11072_v32  ;;  %v3637_v45 = vsel %vm1305_vm14, %v12543_v27, %v12542_v44 }
 0x40c   : > { %v3715_v55 = vadd.f32 %v12544_v33, %v3613_v36  ;;  %v3976_v6 = vadd.f32 %v3974_v8, %v3792_v22  ;;  %5417 = vrot.lane.b32.xlu0 %v11077_v50, %s12140_s3  ;;  %v3997_v41 = vsel %vm1305_vm14, %v12546_v4, %v12545_v13  ;;  %v11284_v42 = vsel %vm1862_vm13, %v5572_v18, %v5573_v26  ;;  %v12547_v22 = vld [vmem:[#allocation109_spill] sm:$0xff]  ;;  %v12552_v33 = vld [vmem:[#allocation130_spill] sm:$0xff] }
 0x40d   : > { %v4710_v31 = vpop.permute.xlu1 %4709  ;;  %v5595_v32 = vrot.slane %v11252_v17, 2  ;;  %v11288_v16 = vstv %s11222_s15  ;;  %v5596_v36 = vrot.slane %v11259_v59, 2  ;;  %v11292_v8 = vmul.f32 %v5609_v47, %v12398_v3  ;;  %v12549_v17 = vld [vmem:[#allocation98_spill] sm:$0xff]  ;;  %v12550_v59 = vld [vmem:[#allocation99_spill] sm:$0xff] }
 0x40e   : > { %v3815_v1 = vadd.f32 %v3813_v34, %v3715_v55  ;;  %v4160_v14 = vadd.f32 %v4158_v28, %v3976_v6  ;;  %v4708_v15 = vpop.permute.xlu0 %4707  ;;  %v3639_v50 = vadd.f32 %v3637_v45, %v11106_v21  ;;  %v3836_v44 = vsel %vm457_vm1, %v12548_v35, %v12547_v22  ;;  %v12551_v28 = vld [vmem:[#allocation118_spill] sm:$0xff]  ;;  %v12553_v55 = vld [vmem:[#allocation131_spill] sm:$0xff] }
 0x40f   : > { %v11299_v18 = vsel %vm457_vm1, %v4708_v15, %v4710_v31  ;;  %5442 = vrot.lane.b32.xlu1 %v11088_v29, %s12140_s3  ;;  %v11304_v26 = vmul.f32 %v5609_v47, %v12436_v39  ;;  %v3650_v34 = vsel %vm1305_vm14, %v12550_v59, %v12549_v17  ;;  %v3726_v27 = vadd.f32 %v12551_v28, %v3626_v61  ;;  %v12556_v31 = vld [vmem:[#allocation111_spill] sm:$0xff]  ;;  %v12560_v28 = vld [vmem:[#allocation148_spill] sm:$0xff] }
 0x410   : > { %v3999_v21 = vadd.f32 %v3997_v41, %v3815_v1  ;;  %5440 = vrot.lane.b32.xlu0 %v11096_v43, %s12140_s3  ;;  %v11313_v45 = vsel %vm1862_vm13, %v5598_v10, %v5599_v54  ;;  %v4020_v29 = vsel %vm1305_vm14, %v12553_v55, %v12552_v33  ;;  %v4430_v6 = vsel %vm457_vm1, %v10869_v58, %v10859_v53  ;;  %v12554_v41 = vld [vmem:[#allocation100_spill] sm:$0xff]  ;;  %v12555_v43 = vld [vmem:[#allocation101_spill] sm:$0xff]  ;;  %v12558_v22 = vld [vmem:[#allocation43_spill] sm:$0xff] }
 0x411   : > { %v4723_v13 = vpop.permute.xlu1 %4722  ;;  %v11322_v4 = vmul.f32 %v5609_v47, %v12400_v37  ;;  %v11325_v61 = vmul.f32 %v5609_v47, %v12445_v63  ;;  %v3663_v10 = vsel %vm1305_vm14, %v12555_v43, %v12554_v41  ;;  %v3838_v54 = vadd.f32 %v3836_v44, %v3726_v27  ;;  %v12557_v1 = vld [vmem:[#allocation112_spill] sm:$0xff]  ;;  %v12559_v58 = vld [vmem:[#allocation119_spill] sm:$0xff]  ;;  %v12561_v33 = vld [vmem:[#allocation34_spill] sm:$0xff] }
 0x412   : > { %v3859_v15 = vsel %vm457_vm1, %v12557_v1, %v12556_v31  ;;  %v4248_v35 = vadd.f32 %v12558_v22, %v4160_v14  ;;  %v4721_v17 = vpop.permute.xlu0 %4720  ;;  %v3652_v53 = vadd.f32 %v3650_v34, %v11136_v57  ;;  %v3737_v59 = vadd.f32 %v12559_v58, %v3639_v50  ;;  %v12562_v27 = vld [vmem:[#allocation132_spill] sm:$0xff]  ;;  %v12563_v41 = vld [vmem:[#allocation133_spill] sm:$0xff]  ;;  %v12568_v22 = vld [vmem:[#allocation114_spill] sm:$0xff] }
 0x413   : > { %v4269_v47 = vsel %vm457_vm1, %v12561_v33, %v12560_v28  ;;  %v11340_v55 = vsel %vm457_vm1, %v4721_v17, %v4723_v13  ;;  %5465 = vrot.lane.b32.xlu1 %v11118_v40, %s12140_s3  ;;  %v4022_v44 = vadd.f32 %v4020_v29, %v3838_v54  ;;  %v4043_v14 = vsel %vm1305_vm14, %v12563_v41, %v12562_v27  ;;  %v12564_v43 = vld [vmem:[#allocation136_spill] sm:$0xff]  ;;  %v12565_v29 = vld [vmem:[#allocation102_spill] sm:$0xff]  ;;  %v12566_v54 = vld [vmem:[#allocation103_spill] sm:$0xff] }
 0x414   : > { %v4171_v31 = vadd.f32 %v12564_v43, %v3999_v21  ;;  %v4432_v57 = vadd.f32 %v4430_v6, %v4248_v35  ;;  %5463 = vrot.lane.b32.xlu0 %v11127_v46, %s12140_s3  ;;  %v3665_v50 = vadd.f32 %v3663_v10, %v11163_v5  ;;  %v3861_v34 = vadd.f32 %v3859_v15, %v3737_v59  ;;  %v12567_v6 = vld [vmem:[#allocation113_spill] sm:$0xff]  ;;  %v12569_v15 = vld [vmem:[#allocation122_spill] sm:$0xff]  ;;  %v12573_v27 = vld [vmem:[#allocation135_spill] sm:$0xff] }
 0x415   : > { %v4453_v13 = vsel %vm1305_vm14, %v10901_v23, %v10898_v48  ;;  %v4736_v1 = vpop.permute.xlu1 %4735  ;;  %v11356_v40 = vmul.f32 %v11288_v16, %v12398_v3  ;;  %v3676_v21 = vsel %vm1305_vm14, %v12566_v54, %v12565_v29  ;;  %v3882_v46 = vsel %vm457_vm1, %v12568_v22, %v12567_v6  ;;  %v12570_v23 = vld [vmem:[#allocation35_spill] sm:$0xff]  ;;  %v12571_v58 = vld [vmem:[#allocation42_spill] sm:$0xff]  ;;  %v12574_v41 = vld [vmem:[#allocation137_spill] sm:$0xff] }
 0x416   : > { %v4271_v35 = vadd.f32 %v4269_v47, %v4171_v31  ;;  %v4616_v5 = vadd.f32 %v11145_v52, %v4432_v57  ;;  %v4734_v10 = vpop.permute.xlu0 %4733  ;;  %v3748_v17 = vadd.f32 %v12569_v15, %v3652_v53  ;;  %v4045_v48 = vadd.f32 %v4043_v14, %v3861_v34  ;;  %v12572_v33 = vld [vmem:[#allocation134_spill] sm:$0xff]  ;;  %v12575_v57 = vld [vmem:[#allocation125_spill] sm:$0xff]  ;;  %v12576_v29 = vld [vmem:[#allocation104_spill] sm:$0xff] }
 0x417   : > { %v4292_v59 = vsel %vm457_vm1, %v12571_v58, %v12570_v23  ;;  %v11370_v28 = vsel %vm457_vm1, %v4734_v10, %v4736_v1  ;;  %5488 = vrot.lane.b32.xlu1 %v11158_v51, %s12140_s3  ;;  %v4066_v47 = vsel %vm1305_vm14, %v12573_v27, %v12572_v33  ;;  %v4182_v52 = vadd.f32 %v12574_v41, %v4022_v44  ;;  %v12577_v54 = vld [vmem:[#allocation105_spill] sm:$0xff]  ;;  %v12579_v6 = vld [vmem:[#allocation116_spill] sm:$0xff]  ;;  %v12583_v10 = vld [vmem:[#allocation138_spill] sm:$0xff] }
 0x418   : > { %v4455_v43 = vadd.f32 %v4453_v13, %v4271_v35  ;;  %5486 = vrot.lane.b32.xlu0 %v11166_v11, %s12140_s3  ;;  %v11381_v53 = vsel %vm1862_vm13, %v5595_v32, %v5596_v36  ;;  %v3678_v14 = vadd.f32 %v3676_v21, %v11192_v25  ;;  %v3884_v31 = vadd.f32 %v3882_v46, %v3748_v17  ;;  %v12578_v13 = vld [vmem:[#allocation115_spill] sm:$0xff]  ;;  %v12580_v22 = vld [vmem:[#allocation140_spill] sm:$0xff]  ;;  %v12581_v46 = vld [vmem:[#allocation74_spill] sm:$0xff] }
 0x419   : > { %v3759_v34 = vadd.f32 %v12575_v57, %v3665_v50  ;;  %v4476_v51 = vsel %vm1305_vm14, %v10945_v60, %v10933_v12  ;;  %v4749_v1 = vpop.permute.xlu1 %4748  ;;  %v3689_v44 = vsel %vm1305_vm14, %v12577_v54, %v12576_v29  ;;  %v3905_v11 = vsel %vm457_vm1, %v12579_v6, %v12578_v13  ;;  %v12582_v35 = vld [vmem:[#allocation30_spill] sm:$0xff]  ;;  %v12584_v15 = vld [vmem:[#allocation139_spill] sm:$0xff]  ;;  %v12586_v33 = vld [vmem:[#allocation49_spill] sm:$0xff] }
 0x41a   : > { %v4294_v32 = vadd.f32 %v4292_v59, %v4182_v52  ;;  %v4747_v36 = vpop.permute.xlu0 %4746  ;;  %v4648_v25 = vadd.f32 %v11150_v2, %v4616_v5  ;;  %v4068_v21 = vadd.f32 %v4066_v47, %v3884_v31  ;;  %v4193_v50 = vadd.f32 %v12580_v22, %v4045_v48  ;;  %v12585_v48 = vld [vmem:[#allocation126_spill] sm:$0xff]  ;;  %v12588_v31 = vld [vmem:[#allocation120_spill] sm:$0xff]  ;;  %v12589_v57 = vld [vmem:[#allocation123_spill] sm:$0xff] }
 0x41b   : > { %v4315_v12 = vsel %vm457_vm1, %v12582_v35, %v12581_v46  ;;  %v4750_v60 = vsel %vm457_vm1, %v4747_v36, %v4749_v1  ;;  %5511 = vrot.lane.b32.xlu1 %v11169_v62, %s12140_s3  ;;  %v4089_v17 = vsel %vm1305_vm14, %v12584_v15, %v12583_v10  ;;  %v4620_v58 = vadd.f32 %v10912_v38, %v4455_v43  ;;  %v12587_v27 = vld [vmem:[#allocation38_spill] sm:$0xff]  ;;  %v12592_v54 = vld [vmem:[#allocation32_spill] sm:$0xff]  ;;  %v12593_v13 = vld [vmem:[#allocation39_spill] sm:$0xff] }
 0x41c   : > { %v4478_v23 = vadd.f32 %v4476_v51, %v4294_v32  ;;  %v11406_v2 = vadd.f32 %v4750_v60, %v4648_v25  ;;  %5509 = vrot.lane.b32.xlu0 %v11181_v20, %s12140_s3  ;;  %v3907_v5 = vadd.f32 %v3905_v11, %v3759_v34  ;;  %v3770_v59 = vadd.f32 %v12585_v48, %v3678_v14  ;;  %v12590_v51 = vld [vmem:[#allocation63_spill] sm:$0xff]  ;;  %v12591_v29 = vld [vmem:[#allocation142_spill] sm:$0xff]  ;;  %v12596_v36 = vld [vmem:[#allocation48_spill] sm:$0xff] }
 0x41d   : > { %v4499_v47 = vsel %vm1305_vm14, %v12587_v27, %v12586_v33  ;;  %v4762_v62 = vpop.permute.xlu1 %4761  ;;  %v5621_v41 = vrot.slane %v11292_v8, 2  ;;  %v3691_v52 = vadd.f32 %v3689_v44, %v11231_v24  ;;  %v3928_v38 = vsel %vm457_vm1, %v12589_v57, %v12588_v31  ;;  %v12594_v24 = vld [vmem:[#allocation141_spill] sm:$0xff]  ;;  %v12595_v8 = vld [vmem:[#allocation143_spill] sm:$0xff]  ;;  %v12598_v46 = vld [vmem:[#allocation52_spill] sm:$0xff] }
 0x41e   : > { %v4317_v43 = vadd.f32 %v4315_v12, %v4193_v50  ;;  %v4661_v1 = vadd.f32 %v12590_v51, %v4620_v58  ;;  %v4760_v20 = vpop.permute.xlu0 %4759  ;;  %v4091_v34 = vadd.f32 %v4089_v17, %v3907_v5  ;;  %v4204_v14 = vadd.f32 %v12591_v29, %v4068_v21  ;;  %v12597_v50 = vld [vmem:[#allocation51_spill] sm:$0xff]  ;;  %v12601_v48 = vld [vmem:[#allocation124_spill] sm:$0xff] }
 0x41f   : > { %v4338_v6 = vsel %vm457_vm1, %v12593_v13, %v12592_v54  ;;  %v4763_v11 = vsel %vm1305_vm14, %v4760_v20, %v4762_v62  ;;  %5534 = vrot.lane.b32.xlu1 %v11219_v30, %s12140_s3  ;;  %v4112_v44 = vsel %vm1305_vm14, %v12595_v8, %v12594_v24  ;;  %v4624_v25 = vadd.f32 %v12596_v36, %v4478_v23  ;;  %v12599_v10 = vld [vmem:[#allocation127_spill] sm:$0xff]  ;;  %v12600_v23 = vld [vmem:[#allocation64_spill] sm:$0xff]  ;;  %v12608_v20 = vld [vmem:[#allocation145_spill] sm:$0xff] }
 0x420   : > { %v4501_v32 = vadd.f32 %v4499_v47, %v4317_v43  ;;  %v11433_v22 = vadd.f32 %v4763_v11, %v4661_v1  ;;  %5532 = vrot.lane.b32.xlu0 %v11225_v56, %s12140_s3  ;;  %v3930_v21 = vadd.f32 %v3928_v38, %v3770_v59  ;;  %v4522_v35 = vsel %vm1305_vm14, %v12598_v46, %v12597_v50  ;;  %v12602_v59 = vld [vmem:[#allocation121_spill] sm:$0xff]  ;;  %v12604_v47 = vld [vmem:[#allocation44_spill] sm:$0xff] }
 0x421   : > { %v4775_v30 = vpop.permute.xlu1 %4774  ;;  %v5622_v12 = vrot.slane %v11304_v26, 2  ;;  %v11443_v60 = vmul.f32 %v11288_v16, %v12436_v39  ;;  %v3781_v15 = vadd.f32 %v12599_v10, %v3691_v52  ;;  %v4340_v17 = vadd.f32 %v4338_v6, %v4204_v14  ;;  %v12603_v26 = vld [vmem:[#allocation40_spill] sm:$0xff]  ;;  %v12605_v52 = vld [vmem:[#allocation146_spill] sm:$0xff] }
 0x422   : > { %v4674_v58 = vadd.f32 %v12600_v23, %v4624_v25  ;;  %v4773_v5 = vpop.permute.xlu0 %4772  ;;  %v5618_v56 = vrot.slane %v11322_v4, 2  ;;  %v3951_v33 = vsel %vm457_vm1, %v12602_v59, %v12601_v48  ;;  %v4114_v27 = vadd.f32 %v4112_v44, %v3930_v21  ;;  %v12606_v4 = vld [vmem:[#allocation50_spill] sm:$0xff]  ;;  %v12607_v1 = vld [vmem:[#allocation144_spill] sm:$0xff]  ;;  %v12612_v25 = vld [vmem:[#allocation45_spill] sm:$0xff] }
 0x423   : > { %v4361_v62 = vsel %vm457_vm1, %v12604_v47, %v12603_v26  ;;  %v4776_v31 = vsel %vm1305_vm14, %v4773_v5, %v4775_v30  ;;  %5557 = vrot.lane.b32.xlu1 %v11228_v9, %s12140_s3  ;;  %v4215_v57 = vadd.f32 %v12605_v52, %v4091_v34  ;;  %v4524_v38 = vadd.f32 %v4522_v35, %v4340_v17  ;;  %v12609_v14 = vld [vmem:[#allocation54_spill] sm:$0xff]  ;;  %v12610_v54 = vld [vmem:[#allocation56_spill] sm:$0xff]  ;;  %v12617_v47 = vld [vmem:[#allocation47_spill] sm:$0xff] }
 0x424   : > { %v4628_v43 = vadd.f32 %v12606_v4, %v4501_v32  ;;  %v11461_v51 = vadd.f32 %v4776_v31, %v4674_v58  ;;  %5555 = vrot.lane.b32.xlu0 %v11239_v49, %s12140_s3  ;;  %v4135_v29 = vsel %vm1305_vm14, %v12608_v20, %v12607_v1  ;;  %v4545_v13 = vsel %vm1305_vm14, %v12610_v54, %v12609_v14  ;;  %v12611_v32 = vld [vmem:[#allocation28_spill] sm:$0xff]  ;;  %v12613_v21 = vld [vmem:[#allocation46_spill] sm:$0xff]  ;;  %v12622_v1 = vld [vmem:[#allocation61_spill] sm:$0xff] }
 0x425   : > { %v4788_v9 = vpop.permute.xlu1 %4787  ;;  %v5619_v34 = vrot.slane %v11325_v61, 2  ;;  %v5644_v6 = vrot.slane %v11356_v40, 2  ;;  %v3953_v11 = vadd.f32 %v3951_v33, %v3781_v15  ;;  %v4363_v24 = vadd.f32 %v4361_v62, %v4215_v57  ;;  %v12615_v15 = vld [vmem:[#allocation57_spill] sm:$0xff]  ;;  %v12616_v17 = vld [vmem:[#allocation58_spill] sm:$0xff]  ;;  %v12620_v57 = vld [vmem:[#allocation55_spill] sm:$0xff] }
 0x426   : > { %v4687_v8 = vadd.f32 %v11234_v0, %v4628_v43  ;;  %v4786_v44 = vpop.permute.xlu0 %4785  ;;  %v5635_v49 = vmul.f32 %v11288_v16, %v12445_v63  ;;  %v4226_v36 = vadd.f32 %v12611_v32, %v4114_v27  ;;  %v4384_v50 = vsel %vm457_vm1, %v12613_v21, %v12612_v25  ;;  %v12614_v0 = vld [vmem:[#allocation53_spill] sm:$0xff]  ;;  %v12621_v43 = vld [vmem:[#allocation60_spill] sm:$0xff]  ;;  %v12623_v32 = vld [vmem:[#allocation59_spill] sm:$0xff] }
 0x427   : > { %v4789_v46 = vsel %vm1305_vm14, %v4786_v44, %v4788_v9  ;;  %5580 = vrot.lane.b32.xlu1 %v11256_v19, %s12140_s3  ;;  %v5655_v61 = vstv %s11427_s20  ;;  %v4137_v40 = vadd.f32 %v4135_v29, %v3953_v11  ;;  %v4547_v35 = vadd.f32 %v4545_v13, %v4363_v24  ;;  %v12618_v62 = vld [vmem:[#allocation37_spill] sm:$0xff] }
 0x428   : > { %v4632_v30 = vadd.f32 %v12614_v0, %v4524_v38  ;;  %v11485_v10 = vadd.f32 %v4789_v46, %v4687_v8  ;;  %5578 = vrot.lane.b32.xlu0 %v11284_v42, %s12140_s3  ;;  %v4568_v23 = vsel %vm1305_vm14, %v12616_v17, %v12615_v15  ;;  %v5623_v5 = vsel %vm1862_vm13, %v5621_v41, %v5622_v12  ;;  %s11508_s3 = sld [smem:[#allocation10 + $0xd7]] }
 0x429   : > { %v4801_v58 = vpop.permute.xlu1 %4800  ;;  %v5645_v19 = vrot.slane %v11443_v60, 2  ;;  %v5633_v48 = vmul.f32 %v11288_v16, %v12400_v37  ;;  %v4386_v59 = vadd.f32 %v4384_v50, %v4226_v36  ;;  %v5657_v42 = vmul.f32 %v5655_v61, %v12398_v3  ;;  %v12619_v60 = vld [vmem:[#allocation149_spill] sm:$0xff] }
 0x42a   : > { %v4700_v33 = vadd.f32 %v11269_v7, %v4632_v30  ;;  %v4799_v27 = vpop.permute.xlu0 %4798  ;;  %v5678_v26 = vstv %s11448_s27  ;;  %v4407_v31 = vsel %vm457_vm1, %v12618_v62, %v12617_v47  ;;  %v5642_v12 = vrot.slane %v5635_v49, 2  ;;  %s12630_s27 = sld [smem:[#allocation155_spill]] }
 0x42b   : > { %v4802_v41 = vsel %vm1305_vm14, %v4799_v27, %v4801_v58  ;;  %5603 = vrot.lane.b32.xlu1 %v11313_v45, %s12149_s10  ;;  %v5659_v16 = vmul.f32 %v5655_v61, %v12436_v39  ;;  %v4237_v7 = vadd.f32 %v12619_v60, %v4137_v40  ;;  %v4570_v52 = vadd.f32 %v4568_v23, %v4386_v59 }
 0x42c   : > { %v4636_v38 = vadd.f32 %v12620_v57, %v4547_v35  ;;  %v11512_v4 = vadd.f32 %v4802_v41, %v4700_v33  ;;  %5601 = vrot.lane.b32.xlu0 %v11381_v53, %s12149_s10  ;;  %v4591_v45 = vsel %vm1305_vm14, %v12622_v1, %v12621_v43  ;;  %v5620_v29 = vsel %vm1862_vm13, %v5618_v56, %v5619_v34 }
 0x42d   : > { %v4814_v20 = vpop.permute.xlu1 %4813  ;;  %v5641_v14 = vrot.slane %v5633_v48, 2  ;;  %v5656_v54 = vmul.f32 %v5655_v61, %v12400_v37  ;;  %v4409_v13 = vadd.f32 %v4407_v31, %v4237_v7  ;;  %v5658_v24 = vmul.f32 %v5655_v61, %v12445_v63 }
 0x42e   : > { %v4713_v9 = vadd.f32 %v11299_v18, %v4636_v38  ;;  %v4812_v11 = vpop.permute.xlu0 %4811  ;;  %v5680_v53 = vmul.f32 %v5678_v26, %v12398_v3  ;;  %v5646_v44 = vsel %vm1862_vm13, %v5644_v6, %v5645_v19  ;;  %v5667_v49 = vrot.slane %v5657_v42, 2  ;;  %v12624_v19 = vld [vmem:[#allocation62_spill] sm:$0xff] }
 0x42f   : > { %v4815_v8 = vsel %vm1305_vm14, %v4812_v11, %v4814_v20  ;;  %5626 = vrot.lane.b32.xlu1 %v5623_v5, %s12149_s10  ;;  %v5668_v56 = vrot.slane %v5659_v16, 2  ;;  %v4593_v34 = vadd.f32 %v4591_v45, %v4409_v13  ;;  %v4640_v36 = vadd.f32 %v12623_v32, %v4570_v52 }
 0x430   : > { %v11530_v25 = vadd.f32 %v4815_v8, %v4713_v9  ;;  %5624 = vrot.lane.b32.xlu0 %v5620_v29, %s12149_s10  ;;  %v5643_v18 = vsel %vm1862_vm13, %v5641_v14, %v5642_v12  ;;  %v5664_v50 = vrot.slane %v5656_v54, 2  ;;  %v5682_v46 = vmul.f32 %v5678_v26, %v12436_v39 }
 0x431   : > { %v4827_v21 = vpop.permute.xlu1 %4826  ;;  %v5681_v6 = vmul.f32 %v5678_v26, %v12445_v63  ;;  %v4858_v61 = vstv %s11496_s28  ;;  %v4726_v40 = vadd.f32 %v11340_v55, %v4640_v36  ;;  %v5665_v0 = vrot.slane %v5658_v24, 2  ;;  %s11844_s28 = scalar_lea.hbm %s12630_s27, %s6315_s23 }
 0x432   : > { %v4825_v35 = vpop.permute.xlu0 %4824  ;;  %v5690_v30 = vrot.slane %v5680_v53, 2  ;;  %v4860_v15 = vmul.f32 %v4858_v61, %v12445_v63  ;;  %v5669_v23 = vsel %vm1862_vm13, %v5667_v49, %v5668_v56  ;;  %v5679_v58 = vmul.f32 %v5678_v26, %v12400_v37 }
 0x433   : > { %v4828_v17 = vsel %vm1305_vm14, %v4825_v35, %v4827_v21  ;;  %5649 = vrot.lane.b32.xlu1 %v5646_v44, %s12149_s10  ;;  %v5701_v5 = vstv %s11508_s3  ;;  %v4644_v48 = vadd.f32 %v12624_v19, %v4593_v34  ;;  %v4859_v55 = vmul.f32 %v4858_v61, %v12400_v37  ;;  %s6502_s3 = scalar_lea.vmem %s11846_s8, 1024 }
 0x434   : > { %v11547_v59 = vadd.f32 %v4828_v17, %v4726_v40  ;;  %5647 = vrot.lane.b32.xlu0 %v5643_v18, %s12149_s10  ;;  %v4869_v33 = vstv %s11516_s29  ;;  %v5691_v42 = vrot.slane %v5682_v46, 2  ;;  %v5688_v47 = vrot.slane %v5681_v6, 2  ;;  %p6503_p11 = scmp.ne.s32.totalorder %s11846_s8, %s6502_s3  ;;  %s6602_s29 = smov [#allocation13]  }
 0x435   : > { %v4840_v27 = vpop.permute.xlu1 %4839  ;;  %v5705_v62 = vmul.f32 %v5701_v5, %v12436_v39  ;;  %v5704_v31 = vmul.f32 %v5701_v5, %v12445_v63  ;;  %v4739_v26 = vadd.f32 %v11370_v28, %v4644_v48  ;;  %v5666_v12 = vsel %vm1862_vm13, %v5664_v50, %v5665_v0 }
 0x436   : > { %v4838_v41 = vpop.permute.xlu0 %4837  ;;  %v4864_v16 = vrot.slane %v4860_v15, 1  ;;  %v5703_v60 = vmul.f32 %v5701_v5, %v12398_v3  ;;  %v5687_v52 = vrot.slane %v5679_v58, 2  ;;  %v5702_v57 = vmul.f32 %v5701_v5, %v12400_v37  ;;  %p6504_p5 = pnand %p6503_p11, %p12631_p4 }
 0x437   : > { %v4841_v7 = vsel %vm1305_vm14, %v4838_v41, %v4840_v27  ;;  %5672 = vrot.lane.b32.xlu1 %v5669_v23, %s12149_s10  ;;  %v4870_v38 = vmul.f32 %v4869_v33, %v12400_v37  ;;  %v4863_v28 = vrot.slane %v4859_v55, 1  ;;  %v4871_v1 = vmul.f32 %v4869_v33, %v12445_v63 }
 0x438   : > { %v11565_v43 = vadd.f32 %v4841_v7, %v4739_v26  ;;  %5670 = vrot.lane.b32.xlu0 %v5666_v12, %s12149_s10  ;;  %v5724_v45 = vstv %s11534_s9  ;;  %v5692_v29 = vsel %vm1862_vm13, %v5690_v30, %v5691_v42  ;;  %v5689_v14 = vsel %vm1862_vm13, %v5687_v52, %v5688_v47  ;;  %p6505_p8 = pneg %p6504_p5  ;;  %s6506_s9 = sshll.u32 %s6602_s29, 4  ;;  %s6507_s9 = int_to_ptr.vmem [resolvable:$false] %s6506_s9 }
 0x439   : > { %v4853_v20 = vpop.permute.xlu1 %4852  ;;  %v5714_v54 = vrot.slane %v5705_v62, 2  ;;  %v5711_v13 = vrot.slane %v5704_v31, 2  ;;  %v4865_v11 = vsel %vm768_vm0, %v4863_v28, %v4864_v16  ;;  %v5713_v24 = vrot.slane %v5703_v60, 2  ;;  %p6509_p0 = scmp.lt.s32.totalorder %s11846_s8, %s6507_s9 }
 0x43a   : > { %v4851_v9 = vpop.permute.xlu0 %4850  ;;  %v5728_v53 = vmul.f32 %v5724_v45, %v12436_v39  ;;  %v5727_v8 = vmul.f32 %v5724_v45, %v12445_v63  ;;  %v5710_v49 = vrot.slane %v5702_v57, 2  ;;  %v4874_v56 = vrot.slane %v4870_v38, 1 }
 0x43b   : > { %v4854_v44 = vsel %vm1305_vm14, %v4851_v9, %v4853_v20  ;;  %5695 = vrot.lane.b32.xlu1 %v5692_v29, %s12149_s10  ;;  %v5726_v34 = vmul.f32 %v5724_v45, %v12398_v3  ;;  %v4875_v36 = vrot.slane %v4871_v1, 1  ;;  %v5725_v18 = vmul.f32 %v5724_v45, %v12400_v37 }
 0x43c   : > { %v11581_v32 = vadd.f32 %v4854_v44, %v11406_v2  ;;  %5693 = vrot.lane.b32.xlu0 %v5689_v14, %s12149_s10  ;;  %v4880_v21 = vstv %s11552_s0  ;;  %v5715_v46 = vsel %vm1862_vm13, %v5713_v24, %v5714_v54  ;;  %v5712_v6 = vsel %vm1862_vm13, %v5710_v49, %v5711_v13  ;;  %s6508_s0 = scalar_lea.vmem %s6507_s9, 2048 }
 0x43d   : > { %v4964_v50 = vpop.permute.xlu1 %4963  ;;  %v4882_v61 = vmul.f32 %v4880_v21, %v12445_v63  ;;  %v5747_v40 = vstv %s11556_s26  ;;  %v4867_v2 = vadd.f32 %v4865_v11, %v11433_v22  ;;  %v5737_v0 = vrot.slane %v5728_v53, 2  ;;  %p6510_p6 = scmp.lt.s32.totalorder %s6508_s0, %s6502_s3 }
 0x43e   : > { %v4962_v35 = vpop.permute.xlu0 %4961  ;;  %v5734_v30 = vrot.slane %v5727_v8, 2  ;;  %v5751_v15 = vmul.f32 %v5747_v40, %v12436_v39  ;;  %v5736_v23 = vrot.slane %v5726_v34, 2  ;;  %v4881_v58 = vmul.f32 %v4880_v21, %v12400_v37 }
 0x43f   : > { %v4965_v17 = vsel %vm457_vm1, %v4962_v35, %v4964_v50  ;;  %5718 = vrot.lane.b32.xlu1 %v5715_v46, %s12149_s10  ;;  %v5750_v5 = vmul.f32 %v5747_v40, %v12445_v63  ;;  %v5733_v48 = vrot.slane %v5725_v18, 2  ;;  %v5749_v22 = vmul.f32 %v5747_v40, %v12398_v3  ;;  %p6511_p7 = por %p6510_p6, %p6509_p0 }
 0x440   : > { %v11598_v19 = vadd.f32 %v4965_v17, %v4867_v2  ;;  %5716 = vrot.lane.b32.xlu0 %v5712_v6, %s12149_s10  ;;  %v4891_v55 = vstv %s11570_s25  ;;  %v4876_v33 = vsel %vm768_vm0, %v4874_v56, %v4875_v36  ;;  %v4886_v27 = vrot.slane %v4882_v61, 1 }
 0x441   : > { %v4987_v39 = vpop.permute.xlu1 %4986  ;;  %v5748_v42 = vmul.f32 %v5747_v40, %v12400_v37  ;;  %v4893_v47 = vmul.f32 %v4891_v55, %v12445_v63  ;;  %v4878_v31 = vadd.f32 %v4876_v33, %v11461_v51  ;;  %v5738_v26 = vsel %vm1862_vm13, %v5736_v23, %v5737_v0  ;;  %p6512_p10 = pnand %p6511_p7, %p6505_p8 }
 0x442   : > { %v4985_v62 = vpop.permute.xlu0 %4984  ;;  %v5735_v41 = vsel %vm1862_vm13, %v5733_v48, %v5734_v30  ;;  %v5760_v3 = vrot.slane %v5751_v15, 2  ;;  %v4885_v16 = vrot.slane %v4881_v58, 1  ;;  %v5757_v60 = vrot.slane %v5750_v5, 2 }
 0x443   : > { %v4988_v12 = vsel %vm457_vm1, %v4985_v62, %v4987_v39  ;;  %5741 = vrot.lane.b32.xlu1 %v5738_v26, %s12149_s10  ;;  %v4892_v7 = vmul.f32 %v4891_v55, %v12400_v37  ;;  %v5759_v57 = vrot.slane %v5749_v22, 2  ;;  %v4902_v38 = vstv %s11586_s30 }
 0x444   : > { %v11614_v52 = vadd.f32 %v4988_v12, %v4878_v31  ;;  %5739 = vrot.lane.b32.xlu0 %v5735_v41, %s12149_s10  ;;  %v4887_v28 = vsel %vm768_vm0, %v4885_v16, %v4886_v27  ;;  %v5756_v1 = vrot.slane %v5748_v42, 2  ;;  %v4897_v45 = vrot.slane %v4893_v47, 1 }
 0x445   : > { %v5010_v51 = vpop.permute.xlu1 %5009  ;;  %v4904_v20 = vmul.f32 %v4902_v38, %v12445_v63  ;;  %v4889_v14 = vadd.f32 %v4887_v28, %v11485_v10  ;;  %v5761_v54 = vsel %vm1862_vm13, %v5759_v57, %v5760_v3  ;;  %v4896_v11 = vrot.slane %v4892_v7, 1 }
 0x446   : > { %v5008_v29 = vpop.permute.xlu0 %5007  ;;  %v5758_v9 = vsel %vm1862_vm13, %v5756_v1, %v5757_v60  ;;  %v4903_v24 = vmul.f32 %v4902_v38, %v12400_v37  ;;  %v4913_v8 = vstv %s11603_s18  ;;  %v4924_v6 = vstv %s11618_s4 }
 0x447   : > { %v5011_v13 = vsel %vm457_vm1, %v5008_v29, %v5010_v51  ;;  %5764 = vrot.lane.b32.xlu1 %v5761_v54, %s12149_s10  ;;  %v4898_v44 = vsel %vm768_vm0, %v4896_v11, %v4897_v45  ;;  %v4908_v49 = vrot.slane %v4904_v20, 1  ;;  %v4915_v56 = vmul.f32 %v4913_v8, %v12445_v63 }
 0x448   : > { %v11628_v53 = vadd.f32 %v5011_v13, %v4889_v14  ;;  %5762 = vrot.lane.b32.xlu0 %v5758_v9, %s12149_s10  ;;  %v4900_v36 = vadd.f32 %v4898_v44, %v11512_v4  ;;  %v4907_v21 = vrot.slane %v4903_v24, 1  ;;  %v4914_v50 = vmul.f32 %v4913_v8, %v12400_v37  ;;  %s6278_s10 = sld [smem:[#allocation10 + $0x21]] }
 0x449   : > { %v5033_v10 = vpop.permute.xlu1 %5032  ;;  %v4919_v35 = vrot.slane %v4915_v56, 1  ;;  %v4926_v2 = vmul.f32 %v4924_v6, %v12445_v63  ;;  %v4925_v17 = vmul.f32 %v4924_v6, %v12400_v37  ;;  %v4935_v58 = vstv %s11632_s17 }
 0x44a   : > { %v5031_v34 = vpop.permute.xlu0 %5030  ;;  %v4909_v40 = vsel %vm768_vm0, %v4907_v21, %v4908_v49  ;;  %v4918_v15 = vrot.slane %v4914_v50, 1  ;;  %v4937_v55 = vmul.f32 %v4935_v58, %v12445_v63  ;;  %v4936_v42 = vmul.f32 %v4935_v58, %v12400_v37 }
 0x44b   : > { %v5034_v18 = vsel %vm457_vm1, %v5031_v34, %v5033_v10  ;;  %v4911_v30 = vadd.f32 %v4909_v40, %v11530_v25  ;;  %v4930_v22 = vrot.slane %v4926_v2, 1  ;;  %v4929_v25 = vrot.slane %v4925_v17, 1 }
 0x44c   : > { %v11639_v46 = vadd.f32 %v5034_v18, %v4900_v36  ;;  %v4920_v48 = vsel %vm768_vm0, %v4918_v15, %v4919_v35  ;;  %v4941_v26 = vrot.slane %v4937_v55, 1  ;;  %v4940_v16 = vrot.slane %v4936_v42, 1 }
 0x44d   : > { %v5056_v61 = vpop.permute.xlu1 %5055  ;;  %v4922_v33 = vadd.f32 %v4920_v48, %v11547_v59  ;;  %v4931_v31 = vsel %vm768_vm0, %v4929_v25, %v4930_v22 }
 0x44e   : > { %v5054_v0 = vpop.permute.xlu0 %5053  ;;  %v4933_v3 = vadd.f32 %v4931_v31, %v11565_v43  ;;  %v4942_v7 = vsel %vm768_vm0, %v4940_v16, %v4941_v26 }
 0x44f   : > { %v5057_v4 = vsel %vm457_vm1, %v5054_v0, %v5056_v61  ;;  %v4944_v38 = vadd.f32 %v4942_v7, %v11581_v32  ;;  %v5314_v0 = vstv %s6278_s10  ;;  %v5347_v7 = vstv %s11704_s2 }
 0x450   : > { %v11647_v23 = vadd.f32 %v5057_v4, %v4911_v30  ;;  %v5316_v4 = vmul.f32 %v5314_v0, %v12445_v63  ;;  %v5315_v17 = vmul.f32 %v5314_v0, %v12400_v37 }
 0x451   : > { %v5079_v5 = vpop.permute.xlu1 %5078 }
 0x452   : > { %v5077_v39 = vpop.permute.xlu0 %5076  ;;  %v5320_v22 = vrot.slane %v5316_v4, 2  ;;  %v5319_v25 = vrot.slane %v5315_v17, 2  ;;  %v1141_v4 = vstv %s11715_s5 }
 0x453   : > { %v5080_v27 = vsel %vm457_vm1, %v5077_v39, %v5079_v5  ;;  %v5325_v5 = vstv %s6279_s11 }
 0x454   : > { %v11655_v47 = vadd.f32 %v5080_v27, %v4922_v33  ;;  %v5327_v55 = vmul.f32 %v5325_v5, %v12445_v63  ;;  %v5336_v33 = vstv %s6280_s14  ;;  %v5326_v42 = vmul.f32 %v5325_v5, %v12400_v37 }
 0x455   : > { %v5102_v62 = vpop.permute.xlu1 %5101  ;;  %v5338_v31 = vmul.f32 %v5336_v33, %v12445_v63  ;;  %v5348_v5 = vmul.f32 %v5347_v7, %v12400_v37 }
 0x456   : > { %v5100_v41 = vpop.permute.xlu0 %5099 }
 0x457   : > { %v5103_v12 = vsel %vm457_vm1, %v5100_v41, %v5102_v62 }
 0x458   : > { %v11660_v60 = vadd.f32 %v5103_v12, %v4933_v3  ;;  %v5331_v3 = vrot.slane %v5327_v55, 2  ;;  %v5337_v12 = vmul.f32 %v5336_v33, %v12400_v37  ;;  %v5358_v55 = vstv %s11719_s6 }
 0x459   : > { %v5125_v59 = vpop.permute.xlu1 %5124 }
 0x45a   : > { %v5123_v57 = vpop.permute.xlu0 %5122 }
 0x45b   : > { %v5126_v51 = vsel %vm457_vm1, %v5123_v57, %v5125_v59 }
 0x45c   : > { %v11665_v28 = vadd.f32 %v5126_v51, %v4944_v38  ;;  %v5330_v38 = vrot.slane %v5326_v42, 2  ;;  %v5349_v51 = vmul.f32 %v5347_v7, %v12445_v63 }
 0x45d   : > { %v5148_v1 = vpop.permute.xlu1 %5147 }
 0x45e   : > { %v5146_v45 = vpop.permute.xlu0 %5145 }
 0x45f   : > { %v5149_v15 = vsel %vm1305_vm14, %v5146_v45, %v5148_v1 }
 0x460   : > { %v5151_v39 = vadd.f32 %v5149_v15, %v11598_v19  ;;  %v5321_v19 = vsel %vm1862_vm13, %v5319_v25, %v5320_v22  ;;  %v5353_v22 = vrot.slane %v5349_v51, 2 }
 0x461   : > { %v5171_v20 = vpop.permute.xlu1 %5170 }
 0x462   : > { %v5169_v29 = vpop.permute.xlu0 %5168  ;;  %v5323_v59 = vadd.f32 %v5321_v19, %v5151_v39 }
 0x463   : > { %v5172_v27 = vsel %vm1305_vm14, %v5169_v29, %v5171_v20  ;;  %v5342_v20 = vrot.slane %v5338_v31, 2 }
 0x464   : > { %v5174_v16 = vadd.f32 %v5172_v27, %v11614_v52  ;;  %v5341_v52 = vrot.slane %v5337_v12, 2 }
 0x465   : > { %v5194_v43 = vpop.permute.xlu1 %5193 }
 0x466   : > { %v5192_v14 = vpop.permute.xlu0 %5191  ;;  %v5343_v39 = vsel %vm1862_vm13, %v5341_v52, %v5342_v20 }
 0x467   : > { %v5195_v57 = vsel %vm1305_vm14, %v5192_v14, %v5194_v43 }
 0x468   : > { %v5197_v43 = vadd.f32 %v5195_v57, %v11628_v53  ;;  %v5369_v53 = vstv %s11724_s13 }
 0x469   : > { %v11667_v54 = vpop.permute.xlu1 %5216 }
 0x46a   : > { %v11669_v13 = vpop.permute.xlu0 %5214 }
 0x46b   : > { %v5218_v17 = vsel %vm1305_vm14, %v11669_v13, %v11667_v54  ;;  %v5360_v54 = vmul.f32 %v5358_v55, %v12445_v63  ;;  %v12626_v13 = vld [vmem:[#allocation36_spill] sm:$0xff] }
 0x46c   : > { %vm11757_vm15 = vcmp.lt.s32.totalorder %v12626_v13, %v1141_v4  ;;  %v5220_v19 = vadd.f32 %v5218_v17, %v11639_v46 }
 0x46d   : > { %v11671_v9 = vpop.permute.xlu1 %5239 }
 0x46e   : > { %v11673_v11 = vpop.permute.xlu0 %5237 }
 0x471   : > { %v11675_v24 = vpop.permute.xlu1 %5262 }
 0x472   : > { %v11677_v32 = vpop.permute.xlu0 %5260 }
 0x475   : > { %v11679_v8 = vpop.permute.xlu1 %5285 }
 0x476   : > { %v11681_v10 = vpop.permute.xlu0 %5283 }
 0x479   : > { %v11683_v44 = vpop.permute.xlu1 %5308 }
 0x47a   : > { %v11685_v49 = vpop.permute.xlu0 %5306 }
 0x47d   : > { %v5420_v56 = vpop.permute.xlu1 %5419 }
 0x47e   : > { %v5418_v34 = vpop.permute.xlu0 %5417 }
 0x47f   : > { %v5421_v41 = vsel %vm457_vm1, %v5418_v34, %v5420_v56  ;;  %v5332_v56 = vsel %vm1862_vm13, %v5330_v38, %v5331_v3  ;;  %v5371_v38 = vmul.f32 %v5369_v53, %v12445_v63 }
 0x480   : > { %v5423_v45 = vadd.f32 %v5421_v41, %v5323_v59  ;;  %v5334_v14 = vadd.f32 %v5332_v56, %v5174_v16  ;;  %v5345_v41 = vadd.f32 %v5343_v39, %v5197_v43  ;;  %v5241_v16 = vsel %vm1305_vm14, %v11673_v11, %v11671_v9 }
 0x481   : > { %v5443_v36 = vpop.permute.xlu1 %5442  ;;  %v5352_v59 = vrot.slane %v5348_v5, 2  ;;  %v5364_v11 = vrot.slane %v5360_v54, 2 }
 0x482   : > { %v5441_v18 = vpop.permute.xlu0 %5440 }
 0x483   : > { %v5444_v34 = vsel %vm457_vm1, %v5441_v18, %v5443_v36 }
 0x484   : > { %v5446_v18 = vadd.f32 %v5444_v34, %v5334_v14 }
 0x485   : > { %v11687_v21 = vpop.permute.xlu1 %5465 }
 0x486   : > { %v11689_v50 = vpop.permute.xlu0 %5463 }
 0x487   : > { %v5467_v25 = vsel %vm457_vm1, %v11689_v50, %v11687_v21  ;;  %v5359_v21 = vmul.f32 %v5358_v55, %v12400_v37  ;;  %v5370_v50 = vmul.f32 %v5369_v53, %v12400_v37 }
 0x488   : > { %v5469_v57 = vadd.f32 %v5467_v25, %v5345_v41  ;;  %v5391_v25 = vstv %s11768_s24 }
 0x489   : > { %v11691_v6 = vpop.permute.xlu1 %5488  ;;  %v5363_v43 = vrot.slane %v5359_v21, 2  ;;  %v5374_v14 = vrot.slane %v5370_v50, 2  ;;  %v5310_v21 = vsel %vm1305_vm14, %v11685_v49, %v11683_v44 }
 0x48a   : > { %v11693_v61 = vpop.permute.xlu0 %5486 }
 0x48b   : > { %v5490_v9 = vsel %vm457_vm1, %v11693_v61, %v11691_v6  ;;  %v5380_v6 = vstv %s11746_s7 }
 0x48d   : > { %v11695_v40 = vpop.permute.xlu1 %5511 }
 0x48e   : > { %v11697_v35 = vpop.permute.xlu0 %5509 }
 0x48f   : > { %v5513_v55 = vsel %vm457_vm1, %v11697_v35, %v11695_v40 }
 0x491   : > { %v11699_v2 = vpop.permute.xlu1 %5534 }
 0x492   : > { %v11701_v30 = vpop.permute.xlu0 %5532 }
 0x495   : > { %v11708_v58 = vpop.permute.xlu1 %5557 }
 0x496   : > { %v11710_v48 = vpop.permute.xlu0 %5555 }
 0x499   : > { %v11721_v62 = vpop.permute.xlu1 %5580 }
 0x49a   : > { %v11726_v26 = vpop.permute.xlu0 %5578 }
 0x49d   : > { %v5604_v1 = vpop.permute.xlu1 %5603 }
 0x49e   : > { %v5602_v29 = vpop.permute.xlu0 %5601 }
 0x49f   : > { %v5605_v0 = vsel %vm1305_vm14, %v5602_v29, %v5604_v1  ;;  %v5243_v29 = vadd.f32 %v5241_v16, %v11647_v23 }
 0x4a0   : > { %v5607_v15 = vadd.f32 %v5605_v0, %v5423_v45  ;;  %v5354_v45 = vsel %vm1862_vm13, %v5352_v59, %v5353_v22  ;;  %v5264_v0 = vsel %vm1305_vm14, %v11677_v32, %v11675_v24  ;;  %v5365_v22 = vsel %vm1862_vm13, %v5363_v43, %v5364_v11 }
 0x4a1   : > { %v5627_v36 = vpop.permute.xlu1 %5626  ;;  %v5356_v56 = vadd.f32 %v5354_v45, %v5220_v19  ;;  %v5382_v24 = vmul.f32 %v5380_v6, %v12445_v63  ;;  %v5536_v19 = vsel %vm457_vm1, %v11701_v30, %v11699_v2 }
 0x4a2   : > { %v5769_v33 = vmax.f32 %v5607_v15, 0.0  ;;  %v5625_v27 = vpop.permute.xlu0 %5624  ;;  %v5375_v15 = vrot.slane %v5371_v38, 2 }
 0x4a3   : > { %v5628_v31 = vsel %vm1305_vm14, %v5625_v27, %v5627_v36  ;;  %v5492_v4 = vadd.f32 %v5490_v9, %v5356_v56  ;;  %v5266_v36 = vadd.f32 %v5264_v0, %v11655_v47  ;;  %v5381_v27 = vmul.f32 %v5380_v6, %v12400_v37 }
 0x4a4   : > { %v5770_v3 = vmin.f32 %v5769_v33, 20.0  ;;  %v5630_v12 = vadd.f32 %v5628_v31, %v5446_v18  ;;  %v5367_v18 = vadd.f32 %v5365_v22, %v5243_v29  ;;  %v5287_v33 = vsel %vm1305_vm14, %v11681_v10, %v11679_v8 }
 0x4a5   : > { %v5650_v7 = vpop.permute.xlu1 %5649  ;;  %v5376_v35 = vsel %vm1862_vm13, %v5374_v14, %v5375_v15  ;;  %v5386_v41 = vrot.slane %v5382_v24, 2  ;;  %v5289_v10 = vadd.f32 %v5287_v33, %v11660_v60  ;;  %v5385_v50 = vrot.slane %v5381_v27, 2 }
 0x4a6   : > { %v5771_v46 = vsel %vm11757_vm15, %v5770_v3, 0.0  ;;  %v5773_v51 = vmax.f32 %v5630_v12, 0.0  ;;  %v5648_v1 = vpop.permute.xlu0 %5647  ;;  %v5515_v40 = vadd.f32 %v5513_v55, %v5367_v18  ;;  %v5393_v3 = vmul.f32 %v5391_v25, %v12445_v63 }
 0x4a7   : > { %5772 = vst [vmem:[%s11777_s16] sm:$0xff] %v5771_v46  ;;  %v5651_v20 = vsel %vm1305_vm14, %v5648_v1, %v5650_v7  ;;  %v5378_v12 = vadd.f32 %v5376_v35, %v5266_v36  ;;  %v5392_v7 = vmul.f32 %v5391_v25, %v12400_v37  ;;  %v5387_v46 = vsel %vm1862_vm13, %v5385_v50, %v5386_v41 }
 0x4a8   : > { %v5774_v34 = vmin.f32 %v5773_v51, 20.0  ;;  %v5653_v52 = vadd.f32 %v5651_v20, %v5469_v57  ;;  %v5559_v60 = vsel %vm457_vm1, %v11710_v48, %v11708_v58  ;;  %v5397_v51 = vrot.slane %v5393_v3, 2 }
 0x4a9   : > { %v5673_v61 = vpop.permute.xlu1 %5672  ;;  %v5538_v30 = vadd.f32 %v5536_v19, %v5378_v12  ;;  %v5312_v37 = vadd.f32 %v5310_v21, %v11665_v28  ;;  %v5389_v49 = vadd.f32 %v5387_v46, %v5289_v10  ;;  %v5396_v9 = vrot.slane %v5392_v7, 2 }
 0x4aa   : > { %v5775_v17 = vsel %vm11757_vm15, %v5774_v34, 0.0  ;;  %v5778_v5 = vmax.f32 %v5653_v52, 0.0  ;;  %v5671_v23 = vpop.permute.xlu0 %5670  ;;  %v5582_v48 = vsel %vm457_vm1, %v11726_v26, %v11721_v62 }
 0x4ab   : > { %6302 = vst [vmem:[%s11777_s16 + $0x8] sm:$0xff] %v5775_v17  ;;  %v5674_v32 = vsel %vm1305_vm14, %v5671_v23, %v5673_v61  ;;  %v5561_v20 = vadd.f32 %v5559_v60, %v5389_v49  ;;  %v5398_v58 = vsel %vm1862_vm13, %v5396_v9, %v5397_v51 }
 0x4ac   : > { %v5779_v39 = vmin.f32 %v5778_v5, 20.0  ;;  %v5676_v53 = vadd.f32 %v5674_v32, %v5492_v4  ;;  %v5400_v52 = vadd.f32 %v5398_v58, %v5312_v37 }
 0x4ad   : > { %v5696_v54 = vpop.permute.xlu1 %5695 }
 0x4ae   : > { %v5780_v13 = vsel %vm11757_vm15, %v5779_v39, 0.0  ;;  %v5783_v31 = vmax.f32 %v5676_v53, 0.0  ;;  %v5694_v47 = vpop.permute.xlu0 %5693  ;;  %v5584_v6 = vadd.f32 %v5582_v48, %v5400_v52 }
 0x4af   : > { %6303 = vst [vmem:[%s11777_s16 + $0x10] sm:$0xff] %v5780_v13  ;;  %v5697_v8 = vsel %vm1305_vm14, %v5694_v47, %v5696_v54 }
 0x4b0   : > { %v5784_v16 = vmin.f32 %v5783_v31, 20.0  ;;  %v5699_v59 = vadd.f32 %v5697_v8, %v5515_v40 }
 0x4b1   : > { %v5719_v2 = vpop.permute.xlu1 %5718 }
 0x4b2   : > { %v5785_v63 = vsel %vm11757_vm15, %v5784_v16, 0.0  ;;  %v5788_v57 = vmax.f32 %v5699_v59, 0.0  ;;  %v5717_v38 = vpop.permute.xlu0 %5716 }
 0x4b3   : > { %6304 = vst [vmem:[%s11777_s16 + $0x18] sm:$0xff] %v5785_v63  ;;  %v5720_v44 = vsel %vm1305_vm14, %v5717_v38, %v5719_v2 }
 0x4b4   : > { %v5789_v1 = vmin.f32 %v5788_v57, 20.0  ;;  %v5722_v45 = vadd.f32 %v5720_v44, %v5538_v30 }
 0x4b5   : > { %v5742_v11 = vpop.permute.xlu1 %5741 }
 0x4b6   : > { %v5790_v29 = vsel %vm11757_vm15, %v5789_v1, 0.0  ;;  %v5793_v56 = vmax.f32 %v5722_v45, 0.0  ;;  %v5740_v34 = vpop.permute.xlu0 %5739 }
 0x4b7   : > { %6305 = vst [vmem:[%s11777_s16 + $0x20] sm:$0xff] %v5790_v29  ;;  %v5743_v28 = vsel %vm1305_vm14, %v5740_v34, %v5742_v11 }
 0x4b8   : > { %v5794_v0 = vmin.f32 %v5793_v56, 20.0  ;;  %v5745_v43 = vadd.f32 %v5743_v28, %v5561_v20 }
 0x4b9   : > { %v5765_v14 = vpop.permute.xlu1 %5764 }
 0x4ba   : > { %v5795_v61 = vsel %vm11757_vm15, %v5794_v0, 0.0  ;;  %v5798_v4 = vmax.f32 %v5745_v43, 0.0  ;;  %v5763_v15 = vpop.permute.xlu0 %5762 }
 0x4bb   : > { %6306 = vst [vmem:[%s11777_s16 + $0x28] sm:$0xff] %v5795_v61  ;;  %v5766_v62 = vsel %vm1305_vm14, %v5763_v15, %v5765_v14 }
 0x4bc   : > { %v5799_v26 = vmin.f32 %v5798_v4, 20.0  ;;  %v5768_v17 = vadd.f32 %v5766_v62, %v5584_v6 }
 0x4be   : > { %v5800_v5 = vsel %vm11757_vm15, %v5799_v26, 0.0  ;;  %v5803_v23 = vmax.f32 %v5768_v17, 0.0 }
 0x4bf   : > { %6307 = vst [vmem:[%s11777_s16 + $0x30] sm:$0xff] %v5800_v5 }
 0x4c0   : > { %v5804_v22 = vmin.f32 %v5803_v23, 20.0 }
 0x4c2   : > { %v5805_v55 = vsel %vm11757_vm15, %v5804_v22, 0.0 }
 0x4c3   : > { %6308 = vst [vmem:[%s11777_s16 + $0x38] sm:$0xff] %v5805_v55 }
 0x4c4   : > { %6515 = shalt.err (!%p6512_p10)
}
 0x4c5   : > { %s6516_s26 = scalar_lea.hbm %s11844_s28, 1024  ;;  %s6520_s18 = scalar_lea.hbm %s12630_s27, 2048 }
 0x4c6   : > { %p6517_p12 = scmp.ne.s32.totalorder %s11844_s28, %s6516_s26  ;;  %p6521_p2 = scmp.lt.s32.totalorder %s11844_s28, %s12630_s27 }
 0x4c7   : > { %p6522_p3 = scmp.lt.s32.totalorder %s6520_s18, %s6516_s26 }
 0x4c8   : > { %p6518_p13 = pnand %p6517_p12, %p12631_p4 }
 0x4c9   : > { %p6523_p9 = por %p6522_p3, %p6521_p2 }
 0x4ca   : > { %p6519_p1 = pneg %p6518_p13 }
 0x4cc   : > { %p6524_p11 = pnand %p6523_p9, %p6519_p1 }
 0x4ce   : > { %6527 = shalt.err (!%p6524_p11)
}
 0x4cf   : > { %s6603_s10 = smov 128   ;;  %s6604_s11 = smov 8  }
 0x4d0   : > { %6332 = dma.vmem_to_hbm [thread:$0]  (%p12631_p4), %s11846_s8, 1024, %s11844_s28, %s11853_s12, %s6603_s10, %s6603_s10, %s6604_s11  }
 0x4d1 PF: > { %s12632_s14 = sld [smem:[#allocation23_spill]] }
 0x4d2   : > { %s12633_s2 = sld [smem:[#allocation19_spill]] }
 0x4d3   : > { %s12634_s5 = sld [smem:[#allocation26_spill]] }
 0x4d7   : > { %p6359_p5 = scmp.ge.s32.totalorder %s12632_s14, 2 }
 0x4d8   : > { %s5838_s6 = sand.u32 1, %s12633_s2  }
 0x4d9   : > { %p12635_p8 = scmp.ne.s32.totalorder %s12634_s5, 0  ;;  %s5839_s13 = scalar_lea.sflag [#allocation6], %s5838_s6 }
 0x4db   : > { %p6348_p0 = pnand %p6359_p5, %p12635_p8 }
 0x4dd   : > { %p6349_p6 = pneg %p6348_p0 }
 0x4df   : > { %6567 = dma.done.wait (%p6349_p6), %s5839_s13, 1024  }
 0x4e0   : > { %6569 = vsyncadd (%p6349_p6), %s5839_s13, 4294966272  ;;  %s33_s14 = sadd.s32 1, %s12632_s14   ;;  %s12636_s1 = sld [smem:[#allocation20_spill]] }
 0x4e1   : > { %p30_p7 = scmp.ge.s32.totalorder %s33_s14, 4   ;;  %s12637_s10 = sld [smem:[#allocation21_spill]] }
 0x4e2   : > { %s12638_s11 = sld [smem:[#allocation27_spill]] }
 0x4e3   : > { %s12639_s12 = sld [smem:[#allocation22_spill]]  ;;  %32 = sbr.rel (!%p30_p7) target bundleno = 35 (0x23), region = 102 }
 0x4e4   : > { %s12640_s13 = sld [smem:[#allocation24_spill]] }
 0x4e8   :  { %5844 = vsyncpa [#allocation6], 1 }
 0x4e9   :  { %5846 = vsyncpa [#allocation6 + $0x1], 1 }
 0x4ea   :  { %5847 = vsyncpa [#allocation7], 1 }
 0x4eb   :  { %5849 = vsyncpa [#allocation7 + $0x1], 1 }
 0x4ec   :  { %5850 = vsyncpa [#allocation9], 1 }
 0x4ed   :  { %5851 = vsyncpa [#allocation12], 1 }

</bundles_post_ra>
